<compile_context>
chip_gen: v7x
topology: tpu7x:2x2x1
jax: 0.10.0
libtpu: 0.0.40
codegen_flags: <defaults>
</compile_context>

<pallas_src>
import functools

import jax
import jax.numpy as jnp
from jax.experimental import pallas as pl
from jax.experimental.pallas import tpu as pltpu


def _pick_tile(dim, prefs):
    """Largest preferred tile that divides `dim`, else the full dim.

    A full-dim block is always legal (block dim == array dim), so no padding
    copies are ever needed for ragged dims like K=147 or N=64.
    """
    for t in prefs:
        if dim % t == 0:
            return t
    return dim


# --------------------------------------------------------------------------- #
# Fused matmul + epilogue (the hot path for every conv and the fc layer).
#   out = [relu]( (A @ B) * scale + bias [+ residual] )
#   A: [M, K] bf16, B: [K, N] bf16, scale/bias: [N] f32, residual: [M, N] f32.
# --------------------------------------------------------------------------- #
def _fused_matmul_kernel(*refs, relu, has_residual):
    if has_residual:
        a_ref, b_ref, s_ref, c_ref, r_ref, o_ref, acc_ref = refs
    else:
        a_ref, b_ref, s_ref, c_ref, o_ref, acc_ref = refs
        r_ref = None

    @pl.when(pl.program_id(2) == 0)
    def _():
        acc_ref[...] = jnp.zeros_like(acc_ref)

    acc_ref[...] += jnp.dot(a_ref[...], b_ref[...],
                            preferred_element_type=jnp.float32)

    @pl.when(pl.program_id(2) == pl.num_programs(2) - 1)
    def _():
        y = acc_ref[...] * s_ref[...] + c_ref[...]
        if r_ref is not None:
            y = y + r_ref[...]
        if relu:
            y = jnp.maximum(y, 0.0)
        o_ref[...] = y.astype(o_ref.dtype)


def fused_matmul(a, b, scale, bias, residual=None, relu=False):
    M, K = a.shape
    _, N = b.shape
    tm = _pick_tile(M, (256, 128, 64, 56, 32, 16, 8))
    tn = _pick_tile(N, (256, 128))
    tk = _pick_tile(K, (256, 128))

    s2 = scale.reshape(1, N).astype(jnp.float32)
    c2 = bias.reshape(1, N).astype(jnp.float32)

    in_specs = [
        pl.BlockSpec((tm, tk), lambda i, j, k: (i, k)),
        pl.BlockSpec((tk, tn), lambda i, j, k: (k, j)),
        pl.BlockSpec((1, tn), lambda i, j, k: (0, j)),
        pl.BlockSpec((1, tn), lambda i, j, k: (0, j)),
    ]
    args = [a.astype(jnp.bfloat16), b.astype(jnp.bfloat16), s2, c2]
    if residual is not None:
        in_specs.append(pl.BlockSpec((tm, tn), lambda i, j, k: (i, j)))
        args.append(residual.astype(jnp.float32))

    kernel = functools.partial(_fused_matmul_kernel, relu=relu,
                               has_residual=residual is not None)
    return pl.pallas_call(
        kernel,
        out_shape=jax.ShapeDtypeStruct((M, N), jnp.float32),
        grid_spec=pltpu.PrefetchScalarGridSpec(
            num_scalar_prefetch=0,
            grid=(M // tm, N // tn, K // tk),
            in_specs=in_specs,
            out_specs=pl.BlockSpec((tm, tn), lambda i, j, k: (i, j)),
            scratch_shapes=[pltpu.VMEM((tm, tn), jnp.float32)],
        ),
        compiler_params=pltpu.CompilerParams(
            dimension_semantics=("parallel", "parallel", "arbitrary")),
    )(*args)


# --------------------------------------------------------------------------- #
# Convolution = im2col (plain-JAX glue, bf16) + fused Pallas matmul epilogue.
# --------------------------------------------------------------------------- #
def _im2col_bf16(x_nhwc, kh, kw, stride, pad):
    """bf16 im2col patches [N*OH*OW, kh*kw*C] (cast folded into construction)."""
    # TODO(synk): patches are still materialized in HBM (in bf16); fully fusing
    # the (kh, kw) tap loop into the matmul K grid axis is not implemented.
    N, H, W, C = x_nhwc.shape
    xp = x_nhwc
    if pad:
        xp = jnp.pad(xp, ((0, 0), (pad, pad), (pad, pad), (0, 0)))
    xp = xp.astype(jnp.bfloat16)
    OH = (H + 2 * pad - kh) // stride + 1
    OW = (W + 2 * pad - kw) // stride + 1
    if kh == 1 and kw == 1 and stride == 1:
        return xp.reshape(N * OH * OW, C), OH, OW
    cols = [xp[:, i:i + stride * OH:stride, j:j + stride * OW:stride, :]
            for i in range(kh) for j in range(kw)]
    patches = jnp.concatenate(cols, axis=-1) if len(cols) > 1 else cols[0]
    return patches.reshape(N * OH * OW, kh * kw * C), OH, OW


def conv_bn(x_nhwc, w_oihw, bnp, stride, pad, relu, residual_nhwc=None,
            eps=1e-5):
    """Conv2d (no bias) + eval-mode BN (+ residual, + ReLU) in ONE Pallas call."""
    Cout, Cin, kh, kw = w_oihw.shape
    patches, OH, OW = _im2col_bf16(x_nhwc, kh, kw, stride, pad)
    wmat = jnp.transpose(w_oihw, (2, 3, 1, 0)).reshape(kh * kw * Cin, Cout)
    scale = bnp["gamma"] * jax.lax.rsqrt(bnp["var"] + eps)
    bias = bnp["beta"] - bnp["mean"] * scale
    r2d = None
    if residual_nhwc is not None:
        r2d = residual_nhwc.reshape(-1, Cout)
    y = fused_matmul(patches, wmat, scale, bias, residual=r2d, relu=relu)
    N = x_nhwc.shape[0]
    return y.reshape(N, OH, OW, Cout)


# --------------------------------------------------------------------------- #
# Max-pool 3x3 / stride 2 / pad 1 — parity decomposition, per-sample grid.
# ee[a,b]=xp[2a,2b], eo[a,b]=xp[2a,2b+1], oe[a,b]=xp[2a+1,2b], oo=xp[2a+1,2b+1]
# so every 3x3/stride-2 window is the max of 9 unit-offset reads.
# --------------------------------------------------------------------------- #
def _maxpool_kernel(ee_ref, eo_ref, oe_ref, oo_ref, o_ref):
    ee = ee_ref[0]              # [OH+1, OW+1, C]
    eo = eo_ref[0]              # [OH+1, OW,   C]
    oe = oe_ref[0]              # [OH,   OW+1, C]
    oo = oo_ref[0]              # [OH,   OW,   C]
    oh, ow = oo.shape[0], oo.shape[1]
    m = oo
    m = jnp.maximum(m, eo[:oh])
    m = jnp.maximum(m, eo[1:oh + 1])
    m = jnp.maximum(m, oe[:, :ow])
    m = jnp.maximum(m, oe[:, 1:ow + 1])
    m = jnp.maximum(m, ee[:oh, :ow])
    m = jnp.maximum(m, ee[:oh, 1:ow + 1])
    m = jnp.maximum(m, ee[1:oh + 1, :ow])
    m = jnp.maximum(m, ee[1:oh + 1, 1:ow + 1])
    o_ref[0] = m


def maxpool_3x3_s2(x_nhwc):
    N, H, W, C = x_nhwc.shape
    OH = (H + 2 - 3) // 2 + 1
    OW = (W + 2 - 3) // 2 + 1
    xp = jnp.pad(x_nhwc.astype(jnp.float32), ((0, 0), (1, 1), (1, 1), (0, 0)),
                 constant_values=-jnp.inf)
    ee = xp[:, 0:2 * OH + 1:2, 0:2 * OW + 1:2, :]
    eo = xp[:, 0:2 * OH + 1:2, 1:2 * OW:2, :]
    oe = xp[:, 1:2 * OH:2, 0:2 * OW + 1:2, :]
    oo = xp[:, 1:2 * OH:2, 1:2 * OW:2, :]

    def bs(h, w):
        return pl.BlockSpec((1, h, w, C), lambda n: (n, 0, 0, 0))

    return pl.pallas_call(
        _maxpool_kernel,
        out_shape=jax.ShapeDtypeStruct((N, OH, OW, C), jnp.float32),
        grid=(N,),
        in_specs=[bs(OH + 1, OW + 1), bs(OH + 1, OW), bs(OH, OW + 1),
                  bs(OH, OW)],
        out_specs=bs(OH, OW),
        compiler_params=pltpu.CompilerParams(
            dimension_semantics=("parallel",)),
    )(ee, eo, oe, oo)


# --------------------------------------------------------------------------- #
# Global average pool (tiny: [N, H*W, 512] -> [N, 512]).
# --------------------------------------------------------------------------- #
def _avgpool_kernel(x_ref, o_ref):
    o_ref[...] = jnp.mean(x_ref[...], axis=1)


def global_avgpool(x_nhwc):
    N, H, W, C = x_nhwc.shape
    x3 = x_nhwc.reshape(N, H * W, C).astype(jnp.float32)
    return pl.pallas_call(
        _avgpool_kernel,
        out_shape=jax.ShapeDtypeStruct((N, C), jnp.float32),
        grid=(1,),
        in_specs=[pl.BlockSpec((N, H * W, C), lambda i: (0, 0, 0))],
        out_specs=pl.BlockSpec((N, C), lambda i: (0, 0)),
    )(x3)


# --------------------------------------------------------------------------- #
# ResNet-18 structure (FishClassifier.base_model with fc -> out_dim).
# --------------------------------------------------------------------------- #
def basic_block(x, p, stride):
    out = conv_bn(x, p["conv1"], p["bn1"], stride, 1, relu=True)
    if "down_conv" in p:
        identity = conv_bn(x, p["down_conv"], p["down_bn"], stride, 0,
                           relu=False)
    else:
        identity = x
    # conv2 + bn2 + residual add + relu: all fused into one Pallas matmul.
    return conv_bn(out, p["conv2"], p["bn2"], 1, 1, relu=True,
                   residual_nhwc=identity)


def fish_classifier_forward(params, x_nchw):
    # NCHW (PyTorch) -> NHWC (kernel layout: channels on the 128-lane axis).
    x = jnp.transpose(x_nchw, (0, 2, 3, 1)).astype(jnp.float32)
    x = conv_bn(x, params["conv1"], params["bn1"], stride=2, pad=3, relu=True)
    x = maxpool_3x3_s2(x)
    for li, stride in enumerate([1, 2, 2, 2]):
        for bi, bp in enumerate(params[f"layer{li + 1}"]):
            x = basic_block(x, bp, stride if bi == 0 else 1)
    pooled = global_avgpool(x)                                # [N, 512]
    out_dim = params["fc_b"].shape[0]
    # fc: bias folded into the matmul epilogue (scale = 1, no relu).
    logits = fused_matmul(pooled, params["fc_w"].T,
                          jnp.ones((out_dim,), jnp.float32), params["fc_b"],
                          relu=False)
    return logits


# --------------------------------------------------------------------------- #
# Deterministic parameter init (shapes match torchvision resnet18 + new fc).
# --------------------------------------------------------------------------- #
def init_params(key, out_dim):
    keys = iter(jax.random.split(key, 256))

    def conv(cout, cin, k):
        return 0.05 * jax.random.normal(next(keys), (cout, cin, k, k),
                                        jnp.float32)

    def bn(c):
        return dict(
            gamma=1.0 + 0.1 * jax.random.normal(next(keys), (c,), jnp.float32),
            beta=0.1 * jax.random.normal(next(keys), (c,), jnp.float32),
            mean=0.1 * jax.random.normal(next(keys), (c,), jnp.float32),
            var=0.5 + jnp.abs(jax.random.normal(next(keys), (c,), jnp.float32)),
        )

    def block(cin, cout, downsample):
        p = dict(conv1=conv(cout, cin, 3), bn1=bn(cout),
                 conv2=conv(cout, cout, 3), bn2=bn(cout))
        if downsample:
            p["down_conv"] = conv(cout, cin, 1)
            p["down_bn"] = bn(cout)
        return p

    params = dict(conv1=conv(64, 3, 7), bn1=bn(64))
    widths = [(64, 64), (64, 128), (128, 256), (256, 512)]
    for li, (cin, cout) in enumerate(widths):
        params[f"layer{li + 1}"] = [
            block(cin, cout, downsample=(cin != cout)),
            block(cout, cout, downsample=False),
        ]
    params["fc_w"] = 0.05 * jax.random.normal(next(keys), (out_dim, 512),
                                              jnp.float32)
    params["fc_b"] = 0.1 * jax.random.normal(next(keys), (out_dim,),
                                             jnp.float32)
    return params


# TODO(synk): training-mode BatchNorm (batch statistics + running-stat updates)
# is not implemented; kernels reproduce eval/inference-mode forward semantics.

if __name__ == "__main__":
    key = jax.random.PRNGKey(0)
    k_param, k_data = jax.random.split(key)
    out_dim = 5
    params = init_params(k_param, out_dim)
    x = jax.random.normal(k_data, (2, 3, 32, 32), jnp.float32)  # NCHW input

    fwd = jax.jit(fish_classifier_forward)
    logits = jax.block_until_ready(fwd(params, x))

    assert logits.shape == (2, out_dim)
    assert bool(jnp.all(jnp.isfinite(logits)))
    print("KERNEL_OK")
</pallas_src>

<mosaic_0001>
module attributes {stable_mosaic.version = 11 : i64} {
  func.func @_fused_matmul_kernel(%arg0: i32, %arg1: i32, %arg2: i32, %arg3: memref<256x147xbf16, #tpu.memory_space<vmem>>, %arg4: memref<147x64xbf16, #tpu.memory_space<vmem>>, %arg5: memref<1x64xf32, #tpu.memory_space<vmem>>, %arg6: memref<1x64xf32, #tpu.memory_space<vmem>>, %arg7: memref<256x64xf32, #tpu.memory_space<vmem>>, %arg8: memref<256x64xf32, #tpu.memory_space<vmem>>) attributes {dimension_semantics = [#tpu.dimension_semantics<parallel>, #tpu.dimension_semantics<parallel>, #tpu.dimension_semantics<arbitrary>], iteration_bounds = array<i64: 2, 1, 1>, scalar_prefetch = 0 : i64, scratch_operands = 1 : i64, tpu.core_type = #tpu.core_type<tc>, window_params = [{transform_indices = @transform_0, window_bounds = array<i64: 256, 147>}, {transform_indices = @transform_1, window_bounds = array<i64: 147, 64>}, {transform_indices = @transform_2, window_bounds = array<i64: 1, 64>}, {transform_indices = @transform_3, window_bounds = array<i64: 1, 64>}, {transform_indices = @transform_4, window_bounds = array<i64: 256, 64>}]} {
    %c0_i32 = arith.constant 0 : i32
    %0 = arith.cmpi eq, %arg2, %c0_i32 : i32
    %1 = arith.extui %0 : i1 to i32
    %c0_i32_0 = arith.constant 0 : i32
    %2 = arith.cmpi ne, %1, %c0_i32_0 : i32
    scf.if %2 {
      %cst_10 = arith.constant 0.000000e+00 : f32
      %12 = vector.broadcast %cst_10 : f32 to vector<256x64xf32>
      %c0_11 = arith.constant 0 : index
      %c0_12 = arith.constant 0 : index
      %13 = vector.load %arg8[%c0_11, %c0_12] : memref<256x64xf32, #tpu.memory_space<vmem>>, vector<256x64xf32>
      tpu.vector_store %arg8[%c0_11, %c0_12], %12 {strides = array<i32>} : memref<256x64xf32, #tpu.memory_space<vmem>>, vector<256x64xf32>,
    } else {
    }
    %c0 = arith.constant 0 : index
    %c0_1 = arith.constant 0 : index
    %3 = vector.load %arg8[%c0, %c0_1] : memref<256x64xf32, #tpu.memory_space<vmem>>, vector<256x64xf32>
    %c0_2 = arith.constant 0 : index
    %c0_3 = arith.constant 0 : index
    %4 = vector.load %arg3[%c0_2, %c0_3] : memref<256x147xbf16, #tpu.memory_space<vmem>>, vector<256x147xbf16>
    %c0_4 = arith.constant 0 : index
    %c0_5 = arith.constant 0 : index
    %5 = vector.load %arg4[%c0_4, %c0_5] : memref<147x64xbf16, #tpu.memory_space<vmem>>, vector<147x64xbf16>
    %cst = arith.constant dense<0.000000e+00> : vector<256x64xf32>
    %6 = tpu.matmul %4, %5, %cst {dimension_numbers = #tpu.dot_dimension_numbers<[1], [0], [0], [1], [0, 0, 1, 1], [], []>} : vector<256x147xbf16>, vector<147x64xbf16>, vector<256x64xf32> -> vector<256x64xf32>
    %7 = arith.addf %3, %6 : vector<256x64xf32>
    %c0_6 = arith.constant 0 : index
    %c0_7 = arith.constant 0 : index
    %8 = vector.load %arg8[%c0_6, %c0_7] : memref<256x64xf32, #tpu.memory_space<vmem>>, vector<256x64xf32>
    tpu.vector_store %arg8[%c0_6, %c0_7], %7 {strides = array<i32>} : memref<256x64xf32, #tpu.memory_space<vmem>>, vector<256x64xf32>,
    %c0_i32_8 = arith.constant 0 : i32
    %9 = arith.cmpi eq, %arg2, %c0_i32_8 : i32
    %10 = arith.extui %9 : i1 to i32
    %c0_i32_9 = arith.constant 0 : i32
    %11 = arith.cmpi ne, %10, %c0_i32_9 : i32
    scf.if %11 {
      %c0_10 = arith.constant 0 : index
      %c0_11 = arith.constant 0 : index
      %12 = vector.load %arg8[%c0_10, %c0_11] : memref<256x64xf32, #tpu.memory_space<vmem>>, vector<256x64xf32>
      %c0_12 = arith.constant 0 : index
      %c0_13 = arith.constant 0 : index
      %13 = vector.load %arg5[%c0_12, %c0_13] : memref<1x64xf32, #tpu.memory_space<vmem>>, vector<1x64xf32>
      %14 = vector.broadcast %13 : vector<1x64xf32> to vector<256x64xf32>
      %15 = arith.mulf %12, %14 : vector<256x64xf32>
      %c0_14 = arith.constant 0 : index
      %c0_15 = arith.constant 0 : index
      %16 = vector.load %arg6[%c0_14, %c0_15] : memref<1x64xf32, #tpu.memory_space<vmem>>, vector<1x64xf32>
      %17 = vector.broadcast %16 : vector<1x64xf32> to vector<256x64xf32>
      %18 = arith.addf %15, %17 : vector<256x64xf32>
      %cst_16 = arith.constant 0.000000e+00 : f32
      %19 = vector.broadcast %cst_16 : f32 to vector<256x64xf32>
      %20 = arith.maximumf %18, %19 : vector<256x64xf32>
      %c0_17 = arith.constant 0 : index
      %c0_18 = arith.constant 0 : index
      %21 = vector.load %arg7[%c0_17, %c0_18] : memref<256x64xf32, #tpu.memory_space<vmem>>, vector<256x64xf32>
      tpu.vector_store %arg7[%c0_17, %c0_18], %20 {strides = array<i32>} : memref<256x64xf32, #tpu.memory_space<vmem>>, vector<256x64xf32>,
    } else {
    }
    return
  }
  func.func @transform_0(%arg0: i32, %arg1: i32, %arg2: i32) -> (i32, i32) {
    %c0_i32 = arith.constant 0 : i32
    return %arg0, %arg2 : i32, i32
  }
  func.func @transform_1(%arg0: i32, %arg1: i32, %arg2: i32) -> (i32, i32) {
    %c0_i32 = arith.constant 0 : i32
    return %arg2, %arg1 : i32, i32
  }
  func.func @transform_2(%arg0: i32, %arg1: i32, %arg2: i32) -> (i32, i32) {
    %c0_i32 = arith.constant 0 : i32
    %c0_i32_0 = arith.constant 0 : i32
    return %c0_i32, %arg1 : i32, i32
  }
  func.func @transform_3(%arg0: i32, %arg1: i32, %arg2: i32) -> (i32, i32) {
    %c0_i32 = arith.constant 0 : i32
    %c0_i32_0 = arith.constant 0 : i32
    return %c0_i32, %arg1 : i32, i32
  }
  func.func @transform_4(%arg0: i32, %arg1: i32, %arg2: i32) -> (i32, i32) {
    %c0_i32 = arith.constant 0 : i32
    return %arg0, %arg1 : i32, i32
  }
}

module attributes {stable_mosaic.version = 11 : i64} {
  func.func @_maxpool_kernel(%arg0: i32, %arg1: memref<1x9x9x64xf32, #tpu.memory_space<vmem>>, %arg2: memref<1x9x8x64xf32, #tpu.memory_space<vmem>>, %arg3: memref<1x8x9x64xf32, #tpu.memory_space<vmem>>, %arg4: memref<1x8x8x64xf32, #tpu.memory_space<vmem>>, %arg5: memref<1x8x8x64xf32, #tpu.memory_space<vmem>>) attributes {dimension_semantics = [#tpu.dimension_semantics<parallel>], iteration_bounds = array<i64: 2>, scalar_prefetch = 0 : i64, scratch_operands = 0 : i64, tpu.core_type = #tpu.core_type<tc>, window_params = [{transform_indices = @transform_0, window_bounds = array<i64: 1, 9, 9, 64>}, {transform_indices = @transform_1, window_bounds = array<i64: 1, 9, 8, 64>}, {transform_indices = @transform_2, window_bounds = array<i64: 1, 8, 9, 64>}, {transform_indices = @transform_3, window_bounds = array<i64: 1, 8, 8, 64>}, {transform_indices = @transform_4, window_bounds = array<i64: 1, 8, 8, 64>}]} {
    %c0 = arith.constant 0 : index
    %c0_0 = arith.constant 0 : index
    %c0_1 = arith.constant 0 : index
    %c0_2 = arith.constant 0 : index
    %0 = vector.load %arg1[%c0, %c0_0, %c0_1, %c0_2] : memref<1x9x9x64xf32, #tpu.memory_space<vmem>>, vector<1x9x9x64xf32>
    %1 = vector.shape_cast %0 : vector<1x9x9x64xf32> to vector<9x9x64xf32>
    %c0_3 = arith.constant 0 : index
    %c0_4 = arith.constant 0 : index
    %c0_5 = arith.constant 0 : index
    %c0_6 = arith.constant 0 : index
    %2 = vector.load %arg2[%c0_3, %c0_4, %c0_5, %c0_6] : memref<1x9x8x64xf32, #tpu.memory_space<vmem>>, vector<1x9x8x64xf32>
    %3 = vector.shape_cast %2 : vector<1x9x8x64xf32> to vector<9x8x64xf32>
    %c0_7 = arith.constant 0 : index
    %c0_8 = arith.constant 0 : index
    %c0_9 = arith.constant 0 : index
    %c0_10 = arith.constant 0 : index
    %4 = vector.load %arg3[%c0_7, %c0_8, %c0_9, %c0_10] : memref<1x8x9x64xf32, #tpu.memory_space<vmem>>, vector<1x8x9x64xf32>
    %5 = vector.shape_cast %4 : vector<1x8x9x64xf32> to vector<8x9x64xf32>
    %c0_11 = arith.constant 0 : index
    %c0_12 = arith.constant 0 : index
    %c0_13 = arith.constant 0 : index
    %c0_14 = arith.constant 0 : index
    %6 = vector.load %arg4[%c0_11, %c0_12, %c0_13, %c0_14] : memref<1x8x8x64xf32, #tpu.memory_space<vmem>>, vector<1x8x8x64xf32>
    %7 = vector.shape_cast %6 : vector<1x8x8x64xf32> to vector<8x8x64xf32>
    %8 = vector.extract_strided_slice %3 {offsets = [0, 0, 0], sizes = [8, 8, 64], strides = [1, 1, 1]} : vector<9x8x64xf32> to vector<8x8x64xf32>
    %9 = arith.maximumf %7, %8 : vector<8x8x64xf32>
    %10 = vector.extract_strided_slice %3 {offsets = [1, 0, 0], sizes = [8, 8, 64], strides = [1, 1, 1]} : vector<9x8x64xf32> to vector<8x8x64xf32>
    %11 = arith.maximumf %9, %10 : vector<8x8x64xf32>
    %12 = vector.extract_strided_slice %5 {offsets = [0, 0, 0], sizes = [8, 8, 64], strides = [1, 1, 1]} : vector<8x9x64xf32> to vector<8x8x64xf32>
    %13 = arith.maximumf %11, %12 : vector<8x8x64xf32>
    %14 = vector.extract_strided_slice %5 {offsets = [0, 1, 0], sizes = [8, 8, 64], strides = [1, 1, 1]} : vector<8x9x64xf32> to vector<8x8x64xf32>
    %15 = arith.maximumf %13, %14 : vector<8x8x64xf32>
    %16 = vector.extract_strided_slice %1 {offsets = [0, 0, 0], sizes = [8, 8, 64], strides = [1, 1, 1]} : vector<9x9x64xf32> to vector<8x8x64xf32>
    %17 = arith.maximumf %15, %16 : vector<8x8x64xf32>
    %18 = vector.extract_strided_slice %1 {offsets = [0, 1, 0], sizes = [8, 8, 64], strides = [1, 1, 1]} : vector<9x9x64xf32> to vector<8x8x64xf32>
    %19 = arith.maximumf %17, %18 : vector<8x8x64xf32>
    %20 = vector.extract_strided_slice %1 {offsets = [1, 0, 0], sizes = [8, 8, 64], strides = [1, 1, 1]} : vector<9x9x64xf32> to vector<8x8x64xf32>
    %21 = arith.maximumf %19, %20 : vector<8x8x64xf32>
    %22 = vector.extract_strided_slice %1 {offsets = [1, 1, 0], sizes = [8, 8, 64], strides = [1, 1, 1]} : vector<9x9x64xf32> to vector<8x8x64xf32>
    %23 = arith.maximumf %21, %22 : vector<8x8x64xf32>
    %c0_15 = arith.constant 0 : index
    %c0_16 = arith.constant 0 : index
    %c0_17 = arith.constant 0 : index
    %c0_18 = arith.constant 0 : index
    %24 = vector.load %arg5[%c0_15, %c0_16, %c0_17, %c0_18] : memref<1x8x8x64xf32, #tpu.memory_space<vmem>>, vector<1x8x8x64xf32>
    %25 = vector.shape_cast %24 : vector<1x8x8x64xf32> to vector<8x8x64xf32>
    %26 = vector.shape_cast %23 : vector<8x8x64xf32> to vector<1x8x8x64xf32>
    tpu.vector_store %arg5[%c0_15, %c0_16, %c0_17, %c0_18], %26 {strides = array<i32>} : memref<1x8x8x64xf32, #tpu.memory_space<vmem>>, vector<1x8x8x64xf32>,
    return
  }
  func.func @transform_0(%arg0: i32) -> (i32, i32, i32, i32) {
    %c0_i32 = arith.constant 0 : i32
    %c0_i32_0 = arith.constant 0 : i32
    %c0_i32_1 = arith.constant 0 : i32
    %c0_i32_2 = arith.constant 0 : i32
    return %arg0, %c0_i32, %c0_i32_0, %c0_i32_1 : i32, i32, i32, i32
  }
  func.func @transform_1(%arg0: i32) -> (i32, i32, i32, i32) {
    %c0_i32 = arith.constant 0 : i32
    %c0_i32_0 = arith.constant 0 : i32
    %c0_i32_1 = arith.constant 0 : i32
    %c0_i32_2 = arith.constant 0 : i32
    return %arg0, %c0_i32, %c0_i32_0, %c0_i32_1 : i32, i32, i32, i32
  }
  func.func @transform_2(%arg0: i32) -> (i32, i32, i32, i32) {
    %c0_i32 = arith.constant 0 : i32
    %c0_i32_0 = arith.constant 0 : i32
    %c0_i32_1 = arith.constant 0 : i32
    %c0_i32_2 = arith.constant 0 : i32
    return %arg0, %c0_i32, %c0_i32_0, %c0_i32_1 : i32, i32, i32, i32
  }
  func.func @transform_3(%arg0: i32) -> (i32, i32, i32, i32) {
    %c0_i32 = arith.constant 0 : i32
    %c0_i32_0 = arith.constant 0 : i32
    %c0_i32_1 = arith.constant 0 : i32
    %c0_i32_2 = arith.constant 0 : i32
    return %arg0, %c0_i32, %c0_i32_0, %c0_i32_1 : i32, i32, i32, i32
  }
  func.func @transform_4(%arg0: i32) -> (i32, i32, i32, i32) {
    %c0_i32 = arith.constant 0 : i32
    %c0_i32_0 = arith.constant 0 : i32
    %c0_i32_1 = arith.constant 0 : i32
    %c0_i32_2 = arith.constant 0 : i32
    return %arg0, %c0_i32, %c0_i32_0, %c0_i32_1 : i32, i32, i32, i32
  }
}

module attributes {stable_mosaic.version = 11 : i64} {
  func.func @_fused_matmul_kernel(%arg0: i32, %arg1: i32, %arg2: i32, %arg3: memref<128x576xbf16, #tpu.memory_space<vmem>>, %arg4: memref<576x64xbf16, #tpu.memory_space<vmem>>, %arg5: memref<1x64xf32, #tpu.memory_space<vmem>>, %arg6: memref<1x64xf32, #tpu.memory_space<vmem>>, %arg7: memref<128x64xf32, #tpu.memory_space<vmem>>, %arg8: memref<128x64xf32, #tpu.memory_space<vmem>>) attributes {dimension_semantics = [#tpu.dimension_semantics<parallel>, #tpu.dimension_semantics<parallel>, #tpu.dimension_semantics<arbitrary>], iteration_bounds = array<i64: 1, 1, 1>, scalar_prefetch = 0 : i64, scratch_operands = 1 : i64, tpu.core_type = #tpu.core_type<tc>, window_params = [{transform_indices = @transform_0, window_bounds = array<i64: 128, 576>}, {transform_indices = @transform_1, window_bounds = array<i64: 576, 64>}, {transform_indices = @transform_2, window_bounds = array<i64: 1, 64>}, {transform_indices = @transform_3, window_bounds = array<i64: 1, 64>}, {transform_indices = @transform_4, window_bounds = array<i64: 128, 64>}]} {
    %c0_i32 = arith.constant 0 : i32
    %0 = arith.cmpi eq, %arg2, %c0_i32 : i32
    %1 = arith.extui %0 : i1 to i32
    %c0_i32_0 = arith.constant 0 : i32
    %2 = arith.cmpi ne, %1, %c0_i32_0 : i32
    scf.if %2 {
      %cst_10 = arith.constant 0.000000e+00 : f32
      %12 = vector.broadcast %cst_10 : f32 to vector<128x64xf32>
      %c0_11 = arith.constant 0 : index
      %c0_12 = arith.constant 0 : index
      %13 = vector.load %arg8[%c0_11, %c0_12] : memref<128x64xf32, #tpu.memory_space<vmem>>, vector<128x64xf32>
      tpu.vector_store %arg8[%c0_11, %c0_12], %12 {strides = array<i32>} : memref<128x64xf32, #tpu.memory_space<vmem>>, vector<128x64xf32>,
    } else {
    }
    %c0 = arith.constant 0 : index
    %c0_1 = arith.constant 0 : index
    %3 = vector.load %arg8[%c0, %c0_1] : memref<128x64xf32, #tpu.memory_space<vmem>>, vector<128x64xf32>
    %c0_2 = arith.constant 0 : index
    %c0_3 = arith.constant 0 : index
    %4 = vector.load %arg3[%c0_2, %c0_3] : memref<128x576xbf16, #tpu.memory_space<vmem>>, vector<128x576xbf16>
    %c0_4 = arith.constant 0 : index
    %c0_5 = arith.constant 0 : index
    %5 = vector.load %arg4[%c0_4, %c0_5] : memref<576x64xbf16, #tpu.memory_space<vmem>>, vector<576x64xbf16>
    %cst = arith.constant dense<0.000000e+00> : vector<128x64xf32>
    %6 = tpu.matmul %4, %5, %cst {dimension_numbers = #tpu.dot_dimension_numbers<[1], [0], [0], [1], [0, 0, 1, 1], [], []>} : vector<128x576xbf16>, vector<576x64xbf16>, vector<128x64xf32> -> vector<128x64xf32>
    %7 = arith.addf %3, %6 : vector<128x64xf32>
    %c0_6 = arith.constant 0 : index
    %c0_7 = arith.constant 0 : index
    %8 = vector.load %arg8[%c0_6, %c0_7] : memref<128x64xf32, #tpu.memory_space<vmem>>, vector<128x64xf32>
    tpu.vector_store %arg8[%c0_6, %c0_7], %7 {strides = array<i32>} : memref<128x64xf32, #tpu.memory_space<vmem>>, vector<128x64xf32>,
    %c0_i32_8 = arith.constant 0 : i32
    %9 = arith.cmpi eq, %arg2, %c0_i32_8 : i32
    %10 = arith.extui %9 : i1 to i32
    %c0_i32_9 = arith.constant 0 : i32
    %11 = arith.cmpi ne, %10, %c0_i32_9 : i32
    scf.if %11 {
      %c0_10 = arith.constant 0 : index
      %c0_11 = arith.constant 0 : index
      %12 = vector.load %arg8[%c0_10, %c0_11] : memref<128x64xf32, #tpu.memory_space<vmem>>, vector<128x64xf32>
      %c0_12 = arith.constant 0 : index
      %c0_13 = arith.constant 0 : index
      %13 = vector.load %arg5[%c0_12, %c0_13] : memref<1x64xf32, #tpu.memory_space<vmem>>, vector<1x64xf32>
      %14 = vector.broadcast %13 : vector<1x64xf32> to vector<128x64xf32>
      %15 = arith.mulf %12, %14 : vector<128x64xf32>
      %c0_14 = arith.constant 0 : index
      %c0_15 = arith.constant 0 : index
      %16 = vector.load %arg6[%c0_14, %c0_15] : memref<1x64xf32, #tpu.memory_space<vmem>>, vector<1x64xf32>
      %17 = vector.broadcast %16 : vector<1x64xf32> to vector<128x64xf32>
      %18 = arith.addf %15, %17 : vector<128x64xf32>
      %cst_16 = arith.constant 0.000000e+00 : f32
      %19 = vector.broadcast %cst_16 : f32 to vector<128x64xf32>
      %20 = arith.maximumf %18, %19 : vector<128x64xf32>
      %c0_17 = arith.constant 0 : index
      %c0_18 = arith.constant 0 : index
      %21 = vector.load %arg7[%c0_17, %c0_18] : memref<128x64xf32, #tpu.memory_space<vmem>>, vector<128x64xf32>
      tpu.vector_store %arg7[%c0_17, %c0_18], %20 {strides = array<i32>} : memref<128x64xf32, #tpu.memory_space<vmem>>, vector<128x64xf32>,
    } else {
    }
    return
  }
  func.func @transform_0(%arg0: i32, %arg1: i32, %arg2: i32) -> (i32, i32) {
    %c0_i32 = arith.constant 0 : i32
    return %arg0, %arg2 : i32, i32
  }
  func.func @transform_1(%arg0: i32, %arg1: i32, %arg2: i32) -> (i32, i32) {
    %c0_i32 = arith.constant 0 : i32
    return %arg2, %arg1 : i32, i32
  }
  func.func @transform_2(%arg0: i32, %arg1: i32, %arg2: i32) -> (i32, i32) {
    %c0_i32 = arith.constant 0 : i32
    %c0_i32_0 = arith.constant 0 : i32
    return %c0_i32, %arg1 : i32, i32
  }
  func.func @transform_3(%arg0: i32, %arg1: i32, %arg2: i32) -> (i32, i32) {
    %c0_i32 = arith.constant 0 : i32
    %c0_i32_0 = arith.constant 0 : i32
    return %c0_i32, %arg1 : i32, i32
  }
  func.func @transform_4(%arg0: i32, %arg1: i32, %arg2: i32) -> (i32, i32) {
    %c0_i32 = arith.constant 0 : i32
    return %arg0, %arg1 : i32, i32
  }
}

module attributes {stable_mosaic.version = 11 : i64} {
  func.func @_fused_matmul_kernel(%arg0: i32, %arg1: i32, %arg2: i32, %arg3: memref<128x576xbf16, #tpu.memory_space<vmem>>, %arg4: memref<576x64xbf16, #tpu.memory_space<vmem>>, %arg5: memref<1x64xf32, #tpu.memory_space<vmem>>, %arg6: memref<1x64xf32, #tpu.memory_space<vmem>>, %arg7: memref<128x64xf32, #tpu.memory_space<vmem>>, %arg8: memref<128x64xf32, #tpu.memory_space<vmem>>, %arg9: memref<128x64xf32, #tpu.memory_space<vmem>>) attributes {dimension_semantics = [#tpu.dimension_semantics<parallel>, #tpu.dimension_semantics<parallel>, #tpu.dimension_semantics<arbitrary>], iteration_bounds = array<i64: 1, 1, 1>, scalar_prefetch = 0 : i64, scratch_operands = 1 : i64, tpu.core_type = #tpu.core_type<tc>, window_params = [{transform_indices = @transform_0, window_bounds = array<i64: 128, 576>}, {transform_indices = @transform_1, window_bounds = array<i64: 576, 64>}, {transform_indices = @transform_2, window_bounds = array<i64: 1, 64>}, {transform_indices = @transform_3, window_bounds = array<i64: 1, 64>}, {transform_indices = @transform_4, window_bounds = array<i64: 128, 64>}, {transform_indices = @transform_5, window_bounds = array<i64: 128, 64>}]} {
    %c0_i32 = arith.constant 0 : i32
    %0 = arith.cmpi eq, %arg2, %c0_i32 : i32
    %1 = arith.extui %0 : i1 to i32
    %c0_i32_0 = arith.constant 0 : i32
    %2 = arith.cmpi ne, %1, %c0_i32_0 : i32
    scf.if %2 {
      %cst_10 = arith.constant 0.000000e+00 : f32
      %12 = vector.broadcast %cst_10 : f32 to vector<128x64xf32>
      %c0_11 = arith.constant 0 : index
      %c0_12 = arith.constant 0 : index
      %13 = vector.load %arg9[%c0_11, %c0_12] : memref<128x64xf32, #tpu.memory_space<vmem>>, vector<128x64xf32>
      tpu.vector_store %arg9[%c0_11, %c0_12], %12 {strides = array<i32>} : memref<128x64xf32, #tpu.memory_space<vmem>>, vector<128x64xf32>,
    } else {
    }
    %c0 = arith.constant 0 : index
    %c0_1 = arith.constant 0 : index
    %3 = vector.load %arg9[%c0, %c0_1] : memref<128x64xf32, #tpu.memory_space<vmem>>, vector<128x64xf32>
    %c0_2 = arith.constant 0 : index
    %c0_3 = arith.constant 0 : index
    %4 = vector.load %arg3[%c0_2, %c0_3] : memref<128x576xbf16, #tpu.memory_space<vmem>>, vector<128x576xbf16>
    %c0_4 = arith.constant 0 : index
    %c0_5 = arith.constant 0 : index
    %5 = vector.load %arg4[%c0_4, %c0_5] : memref<576x64xbf16, #tpu.memory_space<vmem>>, vector<576x64xbf16>
    %cst = arith.constant dense<0.000000e+00> : vector<128x64xf32>
    %6 = tpu.matmul %4, %5, %cst {dimension_numbers = #tpu.dot_dimension_numbers<[1], [0], [0], [1], [0, 0, 1, 1], [], []>} : vector<128x576xbf16>, vector<576x64xbf16>, vector<128x64xf32> -> vector<128x64xf32>
    %7 = arith.addf %3, %6 : vector<128x64xf32>
    %c0_6 = arith.constant 0 : index
    %c0_7 = arith.constant 0 : index
    %8 = vector.load %arg9[%c0_6, %c0_7] : memref<128x64xf32, #tpu.memory_space<vmem>>, vector<128x64xf32>
    tpu.vector_store %arg9[%c0_6, %c0_7], %7 {strides = array<i32>} : memref<128x64xf32, #tpu.memory_space<vmem>>, vector<128x64xf32>,
    %c0_i32_8 = arith.constant 0 : i32
    %9 = arith.cmpi eq, %arg2, %c0_i32_8 : i32
    %10 = arith.extui %9 : i1 to i32
    %c0_i32_9 = arith.constant 0 : i32
    %11 = arith.cmpi ne, %10, %c0_i32_9 : i32
    scf.if %11 {
      %c0_10 = arith.constant 0 : index
      %c0_11 = arith.constant 0 : index
      %12 = vector.load %arg9[%c0_10, %c0_11] : memref<128x64xf32, #tpu.memory_space<vmem>>, vector<128x64xf32>
      %c0_12 = arith.constant 0 : index
      %c0_13 = arith.constant 0 : index
      %13 = vector.load %arg5[%c0_12, %c0_13] : memref<1x64xf32, #tpu.memory_space<vmem>>, vector<1x64xf32>
      %14 = vector.broadcast %13 : vector<1x64xf32> to vector<128x64xf32>
      %15 = arith.mulf %12, %14 : vector<128x64xf32>
      %c0_14 = arith.constant 0 : index
      %c0_15 = arith.constant 0 : index
      %16 = vector.load %arg6[%c0_14, %c0_15] : memref<1x64xf32, #tpu.memory_space<vmem>>, vector<1x64xf32>
      %17 = vector.broadcast %16 : vector<1x64xf32> to vector<128x64xf32>
      %18 = arith.addf %15, %17 : vector<128x64xf32>
      %c0_16 = arith.constant 0 : index
      %c0_17 = arith.constant 0 : index
      %19 = vector.load %arg7[%c0_16, %c0_17] : memref<128x64xf32, #tpu.memory_space<vmem>>, vector<128x64xf32>
      %20 = arith.addf %18, %19 : vector<128x64xf32>
      %cst_18 = arith.constant 0.000000e+00 : f32
      %21 = vector.broadcast %cst_18 : f32 to vector<128x64xf32>
      %22 = arith.maximumf %20, %21 : vector<128x64xf32>
      %c0_19 = arith.constant 0 : index
      %c0_20 = arith.constant 0 : index
      %23 = vector.load %arg8[%c0_19, %c0_20] : memref<128x64xf32, #tpu.memory_space<vmem>>, vector<128x64xf32>
      tpu.vector_store %arg8[%c0_19, %c0_20], %22 {strides = array<i32>} : memref<128x64xf32, #tpu.memory_space<vmem>>, vector<128x64xf32>,
    } else {
    }
    return
  }
  func.func @transform_0(%arg0: i32, %arg1: i32, %arg2: i32) -> (i32, i32) {
    %c0_i32 = arith.constant 0 : i32
    return %arg0, %arg2 : i32, i32
  }
  func.func @transform_1(%arg0: i32, %arg1: i32, %arg2: i32) -> (i32, i32) {
    %c0_i32 = arith.constant 0 : i32
    return %arg2, %arg1 : i32, i32
  }
  func.func @transform_2(%arg0: i32, %arg1: i32, %arg2: i32) -> (i32, i32) {
    %c0_i32 = arith.constant 0 : i32
    %c0_i32_0 = arith.constant 0 : i32
    return %c0_i32, %arg1 : i32, i32
  }
  func.func @transform_3(%arg0: i32, %arg1: i32, %arg2: i32) -> (i32, i32) {
    %c0_i32 = arith.constant 0 : i32
    %c0_i32_0 = arith.constant 0 : i32
    return %c0_i32, %arg1 : i32, i32
  }
  func.func @transform_4(%arg0: i32, %arg1: i32, %arg2: i32) -> (i32, i32) {
    %c0_i32 = arith.constant 0 : i32
    return %arg0, %arg1 : i32, i32
  }
  func.func @transform_5(%arg0: i32, %arg1: i32, %arg2: i32) -> (i32, i32) {
    %c0_i32 = arith.constant 0 : i32
    return %arg0, %arg1 : i32, i32
  }
}

module attributes {stable_mosaic.version = 11 : i64} {
  func.func @_fused_matmul_kernel(%arg0: i32, %arg1: i32, %arg2: i32, %arg3: memref<32x576xbf16, #tpu.memory_space<vmem>>, %arg4: memref<576x128xbf16, #tpu.memory_space<vmem>>, %arg5: memref<1x128xf32, #tpu.memory_space<vmem>>, %arg6: memref<1x128xf32, #tpu.memory_space<vmem>>, %arg7: memref<32x128xf32, #tpu.memory_space<vmem>>, %arg8: memref<32x128xf32, #tpu.memory_space<vmem>>) attributes {dimension_semantics = [#tpu.dimension_semantics<parallel>, #tpu.dimension_semantics<parallel>, #tpu.dimension_semantics<arbitrary>], iteration_bounds = array<i64: 1, 1, 1>, scalar_prefetch = 0 : i64, scratch_operands = 1 : i64, tpu.core_type = #tpu.core_type<tc>, window_params = [{transform_indices = @transform_0, window_bounds = array<i64: 32, 576>}, {transform_indices = @transform_1, window_bounds = array<i64: 576, 128>}, {transform_indices = @transform_2, window_bounds = array<i64: 1, 128>}, {transform_indices = @transform_3, window_bounds = array<i64: 1, 128>}, {transform_indices = @transform_4, window_bounds = array<i64: 32, 128>}]} {
    %c0_i32 = arith.constant 0 : i32
    %0 = arith.cmpi eq, %arg2, %c0_i32 : i32
    %1 = arith.extui %0 : i1 to i32
    %c0_i32_0 = arith.constant 0 : i32
    %2 = arith.cmpi ne, %1, %c0_i32_0 : i32
    scf.if %2 {
      %cst_10 = arith.constant 0.000000e+00 : f32
      %12 = vector.broadcast %cst_10 : f32 to vector<32x128xf32>
      %c0_11 = arith.constant 0 : index
      %c0_12 = arith.constant 0 : index
      %13 = vector.load %arg8[%c0_11, %c0_12] : memref<32x128xf32, #tpu.memory_space<vmem>>, vector<32x128xf32>
      tpu.vector_store %arg8[%c0_11, %c0_12], %12 {strides = array<i32>} : memref<32x128xf32, #tpu.memory_space<vmem>>, vector<32x128xf32>,
    } else {
    }
    %c0 = arith.constant 0 : index
    %c0_1 = arith.constant 0 : index
    %3 = vector.load %arg8[%c0, %c0_1] : memref<32x128xf32, #tpu.memory_space<vmem>>, vector<32x128xf32>
    %c0_2 = arith.constant 0 : index
    %c0_3 = arith.constant 0 : index
    %4 = vector.load %arg3[%c0_2, %c0_3] : memref<32x576xbf16, #tpu.memory_space<vmem>>, vector<32x576xbf16>
    %c0_4 = arith.constant 0 : index
    %c0_5 = arith.constant 0 : index
    %5 = vector.load %arg4[%c0_4, %c0_5] : memref<576x128xbf16, #tpu.memory_space<vmem>>, vector<576x128xbf16>
    %cst = arith.constant dense<0.000000e+00> : vector<32x128xf32>
    %6 = tpu.matmul %4, %5, %cst {dimension_numbers = #tpu.dot_dimension_numbers<[1], [0], [0], [1], [0, 0, 1, 1], [], []>} : vector<32x576xbf16>, vector<576x128xbf16>, vector<32x128xf32> -> vector<32x128xf32>
    %7 = arith.addf %3, %6 : vector<32x128xf32>
    %c0_6 = arith.constant 0 : index
    %c0_7 = arith.constant 0 : index
    %8 = vector.load %arg8[%c0_6, %c0_7] : memref<32x128xf32, #tpu.memory_space<vmem>>, vector<32x128xf32>
    tpu.vector_store %arg8[%c0_6, %c0_7], %7 {strides = array<i32>} : memref<32x128xf32, #tpu.memory_space<vmem>>, vector<32x128xf32>,
    %c0_i32_8 = arith.constant 0 : i32
    %9 = arith.cmpi eq, %arg2, %c0_i32_8 : i32
    %10 = arith.extui %9 : i1 to i32
    %c0_i32_9 = arith.constant 0 : i32
    %11 = arith.cmpi ne, %10, %c0_i32_9 : i32
    scf.if %11 {
      %c0_10 = arith.constant 0 : index
      %c0_11 = arith.constant 0 : index
      %12 = vector.load %arg8[%c0_10, %c0_11] : memref<32x128xf32, #tpu.memory_space<vmem>>, vector<32x128xf32>
      %c0_12 = arith.constant 0 : index
      %c0_13 = arith.constant 0 : index
      %13 = vector.load %arg5[%c0_12, %c0_13] : memref<1x128xf32, #tpu.memory_space<vmem>>, vector<1x128xf32>
      %14 = vector.broadcast %13 : vector<1x128xf32> to vector<32x128xf32>
      %15 = arith.mulf %12, %14 : vector<32x128xf32>
      %c0_14 = arith.constant 0 : index
      %c0_15 = arith.constant 0 : index
      %16 = vector.load %arg6[%c0_14, %c0_15] : memref<1x128xf32, #tpu.memory_space<vmem>>, vector<1x128xf32>
      %17 = vector.broadcast %16 : vector<1x128xf32> to vector<32x128xf32>
      %18 = arith.addf %15, %17 : vector<32x128xf32>
      %cst_16 = arith.constant 0.000000e+00 : f32
      %19 = vector.broadcast %cst_16 : f32 to vector<32x128xf32>
      %20 = arith.maximumf %18, %19 : vector<32x128xf32>
      %c0_17 = arith.constant 0 : index
      %c0_18 = arith.constant 0 : index
      %21 = vector.load %arg7[%c0_17, %c0_18] : memref<32x128xf32, #tpu.memory_space<vmem>>, vector<32x128xf32>
      tpu.vector_store %arg7[%c0_17, %c0_18], %20 {strides = array<i32>} : memref<32x128xf32, #tpu.memory_space<vmem>>, vector<32x128xf32>,
    } else {
    }
    return
  }
  func.func @transform_0(%arg0: i32, %arg1: i32, %arg2: i32) -> (i32, i32) {
    %c0_i32 = arith.constant 0 : i32
    return %arg0, %arg2 : i32, i32
  }
  func.func @transform_1(%arg0: i32, %arg1: i32, %arg2: i32) -> (i32, i32) {
    %c0_i32 = arith.constant 0 : i32
    return %arg2, %arg1 : i32, i32
  }
  func.func @transform_2(%arg0: i32, %arg1: i32, %arg2: i32) -> (i32, i32) {
    %c0_i32 = arith.constant 0 : i32
    %c0_i32_0 = arith.constant 0 : i32
    return %c0_i32, %arg1 : i32, i32
  }
  func.func @transform_3(%arg0: i32, %arg1: i32, %arg2: i32) -> (i32, i32) {
    %c0_i32 = arith.constant 0 : i32
    %c0_i32_0 = arith.constant 0 : i32
    return %c0_i32, %arg1 : i32, i32
  }
  func.func @transform_4(%arg0: i32, %arg1: i32, %arg2: i32) -> (i32, i32) {
    %c0_i32 = arith.constant 0 : i32
    return %arg0, %arg1 : i32, i32
  }
}

module attributes {stable_mosaic.version = 11 : i64} {
  func.func @_fused_matmul_kernel(%arg0: i32, %arg1: i32, %arg2: i32, %arg3: memref<32x64xbf16, #tpu.memory_space<vmem>>, %arg4: memref<64x128xbf16, #tpu.memory_space<vmem>>, %arg5: memref<1x128xf32, #tpu.memory_space<vmem>>, %arg6: memref<1x128xf32, #tpu.memory_space<vmem>>, %arg7: memref<32x128xf32, #tpu.memory_space<vmem>>, %arg8: memref<32x128xf32, #tpu.memory_space<vmem>>) attributes {dimension_semantics = [#tpu.dimension_semantics<parallel>, #tpu.dimension_semantics<parallel>, #tpu.dimension_semantics<arbitrary>], iteration_bounds = array<i64: 1, 1, 1>, scalar_prefetch = 0 : i64, scratch_operands = 1 : i64, tpu.core_type = #tpu.core_type<tc>, window_params = [{transform_indices = @transform_0, window_bounds = array<i64: 32, 64>}, {transform_indices = @transform_1, window_bounds = array<i64: 64, 128>}, {transform_indices = @transform_2, window_bounds = array<i64: 1, 128>}, {transform_indices = @transform_3, window_bounds = array<i64: 1, 128>}, {transform_indices = @transform_4, window_bounds = array<i64: 32, 128>}]} {
    %c0_i32 = arith.constant 0 : i32
    %0 = arith.cmpi eq, %arg2, %c0_i32 : i32
    %1 = arith.extui %0 : i1 to i32
    %c0_i32_0 = arith.constant 0 : i32
    %2 = arith.cmpi ne, %1, %c0_i32_0 : i32
    scf.if %2 {
      %cst_10 = arith.constant 0.000000e+00 : f32
      %12 = vector.broadcast %cst_10 : f32 to vector<32x128xf32>
      %c0_11 = arith.constant 0 : index
      %c0_12 = arith.constant 0 : index
      %13 = vector.load %arg8[%c0_11, %c0_12] : memref<32x128xf32, #tpu.memory_space<vmem>>, vector<32x128xf32>
      tpu.vector_store %arg8[%c0_11, %c0_12], %12 {strides = array<i32>} : memref<32x128xf32, #tpu.memory_space<vmem>>, vector<32x128xf32>,
    } else {
    }
    %c0 = arith.constant 0 : index
    %c0_1 = arith.constant 0 : index
    %3 = vector.load %arg8[%c0, %c0_1] : memref<32x128xf32, #tpu.memory_space<vmem>>, vector<32x128xf32>
    %c0_2 = arith.constant 0 : index
    %c0_3 = arith.constant 0 : index
    %4 = vector.load %arg3[%c0_2, %c0_3] : memref<32x64xbf16, #tpu.memory_space<vmem>>, vector<32x64xbf16>
    %c0_4 = arith.constant 0 : index
    %c0_5 = arith.constant 0 : index
    %5 = vector.load %arg4[%c0_4, %c0_5] : memref<64x128xbf16, #tpu.memory_space<vmem>>, vector<64x128xbf16>
    %cst = arith.constant dense<0.000000e+00> : vector<32x128xf32>
    %6 = tpu.matmul %4, %5, %cst {dimension_numbers = #tpu.dot_dimension_numbers<[1], [0], [0], [1], [0, 0, 1, 1], [], []>} : vector<32x64xbf16>, vector<64x128xbf16>, vector<32x128xf32> -> vector<32x128xf32>
    %7 = arith.addf %3, %6 : vector<32x128xf32>
    %c0_6 = arith.constant 0 : index
    %c0_7 = arith.constant 0 : index
    %8 = vector.load %arg8[%c0_6, %c0_7] : memref<32x128xf32, #tpu.memory_space<vmem>>, vector<32x128xf32>
    tpu.vector_store %arg8[%c0_6, %c0_7], %7 {strides = array<i32>} : memref<32x128xf32, #tpu.memory_space<vmem>>, vector<32x128xf32>,
    %c0_i32_8 = arith.constant 0 : i32
    %9 = arith.cmpi eq, %arg2, %c0_i32_8 : i32
    %10 = arith.extui %9 : i1 to i32
    %c0_i32_9 = arith.constant 0 : i32
    %11 = arith.cmpi ne, %10, %c0_i32_9 : i32
    scf.if %11 {
      %c0_10 = arith.constant 0 : index
      %c0_11 = arith.constant 0 : index
      %12 = vector.load %arg8[%c0_10, %c0_11] : memref<32x128xf32, #tpu.memory_space<vmem>>, vector<32x128xf32>
      %c0_12 = arith.constant 0 : index
      %c0_13 = arith.constant 0 : index
      %13 = vector.load %arg5[%c0_12, %c0_13] : memref<1x128xf32, #tpu.memory_space<vmem>>, vector<1x128xf32>
      %14 = vector.broadcast %13 : vector<1x128xf32> to vector<32x128xf32>
      %15 = arith.mulf %12, %14 : vector<32x128xf32>
      %c0_14 = arith.constant 0 : index
      %c0_15 = arith.constant 0 : index
      %16 = vector.load %arg6[%c0_14, %c0_15] : memref<1x128xf32, #tpu.memory_space<vmem>>, vector<1x128xf32>
      %17 = vector.broadcast %16 : vector<1x128xf32> to vector<32x128xf32>
      %18 = arith.addf %15, %17 : vector<32x128xf32>
      %c0_16 = arith.constant 0 : index
      %c0_17 = arith.constant 0 : index
      %19 = vector.load %arg7[%c0_16, %c0_17] : memref<32x128xf32, #tpu.memory_space<vmem>>, vector<32x128xf32>
      tpu.vector_store %arg7[%c0_16, %c0_17], %18 {strides = array<i32>} : memref<32x128xf32, #tpu.memory_space<vmem>>, vector<32x128xf32>,
    } else {
    }
    return
  }
  func.func @transform_0(%arg0: i32, %arg1: i32, %arg2: i32) -> (i32, i32) {
    %c0_i32 = arith.constant 0 : i32
    return %arg0, %arg2 : i32, i32
  }
  func.func @transform_1(%arg0: i32, %arg1: i32, %arg2: i32) -> (i32, i32) {
    %c0_i32 = arith.constant 0 : i32
    return %arg2, %arg1 : i32, i32
  }
  func.func @transform_2(%arg0: i32, %arg1: i32, %arg2: i32) -> (i32, i32) {
    %c0_i32 = arith.constant 0 : i32
    %c0_i32_0 = arith.constant 0 : i32
    return %c0_i32, %arg1 : i32, i32
  }
  func.func @transform_3(%arg0: i32, %arg1: i32, %arg2: i32) -> (i32, i32) {
    %c0_i32 = arith.constant 0 : i32
    %c0_i32_0 = arith.constant 0 : i32
    return %c0_i32, %arg1 : i32, i32
  }
  func.func @transform_4(%arg0: i32, %arg1: i32, %arg2: i32) -> (i32, i32) {
    %c0_i32 = arith.constant 0 : i32
    return %arg0, %arg1 : i32, i32
  }
}

module attributes {stable_mosaic.version = 11 : i64} {
  func.func @_fused_matmul_kernel(%arg0: i32, %arg1: i32, %arg2: i32, %arg3: memref<32x128xbf16, #tpu.memory_space<vmem>>, %arg4: memref<128x128xbf16, #tpu.memory_space<vmem>>, %arg5: memref<1x128xf32, #tpu.memory_space<vmem>>, %arg6: memref<1x128xf32, #tpu.memory_space<vmem>>, %arg7: memref<32x128xf32, #tpu.memory_space<vmem>>, %arg8: memref<32x128xf32, #tpu.memory_space<vmem>>, %arg9: memref<32x128xf32, #tpu.memory_space<vmem>>) attributes {dimension_semantics = [#tpu.dimension_semantics<parallel>, #tpu.dimension_semantics<parallel>, #tpu.dimension_semantics<arbitrary>], iteration_bounds = array<i64: 1, 1, 9>, scalar_prefetch = 0 : i64, scratch_operands = 1 : i64, tpu.core_type = #tpu.core_type<tc>, window_params = [{transform_indices = @transform_0, window_bounds = array<i64: 32, 128>}, {transform_indices = @transform_1, window_bounds = array<i64: 128, 128>}, {transform_indices = @transform_2, window_bounds = array<i64: 1, 128>}, {transform_indices = @transform_3, window_bounds = array<i64: 1, 128>}, {transform_indices = @transform_4, window_bounds = array<i64: 32, 128>}, {transform_indices = @transform_5, window_bounds = array<i64: 32, 128>}]} {
    %c0_i32 = arith.constant 0 : i32
    %0 = arith.cmpi eq, %arg2, %c0_i32 : i32
    %1 = arith.extui %0 : i1 to i32
    %c0_i32_0 = arith.constant 0 : i32
    %2 = arith.cmpi ne, %1, %c0_i32_0 : i32
    scf.if %2 {
      %cst_9 = arith.constant 0.000000e+00 : f32
      %12 = vector.broadcast %cst_9 : f32 to vector<32x128xf32>
      %c0_10 = arith.constant 0 : index
      %c0_11 = arith.constant 0 : index
      %13 = vector.load %arg9[%c0_10, %c0_11] : memref<32x128xf32, #tpu.memory_space<vmem>>, vector<32x128xf32>
      tpu.vector_store %arg9[%c0_10, %c0_11], %12 {strides = array<i32>} : memref<32x128xf32, #tpu.memory_space<vmem>>, vector<32x128xf32>,
    } else {
    }
    %c0 = arith.constant 0 : index
    %c0_1 = arith.constant 0 : index
    %3 = vector.load %arg9[%c0, %c0_1] : memref<32x128xf32, #tpu.memory_space<vmem>>, vector<32x128xf32>
    %c0_2 = arith.constant 0 : index
    %c0_3 = arith.constant 0 : index
    %4 = vector.load %arg3[%c0_2, %c0_3] : memref<32x128xbf16, #tpu.memory_space<vmem>>, vector<32x128xbf16>
    %c0_4 = arith.constant 0 : index
    %c0_5 = arith.constant 0 : index
    %5 = vector.load %arg4[%c0_4, %c0_5] : memref<128x128xbf16, #tpu.memory_space<vmem>>, vector<128x128xbf16>
    %cst = arith.constant dense<0.000000e+00> : vector<32x128xf32>
    %6 = tpu.matmul %4, %5, %cst {dimension_numbers = #tpu.dot_dimension_numbers<[1], [0], [0], [1], [0, 0, 1, 1], [], []>} : vector<32x128xbf16>, vector<128x128xbf16>, vector<32x128xf32> -> vector<32x128xf32>
    %7 = arith.addf %3, %6 : vector<32x128xf32>
    %c0_6 = arith.constant 0 : index
    %c0_7 = arith.constant 0 : index
    %8 = vector.load %arg9[%c0_6, %c0_7] : memref<32x128xf32, #tpu.memory_space<vmem>>, vector<32x128xf32>
    tpu.vector_store %arg9[%c0_6, %c0_7], %7 {strides = array<i32>} : memref<32x128xf32, #tpu.memory_space<vmem>>, vector<32x128xf32>,
    %c8_i32 = arith.constant 8 : i32
    %9 = arith.cmpi eq, %arg2, %c8_i32 : i32
    %10 = arith.extui %9 : i1 to i32
    %c0_i32_8 = arith.constant 0 : i32
    %11 = arith.cmpi ne, %10, %c0_i32_8 : i32
    scf.if %11 {
      %c0_9 = arith.constant 0 : index
      %c0_10 = arith.constant 0 : index
      %12 = vector.load %arg9[%c0_9, %c0_10] : memref<32x128xf32, #tpu.memory_space<vmem>>, vector<32x128xf32>
      %c0_11 = arith.constant 0 : index
      %c0_12 = arith.constant 0 : index
      %13 = vector.load %arg5[%c0_11, %c0_12] : memref<1x128xf32, #tpu.memory_space<vmem>>, vector<1x128xf32>
      %14 = vector.broadcast %13 : vector<1x128xf32> to vector<32x128xf32>
      %15 = arith.mulf %12, %14 : vector<32x128xf32>
      %c0_13 = arith.constant 0 : index
      %c0_14 = arith.constant 0 : index
      %16 = vector.load %arg6[%c0_13, %c0_14] : memref<1x128xf32, #tpu.memory_space<vmem>>, vector<1x128xf32>
      %17 = vector.broadcast %16 : vector<1x128xf32> to vector<32x128xf32>
      %18 = arith.addf %15, %17 : vector<32x128xf32>
      %c0_15 = arith.constant 0 : index
      %c0_16 = arith.constant 0 : index
      %19 = vector.load %arg7[%c0_15, %c0_16] : memref<32x128xf32, #tpu.memory_space<vmem>>, vector<32x128xf32>
      %20 = arith.addf %18, %19 : vector<32x128xf32>
      %cst_17 = arith.constant 0.000000e+00 : f32
      %21 = vector.broadcast %cst_17 : f32 to vector<32x128xf32>
      %22 = arith.maximumf %20, %21 : vector<32x128xf32>
      %c0_18 = arith.constant 0 : index
      %c0_19 = arith.constant 0 : index
      %23 = vector.load %arg8[%c0_18, %c0_19] : memref<32x128xf32, #tpu.memory_space<vmem>>, vector<32x128xf32>
      tpu.vector_store %arg8[%c0_18, %c0_19], %22 {strides = array<i32>} : memref<32x128xf32, #tpu.memory_space<vmem>>, vector<32x128xf32>,
    } else {
    }
    return
  }
  func.func @transform_0(%arg0: i32, %arg1: i32, %arg2: i32) -> (i32, i32) {
    %c0_i32 = arith.constant 0 : i32
    return %arg0, %arg2 : i32, i32
  }
  func.func @transform_1(%arg0: i32, %arg1: i32, %arg2: i32) -> (i32, i32) {
    %c0_i32 = arith.constant 0 : i32
    return %arg2, %arg1 : i32, i32
  }
  func.func @transform_2(%arg0: i32, %arg1: i32, %arg2: i32) -> (i32, i32) {
    %c0_i32 = arith.constant 0 : i32
    %c0_i32_0 = arith.constant 0 : i32
    return %c0_i32, %arg1 : i32, i32
  }
  func.func @transform_3(%arg0: i32, %arg1: i32, %arg2: i32) -> (i32, i32) {
    %c0_i32 = arith.constant 0 : i32
    %c0_i32_0 = arith.constant 0 : i32
    return %c0_i32, %arg1 : i32, i32
  }
  func.func @transform_4(%arg0: i32, %arg1: i32, %arg2: i32) -> (i32, i32) {
    %c0_i32 = arith.constant 0 : i32
    return %arg0, %arg1 : i32, i32
  }
  func.func @transform_5(%arg0: i32, %arg1: i32, %arg2: i32) -> (i32, i32) {
    %c0_i32 = arith.constant 0 : i32
    return %arg0, %arg1 : i32, i32
  }
}

module attributes {stable_mosaic.version = 11 : i64} {
  func.func @_fused_matmul_kernel(%arg0: i32, %arg1: i32, %arg2: i32, %arg3: memref<32x128xbf16, #tpu.memory_space<vmem>>, %arg4: memref<128x128xbf16, #tpu.memory_space<vmem>>, %arg5: memref<1x128xf32, #tpu.memory_space<vmem>>, %arg6: memref<1x128xf32, #tpu.memory_space<vmem>>, %arg7: memref<32x128xf32, #tpu.memory_space<vmem>>, %arg8: memref<32x128xf32, #tpu.memory_space<vmem>>) attributes {dimension_semantics = [#tpu.dimension_semantics<parallel>, #tpu.dimension_semantics<parallel>, #tpu.dimension_semantics<arbitrary>], iteration_bounds = array<i64: 1, 1, 9>, scalar_prefetch = 0 : i64, scratch_operands = 1 : i64, tpu.core_type = #tpu.core_type<tc>, window_params = [{transform_indices = @transform_0, window_bounds = array<i64: 32, 128>}, {transform_indices = @transform_1, window_bounds = array<i64: 128, 128>}, {transform_indices = @transform_2, window_bounds = array<i64: 1, 128>}, {transform_indices = @transform_3, window_bounds = array<i64: 1, 128>}, {transform_indices = @transform_4, window_bounds = array<i64: 32, 128>}]} {
    %c0_i32 = arith.constant 0 : i32
    %0 = arith.cmpi eq, %arg2, %c0_i32 : i32
    %1 = arith.extui %0 : i1 to i32
    %c0_i32_0 = arith.constant 0 : i32
    %2 = arith.cmpi ne, %1, %c0_i32_0 : i32
    scf.if %2 {
      %cst_9 = arith.constant 0.000000e+00 : f32
      %12 = vector.broadcast %cst_9 : f32 to vector<32x128xf32>
      %c0_10 = arith.constant 0 : index
      %c0_11 = arith.constant 0 : index
      %13 = vector.load %arg8[%c0_10, %c0_11] : memref<32x128xf32, #tpu.memory_space<vmem>>, vector<32x128xf32>
      tpu.vector_store %arg8[%c0_10, %c0_11], %12 {strides = array<i32>} : memref<32x128xf32, #tpu.memory_space<vmem>>, vector<32x128xf32>,
    } else {
    }
    %c0 = arith.constant 0 : index
    %c0_1 = arith.constant 0 : index
    %3 = vector.load %arg8[%c0, %c0_1] : memref<32x128xf32, #tpu.memory_space<vmem>>, vector<32x128xf32>
    %c0_2 = arith.constant 0 : index
    %c0_3 = arith.constant 0 : index
    %4 = vector.load %arg3[%c0_2, %c0_3] : memref<32x128xbf16, #tpu.memory_space<vmem>>, vector<32x128xbf16>
    %c0_4 = arith.constant 0 : index
    %c0_5 = arith.constant 0 : index
    %5 = vector.load %arg4[%c0_4, %c0_5] : memref<128x128xbf16, #tpu.memory_space<vmem>>, vector<128x128xbf16>
    %cst = arith.constant dense<0.000000e+00> : vector<32x128xf32>
    %6 = tpu.matmul %4, %5, %cst {dimension_numbers = #tpu.dot_dimension_numbers<[1], [0], [0], [1], [0, 0, 1, 1], [], []>} : vector<32x128xbf16>, vector<128x128xbf16>, vector<32x128xf32> -> vector<32x128xf32>
    %7 = arith.addf %3, %6 : vector<32x128xf32>
    %c0_6 = arith.constant 0 : index
    %c0_7 = arith.constant 0 : index
    %8 = vector.load %arg8[%c0_6, %c0_7] : memref<32x128xf32, #tpu.memory_space<vmem>>, vector<32x128xf32>
    tpu.vector_store %arg8[%c0_6, %c0_7], %7 {strides = array<i32>} : memref<32x128xf32, #tpu.memory_space<vmem>>, vector<32x128xf32>,
    %c8_i32 = arith.constant 8 : i32
    %9 = arith.cmpi eq, %arg2, %c8_i32 : i32
    %10 = arith.extui %9 : i1 to i32
    %c0_i32_8 = arith.constant 0 : i32
    %11 = arith.cmpi ne, %10, %c0_i32_8 : i32
    scf.if %11 {
      %c0_9 = arith.constant 0 : index
      %c0_10 = arith.constant 0 : index
      %12 = vector.load %arg8[%c0_9, %c0_10] : memref<32x128xf32, #tpu.memory_space<vmem>>, vector<32x128xf32>
      %c0_11 = arith.constant 0 : index
      %c0_12 = arith.constant 0 : index
      %13 = vector.load %arg5[%c0_11, %c0_12] : memref<1x128xf32, #tpu.memory_space<vmem>>, vector<1x128xf32>
      %14 = vector.broadcast %13 : vector<1x128xf32> to vector<32x128xf32>
      %15 = arith.mulf %12, %14 : vector<32x128xf32>
      %c0_13 = arith.constant 0 : index
      %c0_14 = arith.constant 0 : index
      %16 = vector.load %arg6[%c0_13, %c0_14] : memref<1x128xf32, #tpu.memory_space<vmem>>, vector<1x128xf32>
      %17 = vector.broadcast %16 : vector<1x128xf32> to vector<32x128xf32>
      %18 = arith.addf %15, %17 : vector<32x128xf32>
      %cst_15 = arith.constant 0.000000e+00 : f32
      %19 = vector.broadcast %cst_15 : f32 to vector<32x128xf32>
      %20 = arith.maximumf %18, %19 : vector<32x128xf32>
      %c0_16 = arith.constant 0 : index
      %c0_17 = arith.constant 0 : index
      %21 = vector.load %arg7[%c0_16, %c0_17] : memref<32x128xf32, #tpu.memory_space<vmem>>, vector<32x128xf32>
      tpu.vector_store %arg7[%c0_16, %c0_17], %20 {strides = array<i32>} : memref<32x128xf32, #tpu.memory_space<vmem>>, vector<32x128xf32>,
    } else {
    }
    return
  }
  func.func @transform_0(%arg0: i32, %arg1: i32, %arg2: i32) -> (i32, i32) {
    %c0_i32 = arith.constant 0 : i32
    return %arg0, %arg2 : i32, i32
  }
  func.func @transform_1(%arg0: i32, %arg1: i32, %arg2: i32) -> (i32, i32) {
    %c0_i32 = arith.constant 0 : i32
    return %arg2, %arg1 : i32, i32
  }
  func.func @transform_2(%arg0: i32, %arg1: i32, %arg2: i32) -> (i32, i32) {
    %c0_i32 = arith.constant 0 : i32
    %c0_i32_0 = arith.constant 0 : i32
    return %c0_i32, %arg1 : i32, i32
  }
  func.func @transform_3(%arg0: i32, %arg1: i32, %arg2: i32) -> (i32, i32) {
    %c0_i32 = arith.constant 0 : i32
    %c0_i32_0 = arith.constant 0 : i32
    return %c0_i32, %arg1 : i32, i32
  }
  func.func @transform_4(%arg0: i32, %arg1: i32, %arg2: i32) -> (i32, i32) {
    %c0_i32 = arith.constant 0 : i32
    return %arg0, %arg1 : i32, i32
  }
}

module attributes {stable_mosaic.version = 11 : i64} {
  func.func @_fused_matmul_kernel(%arg0: i32, %arg1: i32, %arg2: i32, %arg3: memref<8x128xbf16, #tpu.memory_space<vmem>>, %arg4: memref<128x256xbf16, #tpu.memory_space<vmem>>, %arg5: memref<1x256xf32, #tpu.memory_space<vmem>>, %arg6: memref<1x256xf32, #tpu.memory_space<vmem>>, %arg7: memref<8x256xf32, #tpu.memory_space<vmem>>, %arg8: memref<8x256xf32, #tpu.memory_space<vmem>>) attributes {dimension_semantics = [#tpu.dimension_semantics<parallel>, #tpu.dimension_semantics<parallel>, #tpu.dimension_semantics<arbitrary>], iteration_bounds = array<i64: 1, 1, 9>, scalar_prefetch = 0 : i64, scratch_operands = 1 : i64, tpu.core_type = #tpu.core_type<tc>, window_params = [{transform_indices = @transform_0, window_bounds = array<i64: 8, 128>}, {transform_indices = @transform_1, window_bounds = array<i64: 128, 256>}, {transform_indices = @transform_2, window_bounds = array<i64: 1, 256>}, {transform_indices = @transform_3, window_bounds = array<i64: 1, 256>}, {transform_indices = @transform_4, window_bounds = array<i64: 8, 256>}]} {
    %c0_i32 = arith.constant 0 : i32
    %0 = arith.cmpi eq, %arg2, %c0_i32 : i32
    %1 = arith.extui %0 : i1 to i32
    %c0_i32_0 = arith.constant 0 : i32
    %2 = arith.cmpi ne, %1, %c0_i32_0 : i32
    scf.if %2 {
      %cst_9 = arith.constant 0.000000e+00 : f32
      %12 = vector.broadcast %cst_9 : f32 to vector<8x256xf32>
      %c0_10 = arith.constant 0 : index
      %c0_11 = arith.constant 0 : index
      %13 = vector.load %arg8[%c0_10, %c0_11] : memref<8x256xf32, #tpu.memory_space<vmem>>, vector<8x256xf32>
      tpu.vector_store %arg8[%c0_10, %c0_11], %12 {strides = array<i32>} : memref<8x256xf32, #tpu.memory_space<vmem>>, vector<8x256xf32>,
    } else {
    }
    %c0 = arith.constant 0 : index
    %c0_1 = arith.constant 0 : index
    %3 = vector.load %arg8[%c0, %c0_1] : memref<8x256xf32, #tpu.memory_space<vmem>>, vector<8x256xf32>
    %c0_2 = arith.constant 0 : index
    %c0_3 = arith.constant 0 : index
    %4 = vector.load %arg3[%c0_2, %c0_3] : memref<8x128xbf16, #tpu.memory_space<vmem>>, vector<8x128xbf16>
    %c0_4 = arith.constant 0 : index
    %c0_5 = arith.constant 0 : index
    %5 = vector.load %arg4[%c0_4, %c0_5] : memref<128x256xbf16, #tpu.memory_space<vmem>>, vector<128x256xbf16>
    %cst = arith.constant dense<0.000000e+00> : vector<8x256xf32>
    %6 = tpu.matmul %4, %5, %cst {dimension_numbers = #tpu.dot_dimension_numbers<[1], [0], [0], [1], [0, 0, 1, 1], [], []>} : vector<8x128xbf16>, vector<128x256xbf16>, vector<8x256xf32> -> vector<8x256xf32>
    %7 = arith.addf %3, %6 : vector<8x256xf32>
    %c0_6 = arith.constant 0 : index
    %c0_7 = arith.constant 0 : index
    %8 = vector.load %arg8[%c0_6, %c0_7] : memref<8x256xf32, #tpu.memory_space<vmem>>, vector<8x256xf32>
    tpu.vector_store %arg8[%c0_6, %c0_7], %7 {strides = array<i32>} : memref<8x256xf32, #tpu.memory_space<vmem>>, vector<8x256xf32>,
    %c8_i32 = arith.constant 8 : i32
    %9 = arith.cmpi eq, %arg2, %c8_i32 : i32
    %10 = arith.extui %9 : i1 to i32
    %c0_i32_8 = arith.constant 0 : i32
    %11 = arith.cmpi ne, %10, %c0_i32_8 : i32
    scf.if %11 {
      %c0_9 = arith.constant 0 : index
      %c0_10 = arith.constant 0 : index
      %12 = vector.load %arg8[%c0_9, %c0_10] : memref<8x256xf32, #tpu.memory_space<vmem>>, vector<8x256xf32>
      %c0_11 = arith.constant 0 : index
      %c0_12 = arith.constant 0 : index
      %13 = vector.load %arg5[%c0_11, %c0_12] : memref<1x256xf32, #tpu.memory_space<vmem>>, vector<1x256xf32>
      %14 = vector.broadcast %13 : vector<1x256xf32> to vector<8x256xf32>
      %15 = arith.mulf %12, %14 : vector<8x256xf32>
      %c0_13 = arith.constant 0 : index
      %c0_14 = arith.constant 0 : index
      %16 = vector.load %arg6[%c0_13, %c0_14] : memref<1x256xf32, #tpu.memory_space<vmem>>, vector<1x256xf32>
      %17 = vector.broadcast %16 : vector<1x256xf32> to vector<8x256xf32>
      %18 = arith.addf %15, %17 : vector<8x256xf32>
      %cst_15 = arith.constant 0.000000e+00 : f32
      %19 = vector.broadcast %cst_15 : f32 to vector<8x256xf32>
      %20 = arith.maximumf %18, %19 : vector<8x256xf32>
      %c0_16 = arith.constant 0 : index
      %c0_17 = arith.constant 0 : index
      %21 = vector.load %arg7[%c0_16, %c0_17] : memref<8x256xf32, #tpu.memory_space<vmem>>, vector<8x256xf32>
      tpu.vector_store %arg7[%c0_16, %c0_17], %20 {strides = array<i32>} : memref<8x256xf32, #tpu.memory_space<vmem>>, vector<8x256xf32>,
    } else {
    }
    return
  }
  func.func @transform_0(%arg0: i32, %arg1: i32, %arg2: i32) -> (i32, i32) {
    %c0_i32 = arith.constant 0 : i32
    return %arg0, %arg2 : i32, i32
  }
  func.func @transform_1(%arg0: i32, %arg1: i32, %arg2: i32) -> (i32, i32) {
    %c0_i32 = arith.constant 0 : i32
    return %arg2, %arg1 : i32, i32
  }
  func.func @transform_2(%arg0: i32, %arg1: i32, %arg2: i32) -> (i32, i32) {
    %c0_i32 = arith.constant 0 : i32
    %c0_i32_0 = arith.constant 0 : i32
    return %c0_i32, %arg1 : i32, i32
  }
  func.func @transform_3(%arg0: i32, %arg1: i32, %arg2: i32) -> (i32, i32) {
    %c0_i32 = arith.constant 0 : i32
    %c0_i32_0 = arith.constant 0 : i32
    return %c0_i32, %arg1 : i32, i32
  }
  func.func @transform_4(%arg0: i32, %arg1: i32, %arg2: i32) -> (i32, i32) {
    %c0_i32 = arith.constant 0 : i32
    return %arg0, %arg1 : i32, i32
  }
}

module attributes {stable_mosaic.version = 11 : i64} {
  func.func @_fused_matmul_kernel(%arg0: i32, %arg1: i32, %arg2: i32, %arg3: memref<8x128xbf16, #tpu.memory_space<vmem>>, %arg4: memref<128x256xbf16, #tpu.memory_space<vmem>>, %arg5: memref<1x256xf32, #tpu.memory_space<vmem>>, %arg6: memref<1x256xf32, #tpu.memory_space<vmem>>, %arg7: memref<8x256xf32, #tpu.memory_space<vmem>>, %arg8: memref<8x256xf32, #tpu.memory_space<vmem>>) attributes {dimension_semantics = [#tpu.dimension_semantics<parallel>, #tpu.dimension_semantics<parallel>, #tpu.dimension_semantics<arbitrary>], iteration_bounds = array<i64: 1, 1, 1>, scalar_prefetch = 0 : i64, scratch_operands = 1 : i64, tpu.core_type = #tpu.core_type<tc>, window_params = [{transform_indices = @transform_0, window_bounds = array<i64: 8, 128>}, {transform_indices = @transform_1, window_bounds = array<i64: 128, 256>}, {transform_indices = @transform_2, window_bounds = array<i64: 1, 256>}, {transform_indices = @transform_3, window_bounds = array<i64: 1, 256>}, {transform_indices = @transform_4, window_bounds = array<i64: 8, 256>}]} {
    %c0_i32 = arith.constant 0 : i32
    %0 = arith.cmpi eq, %arg2, %c0_i32 : i32
    %1 = arith.extui %0 : i1 to i32
    %c0_i32_0 = arith.constant 0 : i32
    %2 = arith.cmpi ne, %1, %c0_i32_0 : i32
    scf.if %2 {
      %cst_10 = arith.constant 0.000000e+00 : f32
      %12 = vector.broadcast %cst_10 : f32 to vector<8x256xf32>
      %c0_11 = arith.constant 0 : index
      %c0_12 = arith.constant 0 : index
      %13 = vector.load %arg8[%c0_11, %c0_12] : memref<8x256xf32, #tpu.memory_space<vmem>>, vector<8x256xf32>
      tpu.vector_store %arg8[%c0_11, %c0_12], %12 {strides = array<i32>} : memref<8x256xf32, #tpu.memory_space<vmem>>, vector<8x256xf32>,
    } else {
    }
    %c0 = arith.constant 0 : index
    %c0_1 = arith.constant 0 : index
    %3 = vector.load %arg8[%c0, %c0_1] : memref<8x256xf32, #tpu.memory_space<vmem>>, vector<8x256xf32>
    %c0_2 = arith.constant 0 : index
    %c0_3 = arith.constant 0 : index
    %4 = vector.load %arg3[%c0_2, %c0_3] : memref<8x128xbf16, #tpu.memory_space<vmem>>, vector<8x128xbf16>
    %c0_4 = arith.constant 0 : index
    %c0_5 = arith.constant 0 : index
    %5 = vector.load %arg4[%c0_4, %c0_5] : memref<128x256xbf16, #tpu.memory_space<vmem>>, vector<128x256xbf16>
    %cst = arith.constant dense<0.000000e+00> : vector<8x256xf32>
    %6 = tpu.matmul %4, %5, %cst {dimension_numbers = #tpu.dot_dimension_numbers<[1], [0], [0], [1], [0, 0, 1, 1], [], []>} : vector<8x128xbf16>, vector<128x256xbf16>, vector<8x256xf32> -> vector<8x256xf32>
    %7 = arith.addf %3, %6 : vector<8x256xf32>
    %c0_6 = arith.constant 0 : index
    %c0_7 = arith.constant 0 : index
    %8 = vector.load %arg8[%c0_6, %c0_7] : memref<8x256xf32, #tpu.memory_space<vmem>>, vector<8x256xf32>
    tpu.vector_store %arg8[%c0_6, %c0_7], %7 {strides = array<i32>} : memref<8x256xf32, #tpu.memory_space<vmem>>, vector<8x256xf32>,
    %c0_i32_8 = arith.constant 0 : i32
    %9 = arith.cmpi eq, %arg2, %c0_i32_8 : i32
    %10 = arith.extui %9 : i1 to i32
    %c0_i32_9 = arith.constant 0 : i32
    %11 = arith.cmpi ne, %10, %c0_i32_9 : i32
    scf.if %11 {
      %c0_10 = arith.constant 0 : index
      %c0_11 = arith.constant 0 : index
      %12 = vector.load %arg8[%c0_10, %c0_11] : memref<8x256xf32, #tpu.memory_space<vmem>>, vector<8x256xf32>
      %c0_12 = arith.constant 0 : index
      %c0_13 = arith.constant 0 : index
      %13 = vector.load %arg5[%c0_12, %c0_13] : memref<1x256xf32, #tpu.memory_space<vmem>>, vector<1x256xf32>
      %14 = vector.broadcast %13 : vector<1x256xf32> to vector<8x256xf32>
      %15 = arith.mulf %12, %14 : vector<8x256xf32>
      %c0_14 = arith.constant 0 : index
      %c0_15 = arith.constant 0 : index
      %16 = vector.load %arg6[%c0_14, %c0_15] : memref<1x256xf32, #tpu.memory_space<vmem>>, vector<1x256xf32>
      %17 = vector.broadcast %16 : vector<1x256xf32> to vector<8x256xf32>
      %18 = arith.addf %15, %17 : vector<8x256xf32>
      %c0_16 = arith.constant 0 : index
      %c0_17 = arith.constant 0 : index
      %19 = vector.load %arg7[%c0_16, %c0_17] : memref<8x256xf32, #tpu.memory_space<vmem>>, vector<8x256xf32>
      tpu.vector_store %arg7[%c0_16, %c0_17], %18 {strides = array<i32>} : memref<8x256xf32, #tpu.memory_space<vmem>>, vector<8x256xf32>,
    } else {
    }
    return
  }
  func.func @transform_0(%arg0: i32, %arg1: i32, %arg2: i32) -> (i32, i32) {
    %c0_i32 = arith.constant 0 : i32
    return %arg0, %arg2 : i32, i32
  }
  func.func @transform_1(%arg0: i32, %arg1: i32, %arg2: i32) -> (i32, i32) {
    %c0_i32 = arith.constant 0 : i32
    return %arg2, %arg1 : i32, i32
  }
  func.func @transform_2(%arg0: i32, %arg1: i32, %arg2: i32) -> (i32, i32) {
    %c0_i32 = arith.constant 0 : i32
    %c0_i32_0 = arith.constant 0 : i32
    return %c0_i32, %arg1 : i32, i32
  }
  func.func @transform_3(%arg0: i32, %arg1: i32, %arg2: i32) -> (i32, i32) {
    %c0_i32 = arith.constant 0 : i32
    %c0_i32_0 = arith.constant 0 : i32
    return %c0_i32, %arg1 : i32, i32
  }
  func.func @transform_4(%arg0: i32, %arg1: i32, %arg2: i32) -> (i32, i32) {
    %c0_i32 = arith.constant 0 : i32
    return %arg0, %arg1 : i32, i32
  }
}

module attributes {stable_mosaic.version = 11 : i64} {
  func.func @_fused_matmul_kernel(%arg0: i32, %arg1: i32, %arg2: i32, %arg3: memref<8x256xbf16, #tpu.memory_space<vmem>>, %arg4: memref<256x256xbf16, #tpu.memory_space<vmem>>, %arg5: memref<1x256xf32, #tpu.memory_space<vmem>>, %arg6: memref<1x256xf32, #tpu.memory_space<vmem>>, %arg7: memref<8x256xf32, #tpu.memory_space<vmem>>, %arg8: memref<8x256xf32, #tpu.memory_space<vmem>>, %arg9: memref<8x256xf32, #tpu.memory_space<vmem>>) attributes {dimension_semantics = [#tpu.dimension_semantics<parallel>, #tpu.dimension_semantics<parallel>, #tpu.dimension_semantics<arbitrary>], iteration_bounds = array<i64: 1, 1, 9>, scalar_prefetch = 0 : i64, scratch_operands = 1 : i64, tpu.core_type = #tpu.core_type<tc>, window_params = [{transform_indices = @transform_0, window_bounds = array<i64: 8, 256>}, {transform_indices = @transform_1, window_bounds = array<i64: 256, 256>}, {transform_indices = @transform_2, window_bounds = array<i64: 1, 256>}, {transform_indices = @transform_3, window_bounds = array<i64: 1, 256>}, {transform_indices = @transform_4, window_bounds = array<i64: 8, 256>}, {transform_indices = @transform_5, window_bounds = array<i64: 8, 256>}]} {
    %c0_i32 = arith.constant 0 : i32
    %0 = arith.cmpi eq, %arg2, %c0_i32 : i32
    %1 = arith.extui %0 : i1 to i32
    %c0_i32_0 = arith.constant 0 : i32
    %2 = arith.cmpi ne, %1, %c0_i32_0 : i32
    scf.if %2 {
      %cst_9 = arith.constant 0.000000e+00 : f32
      %12 = vector.broadcast %cst_9 : f32 to vector<8x256xf32>
      %c0_10 = arith.constant 0 : index
      %c0_11 = arith.constant 0 : index
      %13 = vector.load %arg9[%c0_10, %c0_11] : memref<8x256xf32, #tpu.memory_space<vmem>>, vector<8x256xf32>
      tpu.vector_store %arg9[%c0_10, %c0_11], %12 {strides = array<i32>} : memref<8x256xf32, #tpu.memory_space<vmem>>, vector<8x256xf32>,
    } else {
    }
    %c0 = arith.constant 0 : index
    %c0_1 = arith.constant 0 : index
    %3 = vector.load %arg9[%c0, %c0_1] : memref<8x256xf32, #tpu.memory_space<vmem>>, vector<8x256xf32>
    %c0_2 = arith.constant 0 : index
    %c0_3 = arith.constant 0 : index
    %4 = vector.load %arg3[%c0_2, %c0_3] : memref<8x256xbf16, #tpu.memory_space<vmem>>, vector<8x256xbf16>
    %c0_4 = arith.constant 0 : index
    %c0_5 = arith.constant 0 : index
    %5 = vector.load %arg4[%c0_4, %c0_5] : memref<256x256xbf16, #tpu.memory_space<vmem>>, vector<256x256xbf16>
    %cst = arith.constant dense<0.000000e+00> : vector<8x256xf32>
    %6 = tpu.matmul %4, %5, %cst {dimension_numbers = #tpu.dot_dimension_numbers<[1], [0], [0], [1], [0, 0, 1, 1], [], []>} : vector<8x256xbf16>, vector<256x256xbf16>, vector<8x256xf32> -> vector<8x256xf32>
    %7 = arith.addf %3, %6 : vector<8x256xf32>
    %c0_6 = arith.constant 0 : index
    %c0_7 = arith.constant 0 : index
    %8 = vector.load %arg9[%c0_6, %c0_7] : memref<8x256xf32, #tpu.memory_space<vmem>>, vector<8x256xf32>
    tpu.vector_store %arg9[%c0_6, %c0_7], %7 {strides = array<i32>} : memref<8x256xf32, #tpu.memory_space<vmem>>, vector<8x256xf32>,
    %c8_i32 = arith.constant 8 : i32
    %9 = arith.cmpi eq, %arg2, %c8_i32 : i32
    %10 = arith.extui %9 : i1 to i32
    %c0_i32_8 = arith.constant 0 : i32
    %11 = arith.cmpi ne, %10, %c0_i32_8 : i32
    scf.if %11 {
      %c0_9 = arith.constant 0 : index
      %c0_10 = arith.constant 0 : index
      %12 = vector.load %arg9[%c0_9, %c0_10] : memref<8x256xf32, #tpu.memory_space<vmem>>, vector<8x256xf32>
      %c0_11 = arith.constant 0 : index
      %c0_12 = arith.constant 0 : index
      %13 = vector.load %arg5[%c0_11, %c0_12] : memref<1x256xf32, #tpu.memory_space<vmem>>, vector<1x256xf32>
      %14 = vector.broadcast %13 : vector<1x256xf32> to vector<8x256xf32>
      %15 = arith.mulf %12, %14 : vector<8x256xf32>
      %c0_13 = arith.constant 0 : index
      %c0_14 = arith.constant 0 : index
      %16 = vector.load %arg6[%c0_13, %c0_14] : memref<1x256xf32, #tpu.memory_space<vmem>>, vector<1x256xf32>
      %17 = vector.broadcast %16 : vector<1x256xf32> to vector<8x256xf32>
      %18 = arith.addf %15, %17 : vector<8x256xf32>
      %c0_15 = arith.constant 0 : index
      %c0_16 = arith.constant 0 : index
      %19 = vector.load %arg7[%c0_15, %c0_16] : memref<8x256xf32, #tpu.memory_space<vmem>>, vector<8x256xf32>
      %20 = arith.addf %18, %19 : vector<8x256xf32>
      %cst_17 = arith.constant 0.000000e+00 : f32
      %21 = vector.broadcast %cst_17 : f32 to vector<8x256xf32>
      %22 = arith.maximumf %20, %21 : vector<8x256xf32>
      %c0_18 = arith.constant 0 : index
      %c0_19 = arith.constant 0 : index
      %23 = vector.load %arg8[%c0_18, %c0_19] : memref<8x256xf32, #tpu.memory_space<vmem>>, vector<8x256xf32>
      tpu.vector_store %arg8[%c0_18, %c0_19], %22 {strides = array<i32>} : memref<8x256xf32, #tpu.memory_space<vmem>>, vector<8x256xf32>,
    } else {
    }
    return
  }
  func.func @transform_0(%arg0: i32, %arg1: i32, %arg2: i32) -> (i32, i32) {
    %c0_i32 = arith.constant 0 : i32
    return %arg0, %arg2 : i32, i32
  }
  func.func @transform_1(%arg0: i32, %arg1: i32, %arg2: i32) -> (i32, i32) {
    %c0_i32 = arith.constant 0 : i32
    return %arg2, %arg1 : i32, i32
  }
  func.func @transform_2(%arg0: i32, %arg1: i32, %arg2: i32) -> (i32, i32) {
    %c0_i32 = arith.constant 0 : i32
    %c0_i32_0 = arith.constant 0 : i32
    return %c0_i32, %arg1 : i32, i32
  }
  func.func @transform_3(%arg0: i32, %arg1: i32, %arg2: i32) -> (i32, i32) {
    %c0_i32 = arith.constant 0 : i32
    %c0_i32_0 = arith.constant 0 : i32
    return %c0_i32, %arg1 : i32, i32
  }
  func.func @transform_4(%arg0: i32, %arg1: i32, %arg2: i32) -> (i32, i32) {
    %c0_i32 = arith.constant 0 : i32
    return %arg0, %arg1 : i32, i32
  }
  func.func @transform_5(%arg0: i32, %arg1: i32, %arg2: i32) -> (i32, i32) {
    %c0_i32 = arith.constant 0 : i32
    return %arg0, %arg1 : i32, i32
  }
}

module attributes {stable_mosaic.version = 11 : i64} {
  func.func @_fused_matmul_kernel(%arg0: i32, %arg1: i32, %arg2: i32, %arg3: memref<8x256xbf16, #tpu.memory_space<vmem>>, %arg4: memref<256x256xbf16, #tpu.memory_space<vmem>>, %arg5: memref<1x256xf32, #tpu.memory_space<vmem>>, %arg6: memref<1x256xf32, #tpu.memory_space<vmem>>, %arg7: memref<8x256xf32, #tpu.memory_space<vmem>>, %arg8: memref<8x256xf32, #tpu.memory_space<vmem>>) attributes {dimension_semantics = [#tpu.dimension_semantics<parallel>, #tpu.dimension_semantics<parallel>, #tpu.dimension_semantics<arbitrary>], iteration_bounds = array<i64: 1, 1, 9>, scalar_prefetch = 0 : i64, scratch_operands = 1 : i64, tpu.core_type = #tpu.core_type<tc>, window_params = [{transform_indices = @transform_0, window_bounds = array<i64: 8, 256>}, {transform_indices = @transform_1, window_bounds = array<i64: 256, 256>}, {transform_indices = @transform_2, window_bounds = array<i64: 1, 256>}, {transform_indices = @transform_3, window_bounds = array<i64: 1, 256>}, {transform_indices = @transform_4, window_bounds = array<i64: 8, 256>}]} {
    %c0_i32 = arith.constant 0 : i32
    %0 = arith.cmpi eq, %arg2, %c0_i32 : i32
    %1 = arith.extui %0 : i1 to i32
    %c0_i32_0 = arith.constant 0 : i32
    %2 = arith.cmpi ne, %1, %c0_i32_0 : i32
    scf.if %2 {
      %cst_9 = arith.constant 0.000000e+00 : f32
      %12 = vector.broadcast %cst_9 : f32 to vector<8x256xf32>
      %c0_10 = arith.constant 0 : index
      %c0_11 = arith.constant 0 : index
      %13 = vector.load %arg8[%c0_10, %c0_11] : memref<8x256xf32, #tpu.memory_space<vmem>>, vector<8x256xf32>
      tpu.vector_store %arg8[%c0_10, %c0_11], %12 {strides = array<i32>} : memref<8x256xf32, #tpu.memory_space<vmem>>, vector<8x256xf32>,
    } else {
    }
    %c0 = arith.constant 0 : index
    %c0_1 = arith.constant 0 : index
    %3 = vector.load %arg8[%c0, %c0_1] : memref<8x256xf32, #tpu.memory_space<vmem>>, vector<8x256xf32>
    %c0_2 = arith.constant 0 : index
    %c0_3 = arith.constant 0 : index
    %4 = vector.load %arg3[%c0_2, %c0_3] : memref<8x256xbf16, #tpu.memory_space<vmem>>, vector<8x256xbf16>
    %c0_4 = arith.constant 0 : index
    %c0_5 = arith.constant 0 : index
    %5 = vector.load %arg4[%c0_4, %c0_5] : memref<256x256xbf16, #tpu.memory_space<vmem>>, vector<256x256xbf16>
    %cst = arith.constant dense<0.000000e+00> : vector<8x256xf32>
    %6 = tpu.matmul %4, %5, %cst {dimension_numbers = #tpu.dot_dimension_numbers<[1], [0], [0], [1], [0, 0, 1, 1], [], []>} : vector<8x256xbf16>, vector<256x256xbf16>, vector<8x256xf32> -> vector<8x256xf32>
    %7 = arith.addf %3, %6 : vector<8x256xf32>
    %c0_6 = arith.constant 0 : index
    %c0_7 = arith.constant 0 : index
    %8 = vector.load %arg8[%c0_6, %c0_7] : memref<8x256xf32, #tpu.memory_space<vmem>>, vector<8x256xf32>
    tpu.vector_store %arg8[%c0_6, %c0_7], %7 {strides = array<i32>} : memref<8x256xf32, #tpu.memory_space<vmem>>, vector<8x256xf32>,
    %c8_i32 = arith.constant 8 : i32
    %9 = arith.cmpi eq, %arg2, %c8_i32 : i32
    %10 = arith.extui %9 : i1 to i32
    %c0_i32_8 = arith.constant 0 : i32
    %11 = arith.cmpi ne, %10, %c0_i32_8 : i32
    scf.if %11 {
      %c0_9 = arith.constant 0 : index
      %c0_10 = arith.constant 0 : index
      %12 = vector.load %arg8[%c0_9, %c0_10] : memref<8x256xf32, #tpu.memory_space<vmem>>, vector<8x256xf32>
      %c0_11 = arith.constant 0 : index
      %c0_12 = arith.constant 0 : index
      %13 = vector.load %arg5[%c0_11, %c0_12] : memref<1x256xf32, #tpu.memory_space<vmem>>, vector<1x256xf32>
      %14 = vector.broadcast %13 : vector<1x256xf32> to vector<8x256xf32>
      %15 = arith.mulf %12, %14 : vector<8x256xf32>
      %c0_13 = arith.constant 0 : index
      %c0_14 = arith.constant 0 : index
      %16 = vector.load %arg6[%c0_13, %c0_14] : memref<1x256xf32, #tpu.memory_space<vmem>>, vector<1x256xf32>
      %17 = vector.broadcast %16 : vector<1x256xf32> to vector<8x256xf32>
      %18 = arith.addf %15, %17 : vector<8x256xf32>
      %cst_15 = arith.constant 0.000000e+00 : f32
      %19 = vector.broadcast %cst_15 : f32 to vector<8x256xf32>
      %20 = arith.maximumf %18, %19 : vector<8x256xf32>
      %c0_16 = arith.constant 0 : index
      %c0_17 = arith.constant 0 : index
      %21 = vector.load %arg7[%c0_16, %c0_17] : memref<8x256xf32, #tpu.memory_space<vmem>>, vector<8x256xf32>
      tpu.vector_store %arg7[%c0_16, %c0_17], %20 {strides = array<i32>} : memref<8x256xf32, #tpu.memory_space<vmem>>, vector<8x256xf32>,
    } else {
    }
    return
  }
  func.func @transform_0(%arg0: i32, %arg1: i32, %arg2: i32) -> (i32, i32) {
    %c0_i32 = arith.constant 0 : i32
    return %arg0, %arg2 : i32, i32
  }
  func.func @transform_1(%arg0: i32, %arg1: i32, %arg2: i32) -> (i32, i32) {
    %c0_i32 = arith.constant 0 : i32
    return %arg2, %arg1 : i32, i32
  }
  func.func @transform_2(%arg0: i32, %arg1: i32, %arg2: i32) -> (i32, i32) {
    %c0_i32 = arith.constant 0 : i32
    %c0_i32_0 = arith.constant 0 : i32
    return %c0_i32, %arg1 : i32, i32
  }
  func.func @transform_3(%arg0: i32, %arg1: i32, %arg2: i32) -> (i32, i32) {
    %c0_i32 = arith.constant 0 : i32
    %c0_i32_0 = arith.constant 0 : i32
    return %c0_i32, %arg1 : i32, i32
  }
  func.func @transform_4(%arg0: i32, %arg1: i32, %arg2: i32) -> (i32, i32) {
    %c0_i32 = arith.constant 0 : i32
    return %arg0, %arg1 : i32, i32
  }
}

module attributes {stable_mosaic.version = 11 : i64} {
  func.func @_fused_matmul_kernel(%arg0: i32, %arg1: i32, %arg2: i32, %arg3: memref<2x256xbf16, #tpu.memory_space<vmem>>, %arg4: memref<256x256xbf16, #tpu.memory_space<vmem>>, %arg5: memref<1x256xf32, #tpu.memory_space<vmem>>, %arg6: memref<1x256xf32, #tpu.memory_space<vmem>>, %arg7: memref<2x256xf32, #tpu.memory_space<vmem>>, %arg8: memref<2x256xf32, #tpu.memory_space<vmem>>) attributes {dimension_semantics = [#tpu.dimension_semantics<parallel>, #tpu.dimension_semantics<parallel>, #tpu.dimension_semantics<arbitrary>], iteration_bounds = array<i64: 1, 2, 9>, scalar_prefetch = 0 : i64, scratch_operands = 1 : i64, tpu.core_type = #tpu.core_type<tc>, window_params = [{transform_indices = @transform_0, window_bounds = array<i64: 2, 256>}, {transform_indices = @transform_1, window_bounds = array<i64: 256, 256>}, {transform_indices = @transform_2, window_bounds = array<i64: 1, 256>}, {transform_indices = @transform_3, window_bounds = array<i64: 1, 256>}, {transform_indices = @transform_4, window_bounds = array<i64: 2, 256>}]} {
    %c0_i32 = arith.constant 0 : i32
    %0 = arith.cmpi eq, %arg2, %c0_i32 : i32
    %1 = arith.extui %0 : i1 to i32
    %c0_i32_0 = arith.constant 0 : i32
    %2 = arith.cmpi ne, %1, %c0_i32_0 : i32
    scf.if %2 {
      %cst_9 = arith.constant 0.000000e+00 : f32
      %12 = vector.broadcast %cst_9 : f32 to vector<2x256xf32>
      %c0_10 = arith.constant 0 : index
      %c0_11 = arith.constant 0 : index
      %13 = vector.load %arg8[%c0_10, %c0_11] : memref<2x256xf32, #tpu.memory_space<vmem>>, vector<2x256xf32>
      tpu.vector_store %arg8[%c0_10, %c0_11], %12 {strides = array<i32>} : memref<2x256xf32, #tpu.memory_space<vmem>>, vector<2x256xf32>,
    } else {
    }
    %c0 = arith.constant 0 : index
    %c0_1 = arith.constant 0 : index
    %3 = vector.load %arg8[%c0, %c0_1] : memref<2x256xf32, #tpu.memory_space<vmem>>, vector<2x256xf32>
    %c0_2 = arith.constant 0 : index
    %c0_3 = arith.constant 0 : index
    %4 = vector.load %arg3[%c0_2, %c0_3] : memref<2x256xbf16, #tpu.memory_space<vmem>>, vector<2x256xbf16>
    %c0_4 = arith.constant 0 : index
    %c0_5 = arith.constant 0 : index
    %5 = vector.load %arg4[%c0_4, %c0_5] : memref<256x256xbf16, #tpu.memory_space<vmem>>, vector<256x256xbf16>
    %cst = arith.constant dense<0.000000e+00> : vector<2x256xf32>
    %6 = tpu.matmul %4, %5, %cst {dimension_numbers = #tpu.dot_dimension_numbers<[1], [0], [0], [1], [0, 0, 1, 1], [], []>} : vector<2x256xbf16>, vector<256x256xbf16>, vector<2x256xf32> -> vector<2x256xf32>
    %7 = arith.addf %3, %6 : vector<2x256xf32>
    %c0_6 = arith.constant 0 : index
    %c0_7 = arith.constant 0 : index
    %8 = vector.load %arg8[%c0_6, %c0_7] : memref<2x256xf32, #tpu.memory_space<vmem>>, vector<2x256xf32>
    tpu.vector_store %arg8[%c0_6, %c0_7], %7 {strides = array<i32>} : memref<2x256xf32, #tpu.memory_space<vmem>>, vector<2x256xf32>,
    %c8_i32 = arith.constant 8 : i32
    %9 = arith.cmpi eq, %arg2, %c8_i32 : i32
    %10 = arith.extui %9 : i1 to i32
    %c0_i32_8 = arith.constant 0 : i32
    %11 = arith.cmpi ne, %10, %c0_i32_8 : i32
    scf.if %11 {
      %c0_9 = arith.constant 0 : index
      %c0_10 = arith.constant 0 : index
      %12 = vector.load %arg8[%c0_9, %c0_10] : memref<2x256xf32, #tpu.memory_space<vmem>>, vector<2x256xf32>
      %c0_11 = arith.constant 0 : index
      %c0_12 = arith.constant 0 : index
      %13 = vector.load %arg5[%c0_11, %c0_12] : memref<1x256xf32, #tpu.memory_space<vmem>>, vector<1x256xf32>
      %14 = vector.broadcast %13 : vector<1x256xf32> to vector<2x256xf32>
      %15 = arith.mulf %12, %14 : vector<2x256xf32>
      %c0_13 = arith.constant 0 : index
      %c0_14 = arith.constant 0 : index
      %16 = vector.load %arg6[%c0_13, %c0_14] : memref<1x256xf32, #tpu.memory_space<vmem>>, vector<1x256xf32>
      %17 = vector.broadcast %16 : vector<1x256xf32> to vector<2x256xf32>
      %18 = arith.addf %15, %17 : vector<2x256xf32>
      %cst_15 = arith.constant 0.000000e+00 : f32
      %19 = vector.broadcast %cst_15 : f32 to vector<2x256xf32>
      %20 = arith.maximumf %18, %19 : vector<2x256xf32>
      %c0_16 = arith.constant 0 : index
      %c0_17 = arith.constant 0 : index
      %21 = vector.load %arg7[%c0_16, %c0_17] : memref<2x256xf32, #tpu.memory_space<vmem>>, vector<2x256xf32>
      tpu.vector_store %arg7[%c0_16, %c0_17], %20 {strides = array<i32>} : memref<2x256xf32, #tpu.memory_space<vmem>>, vector<2x256xf32>,
    } else {
    }
    return
  }
  func.func @transform_0(%arg0: i32, %arg1: i32, %arg2: i32) -> (i32, i32) {
    %c0_i32 = arith.constant 0 : i32
    return %arg0, %arg2 : i32, i32
  }
  func.func @transform_1(%arg0: i32, %arg1: i32, %arg2: i32) -> (i32, i32) {
    %c0_i32 = arith.constant 0 : i32
    return %arg2, %arg1 : i32, i32
  }
  func.func @transform_2(%arg0: i32, %arg1: i32, %arg2: i32) -> (i32, i32) {
    %c0_i32 = arith.constant 0 : i32
    %c0_i32_0 = arith.constant 0 : i32
    return %c0_i32, %arg1 : i32, i32
  }
  func.func @transform_3(%arg0: i32, %arg1: i32, %arg2: i32) -> (i32, i32) {
    %c0_i32 = arith.constant 0 : i32
    %c0_i32_0 = arith.constant 0 : i32
    return %c0_i32, %arg1 : i32, i32
  }
  func.func @transform_4(%arg0: i32, %arg1: i32, %arg2: i32) -> (i32, i32) {
    %c0_i32 = arith.constant 0 : i32
    return %arg0, %arg1 : i32, i32
  }
}

module attributes {stable_mosaic.version = 11 : i64} {
  func.func @_fused_matmul_kernel(%arg0: i32, %arg1: i32, %arg2: i32, %arg3: memref<2x256xbf16, #tpu.memory_space<vmem>>, %arg4: memref<256x256xbf16, #tpu.memory_space<vmem>>, %arg5: memref<1x256xf32, #tpu.memory_space<vmem>>, %arg6: memref<1x256xf32, #tpu.memory_space<vmem>>, %arg7: memref<2x256xf32, #tpu.memory_space<vmem>>, %arg8: memref<2x256xf32, #tpu.memory_space<vmem>>) attributes {dimension_semantics = [#tpu.dimension_semantics<parallel>, #tpu.dimension_semantics<parallel>, #tpu.dimension_semantics<arbitrary>], iteration_bounds = array<i64: 1, 2, 1>, scalar_prefetch = 0 : i64, scratch_operands = 1 : i64, tpu.core_type = #tpu.core_type<tc>, window_params = [{transform_indices = @transform_0, window_bounds = array<i64: 2, 256>}, {transform_indices = @transform_1, window_bounds = array<i64: 256, 256>}, {transform_indices = @transform_2, window_bounds = array<i64: 1, 256>}, {transform_indices = @transform_3, window_bounds = array<i64: 1, 256>}, {transform_indices = @transform_4, window_bounds = array<i64: 2, 256>}]} {
    %c0_i32 = arith.constant 0 : i32
    %0 = arith.cmpi eq, %arg2, %c0_i32 : i32
    %1 = arith.extui %0 : i1 to i32
    %c0_i32_0 = arith.constant 0 : i32
    %2 = arith.cmpi ne, %1, %c0_i32_0 : i32
    scf.if %2 {
      %cst_10 = arith.constant 0.000000e+00 : f32
      %12 = vector.broadcast %cst_10 : f32 to vector<2x256xf32>
      %c0_11 = arith.constant 0 : index
      %c0_12 = arith.constant 0 : index
      %13 = vector.load %arg8[%c0_11, %c0_12] : memref<2x256xf32, #tpu.memory_space<vmem>>, vector<2x256xf32>
      tpu.vector_store %arg8[%c0_11, %c0_12], %12 {strides = array<i32>} : memref<2x256xf32, #tpu.memory_space<vmem>>, vector<2x256xf32>,
    } else {
    }
    %c0 = arith.constant 0 : index
    %c0_1 = arith.constant 0 : index
    %3 = vector.load %arg8[%c0, %c0_1] : memref<2x256xf32, #tpu.memory_space<vmem>>, vector<2x256xf32>
    %c0_2 = arith.constant 0 : index
    %c0_3 = arith.constant 0 : index
    %4 = vector.load %arg3[%c0_2, %c0_3] : memref<2x256xbf16, #tpu.memory_space<vmem>>, vector<2x256xbf16>
    %c0_4 = arith.constant 0 : index
    %c0_5 = arith.constant 0 : index
    %5 = vector.load %arg4[%c0_4, %c0_5] : memref<256x256xbf16, #tpu.memory_space<vmem>>, vector<256x256xbf16>
    %cst = arith.constant dense<0.000000e+00> : vector<2x256xf32>
    %6 = tpu.matmul %4, %5, %cst {dimension_numbers = #tpu.dot_dimension_numbers<[1], [0], [0], [1], [0, 0, 1, 1], [], []>} : vector<2x256xbf16>, vector<256x256xbf16>, vector<2x256xf32> -> vector<2x256xf32>
    %7 = arith.addf %3, %6 : vector<2x256xf32>
    %c0_6 = arith.constant 0 : index
    %c0_7 = arith.constant 0 : index
    %8 = vector.load %arg8[%c0_6, %c0_7] : memref<2x256xf32, #tpu.memory_space<vmem>>, vector<2x256xf32>
    tpu.vector_store %arg8[%c0_6, %c0_7], %7 {strides = array<i32>} : memref<2x256xf32, #tpu.memory_space<vmem>>, vector<2x256xf32>,
    %c0_i32_8 = arith.constant 0 : i32
    %9 = arith.cmpi eq, %arg2, %c0_i32_8 : i32
    %10 = arith.extui %9 : i1 to i32
    %c0_i32_9 = arith.constant 0 : i32
    %11 = arith.cmpi ne, %10, %c0_i32_9 : i32
    scf.if %11 {
      %c0_10 = arith.constant 0 : index
      %c0_11 = arith.constant 0 : index
      %12 = vector.load %arg8[%c0_10, %c0_11] : memref<2x256xf32, #tpu.memory_space<vmem>>, vector<2x256xf32>
      %c0_12 = arith.constant 0 : index
      %c0_13 = arith.constant 0 : index
      %13 = vector.load %arg5[%c0_12, %c0_13] : memref<1x256xf32, #tpu.memory_space<vmem>>, vector<1x256xf32>
      %14 = vector.broadcast %13 : vector<1x256xf32> to vector<2x256xf32>
      %15 = arith.mulf %12, %14 : vector<2x256xf32>
      %c0_14 = arith.constant 0 : index
      %c0_15 = arith.constant 0 : index
      %16 = vector.load %arg6[%c0_14, %c0_15] : memref<1x256xf32, #tpu.memory_space<vmem>>, vector<1x256xf32>
      %17 = vector.broadcast %16 : vector<1x256xf32> to vector<2x256xf32>
      %18 = arith.addf %15, %17 : vector<2x256xf32>
      %c0_16 = arith.constant 0 : index
      %c0_17 = arith.constant 0 : index
      %19 = vector.load %arg7[%c0_16, %c0_17] : memref<2x256xf32, #tpu.memory_space<vmem>>, vector<2x256xf32>
      tpu.vector_store %arg7[%c0_16, %c0_17], %18 {strides = array<i32>} : memref<2x256xf32, #tpu.memory_space<vmem>>, vector<2x256xf32>,
    } else {
    }
    return
  }
  func.func @transform_0(%arg0: i32, %arg1: i32, %arg2: i32) -> (i32, i32) {
    %c0_i32 = arith.constant 0 : i32
    return %arg0, %arg2 : i32, i32
  }
  func.func @transform_1(%arg0: i32, %arg1: i32, %arg2: i32) -> (i32, i32) {
    %c0_i32 = arith.constant 0 : i32
    return %arg2, %arg1 : i32, i32
  }
  func.func @transform_2(%arg0: i32, %arg1: i32, %arg2: i32) -> (i32, i32) {
    %c0_i32 = arith.constant 0 : i32
    %c0_i32_0 = arith.constant 0 : i32
    return %c0_i32, %arg1 : i32, i32
  }
  func.func @transform_3(%arg0: i32, %arg1: i32, %arg2: i32) -> (i32, i32) {
    %c0_i32 = arith.constant 0 : i32
    %c0_i32_0 = arith.constant 0 : i32
    return %c0_i32, %arg1 : i32, i32
  }
  func.func @transform_4(%arg0: i32, %arg1: i32, %arg2: i32) -> (i32, i32) {
    %c0_i32 = arith.constant 0 : i32
    return %arg0, %arg1 : i32, i32
  }
}

module attributes {stable_mosaic.version = 11 : i64} {
  func.func @_fused_matmul_kernel(%arg0: i32, %arg1: i32, %arg2: i32, %arg3: memref<2x256xbf16, #tpu.memory_space<vmem>>, %arg4: memref<256x256xbf16, #tpu.memory_space<vmem>>, %arg5: memref<1x256xf32, #tpu.memory_space<vmem>>, %arg6: memref<1x256xf32, #tpu.memory_space<vmem>>, %arg7: memref<2x256xf32, #tpu.memory_space<vmem>>, %arg8: memref<2x256xf32, #tpu.memory_space<vmem>>, %arg9: memref<2x256xf32, #tpu.memory_space<vmem>>) attributes {dimension_semantics = [#tpu.dimension_semantics<parallel>, #tpu.dimension_semantics<parallel>, #tpu.dimension_semantics<arbitrary>], iteration_bounds = array<i64: 1, 2, 18>, scalar_prefetch = 0 : i64, scratch_operands = 1 : i64, tpu.core_type = #tpu.core_type<tc>, window_params = [{transform_indices = @transform_0, window_bounds = array<i64: 2, 256>}, {transform_indices = @transform_1, window_bounds = array<i64: 256, 256>}, {transform_indices = @transform_2, window_bounds = array<i64: 1, 256>}, {transform_indices = @transform_3, window_bounds = array<i64: 1, 256>}, {transform_indices = @transform_4, window_bounds = array<i64: 2, 256>}, {transform_indices = @transform_5, window_bounds = array<i64: 2, 256>}]} {
    %c0_i32 = arith.constant 0 : i32
    %0 = arith.cmpi eq, %arg2, %c0_i32 : i32
    %1 = arith.extui %0 : i1 to i32
    %c0_i32_0 = arith.constant 0 : i32
    %2 = arith.cmpi ne, %1, %c0_i32_0 : i32
    scf.if %2 {
      %cst_9 = arith.constant 0.000000e+00 : f32
      %12 = vector.broadcast %cst_9 : f32 to vector<2x256xf32>
      %c0_10 = arith.constant 0 : index
      %c0_11 = arith.constant 0 : index
      %13 = vector.load %arg9[%c0_10, %c0_11] : memref<2x256xf32, #tpu.memory_space<vmem>>, vector<2x256xf32>
      tpu.vector_store %arg9[%c0_10, %c0_11], %12 {strides = array<i32>} : memref<2x256xf32, #tpu.memory_space<vmem>>, vector<2x256xf32>,
    } else {
    }
    %c0 = arith.constant 0 : index
    %c0_1 = arith.constant 0 : index
    %3 = vector.load %arg9[%c0, %c0_1] : memref<2x256xf32, #tpu.memory_space<vmem>>, vector<2x256xf32>
    %c0_2 = arith.constant 0 : index
    %c0_3 = arith.constant 0 : index
    %4 = vector.load %arg3[%c0_2, %c0_3] : memref<2x256xbf16, #tpu.memory_space<vmem>>, vector<2x256xbf16>
    %c0_4 = arith.constant 0 : index
    %c0_5 = arith.constant 0 : index
    %5 = vector.load %arg4[%c0_4, %c0_5] : memref<256x256xbf16, #tpu.memory_space<vmem>>, vector<256x256xbf16>
    %cst = arith.constant dense<0.000000e+00> : vector<2x256xf32>
    %6 = tpu.matmul %4, %5, %cst {dimension_numbers = #tpu.dot_dimension_numbers<[1], [0], [0], [1], [0, 0, 1, 1], [], []>} : vector<2x256xbf16>, vector<256x256xbf16>, vector<2x256xf32> -> vector<2x256xf32>
    %7 = arith.addf %3, %6 : vector<2x256xf32>
    %c0_6 = arith.constant 0 : index
    %c0_7 = arith.constant 0 : index
    %8 = vector.load %arg9[%c0_6, %c0_7] : memref<2x256xf32, #tpu.memory_space<vmem>>, vector<2x256xf32>
    tpu.vector_store %arg9[%c0_6, %c0_7], %7 {strides = array<i32>} : memref<2x256xf32, #tpu.memory_space<vmem>>, vector<2x256xf32>,
    %c17_i32 = arith.constant 17 : i32
    %9 = arith.cmpi eq, %arg2, %c17_i32 : i32
    %10 = arith.extui %9 : i1 to i32
    %c0_i32_8 = arith.constant 0 : i32
    %11 = arith.cmpi ne, %10, %c0_i32_8 : i32
    scf.if %11 {
      %c0_9 = arith.constant 0 : index
      %c0_10 = arith.constant 0 : index
      %12 = vector.load %arg9[%c0_9, %c0_10] : memref<2x256xf32, #tpu.memory_space<vmem>>, vector<2x256xf32>
      %c0_11 = arith.constant 0 : index
      %c0_12 = arith.constant 0 : index
      %13 = vector.load %arg5[%c0_11, %c0_12] : memref<1x256xf32, #tpu.memory_space<vmem>>, vector<1x256xf32>
      %14 = vector.broadcast %13 : vector<1x256xf32> to vector<2x256xf32>
      %15 = arith.mulf %12, %14 : vector<2x256xf32>
      %c0_13 = arith.constant 0 : index
      %c0_14 = arith.constant 0 : index
      %16 = vector.load %arg6[%c0_13, %c0_14] : memref<1x256xf32, #tpu.memory_space<vmem>>, vector<1x256xf32>
      %17 = vector.broadcast %16 : vector<1x256xf32> to vector<2x256xf32>
      %18 = arith.addf %15, %17 : vector<2x256xf32>
      %c0_15 = arith.constant 0 : index
      %c0_16 = arith.constant 0 : index
      %19 = vector.load %arg7[%c0_15, %c0_16] : memref<2x256xf32, #tpu.memory_space<vmem>>, vector<2x256xf32>
      %20 = arith.addf %18, %19 : vector<2x256xf32>
      %cst_17 = arith.constant 0.000000e+00 : f32
      %21 = vector.broadcast %cst_17 : f32 to vector<2x256xf32>
      %22 = arith.maximumf %20, %21 : vector<2x256xf32>
      %c0_18 = arith.constant 0 : index
      %c0_19 = arith.constant 0 : index
      %23 = vector.load %arg8[%c0_18, %c0_19] : memref<2x256xf32, #tpu.memory_space<vmem>>, vector<2x256xf32>
      tpu.vector_store %arg8[%c0_18, %c0_19], %22 {strides = array<i32>} : memref<2x256xf32, #tpu.memory_space<vmem>>, vector<2x256xf32>,
    } else {
    }
    return
  }
  func.func @transform_0(%arg0: i32, %arg1: i32, %arg2: i32) -> (i32, i32) {
    %c0_i32 = arith.constant 0 : i32
    return %arg0, %arg2 : i32, i32
  }
  func.func @transform_1(%arg0: i32, %arg1: i32, %arg2: i32) -> (i32, i32) {
    %c0_i32 = arith.constant 0 : i32
    return %arg2, %arg1 : i32, i32
  }
  func.func @transform_2(%arg0: i32, %arg1: i32, %arg2: i32) -> (i32, i32) {
    %c0_i32 = arith.constant 0 : i32
    %c0_i32_0 = arith.constant 0 : i32
    return %c0_i32, %arg1 : i32, i32
  }
  func.func @transform_3(%arg0: i32, %arg1: i32, %arg2: i32) -> (i32, i32) {
    %c0_i32 = arith.constant 0 : i32
    %c0_i32_0 = arith.constant 0 : i32
    return %c0_i32, %arg1 : i32, i32
  }
  func.func @transform_4(%arg0: i32, %arg1: i32, %arg2: i32) -> (i32, i32) {
    %c0_i32 = arith.constant 0 : i32
    return %arg0, %arg1 : i32, i32
  }
  func.func @transform_5(%arg0: i32, %arg1: i32, %arg2: i32) -> (i32, i32) {
    %c0_i32 = arith.constant 0 : i32
    return %arg0, %arg1 : i32, i32
  }
}

module attributes {stable_mosaic.version = 11 : i64} {
  func.func @_fused_matmul_kernel(%arg0: i32, %arg1: i32, %arg2: i32, %arg3: memref<2x256xbf16, #tpu.memory_space<vmem>>, %arg4: memref<256x256xbf16, #tpu.memory_space<vmem>>, %arg5: memref<1x256xf32, #tpu.memory_space<vmem>>, %arg6: memref<1x256xf32, #tpu.memory_space<vmem>>, %arg7: memref<2x256xf32, #tpu.memory_space<vmem>>, %arg8: memref<2x256xf32, #tpu.memory_space<vmem>>) attributes {dimension_semantics = [#tpu.dimension_semantics<parallel>, #tpu.dimension_semantics<parallel>, #tpu.dimension_semantics<arbitrary>], iteration_bounds = array<i64: 1, 2, 18>, scalar_prefetch = 0 : i64, scratch_operands = 1 : i64, tpu.core_type = #tpu.core_type<tc>, window_params = [{transform_indices = @transform_0, window_bounds = array<i64: 2, 256>}, {transform_indices = @transform_1, window_bounds = array<i64: 256, 256>}, {transform_indices = @transform_2, window_bounds = array<i64: 1, 256>}, {transform_indices = @transform_3, window_bounds = array<i64: 1, 256>}, {transform_indices = @transform_4, window_bounds = array<i64: 2, 256>}]} {
    %c0_i32 = arith.constant 0 : i32
    %0 = arith.cmpi eq, %arg2, %c0_i32 : i32
    %1 = arith.extui %0 : i1 to i32
    %c0_i32_0 = arith.constant 0 : i32
    %2 = arith.cmpi ne, %1, %c0_i32_0 : i32
    scf.if %2 {
      %cst_9 = arith.constant 0.000000e+00 : f32
      %12 = vector.broadcast %cst_9 : f32 to vector<2x256xf32>
      %c0_10 = arith.constant 0 : index
      %c0_11 = arith.constant 0 : index
      %13 = vector.load %arg8[%c0_10, %c0_11] : memref<2x256xf32, #tpu.memory_space<vmem>>, vector<2x256xf32>
      tpu.vector_store %arg8[%c0_10, %c0_11], %12 {strides = array<i32>} : memref<2x256xf32, #tpu.memory_space<vmem>>, vector<2x256xf32>,
    } else {
    }
    %c0 = arith.constant 0 : index
    %c0_1 = arith.constant 0 : index
    %3 = vector.load %arg8[%c0, %c0_1] : memref<2x256xf32, #tpu.memory_space<vmem>>, vector<2x256xf32>
    %c0_2 = arith.constant 0 : index
    %c0_3 = arith.constant 0 : index
    %4 = vector.load %arg3[%c0_2, %c0_3] : memref<2x256xbf16, #tpu.memory_space<vmem>>, vector<2x256xbf16>
    %c0_4 = arith.constant 0 : index
    %c0_5 = arith.constant 0 : index
    %5 = vector.load %arg4[%c0_4, %c0_5] : memref<256x256xbf16, #tpu.memory_space<vmem>>, vector<256x256xbf16>
    %cst = arith.constant dense<0.000000e+00> : vector<2x256xf32>
    %6 = tpu.matmul %4, %5, %cst {dimension_numbers = #tpu.dot_dimension_numbers<[1], [0], [0], [1], [0, 0, 1, 1], [], []>} : vector<2x256xbf16>, vector<256x256xbf16>, vector<2x256xf32> -> vector<2x256xf32>
    %7 = arith.addf %3, %6 : vector<2x256xf32>
    %c0_6 = arith.constant 0 : index
    %c0_7 = arith.constant 0 : index
    %8 = vector.load %arg8[%c0_6, %c0_7] : memref<2x256xf32, #tpu.memory_space<vmem>>, vector<2x256xf32>
    tpu.vector_store %arg8[%c0_6, %c0_7], %7 {strides = array<i32>} : memref<2x256xf32, #tpu.memory_space<vmem>>, vector<2x256xf32>,
    %c17_i32 = arith.constant 17 : i32
    %9 = arith.cmpi eq, %arg2, %c17_i32 : i32
    %10 = arith.extui %9 : i1 to i32
    %c0_i32_8 = arith.constant 0 : i32
    %11 = arith.cmpi ne, %10, %c0_i32_8 : i32
    scf.if %11 {
      %c0_9 = arith.constant 0 : index
      %c0_10 = arith.constant 0 : index
      %12 = vector.load %arg8[%c0_9, %c0_10] : memref<2x256xf32, #tpu.memory_space<vmem>>, vector<2x256xf32>
      %c0_11 = arith.constant 0 : index
      %c0_12 = arith.constant 0 : index
      %13 = vector.load %arg5[%c0_11, %c0_12] : memref<1x256xf32, #tpu.memory_space<vmem>>, vector<1x256xf32>
      %14 = vector.broadcast %13 : vector<1x256xf32> to vector<2x256xf32>
      %15 = arith.mulf %12, %14 : vector<2x256xf32>
      %c0_13 = arith.constant 0 : index
      %c0_14 = arith.constant 0 : index
      %16 = vector.load %arg6[%c0_13, %c0_14] : memref<1x256xf32, #tpu.memory_space<vmem>>, vector<1x256xf32>
      %17 = vector.broadcast %16 : vector<1x256xf32> to vector<2x256xf32>
      %18 = arith.addf %15, %17 : vector<2x256xf32>
      %cst_15 = arith.constant 0.000000e+00 : f32
      %19 = vector.broadcast %cst_15 : f32 to vector<2x256xf32>
      %20 = arith.maximumf %18, %19 : vector<2x256xf32>
      %c0_16 = arith.constant 0 : index
      %c0_17 = arith.constant 0 : index
      %21 = vector.load %arg7[%c0_16, %c0_17] : memref<2x256xf32, #tpu.memory_space<vmem>>, vector<2x256xf32>
      tpu.vector_store %arg7[%c0_16, %c0_17], %20 {strides = array<i32>} : memref<2x256xf32, #tpu.memory_space<vmem>>, vector<2x256xf32>,
    } else {
    }
    return
  }
  func.func @transform_0(%arg0: i32, %arg1: i32, %arg2: i32) -> (i32, i32) {
    %c0_i32 = arith.constant 0 : i32
    return %arg0, %arg2 : i32, i32
  }
  func.func @transform_1(%arg0: i32, %arg1: i32, %arg2: i32) -> (i32, i32) {
    %c0_i32 = arith.constant 0 : i32
    return %arg2, %arg1 : i32, i32
  }
  func.func @transform_2(%arg0: i32, %arg1: i32, %arg2: i32) -> (i32, i32) {
    %c0_i32 = arith.constant 0 : i32
    %c0_i32_0 = arith.constant 0 : i32
    return %c0_i32, %arg1 : i32, i32
  }
  func.func @transform_3(%arg0: i32, %arg1: i32, %arg2: i32) -> (i32, i32) {
    %c0_i32 = arith.constant 0 : i32
    %c0_i32_0 = arith.constant 0 : i32
    return %c0_i32, %arg1 : i32, i32
  }
  func.func @transform_4(%arg0: i32, %arg1: i32, %arg2: i32) -> (i32, i32) {
    %c0_i32 = arith.constant 0 : i32
    return %arg0, %arg1 : i32, i32
  }
}

module attributes {stable_mosaic.version = 11 : i64} {
  func.func @_avgpool_kernel(%arg0: i32, %arg1: memref<2x1x512xf32, #tpu.memory_space<vmem>>, %arg2: memref<2x512xf32, #tpu.memory_space<vmem>>) attributes {dimension_semantics = [#tpu.dimension_semantics<arbitrary>], iteration_bounds = array<i64: 1>, scalar_prefetch = 0 : i64, scratch_operands = 0 : i64, tpu.core_type = #tpu.core_type<tc>, window_params = [{pipeline_mode = #tpu.pipeline_mode<synchronous>, transform_indices = @transform_0, window_bounds = array<i64: 2, 1, 512>}, {pipeline_mode = #tpu.pipeline_mode<synchronous>, transform_indices = @transform_1, window_bounds = array<i64: 2, 512>}]} {
    %c0 = arith.constant 0 : index
    %c0_0 = arith.constant 0 : index
    %c0_1 = arith.constant 0 : index
    %0 = vector.load %arg1[%c0, %c0_0, %c0_1] : memref<2x1x512xf32, #tpu.memory_space<vmem>>, vector<2x1x512xf32>
    %cst = arith.constant dense<0.000000e+00> : vector<2x512xf32>
    %1 = vector.multi_reduction <add>, %0, %cst [1] : vector<2x1x512xf32> to vector<2x512xf32>
    %cst_2 = arith.constant 1.000000e+00 : f32
    %2 = vector.broadcast %cst_2 : f32 to vector<2x512xf32>
    %3 = arith.divf %1, %2 : vector<2x512xf32>
    %c0_3 = arith.constant 0 : index
    %c0_4 = arith.constant 0 : index
    %4 = vector.load %arg2[%c0_3, %c0_4] : memref<2x512xf32, #tpu.memory_space<vmem>>, vector<2x512xf32>
    tpu.vector_store %arg2[%c0_3, %c0_4], %3 {strides = array<i32>} : memref<2x512xf32, #tpu.memory_space<vmem>>, vector<2x512xf32>,
    return
  }
  func.func @transform_0(%arg0: i32) -> (i32, i32, i32) {
    %c0_i32 = arith.constant 0 : i32
    %c0_i32_0 = arith.constant 0 : i32
    %c0_i32_1 = arith.constant 0 : i32
    %c0_i32_2 = arith.constant 0 : i32
    return %c0_i32, %c0_i32_0, %c0_i32_1 : i32, i32, i32
  }
  func.func @transform_1(%arg0: i32) -> (i32, i32) {
    %c0_i32 = arith.constant 0 : i32
    %c0_i32_0 = arith.constant 0 : i32
    %c0_i32_1 = arith.constant 0 : i32
    return %c0_i32, %c0_i32_0 : i32, i32
  }
}

module attributes {stable_mosaic.version = 11 : i64} {
  func.func @_fused_matmul_kernel(%arg0: i32, %arg1: i32, %arg2: i32, %arg3: memref<2x256xbf16, #tpu.memory_space<vmem>>, %arg4: memref<256x5xbf16, #tpu.memory_space<vmem>>, %arg5: memref<1x5xf32, #tpu.memory_space<vmem>>, %arg6: memref<1x5xf32, #tpu.memory_space<vmem>>, %arg7: memref<2x5xf32, #tpu.memory_space<vmem>>, %arg8: memref<2x5xf32, #tpu.memory_space<vmem>>) attributes {dimension_semantics = [#tpu.dimension_semantics<parallel>, #tpu.dimension_semantics<parallel>, #tpu.dimension_semantics<arbitrary>], iteration_bounds = array<i64: 1, 1, 2>, scalar_prefetch = 0 : i64, scratch_operands = 1 : i64, tpu.core_type = #tpu.core_type<tc>, window_params = [{transform_indices = @transform_0, window_bounds = array<i64: 2, 256>}, {transform_indices = @transform_1, window_bounds = array<i64: 256, 5>}, {transform_indices = @transform_2, window_bounds = array<i64: 1, 5>}, {transform_indices = @transform_3, window_bounds = array<i64: 1, 5>}, {transform_indices = @transform_4, window_bounds = array<i64: 2, 5>}]} {
    %c0_i32 = arith.constant 0 : i32
    %0 = arith.cmpi eq, %arg2, %c0_i32 : i32
    %1 = arith.extui %0 : i1 to i32
    %c0_i32_0 = arith.constant 0 : i32
    %2 = arith.cmpi ne, %1, %c0_i32_0 : i32
    scf.if %2 {
      %cst_9 = arith.constant 0.000000e+00 : f32
      %12 = vector.broadcast %cst_9 : f32 to vector<2x5xf32>
      %c0_10 = arith.constant 0 : index
      %c0_11 = arith.constant 0 : index
      %13 = vector.load %arg8[%c0_10, %c0_11] : memref<2x5xf32, #tpu.memory_space<vmem>>, vector<2x5xf32>
      tpu.vector_store %arg8[%c0_10, %c0_11], %12 {strides = array<i32>} : memref<2x5xf32, #tpu.memory_space<vmem>>, vector<2x5xf32>,
    } else {
    }
    %c0 = arith.constant 0 : index
    %c0_1 = arith.constant 0 : index
    %3 = vector.load %arg8[%c0, %c0_1] : memref<2x5xf32, #tpu.memory_space<vmem>>, vector<2x5xf32>
    %c0_2 = arith.constant 0 : index
    %c0_3 = arith.constant 0 : index
    %4 = vector.load %arg3[%c0_2, %c0_3] : memref<2x256xbf16, #tpu.memory_space<vmem>>, vector<2x256xbf16>
    %c0_4 = arith.constant 0 : index
    %c0_5 = arith.constant 0 : index
    %5 = vector.load %arg4[%c0_4, %c0_5] : memref<256x5xbf16, #tpu.memory_space<vmem>>, vector<256x5xbf16>
    %cst = arith.constant dense<0.000000e+00> : vector<2x5xf32>
    %6 = tpu.matmul %4, %5, %cst {dimension_numbers = #tpu.dot_dimension_numbers<[1], [0], [0], [1], [0, 0, 1, 1], [], []>} : vector<2x256xbf16>, vector<256x5xbf16>, vector<2x5xf32> -> vector<2x5xf32>
    %7 = arith.addf %3, %6 : vector<2x5xf32>
    %c0_6 = arith.constant 0 : index
    %c0_7 = arith.constant 0 : index
    %8 = vector.load %arg8[%c0_6, %c0_7] : memref<2x5xf32, #tpu.memory_space<vmem>>, vector<2x5xf32>
    tpu.vector_store %arg8[%c0_6, %c0_7], %7 {strides = array<i32>} : memref<2x5xf32, #tpu.memory_space<vmem>>, vector<2x5xf32>,
    %c1_i32 = arith.constant 1 : i32
    %9 = arith.cmpi eq, %arg2, %c1_i32 : i32
    %10 = arith.extui %9 : i1 to i32
    %c0_i32_8 = arith.constant 0 : i32
    %11 = arith.cmpi ne, %10, %c0_i32_8 : i32
    scf.if %11 {
      %c0_9 = arith.constant 0 : index
      %c0_10 = arith.constant 0 : index
      %12 = vector.load %arg8[%c0_9, %c0_10] : memref<2x5xf32, #tpu.memory_space<vmem>>, vector<2x5xf32>
      %c0_11 = arith.constant 0 : index
      %c0_12 = arith.constant 0 : index
      %13 = vector.load %arg5[%c0_11, %c0_12] : memref<1x5xf32, #tpu.memory_space<vmem>>, vector<1x5xf32>
      %14 = vector.broadcast %13 : vector<1x5xf32> to vector<2x5xf32>
      %15 = arith.mulf %12, %14 : vector<2x5xf32>
      %c0_13 = arith.constant 0 : index
      %c0_14 = arith.constant 0 : index
      %16 = vector.load %arg6[%c0_13, %c0_14] : memref<1x5xf32, #tpu.memory_space<vmem>>, vector<1x5xf32>
      %17 = vector.broadcast %16 : vector<1x5xf32> to vector<2x5xf32>
      %18 = arith.addf %15, %17 : vector<2x5xf32>
      %c0_15 = arith.constant 0 : index
      %c0_16 = arith.constant 0 : index
      %19 = vector.load %arg7[%c0_15, %c0_16] : memref<2x5xf32, #tpu.memory_space<vmem>>, vector<2x5xf32>
      tpu.vector_store %arg7[%c0_15, %c0_16], %18 {strides = array<i32>} : memref<2x5xf32, #tpu.memory_space<vmem>>, vector<2x5xf32>,
    } else {
    }
    return
  }
  func.func @transform_0(%arg0: i32, %arg1: i32, %arg2: i32) -> (i32, i32) {
    %c0_i32 = arith.constant 0 : i32
    return %arg0, %arg2 : i32, i32
  }
  func.func @transform_1(%arg0: i32, %arg1: i32, %arg2: i32) -> (i32, i32) {
    %c0_i32 = arith.constant 0 : i32
    return %arg2, %arg1 : i32, i32
  }
  func.func @transform_2(%arg0: i32, %arg1: i32, %arg2: i32) -> (i32, i32) {
    %c0_i32 = arith.constant 0 : i32
    %c0_i32_0 = arith.constant 0 : i32
    return %c0_i32, %arg1 : i32, i32
  }
  func.func @transform_3(%arg0: i32, %arg1: i32, %arg2: i32) -> (i32, i32) {
    %c0_i32 = arith.constant 0 : i32
    %c0_i32_0 = arith.constant 0 : i32
    return %c0_i32, %arg1 : i32, i32
  }
  func.func @transform_4(%arg0: i32, %arg1: i32, %arg2: i32) -> (i32, i32) {
    %c0_i32 = arith.constant 0 : i32
    return %arg0, %arg1 : i32, i32
  }
}

</mosaic_0001>

<bundles_post_ra>
// kernel: fish_classifier_forward.24
= control target key start
LH: loop header
LB: loop body
LE: loop exit
PB: predicated region body
PF: predicated region fallthrough
CT: control target
= control target key end

     0   :  { %s637_s15 = smov 0   ;;  %s807_s0 = inlined_call_operand.vmem [shape: f32[2,9,9,64], index: 0, kind: input, shape index: {}]   ;;  %s808_s1 = inlined_call_operand.vmem [shape: f32[2,9,8,64], index: 1, kind: input, shape index: {}]   ;;  %s809_s2 = inlined_call_operand.vmem [shape: f32[2,8,9,64], index: 2, kind: input, shape index: {}]   ;;  %s810_s3 = inlined_call_operand.vmem [shape: f32[2,8,8,64], index: 3, kind: input, shape index: {}]   ;;  %s811_s4 = inlined_call_operand.vmem [shape: f32[2,8,8,64], index: 4, kind: output, shape index: {}]  }
   0x1 LB: > { %s576_s16 = sadd.s32 4294967295, %s610_s15   ;;  %p580_p0 = scmp.ge.s32.totalorder %s610_s15, 1  ;;  %s610_s15 = sphi %s637_s15, %s14_s15  }
   0x2   : > { %p192_p1 = scmp.lt.s32.totalorder %s610_s15, 3 }
   0x4   : > { %p193_p2 = pnand %p580_p0, %p192_p1 }
   0x5   : > { %p233_p3 = scmp.lt.s32.totalorder (!%p193_p2), %s576_s16, 1  ;;  %vm349_vm0 = vcmask (!%p193_p2), 1046528   ;;  %vm476_vm1 = vcmask (!%p193_p2), 523264  }
   0x6   : > { %196 = sbr.rel (%p193_p2) target bundleno = 57 (0x39), region = 36 }
   0xd   : > { %s813_s16 = smov (!%p233_p3, %s576_s16), 1 }
   0xe   : > { %s594_s17 = smul.u32 144, %s813_s16  ;;  %s591_s18 = sshll.u32 %s813_s16, 7 }
   0xf   : > { %s595_s19 = smul.u32 72, %s813_s16  ;;  %s653_s22 = scalar_lea.vmem %s809_s2, %s591_s18 }
  0x10   : > { %s658_s25 = scalar_lea.vmem %s807_s0, %s594_s17  ;;  %s592_s26 = sshll.u32 %s813_s16, 6  ;;  %v662_v0 = vld [vmem:[%s653_s22] sm:$0xff]  ;;  %v286_v1 = vld [vmem:[%s653_s22 + $0x8] sm:$0x1]  ;;  %v666_v2 = vld [vmem:[%s653_s22 + $0x10] sm:$0xff] }
  0x11   : > { %s671_s29 = scalar_lea.vmem %s808_s1, %s595_s19  ;;  %s678_s6 = scalar_lea.vmem %s810_s3, %s592_s26  ;;  %v681_v3 = vld [vmem:[%s658_s25] sm:$0xff]  ;;  %v259_v4 = vld [vmem:[%s658_s25 + $0x8] sm:$0x1]  ;;  %v685_v5 = vld [vmem:[%s658_s25 + $0x10] sm:$0xff]  ;;  %v350_v6 = vrot.slane %v662_v0, 1  ;;  %v351_v7 = vrot.slane %v286_v1, 1 }
  0x12   : > { %v261_v8 = vld [vmem:[%s658_s25 + $0x18] sm:$0x1]  ;;  %v276_v9 = vld [vmem:[%s671_s29] sm:$0xff]  ;;  %v277_v10 = vld [vmem:[%s671_s29 + $0x8] sm:$0xff]  ;;  %v353_v11 = vrot.slane %v666_v2, 1  ;;  %v414_v12 = vrot.slane %v681_v3, 1  ;;  %s756_s9 = scalar_lea.vmem %s811_s4, %s592_s26 }
  0x13   : > { %v278_v13 = vld [vmem:[%s671_s29 + $0x10] sm:$0xff]  ;;  %v288_v14 = vld [vmem:[%s653_s22 + $0x18] sm:$0x1]  ;;  %v301_v15 = vld [vmem:[%s678_s6] sm:$0xff]  ;;  %v415_v16 = vrot.slane %v259_v4, 1  ;;  %v417_v17 = vrot.slane %v685_v5, 1  ;;  %v352_v20 = vsel %vm349_vm0, %v350_v6, %v351_v7 }
  0x14   : > { %v302_v18 = vld [vmem:[%s678_s6 + $0x8] sm:$0xff]  ;;  %v309_v19 = vmax.f32 %v301_v15, %v276_v9  ;;  %v354_v21 = vrot.slane %v288_v14, 1  ;;  %v418_v22 = vrot.slane %v261_v8, 1  ;;  %v700_v23 = vld [vmem:[%s658_s25 + $0x20] sm:$0xff]  ;;  %v279_v34 = vld [vmem:[%s671_s29 + $0x18] sm:$0xff] }
  0x15   : > { %v263_v24 = vld [vmem:[%s658_s25 + $0x28] sm:$0x1]  ;;  %v310_v25 = vmax.f32 %v302_v18, %v277_v10  ;;  %v416_v26 = vsel %vm349_vm0, %v414_v12, %v415_v16  ;;  %v289_v27 = vld [vmem:[%s653_s22 + $0x20] sm:$0xff]  ;;  %v420_v29 = vrot.slane %v700_v23, 1  ;;  %v303_v35 = vld [vmem:[%s678_s6 + $0x10] sm:$0xff] }
  0x16   : > { %v290_v28 = vld [vmem:[%s653_s22 + $0x28] sm:$0x1]  ;;  %v421_v30 = vrot.slane %v263_v24, 1  ;;  %v317_v31 = vmax.f32 %v309_v19, %v277_v10  ;;  %v355_v32 = vsel %vm349_vm0, %v353_v11, %v354_v21  ;;  %v709_v33 = vsel %vm349_vm0, %v417_v17, %v418_v22  ;;  %v714_v37 = vld [vmem:[%s658_s25 + $0x30] sm:$0xff]  ;;  %v265_v42 = vld [vmem:[%s658_s25 + $0x38] sm:$0x1] }
  0x17   : > { %v356_v36 = vrot.slane %v289_v27, 1  ;;  %v318_v38 = vmax.f32 %v310_v25, %v278_v13  ;;  %v311_v39 = vmax.f32 %v303_v35, %v278_v13  ;;  %v357_v40 = vrot.slane %v290_v28, 1  ;;  %v291_v43 = vld [vmem:[%s653_s22 + $0x30] sm:$0xff]  ;;  %v292_v44 = vld [vmem:[%s653_s22 + $0x38] sm:$0x1]  ;;  %v280_v46 = vld [vmem:[%s671_s29 + $0x20] sm:$0xff] }
  0x18   : > { %v717_v41 = vsel %vm349_vm0, %v420_v29, %v421_v30  ;;  %v325_v45 = vmax.f32 %v317_v31, %v662_v0  ;;  %v304_v47 = vld [vmem:[%s678_s6 + $0x18] sm:$0xff]  ;;  %v359_v48 = vrot.slane %v291_v43, 1  ;;  %v360_v49 = vrot.slane %v292_v44, 1  ;;  %v729_v55 = vld [vmem:[%s658_s25 + $0x40] sm:$0xff]  ;;  %v294_v57 = vld [vmem:[%s653_s22 + $0x48] sm:$0x1] }
  0x19   : > { %v423_v50 = vrot.slane %v714_v37, 1  ;;  %v326_v51 = vmax.f32 %v318_v38, %v666_v2  ;;  %v319_v52 = vmax.f32 %v311_v39, %v279_v34  ;;  %v358_v53 = vsel %vm349_vm0, %v356_v36, %v357_v40  ;;  %v293_v56 = vld [vmem:[%s653_s22 + $0x40] sm:$0xff]  ;;  %v267_v2 = vld [vmem:[%s658_s25 + $0x48] sm:$0x1]  ;;  %v295_v16 = vld [vmem:[%s653_s22 + $0x50] sm:$0xff] }
  0x1a   : > { %v312_v54 = vmax.f32 %v304_v47, %v279_v34  ;;  %v382_v58 = vmax.f32 %v325_v45, %v352_v20  ;;  %v361_v59 = vsel %vm349_vm0, %v359_v48, %v360_v49  ;;  %v424_v60 = vrot.slane %v265_v42, 1  ;;  %v305_v61 = vld [vmem:[%s678_s6 + $0x20] sm:$0xff]  ;;  %v281_v4 = vld [vmem:[%s671_s29 + $0x28] sm:$0xff]  ;;  %v268_v25 = vld [vmem:[%s658_s25 + $0x50] sm:$0xff] }
  0x1b   : > { %v362_v62 = vrot.slane %v293_v56, 1  ;;  %v383_v63 = vmax.f32 %v326_v51, %v355_v32  ;;  %v327_v0 = vmax.f32 %v319_v52, %v289_v27  ;;  %v313_v6 = vmax.f32 %v305_v61, %v280_v46  ;;  %v306_v11 = vld [vmem:[%s678_s6 + $0x28] sm:$0xff]  ;;  %v282_v27 = vld [vmem:[%s671_s29 + $0x30] sm:$0xff]  ;;  %v296_v28 = vld [vmem:[%s653_s22 + $0x58] sm:$0x1] }
  0x1c   : > { %v320_v1 = vmax.f32 %v312_v54, %v280_v46  ;;  %v390_v7 = vmax.f32 %v382_v58, %v681_v3  ;;  %v425_v8 = vsel %vm349_vm0, %v423_v50, %v424_v60  ;;  %v363_v9 = vrot.slane %v294_v57, 1  ;;  %v269_v36 = vld [vmem:[%s658_s25 + $0x58] sm:$0x1]  ;;  %v297_v38 = vld [vmem:[%s653_s22 + $0x60] sm:$0xff]  ;;  %v307_v39 = vld [vmem:[%s678_s6 + $0x30] sm:$0xff] }
  0x1d   : > { %v426_v10 = vrot.slane %v729_v55, 1  ;;  %v391_v12 = vmax.f32 %v383_v63, %v685_v5  ;;  %v384_v13 = vmax.f32 %v327_v0, %v358_v53  ;;  %v321_v15 = vmax.f32 %v313_v6, %v281_v4  ;;  %v270_v48 = vld [vmem:[%s658_s25 + $0x60] sm:$0xff]  ;;  %v298_v49 = vld [vmem:[%s653_s22 + $0x68] sm:$0x1]  ;;  %v283_v57 = vld [vmem:[%s671_s29 + $0x38] sm:$0xff] }
  0x1e   : > { %v328_v14 = vmax.f32 %v320_v1, %v291_v43  ;;  %v446_v17 = vmax.f32 %v390_v7, %v416_v26  ;;  %v364_v18 = vsel %vm349_vm0, %v362_v62, %v363_v9  ;;  %v427_v3 = vrot.slane %v267_v2, 1  ;;  %v271_v51 = vld [vmem:[%s658_s25 + $0x68] sm:$0x1]  ;;  %v299_v58 = vld [vmem:[%s653_s22 + $0x70] sm:$0xff]  ;;  %v300_v0 = vld [vmem:[%s653_s22 + $0x78] sm:$0x1] }
  0x1f   : > { %v314_v19 = vmax.f32 %v306_v11, %v281_v4  ;;  %v447_v20 = vmax.f32 %v391_v12, %v709_v33  ;;  %v392_v21 = vmax.f32 %v384_v13, %v700_v23  ;;  %v329_v24 = vmax.f32 %v321_v15, %v293_v56  ;;  %v284_v6 = vld [vmem:[%s671_s29 + $0x40] sm:$0xff]  ;;  %v272_v9 = vld [vmem:[%s658_s25 + $0x70] sm:$0xff] }
  0x20   : > { %v385_v22 = vmax.f32 %v328_v14, %v361_v59  ;;  %v454_v29 = vmax.f32 %v446_v17, %v685_v5  ;;  %v428_v26 = vsel %vm349_vm0, %v426_v10, %v427_v3  ;;  %v365_v31 = vrot.slane %v295_v16, 1  ;;  %v308_v59 = vld [vmem:[%s678_s6 + $0x38] sm:$0xff] }
  0x21   : > { %v322_v30 = vmax.f32 %v314_v19, %v282_v27  ;;  %v448_v32 = vmax.f32 %v392_v21, %v717_v41  ;;  %v455_v34 = vmax.f32 %v447_v20, %v700_v23  ;;  %v386_v5 = vmax.f32 %v329_v24, %v364_v18  ;;  %v273_v10 = vld [vmem:[%s658_s25 + $0x78] sm:$0x1] }
  0x22   : > { %v393_v35 = vmax.f32 %v385_v22, %v714_v37  ;;  %v468_v40 = vmax.f32 %v454_v29, %v709_v33  ;;  %v366_v43 = vrot.slane %v296_v28, 1  ;;  %v429_v44 = vrot.slane %v268_v25, 1 }
  0x23   : > { %v330_v42 = vmax.f32 %v322_v30, %v295_v16  ;;  %v469_v45 = vmax.f32 %v455_v34, %v717_v41  ;;  %v456_v23 = vmax.f32 %v448_v32, %v714_v37  ;;  %v394_v47 = vmax.f32 %v386_v5, %v729_v55 }
  0x24   : > { %v449_v46 = vmax.f32 %v393_v35, %v425_v8  ;;  %477 = vst.msk [vmem:[%s756_s9] sm:$0xff] %vm476_vm1, %v468_v40  ;;  %v367_v33 = vsel %vm349_vm0, %v365_v31, %v366_v43  ;;  %v430_v50 = vrot.slane %v269_v36, 1  ;;  %v315_v52 = vmax.f32 %v307_v39, %v282_v27  ;;  %v275_v27 = vld [vmem:[%s658_s25 + $0x88] sm:$0x1] }
  0x25   : > { %v368_v41 = vrot.slane %v297_v38, 1  ;;  %478 = vst.msk [vmem:[%s756_s9 + $0x8] sm:$0xff] %vm476_vm1, %v469_v45  ;;  %v470_v53 = vmax.f32 %v456_v23, %v425_v8  ;;  %v450_v37 = vmax.f32 %v394_v47, %v428_v26  ;;  %v387_v56 = vmax.f32 %v330_v42, %v367_v33 }
  0x26   : > { %v457_v54 = vmax.f32 %v449_v46, %v729_v55  ;;  %v431_v60 = vsel %vm349_vm0, %v429_v44, %v430_v50  ;;  %v323_v61 = vmax.f32 %v315_v52, %v283_v57  ;;  %v369_v62 = vrot.slane %v298_v49, 1 }
  0x27   : > { %v432_v63 = vrot.slane %v270_v48, 1  ;;  %479 = vst.msk [vmem:[%s756_s9 + $0x10] sm:$0xff] %vm476_vm1, %v470_v53  ;;  %v395_v2 = vmax.f32 %v387_v56, %v268_v25  ;;  %v458_v4 = vmax.f32 %v450_v37, %v268_v25  ;;  %v433_v55 = vrot.slane %v271_v51, 1  ;;  %v274_v25 = vld [vmem:[%s658_s25 + $0x80] sm:$0xff] }
  0x28   : > { %v471_v1 = vmax.f32 %v457_v54, %v428_v26  ;;  %v331_v7 = vmax.f32 %v323_v61, %v297_v38  ;;  %v370_v8 = vsel %vm349_vm0, %v368_v41, %v369_v62  ;;  %v316_v11 = vmax.f32 %v308_v59, %v283_v57 }
  0x29   : > { %v371_v12 = vrot.slane %v299_v58, 1  ;;  %v451_v13 = vmax.f32 %v395_v2, %v431_v60  ;;  %v472_v14 = vmax.f32 %v458_v4, %v431_v60  ;;  %v372_v15 = vrot.slane %v300_v0, 1 }
  0x2a   : > { %480 = vst.msk [vmem:[%s756_s9 + $0x18] sm:$0xff] %vm476_vm1, %v471_v1  ;;  %v388_v16 = vmax.f32 %v331_v7, %v370_v8  ;;  %v434_v17 = vsel %vm349_vm0, %v432_v63, %v433_v55  ;;  %v324_v18 = vmax.f32 %v316_v11, %v284_v6  ;;  %v435_v20 = vrot.slane %v272_v9, 1 }
  0x2b   : > { %481 = vst.msk [vmem:[%s756_s9 + $0x20] sm:$0xff] %vm476_vm1, %v472_v14  ;;  %v459_v3 = vmax.f32 %v451_v13, %v270_v48  ;;  %v373_v19 = vsel %vm349_vm0, %v371_v12, %v372_v15  ;;  %v436_v21 = vrot.slane %v273_v10, 1  ;;  %v464_v31 = vrot.slane %v274_v25, 1 }
  0x2c   : > { %v396_v22 = vmax.f32 %v388_v16, %v270_v48  ;;  %v332_v24 = vmax.f32 %v324_v18, %v299_v58  ;;  %v465_v32 = vrot.slane %v275_v27, 1 }
  0x2d   : > { %v473_v28 = vmax.f32 %v459_v3, %v434_v17  ;;  %v437_v30 = vsel %vm349_vm0, %v435_v20, %v436_v21 }
  0x2e   : > { %v452_v29 = vmax.f32 %v396_v22, %v434_v17  ;;  %v389_v26 = vmax.f32 %v332_v24, %v373_v19  ;;  %v466_v38 = vsel %vm349_vm0, %v464_v31, %v465_v32 }
  0x2f   : > { %482 = vst.msk [vmem:[%s756_s9 + $0x28] sm:$0xff] %vm476_vm1, %v473_v28 }
  0x30   : > { %v397_v34 = vmax.f32 %v389_v26, %v272_v9  ;;  %v460_v35 = vmax.f32 %v452_v29, %v272_v9 }
  0x32   : > { %v453_v5 = vmax.f32 %v397_v34, %v437_v30  ;;  %v474_v36 = vmax.f32 %v460_v35, %v437_v30 }
  0x34   : > { %483 = vst.msk [vmem:[%s756_s9 + $0x30] sm:$0xff] %vm476_vm1, %v474_v36  ;;  %v461_v39 = vmax.f32 %v453_v5, %v274_v25 }
  0x36   : > { %v475_v40 = vmax.f32 %v461_v39, %v466_v38 }
  0x38   : > { %484 = vst.msk [vmem:[%s756_s9 + $0x38] sm:$0xff] %vm476_vm1, %v475_v40 }
  0x39 PF: > { %s14_s15 = sadd.s32 1, %s610_s15  }
  0x3a   : > { %p11_p4 = scmp.ge.s32.totalorder %s14_s15, 4  }
  0x3c   :  { %13 = sbr.rel (!%p11_p4) target bundleno = 1 (0x1), region = 75 }

// kernel: fish_classifier_forward.23
= control target key start
LH: loop header
LB: loop body
LE: loop exit
PB: predicated region body
PF: predicated region fallthrough
CT: control target
= control target key end

     0   :  { %s1448_s15 = smov 0   ;;  %s1450_s16 = smov 0   ;;  %s1792_s0 = inlined_call_operand.vmem [shape: bf16[512,147], index: 0, kind: input, shape index: {}]   ;;  %s1793_s1 = inlined_call_operand.vmem [shape: bf16[147,64], index: 1, kind: input, shape index: {}]   ;;  %s1794_s2 = inlined_call_operand.vmem [shape: f32[1,64], index: 2, kind: input, shape index: {}]   ;;  %s1795_s3 = inlined_call_operand.vmem [shape: f32[1,64], index: 3, kind: input, shape index: {}]   ;;  %s1796_s4 = inlined_call_operand.vmem [shape: f32[512,64], index: 4, kind: output, shape index: {}]  }
   0x1   :  { %s1452_s17 = smov 0  }
   0x2 LB: > { %s33_s18 = sadd.s32 1, %s1414_s16  ;;  %p1222_p0 = scmp.ge.s32.totalorder %s1418_s17, 1  ;;  %s1418_s17 = sphi %s1452_s17, %s14_s17   ;;  %s1414_s16 = sphi %s1450_s16, %s1798_s16   ;;  %s1410_s15 = sphi %s1448_s15, %s1797_s15  }
   0x3   : > { %p35_p1 = scmp.ge.s32.totalorder %s33_s18, 2  ;;  %p224_p2 = scmp.lt.s32.totalorder %s1418_s17, 3 }
   0x5   : > { %s1800_s18 = smov (%p35_p1, %s33_s18), 0  ;;  %p225_p3 = pnand %p1222_p0, %p224_p2 }
   0x6   : > { %v1338_v0 = vld [vmem:[%s1793_s1] sm:$0xff] (!%p225_p3)   ;;  %v1420_v1 = vmov (!%p225_p3), 0   ;;  %v1339_v2 = vld [vmem:[%s1793_s1 + $0x8] sm:$0xff] (!%p225_p3)   ;;  %v1340_v3 = vld [vmem:[%s1793_s1 + $0x10] sm:$0xff] (!%p225_p3)   ;;  %s1223_s25 = sshll.u32 (!%p225_p3), %s1410_s15, 5  ;;  %vm313_vm0 = vcmask (!%p225_p3), 523264  }
   0x7   : > { %228 = sbr.rel (%p225_p3) target bundleno = 335 (0x14f), region = 36  ;;  %686 = vmatprep.subr.bf16.mxu0 (!%p225_p3), %v1420_v1  ;;  %1291 = vmatprep.subr.bf16.mxu1 (!%p225_p3), %v1420_v1  ;;  %p274_p4 = scmp.lt.s32.totalorder (!%p225_p3), %s1223_s25, 63  ;;  %v1341_v4 = vld [vmem:[%s1793_s1 + $0x18] sm:$0xff] (!%p225_p3)   ;;  %v1421_v5 = vmov (!%p225_p3), 0.0   ;;  %v1342_v6 = vld [vmem:[%s1793_s1 + $0x20] sm:$0xff] (!%p225_p3)   ;;  %vm630_vm1 = vcmask (!%p225_p3), 154624  }
   0x8   : > { %687 = vmatpush1.bf16.msra.mxu0 (!%p225_p3), %v1338_v0  ;;  %1301 = vmatpush1.bf16.msra.mxu1 (!%p225_p3), %v1338_v0  ;;  %314 = vst.msk [vmem:[#allocation2] sm:$0xff] (!%p225_p3), %vm313_vm0, %v1421_v5  ;;  %315 = vst.msk [vmem:[#allocation2 + $0x8] sm:$0xff] (!%p225_p3), %vm313_vm0, %v1421_v5  ;;  %v1343_v9 = vld [vmem:[%s1793_s1 + $0x28] sm:$0xff] (!%p225_p3)   ;;  %v1344_v10 = vld [vmem:[%s1793_s1 + $0x30] sm:$0xff] (!%p225_p3)   ;;  %vm679_vm2 = vcmask (!%p225_p3), 1040384   ;;  %vm680_vm3 = vcmask (!%p225_p3), 1041408  }
   0x9   : > { %688 = vmatprep.subr.bf16.mxu0 (!%p225_p3), %v1420_v1  ;;  %1292 = vmatprep.subr.bf16.mxu1 (!%p225_p3), %v1420_v1  ;;  %316 = vst.msk [vmem:[#allocation2 + $0x10] sm:$0xff] (!%p225_p3), %vm313_vm0, %v1421_v5  ;;  %317 = vst.msk [vmem:[#allocation2 + $0x18] sm:$0xff] (!%p225_p3), %vm313_vm0, %v1421_v5  ;;  %v1345_v11 = vld [vmem:[%s1793_s1 + $0x38] sm:$0xff] (!%p225_p3)   ;;  %v1422_v12 = vmov (!%p225_p3), 65535   ;;  %v1346_v14 = vld [vmem:[%s1793_s1 + $0x40] sm:$0xff] (!%p225_p3)  }
   0xa   : > { %318 = vst.msk [vmem:[#allocation2 + $0x20] sm:$0xff] (!%p225_p3), %vm313_vm0, %v1421_v5  ;;  %319 = vst.msk [vmem:[#allocation2 + $0x28] sm:$0xff] (!%p225_p3), %vm313_vm0, %v1421_v5  ;;  %v681_v13 = vsel (!%p225_p3), %vm679_vm2, 4294967295, %v1422_v12  ;;  %v1347_v15 = vld [vmem:[%s1793_s1 + $0x48] ss:$0 sps:$4 sm:$0x33] (!%p225_p3)  }
   0xb   : > { %320 = vst.msk [vmem:[#allocation2 + $0x30] sm:$0xff] (!%p225_p3), %vm313_vm0, %v1421_v5  ;;  %321 = vst.msk [vmem:[#allocation2 + $0x38] sm:$0xff] (!%p225_p3), %vm313_vm0, %v1421_v5  ;;  %v682_v16 = vsel (!%p225_p3), %vm680_vm3, %v681_v13, 0  ;;  %v1618_v12 = vld [vmem:[%s1795_s3] ss:$0 sm:$0xff] (!%p225_p3) }
   0xc   : > { %689 = vmatpush1.bf16.msra.mxu0 (!%p225_p3), %v1339_v2  ;;  %1302 = vmatpush1.bf16.msra.mxu1 (!%p225_p3), %v1339_v2  ;;  %322 = vst.msk [vmem:[#allocation2 + $0x40] sm:$0xff] (!%p225_p3), %vm313_vm0, %v1421_v5  ;;  %323 = vst.msk [vmem:[#allocation2 + $0x48] sm:$0xff] (!%p225_p3), %vm313_vm0, %v1421_v5  ;;  %v684_v17 = vand.u32 (!%p225_p3), %v1347_v15, %v682_v16  ;;  %v1613_v2 = vld [vmem:[%s1794_s2] ss:$0 sm:$0xff] (!%p225_p3) }
   0xd   : > { %690 = vmatprep.subr.bf16.mxu0 (!%p225_p3), %v1420_v1  ;;  %1293 = vmatprep.subr.bf16.mxu1 (!%p225_p3), %v1420_v1  ;;  %324 = vst.msk [vmem:[#allocation2 + $0x50] sm:$0xff] (!%p225_p3), %vm313_vm0, %v1421_v5  ;;  %325 = vst.msk [vmem:[#allocation2 + $0x58] sm:$0xff] (!%p225_p3), %vm313_vm0, %v1421_v5 }
   0xe   : > { %s1802_s25 = smov (!%p274_p4, %s1223_s25), 63  ;;  %326 = vst.msk [vmem:[#allocation2 + $0x60] sm:$0xff] %vm313_vm0, %v1421_v5  ;;  %327 = vst.msk [vmem:[#allocation2 + $0x68] sm:$0xff] %vm313_vm0, %v1421_v5 }
   0xf   : > { %s1290_s28 = sshll.u32 %s1802_s25, 3  ;;  %328 = vst.msk [vmem:[#allocation2 + $0x70] sm:$0xff] %vm313_vm0, %v1421_v5  ;;  %329 = vst.msk [vmem:[#allocation2 + $0x78] sm:$0xff] %vm313_vm0, %v1421_v5  ;;  %v346_v48 = vld [vmem:[#allocation2] sm:$0xff]  ;;  %v347_v52 = vld [vmem:[#allocation2 + $0x8] sm:$0xff] }
  0x10   : > { %691 = vmatpush1.bf16.msra.mxu0 %v1340_v3  ;;  %1303 = vmatpush1.bf16.msra.mxu1 %v1340_v3  ;;  %330 = vst.msk [vmem:[#allocation2 + $0x80] sm:$0xff] %vm313_vm0, %v1421_v5  ;;  %331 = vst.msk [vmem:[#allocation2 + $0x88] sm:$0xff] %vm313_vm0, %v1421_v5  ;;  %s1526_s5 = scalar_lea.vmem %s1792_s0, %s1290_s28  ;;  %v348_v0 = vld [vmem:[#allocation2 + $0x10] sm:$0xff]  ;;  %s1635_s29 = scalar_lea.vmem %s1796_s4, %s1290_s28 }
  0x11   : > { %692 = vmatprep.subr.bf16.mxu0 %v1420_v1  ;;  %1294 = vmatprep.subr.bf16.mxu1 %v1420_v1  ;;  %332 = vst.msk [vmem:[#allocation2 + $0x90] sm:$0xff] %vm313_vm0, %v1421_v5  ;;  %333 = vst.msk [vmem:[#allocation2 + $0x98] sm:$0xff] %vm313_vm0, %v1421_v5  ;;  %v1350_v7 = vld [vmem:[%s1526_s5 + $0x4] ss:$8 sps:$4 sm:$0xff]   ;;  %v1348_v18 = vld [vmem:[%s1526_s5] ss:$8 sps:$4 sm:$0xff]  }
  0x12   : > { %334 = vst.msk [vmem:[#allocation2 + $0xa0] sm:$0xff] %vm313_vm0, %v1421_v5  ;;  %335 = vst.msk [vmem:[#allocation2 + $0xa8] sm:$0xff] %vm313_vm0, %v1421_v5  ;;  %v1353_v8 = vld [vmem:[%s1526_s5 + $0x84] ss:$8 sps:$4 sm:$0xff]   ;;  %1270 = vmatprep.mubr.msk.bf16.mxu0 %vm630_vm1, %v1350_v7  ;;  %v1351_v19 = vld [vmem:[%s1526_s5 + $0x80] ss:$8 sps:$4 sm:$0xff]  }
  0x13   : > { %336 = vst.msk [vmem:[#allocation2 + $0xb0] sm:$0xff] %vm313_vm0, %v1421_v5  ;;  %337 = vst.msk [vmem:[#allocation2 + $0xb8] sm:$0xff] %vm313_vm0, %v1421_v5  ;;  %1278 = vmatprep.mubr.msk.bf16.mxu1 %vm630_vm1, %v1353_v8  ;;  %v1354_v20 = vld [vmem:[%s1526_s5 + $0x14] ss:$8 sps:$4 sm:$0xff]   ;;  %v1358_v22 = vld [vmem:[%s1526_s5 + $0x10] ss:$8 sps:$4 sm:$0xff]  }
  0x14   : > { %338 = vst.msk [vmem:[#allocation2 + $0xc0] sm:$0xff] %vm313_vm0, %v1421_v5  ;;  %339 = vst.msk [vmem:[#allocation2 + $0xc8] sm:$0xff] %vm313_vm0, %v1421_v5  ;;  %693 = vmatpush1.bf16.msra.mxu0 %v1341_v4  ;;  %1304 = vmatpush1.bf16.msra.mxu1 %v1341_v4  ;;  %v1356_v21 = vld [vmem:[%s1526_s5 + $0x94] ss:$8 sps:$4 sm:$0xff]   ;;  %v1359_v23 = vld [vmem:[%s1526_s5 + $0x90] ss:$8 sps:$4 sm:$0xff]  }
  0x15   : > { %340 = vst.msk [vmem:[#allocation2 + $0xd0] sm:$0xff] %vm313_vm0, %v1421_v5  ;;  %341 = vst.msk [vmem:[#allocation2 + $0xd8] sm:$0xff] %vm313_vm0, %v1421_v5  ;;  %694 = vmatprep.subr.bf16.mxu0 %v1420_v1  ;;  %1295 = vmatprep.subr.bf16.mxu1 %v1420_v1  ;;  %v1360_v24 = vld [vmem:[%s1526_s5 + $0x24] ss:$8 sps:$4 sm:$0xff]   ;;  %v1364_v26 = vld [vmem:[%s1526_s5 + $0x20] ss:$8 sps:$4 sm:$0xff]  }
  0x16   : > { %342 = vst.msk [vmem:[#allocation2 + $0xe0] sm:$0xff] %vm313_vm0, %v1421_v5  ;;  %343 = vst.msk [vmem:[#allocation2 + $0xe8] sm:$0xff] %vm313_vm0, %v1421_v5  ;;  %v1362_v25 = vld [vmem:[%s1526_s5 + $0xa4] ss:$8 sps:$4 sm:$0xff]   ;;  %v1365_v27 = vld [vmem:[%s1526_s5 + $0xa0] ss:$8 sps:$4 sm:$0xff]  }
  0x17   : > { %344 = vst.msk [vmem:[#allocation2 + $0xf0] sm:$0xff] %vm313_vm0, %v1421_v5  ;;  %345 = vst.msk [vmem:[#allocation2 + $0xf8] sm:$0xff] %vm313_vm0, %v1421_v5  ;;  %v1366_v28 = vld [vmem:[%s1526_s5 + $0x34] ss:$8 sps:$4 sm:$0xff]   ;;  %v1370_v30 = vld [vmem:[%s1526_s5 + $0x30] ss:$8 sps:$4 sm:$0xff]  }
  0x18   : > { %695 = vmatpush1.bf16.msra.mxu0 %v1342_v6  ;;  %1305 = vmatpush1.bf16.msra.mxu1 %v1342_v6  ;;  %v1368_v29 = vld [vmem:[%s1526_s5 + $0xb4] ss:$8 sps:$4 sm:$0xff]   ;;  %v1371_v31 = vld [vmem:[%s1526_s5 + $0xb0] ss:$8 sps:$4 sm:$0xff]   ;;  %v1372_v32 = vld [vmem:[%s1526_s5 + $0x44] ss:$8 sps:$4 sm:$0xff]  }
  0x19   : > { %696 = vmatprep.subr.bf16.mxu0 %v1420_v1  ;;  %1296 = vmatprep.subr.bf16.mxu1 %v1420_v1  ;;  %v1374_v33 = vld [vmem:[%s1526_s5 + $0xc4] ss:$8 sps:$4 sm:$0xff]   ;;  %v1376_v34 = vld [vmem:[%s1526_s5 + $0x40] ss:$8 sps:$4 sm:$0xff]   ;;  %v1378_v36 = vld [vmem:[%s1526_s5 + $0x54] ss:$8 sps:$4 sm:$0xff]  }
  0x1a   : > { %v1377_v35 = vld [vmem:[%s1526_s5 + $0xc0] ss:$8 sps:$4 sm:$0xff]   ;;  %v1380_v37 = vld [vmem:[%s1526_s5 + $0xd4] ss:$8 sps:$4 sm:$0xff]   ;;  %v1382_v38 = vld [vmem:[%s1526_s5 + $0x50] ss:$8 sps:$4 sm:$0xff]  }
  0x1b   : > { %v1383_v39 = vld [vmem:[%s1526_s5 + $0xd0] ss:$8 sps:$4 sm:$0xff]   ;;  %v1384_v40 = vld [vmem:[%s1526_s5 + $0x64] ss:$8 sps:$4 sm:$0xff]   ;;  %v1388_v42 = vld [vmem:[%s1526_s5 + $0x60] ss:$8 sps:$4 sm:$0xff]  }
  0x1c   : > { %697 = vmatpush1.bf16.msra.mxu0 %v1343_v9  ;;  %1306 = vmatpush1.bf16.msra.mxu1 %v1343_v9  ;;  %v1386_v41 = vld [vmem:[%s1526_s5 + $0xe4] ss:$8 sps:$4 sm:$0xff]   ;;  %v1389_v43 = vld [vmem:[%s1526_s5 + $0xe0] ss:$8 sps:$4 sm:$0xff]   ;;  %v1390_v44 = vld [vmem:[%s1526_s5 + $0x74] ss:$8 sps:$4 sm:$0xff]  }
  0x1d   : > { %698 = vmatprep.subr.bf16.mxu0 %v1420_v1  ;;  %1297 = vmatprep.subr.bf16.mxu1 %v1420_v1  ;;  %v1392_v45 = vld [vmem:[%s1526_s5 + $0xf4] ss:$8 sps:$4 sm:$0xff]   ;;  %v1394_v46 = vld [vmem:[%s1526_s5 + $0x70] ss:$8 sps:$4 sm:$0xff]   ;;  %v362_v49 = vld [vmem:[#allocation2 + $0x80] sm:$0xff] }
  0x1e   : > { %v1395_v47 = vld [vmem:[%s1526_s5 + $0xf0] ss:$8 sps:$4 sm:$0xff]   ;;  %v363_v53 = vld [vmem:[#allocation2 + $0x88] sm:$0xff] }
  0x1f   : > { %v349_v5 = vld [vmem:[#allocation2 + $0x18] sm:$0xff] }
  0x20   : > { %699 = vmatpush1.bf16.msra.mxu0 %v1344_v10  ;;  %1307 = vmatpush1.bf16.msra.mxu1 %v1344_v10  ;;  %v365_v6 = vld [vmem:[#allocation2 + $0x98] sm:$0xff] }
  0x21   : > { %700 = vmatprep.subr.bf16.mxu0 %v1420_v1  ;;  %1298 = vmatprep.subr.bf16.mxu1 %v1420_v1 }
  0x24   : > { %701 = vmatpush1.bf16.msra.mxu0 %v1345_v11  ;;  %1308 = vmatpush1.bf16.msra.mxu1 %v1345_v11 }
  0x25   : > { %702 = vmatprep.subr.bf16.mxu0 %v1420_v1  ;;  %1299 = vmatprep.subr.bf16.mxu1 %v1420_v1 }
  0x28   : > { %703 = vmatpush1.bf16.msra.mxu0 %v1346_v14  ;;  %1309 = vmatpush1.bf16.msra.mxu1 %v1346_v14 }
  0x29   : > { %704 = vmatprep.subr.bf16.mxu0 %v1420_v1  ;;  %1300 = vmatprep.subr.bf16.mxu1 %v1420_v1  ;;  %v364_v1 = vld [vmem:[#allocation2 + $0x90] sm:$0xff] }
  0x2c   : > { %705 = vmatpush1.bf16.msra.mxu0 %v684_v17  ;;  %1310 = vmatpush1.bf16.msra.mxu1 %v684_v17 }
  0x2f   : > { %719 = vmatmul.mubr.bf16.vlgmr.msra.gmra.mrb[0].mxu0 %v1348_v18  ;;  %783 = vmatmul.mubr.bf16.vlgmr.msra.gmra.mrb[0].mxu1 %v1351_v19 }
  0x30   : > { %1271 = vmatprep.mubr.msk.bf16.mxu0 %vm630_vm1, %v1354_v20  ;;  %1279 = vmatprep.mubr.msk.bf16.mxu1 %vm630_vm1, %v1356_v21 }
  0x37   : > { %727 = vmatmul.mubr.bf16.gmra.mrb[4].mxu0 %v1358_v22  ;;  %791 = vmatmul.mubr.bf16.gmra.mrb[4].mxu1 %v1359_v23 }
  0x38   : > { %1272 = vmatprep.mubr.msk.bf16.mxu0 %vm630_vm1, %v1360_v24  ;;  %1280 = vmatprep.mubr.msk.bf16.mxu1 %vm630_vm1, %v1362_v25 }
  0x3f   : > { %735 = vmatmul.mubr.bf16.gmra.mrb[8].mxu0 %v1364_v26  ;;  %799 = vmatmul.mubr.bf16.gmra.mrb[8].mxu1 %v1365_v27 }
  0x40   : > { %1273 = vmatprep.mubr.msk.bf16.mxu0 %vm630_vm1, %v1366_v28  ;;  %1281 = vmatprep.mubr.msk.bf16.mxu1 %vm630_vm1, %v1368_v29  ;;  %v350_v28 = vld [vmem:[#allocation2 + $0x20] sm:$0xff] }
  0x41   : > { %v366_v29 = vld [vmem:[#allocation2 + $0xa0] sm:$0xff] }
  0x47   : > { %743 = vmatmul.mubr.bf16.gmra.mrb[12].mxu0 %v1370_v30  ;;  %807 = vmatmul.mubr.bf16.gmra.mrb[12].mxu1 %v1371_v31 }
  0x48   : > { %1274 = vmatprep.mubr.msk.bf16.mxu0 %vm630_vm1, %v1372_v32  ;;  %1282 = vmatprep.mubr.msk.bf16.mxu1 %vm630_vm1, %v1374_v33 }
  0x4f   : > { %751 = vmatmul.mubr.bf16.gmra.mrb[16].mxu0 %v1376_v34  ;;  %815 = vmatmul.mubr.bf16.gmra.mrb[16].mxu1 %v1377_v35 }
  0x50   : > { %1275 = vmatprep.mubr.msk.bf16.mxu0 %vm630_vm1, %v1378_v36  ;;  %1283 = vmatprep.mubr.msk.bf16.mxu1 %vm630_vm1, %v1380_v37  ;;  %v351_v36 = vld [vmem:[#allocation2 + $0x28] sm:$0xff] }
  0x51   : > { %v367_v37 = vld [vmem:[#allocation2 + $0xa8] sm:$0xff] }
  0x57   : > { %759 = vmatmul.mubr.bf16.gmra.mrb[20].mxu0 %v1382_v38  ;;  %823 = vmatmul.mubr.bf16.gmra.mrb[20].mxu1 %v1383_v39 }
  0x58   : > { %1276 = vmatprep.mubr.msk.bf16.mxu0 %vm630_vm1, %v1384_v40  ;;  %1284 = vmatprep.mubr.msk.bf16.mxu1 %vm630_vm1, %v1386_v41 }
  0x5f   : > { %767 = vmatmul.mubr.bf16.gmra.mrb[24].mxu0 %v1388_v42  ;;  %831 = vmatmul.mubr.bf16.gmra.mrb[24].mxu1 %v1389_v43 }
  0x60   : > { %1277 = vmatprep.mubr.msk.bf16.mxu0 %vm630_vm1, %v1390_v44  ;;  %1285 = vmatprep.mubr.msk.bf16.mxu1 %vm630_vm1, %v1392_v45 }
  0x67   : > { %775 = vmatmul.mubr.bf16.gmra.mrb[28].mxu0 %v1394_v46  ;;  %839 = vmatmul.mubr.bf16.gmra.mrb[28].mxu1 %v1395_v47 }
 0x102   : > { %v720_v50 = vpop.f32.mrb[0].mxu0  ;;  %v784_v51 = vpop.f32.mrb[0].mxu1 }
 0x103   : > { %v847_v54 = vadd.f32 %v720_v50, %v346_v48  ;;  %v863_v55 = vadd.f32 %v784_v51, %v362_v49  ;;  %v722_v56 = vpop.f32.mrb[1].mxu0  ;;  %v786_v57 = vpop.f32.mrb[1].mxu1 }
 0x104   : > { %v723_v58 = vpop.f32.mrb[2].mxu0  ;;  %v787_v59 = vpop.f32.mrb[2].mxu1 }
 0x105   : > { %880 = vst.msk [vmem:[#allocation2] sm:$0xff] %vm313_vm0, %v847_v54  ;;  %896 = vst.msk [vmem:[#allocation2 + $0x80] sm:$0xff] %vm313_vm0, %v863_v55  ;;  %v848_v60 = vadd.f32 %v723_v58, %v347_v52  ;;  %v864_v61 = vadd.f32 %v787_v59, %v363_v53  ;;  %v725_v62 = vpop.f32.mrb[3].mxu0  ;;  %v789_v63 = vpop.f32.mrb[3].mxu1 }
 0x107   : > { %881 = vst.msk [vmem:[#allocation2 + $0x8] sm:$0xff] %vm313_vm0, %v848_v60  ;;  %897 = vst.msk [vmem:[#allocation2 + $0x88] sm:$0xff] %vm313_vm0, %v864_v61  ;;  %v352_v60 = vld [vmem:[#allocation2 + $0x30] sm:$0xff] }
 0x108   : > { %v368_v61 = vld [vmem:[#allocation2 + $0xb0] sm:$0xff] }
 0x10a   : > { %v728_v3 = vpop.f32.mrb[4].mxu0  ;;  %v792_v4 = vpop.f32.mrb[4].mxu1 }
 0x10b   : > { %v849_v7 = vadd.f32 %v728_v3, %v348_v0  ;;  %v865_v8 = vadd.f32 %v792_v4, %v364_v1  ;;  %v730_v9 = vpop.f32.mrb[5].mxu0  ;;  %v794_v10 = vpop.f32.mrb[5].mxu1 }
 0x10c   : > { %v915_v11 = vld [vmem:[#allocation2] sm:$0xff]  ;;  %v731_v14 = vpop.f32.mrb[6].mxu0  ;;  %v795_v15 = vpop.f32.mrb[6].mxu1 }
 0x10d   : > { %v931_v13 = vld [vmem:[#allocation2 + $0x80] sm:$0xff]  ;;  %v954_v16 = vmul.f32 %v1613_v2, %v915_v11  ;;  %882 = vst.msk [vmem:[#allocation2 + $0x10] sm:$0xff] %vm313_vm0, %v849_v7  ;;  %898 = vst.msk [vmem:[#allocation2 + $0x90] sm:$0xff] %vm313_vm0, %v865_v8  ;;  %v850_v18 = vadd.f32 %v731_v14, %v349_v5  ;;  %v866_v19 = vadd.f32 %v795_v15, %v365_v6  ;;  %v733_v20 = vpop.f32.mrb[7].mxu0  ;;  %v797_v21 = vpop.f32.mrb[7].mxu1  ;;  %v353_v5 = vld [vmem:[#allocation2 + $0x38] sm:$0xff] }
 0x10e   : > { %v970_v17 = vmul.f32 %v1613_v2, %v931_v13  ;;  %v916_v22 = vld [vmem:[#allocation2 + $0x8] sm:$0xff]  ;;  %v369_v6 = vld [vmem:[#allocation2 + $0xb8] sm:$0xff] }
 0x10f   : > { %v932_v23 = vld [vmem:[#allocation2 + $0x88] sm:$0xff]  ;;  %v993_v24 = vadd.f32 %v1618_v12, %v954_v16  ;;  %v955_v26 = vmul.f32 %v1613_v2, %v916_v22  ;;  %883 = vst.msk [vmem:[#allocation2 + $0x18] sm:$0xff] %vm313_vm0, %v850_v18  ;;  %899 = vst.msk [vmem:[#allocation2 + $0x98] sm:$0xff] %vm313_vm0, %v866_v19 }
 0x110   : > { %v1009_v25 = vadd.f32 %v1618_v12, %v970_v17  ;;  %v971_v27 = vmul.f32 %v1613_v2, %v932_v23 }
 0x111   : > { %v1025_v30 = vmax.f32 %v993_v24, 0.0  ;;  %v994_v32 = vadd.f32 %v1618_v12, %v955_v26 }
 0x112   : > { %v1041_v31 = vmax.f32 %v1009_v25, 0.0  ;;  %v1010_v33 = vadd.f32 %v1618_v12, %v971_v27  ;;  %v736_v34 = vpop.f32.mrb[8].mxu0  ;;  %v800_v35 = vpop.f32.mrb[8].mxu1 }
 0x113   : > { %1057 = vst.msk [vmem:[%s1635_s29] sm:$0xff] %vm313_vm0, %v1025_v30  ;;  %v1026_v38 = vmax.f32 %v994_v32, 0.0  ;;  %v851_v40 = vadd.f32 %v736_v34, %v350_v28  ;;  %v867_v41 = vadd.f32 %v800_v35, %v366_v29  ;;  %v738_v42 = vpop.f32.mrb[9].mxu0  ;;  %v802_v43 = vpop.f32.mrb[9].mxu1  ;;  %v354_v30 = vld [vmem:[#allocation2 + $0x40] sm:$0xff] }
 0x114   : > { %1073 = vst.msk [vmem:[%s1635_s29 + $0x80] sm:$0xff] %vm313_vm0, %v1041_v31  ;;  %v1042_v39 = vmax.f32 %v1010_v33, 0.0  ;;  %v917_v44 = vld [vmem:[#allocation2 + $0x10] sm:$0xff]  ;;  %v739_v46 = vpop.f32.mrb[10].mxu0  ;;  %v803_v47 = vpop.f32.mrb[10].mxu1  ;;  %v370_v31 = vld [vmem:[#allocation2 + $0xc0] sm:$0xff] }
 0x115   : > { %v933_v45 = vld [vmem:[#allocation2 + $0x90] sm:$0xff]  ;;  %1058 = vst.msk [vmem:[%s1635_s29 + $0x8] sm:$0xff] %vm313_vm0, %v1026_v38  ;;  %v956_v48 = vmul.f32 %v1613_v2, %v917_v44  ;;  %884 = vst.msk [vmem:[#allocation2 + $0x20] sm:$0xff] %vm313_vm0, %v851_v40  ;;  %v852_v50 = vadd.f32 %v739_v46, %v351_v36  ;;  %v868_v51 = vadd.f32 %v803_v47, %v367_v37  ;;  %v741_v52 = vpop.f32.mrb[11].mxu0  ;;  %v805_v53 = vpop.f32.mrb[11].mxu1  ;;  %v355_v38 = vld [vmem:[#allocation2 + $0x48] sm:$0xff] }
 0x116   : > { %1074 = vst.msk [vmem:[%s1635_s29 + $0x88] sm:$0xff] %vm313_vm0, %v1042_v39  ;;  %v972_v49 = vmul.f32 %v1613_v2, %v933_v45  ;;  %900 = vst.msk [vmem:[#allocation2 + $0xa0] sm:$0xff] %vm313_vm0, %v867_v41  ;;  %v918_v54 = vld [vmem:[#allocation2 + $0x18] sm:$0xff]  ;;  %v371_v39 = vld [vmem:[#allocation2 + $0xc8] sm:$0xff] }
 0x117   : > { %v934_v55 = vld [vmem:[#allocation2 + $0x98] sm:$0xff]  ;;  %v995_v56 = vadd.f32 %v1618_v12, %v956_v48  ;;  %v957_v58 = vmul.f32 %v1613_v2, %v918_v54  ;;  %885 = vst.msk [vmem:[#allocation2 + $0x28] sm:$0xff] %vm313_vm0, %v852_v50  ;;  %901 = vst.msk [vmem:[#allocation2 + $0xa8] sm:$0xff] %vm313_vm0, %v868_v51 }
 0x118   : > { %v1011_v57 = vadd.f32 %v1618_v12, %v972_v49  ;;  %v973_v59 = vmul.f32 %v1613_v2, %v934_v55 }
 0x119   : > { %v1027_v62 = vmax.f32 %v995_v56, 0.0  ;;  %v996_v0 = vadd.f32 %v1618_v12, %v957_v58 }
 0x11a   : > { %v1043_v63 = vmax.f32 %v1011_v57, 0.0  ;;  %v1012_v1 = vadd.f32 %v1618_v12, %v973_v59  ;;  %v744_v3 = vpop.f32.mrb[12].mxu0  ;;  %v808_v4 = vpop.f32.mrb[12].mxu1 }
 0x11b   : > { %1059 = vst.msk [vmem:[%s1635_s29 + $0x10] sm:$0xff] %vm313_vm0, %v1027_v62  ;;  %v1028_v7 = vmax.f32 %v996_v0, 0.0  ;;  %v853_v9 = vadd.f32 %v744_v3, %v352_v60  ;;  %v869_v10 = vadd.f32 %v808_v4, %v368_v61  ;;  %v746_v11 = vpop.f32.mrb[13].mxu0  ;;  %v810_v13 = vpop.f32.mrb[13].mxu1  ;;  %v356_v62 = vld [vmem:[#allocation2 + $0x50] sm:$0xff] }
 0x11c   : > { %1075 = vst.msk [vmem:[%s1635_s29 + $0x90] sm:$0xff] %vm313_vm0, %v1043_v63  ;;  %v1044_v8 = vmax.f32 %v1012_v1, 0.0  ;;  %v919_v14 = vld [vmem:[#allocation2 + $0x20] sm:$0xff]  ;;  %v747_v16 = vpop.f32.mrb[14].mxu0  ;;  %v811_v17 = vpop.f32.mrb[14].mxu1  ;;  %v372_v63 = vld [vmem:[#allocation2 + $0xd0] sm:$0xff] }
 0x11d   : > { %v935_v15 = vld [vmem:[#allocation2 + $0xa0] sm:$0xff]  ;;  %1060 = vst.msk [vmem:[%s1635_s29 + $0x18] sm:$0xff] %vm313_vm0, %v1028_v7  ;;  %v958_v18 = vmul.f32 %v1613_v2, %v919_v14  ;;  %886 = vst.msk [vmem:[#allocation2 + $0x30] sm:$0xff] %vm313_vm0, %v853_v9  ;;  %v854_v20 = vadd.f32 %v747_v16, %v353_v5  ;;  %v870_v21 = vadd.f32 %v811_v17, %v369_v6  ;;  %v749_v22 = vpop.f32.mrb[15].mxu0  ;;  %v813_v23 = vpop.f32.mrb[15].mxu1  ;;  %v357_v7 = vld [vmem:[#allocation2 + $0x58] sm:$0xff] }
 0x11e   : > { %1076 = vst.msk [vmem:[%s1635_s29 + $0x98] sm:$0xff] %vm313_vm0, %v1044_v8  ;;  %v974_v19 = vmul.f32 %v1613_v2, %v935_v15  ;;  %902 = vst.msk [vmem:[#allocation2 + $0xb0] sm:$0xff] %vm313_vm0, %v869_v10  ;;  %v920_v24 = vld [vmem:[#allocation2 + $0x28] sm:$0xff]  ;;  %v373_v8 = vld [vmem:[#allocation2 + $0xd8] sm:$0xff] }
 0x11f   : > { %v936_v25 = vld [vmem:[#allocation2 + $0xa8] sm:$0xff]  ;;  %v997_v26 = vadd.f32 %v1618_v12, %v958_v18  ;;  %v959_v28 = vmul.f32 %v1613_v2, %v920_v24  ;;  %887 = vst.msk [vmem:[#allocation2 + $0x38] sm:$0xff] %vm313_vm0, %v854_v20  ;;  %903 = vst.msk [vmem:[#allocation2 + $0xb8] sm:$0xff] %vm313_vm0, %v870_v21 }
 0x120   : > { %v1013_v27 = vadd.f32 %v1618_v12, %v974_v19  ;;  %v975_v29 = vmul.f32 %v1613_v2, %v936_v25 }
 0x121   : > { %v1029_v32 = vmax.f32 %v997_v26, 0.0  ;;  %v998_v34 = vadd.f32 %v1618_v12, %v959_v28 }
 0x122   : > { %v1045_v33 = vmax.f32 %v1013_v27, 0.0  ;;  %v1014_v35 = vadd.f32 %v1618_v12, %v975_v29  ;;  %v752_v36 = vpop.f32.mrb[16].mxu0  ;;  %v816_v37 = vpop.f32.mrb[16].mxu1 }
 0x123   : > { %1061 = vst.msk [vmem:[%s1635_s29 + $0x20] sm:$0xff] %vm313_vm0, %v1029_v32  ;;  %v1030_v40 = vmax.f32 %v998_v34, 0.0  ;;  %v855_v42 = vadd.f32 %v752_v36, %v354_v30  ;;  %v871_v43 = vadd.f32 %v816_v37, %v370_v31  ;;  %v754_v44 = vpop.f32.mrb[17].mxu0  ;;  %v818_v45 = vpop.f32.mrb[17].mxu1  ;;  %v358_v32 = vld [vmem:[#allocation2 + $0x60] sm:$0xff] }
 0x124   : > { %1077 = vst.msk [vmem:[%s1635_s29 + $0xa0] sm:$0xff] %vm313_vm0, %v1045_v33  ;;  %v1046_v41 = vmax.f32 %v1014_v35, 0.0  ;;  %v921_v46 = vld [vmem:[#allocation2 + $0x30] sm:$0xff]  ;;  %v755_v48 = vpop.f32.mrb[18].mxu0  ;;  %v819_v49 = vpop.f32.mrb[18].mxu1  ;;  %v374_v33 = vld [vmem:[#allocation2 + $0xe0] sm:$0xff] }
 0x125   : > { %v937_v47 = vld [vmem:[#allocation2 + $0xb0] sm:$0xff]  ;;  %1062 = vst.msk [vmem:[%s1635_s29 + $0x28] sm:$0xff] %vm313_vm0, %v1030_v40  ;;  %v960_v50 = vmul.f32 %v1613_v2, %v921_v46  ;;  %888 = vst.msk [vmem:[#allocation2 + $0x40] sm:$0xff] %vm313_vm0, %v855_v42  ;;  %v856_v52 = vadd.f32 %v755_v48, %v355_v38  ;;  %v872_v53 = vadd.f32 %v819_v49, %v371_v39  ;;  %v757_v54 = vpop.f32.mrb[19].mxu0  ;;  %v821_v55 = vpop.f32.mrb[19].mxu1  ;;  %v359_v40 = vld [vmem:[#allocation2 + $0x68] sm:$0xff] }
 0x126   : > { %1078 = vst.msk [vmem:[%s1635_s29 + $0xa8] sm:$0xff] %vm313_vm0, %v1046_v41  ;;  %v976_v51 = vmul.f32 %v1613_v2, %v937_v47  ;;  %904 = vst.msk [vmem:[#allocation2 + $0xc0] sm:$0xff] %vm313_vm0, %v871_v43  ;;  %v922_v56 = vld [vmem:[#allocation2 + $0x38] sm:$0xff]  ;;  %v375_v41 = vld [vmem:[#allocation2 + $0xe8] sm:$0xff] }
 0x127   : > { %v938_v57 = vld [vmem:[#allocation2 + $0xb8] sm:$0xff]  ;;  %v999_v58 = vadd.f32 %v1618_v12, %v960_v50  ;;  %v961_v60 = vmul.f32 %v1613_v2, %v922_v56  ;;  %889 = vst.msk [vmem:[#allocation2 + $0x48] sm:$0xff] %vm313_vm0, %v856_v52  ;;  %905 = vst.msk [vmem:[#allocation2 + $0xc8] sm:$0xff] %vm313_vm0, %v872_v53 }
 0x128   : > { %v1015_v59 = vadd.f32 %v1618_v12, %v976_v51  ;;  %v977_v61 = vmul.f32 %v1613_v2, %v938_v57 }
 0x129   : > { %v1031_v0 = vmax.f32 %v999_v58, 0.0  ;;  %v1000_v3 = vadd.f32 %v1618_v12, %v961_v60 }
 0x12a   : > { %v1047_v1 = vmax.f32 %v1015_v59, 0.0  ;;  %v1016_v4 = vadd.f32 %v1618_v12, %v977_v61  ;;  %v760_v5 = vpop.f32.mrb[20].mxu0  ;;  %v824_v6 = vpop.f32.mrb[20].mxu1 }
 0x12b   : > { %1063 = vst.msk [vmem:[%s1635_s29 + $0x30] sm:$0xff] %vm313_vm0, %v1031_v0  ;;  %v1032_v9 = vmax.f32 %v1000_v3, 0.0  ;;  %v857_v11 = vadd.f32 %v760_v5, %v356_v62  ;;  %v873_v13 = vadd.f32 %v824_v6, %v372_v63  ;;  %v762_v14 = vpop.f32.mrb[21].mxu0  ;;  %v826_v15 = vpop.f32.mrb[21].mxu1  ;;  %v360_v0 = vld [vmem:[#allocation2 + $0x70] sm:$0xff] }
 0x12c   : > { %1079 = vst.msk [vmem:[%s1635_s29 + $0xb0] sm:$0xff] %vm313_vm0, %v1047_v1  ;;  %v1048_v10 = vmax.f32 %v1016_v4, 0.0  ;;  %v923_v16 = vld [vmem:[#allocation2 + $0x40] sm:$0xff]  ;;  %v763_v18 = vpop.f32.mrb[22].mxu0  ;;  %v827_v19 = vpop.f32.mrb[22].mxu1  ;;  %v376_v1 = vld [vmem:[#allocation2 + $0xf0] sm:$0xff] }
 0x12d   : > { %v939_v17 = vld [vmem:[#allocation2 + $0xc0] sm:$0xff]  ;;  %1064 = vst.msk [vmem:[%s1635_s29 + $0x38] sm:$0xff] %vm313_vm0, %v1032_v9  ;;  %v962_v20 = vmul.f32 %v1613_v2, %v923_v16  ;;  %890 = vst.msk [vmem:[#allocation2 + $0x50] sm:$0xff] %vm313_vm0, %v857_v11  ;;  %v858_v22 = vadd.f32 %v763_v18, %v357_v7  ;;  %v874_v23 = vadd.f32 %v827_v19, %v373_v8  ;;  %v765_v24 = vpop.f32.mrb[23].mxu0  ;;  %v829_v25 = vpop.f32.mrb[23].mxu1  ;;  %v361_v9 = vld [vmem:[#allocation2 + $0x78] sm:$0xff] }
 0x12e   : > { %1080 = vst.msk [vmem:[%s1635_s29 + $0xb8] sm:$0xff] %vm313_vm0, %v1048_v10  ;;  %v978_v21 = vmul.f32 %v1613_v2, %v939_v17  ;;  %906 = vst.msk [vmem:[#allocation2 + $0xd0] sm:$0xff] %vm313_vm0, %v873_v13  ;;  %v924_v26 = vld [vmem:[#allocation2 + $0x48] sm:$0xff]  ;;  %v377_v10 = vld [vmem:[#allocation2 + $0xf8] sm:$0xff] }
 0x12f   : > { %v940_v27 = vld [vmem:[#allocation2 + $0xc8] sm:$0xff]  ;;  %v1001_v28 = vadd.f32 %v1618_v12, %v962_v20  ;;  %v963_v30 = vmul.f32 %v1613_v2, %v924_v26  ;;  %891 = vst.msk [vmem:[#allocation2 + $0x58] sm:$0xff] %vm313_vm0, %v858_v22  ;;  %907 = vst.msk [vmem:[#allocation2 + $0xd8] sm:$0xff] %vm313_vm0, %v874_v23 }
 0x130   : > { %v1017_v29 = vadd.f32 %v1618_v12, %v978_v21  ;;  %v979_v31 = vmul.f32 %v1613_v2, %v940_v27 }
 0x131   : > { %v1033_v34 = vmax.f32 %v1001_v28, 0.0  ;;  %v1002_v36 = vadd.f32 %v1618_v12, %v963_v30 }
 0x132   : > { %v1049_v35 = vmax.f32 %v1017_v29, 0.0  ;;  %v1018_v37 = vadd.f32 %v1618_v12, %v979_v31  ;;  %v768_v38 = vpop.f32.mrb[24].mxu0  ;;  %v832_v39 = vpop.f32.mrb[24].mxu1 }
 0x133   : > { %1065 = vst.msk [vmem:[%s1635_s29 + $0x40] sm:$0xff] %vm313_vm0, %v1033_v34  ;;  %v1034_v42 = vmax.f32 %v1002_v36, 0.0  ;;  %v859_v44 = vadd.f32 %v768_v38, %v358_v32  ;;  %v875_v45 = vadd.f32 %v832_v39, %v374_v33  ;;  %v770_v46 = vpop.f32.mrb[25].mxu0  ;;  %v834_v47 = vpop.f32.mrb[25].mxu1 }
 0x134   : > { %1081 = vst.msk [vmem:[%s1635_s29 + $0xc0] sm:$0xff] %vm313_vm0, %v1049_v35  ;;  %v1050_v43 = vmax.f32 %v1018_v37, 0.0  ;;  %v925_v48 = vld [vmem:[#allocation2 + $0x50] sm:$0xff]  ;;  %v771_v50 = vpop.f32.mrb[26].mxu0  ;;  %v835_v51 = vpop.f32.mrb[26].mxu1 }
 0x135   : > { %v941_v49 = vld [vmem:[#allocation2 + $0xd0] sm:$0xff]  ;;  %1066 = vst.msk [vmem:[%s1635_s29 + $0x48] sm:$0xff] %vm313_vm0, %v1034_v42  ;;  %v964_v52 = vmul.f32 %v1613_v2, %v925_v48  ;;  %892 = vst.msk [vmem:[#allocation2 + $0x60] sm:$0xff] %vm313_vm0, %v859_v44  ;;  %v860_v54 = vadd.f32 %v771_v50, %v359_v40  ;;  %v876_v55 = vadd.f32 %v835_v51, %v375_v41  ;;  %v773_v56 = vpop.f32.mrb[27].mxu0  ;;  %v837_v57 = vpop.f32.mrb[27].mxu1 }
 0x136   : > { %1082 = vst.msk [vmem:[%s1635_s29 + $0xc8] sm:$0xff] %vm313_vm0, %v1050_v43  ;;  %v980_v53 = vmul.f32 %v1613_v2, %v941_v49  ;;  %908 = vst.msk [vmem:[#allocation2 + $0xe0] sm:$0xff] %vm313_vm0, %v875_v45  ;;  %v926_v58 = vld [vmem:[#allocation2 + $0x58] sm:$0xff] }
 0x137   : > { %v942_v59 = vld [vmem:[#allocation2 + $0xd8] sm:$0xff]  ;;  %v1003_v60 = vadd.f32 %v1618_v12, %v964_v52  ;;  %v965_v62 = vmul.f32 %v1613_v2, %v926_v58  ;;  %893 = vst.msk [vmem:[#allocation2 + $0x68] sm:$0xff] %vm313_vm0, %v860_v54  ;;  %909 = vst.msk [vmem:[#allocation2 + $0xe8] sm:$0xff] %vm313_vm0, %v876_v55 }
 0x138   : > { %v1019_v61 = vadd.f32 %v1618_v12, %v980_v53  ;;  %v981_v63 = vmul.f32 %v1613_v2, %v942_v59 }
 0x139   : > { %v1035_v3 = vmax.f32 %v1003_v60, 0.0  ;;  %v1004_v5 = vadd.f32 %v1618_v12, %v965_v62 }
 0x13a   : > { %v1051_v4 = vmax.f32 %v1019_v61, 0.0  ;;  %v1020_v6 = vadd.f32 %v1618_v12, %v981_v63  ;;  %v776_v7 = vpop.f32.mrb[28].mxu0  ;;  %v840_v8 = vpop.f32.mrb[28].mxu1 }
 0x13b   : > { %1067 = vst.msk [vmem:[%s1635_s29 + $0x50] sm:$0xff] %vm313_vm0, %v1035_v3  ;;  %v1036_v11 = vmax.f32 %v1004_v5, 0.0  ;;  %v861_v14 = vadd.f32 %v776_v7, %v360_v0  ;;  %v877_v15 = vadd.f32 %v840_v8, %v376_v1  ;;  %v778_v16 = vpop.f32.mrb[29].mxu0  ;;  %v842_v17 = vpop.f32.mrb[29].mxu1 }
 0x13c   : > { %1083 = vst.msk [vmem:[%s1635_s29 + $0xd0] sm:$0xff] %vm313_vm0, %v1051_v4  ;;  %v1052_v13 = vmax.f32 %v1020_v6, 0.0  ;;  %v927_v18 = vld [vmem:[#allocation2 + $0x60] sm:$0xff]  ;;  %v779_v20 = vpop.f32.mrb[30].mxu0  ;;  %v843_v21 = vpop.f32.mrb[30].mxu1 }
 0x13d   : > { %v943_v19 = vld [vmem:[#allocation2 + $0xe0] sm:$0xff]  ;;  %1068 = vst.msk [vmem:[%s1635_s29 + $0x58] sm:$0xff] %vm313_vm0, %v1036_v11  ;;  %v966_v22 = vmul.f32 %v1613_v2, %v927_v18  ;;  %894 = vst.msk [vmem:[#allocation2 + $0x70] sm:$0xff] %vm313_vm0, %v861_v14  ;;  %v862_v24 = vadd.f32 %v779_v20, %v361_v9  ;;  %v878_v25 = vadd.f32 %v843_v21, %v377_v10  ;;  %v781_v26 = vpop.f32.mrb[31].mxu0  ;;  %v845_v27 = vpop.f32.mrb[31].mxu1 }
 0x13e   : > { %1084 = vst.msk [vmem:[%s1635_s29 + $0xd8] sm:$0xff] %vm313_vm0, %v1052_v13  ;;  %v982_v23 = vmul.f32 %v1613_v2, %v943_v19  ;;  %910 = vst.msk [vmem:[#allocation2 + $0xf0] sm:$0xff] %vm313_vm0, %v877_v15  ;;  %v928_v28 = vld [vmem:[#allocation2 + $0x68] sm:$0xff] }
 0x13f   : > { %v944_v29 = vld [vmem:[#allocation2 + $0xe8] sm:$0xff]  ;;  %v1005_v30 = vadd.f32 %v1618_v12, %v966_v22  ;;  %v967_v32 = vmul.f32 %v1613_v2, %v928_v28  ;;  %895 = vst.msk [vmem:[#allocation2 + $0x78] sm:$0xff] %vm313_vm0, %v862_v24  ;;  %911 = vst.msk [vmem:[#allocation2 + $0xf8] sm:$0xff] %vm313_vm0, %v878_v25 }
 0x140   : > { %v1021_v31 = vadd.f32 %v1618_v12, %v982_v23  ;;  %v983_v33 = vmul.f32 %v1613_v2, %v944_v29 }
 0x141   : > { %v1037_v34 = vmax.f32 %v1005_v30, 0.0  ;;  %v1006_v36 = vadd.f32 %v1618_v12, %v967_v32 }
 0x142   : > { %v1053_v35 = vmax.f32 %v1021_v31, 0.0  ;;  %v1022_v37 = vadd.f32 %v1618_v12, %v983_v33 }
 0x143   : > { %1069 = vst.msk [vmem:[%s1635_s29 + $0x60] sm:$0xff] %vm313_vm0, %v1037_v34  ;;  %v1038_v38 = vmax.f32 %v1006_v36, 0.0 }
 0x144   : > { %1085 = vst.msk [vmem:[%s1635_s29 + $0xe0] sm:$0xff] %vm313_vm0, %v1053_v35  ;;  %v1054_v39 = vmax.f32 %v1022_v37, 0.0  ;;  %v929_v40 = vld [vmem:[#allocation2 + $0x70] sm:$0xff] }
 0x145   : > { %v945_v41 = vld [vmem:[#allocation2 + $0xf0] sm:$0xff]  ;;  %1070 = vst.msk [vmem:[%s1635_s29 + $0x68] sm:$0xff] %vm313_vm0, %v1038_v38  ;;  %v968_v42 = vmul.f32 %v1613_v2, %v929_v40 }
 0x146   : > { %1086 = vst.msk [vmem:[%s1635_s29 + $0xe8] sm:$0xff] %vm313_vm0, %v1054_v39  ;;  %v984_v43 = vmul.f32 %v1613_v2, %v945_v41  ;;  %v930_v44 = vld [vmem:[#allocation2 + $0x78] sm:$0xff] }
 0x147   : > { %v946_v45 = vld [vmem:[#allocation2 + $0xf8] sm:$0xff]  ;;  %v1007_v46 = vadd.f32 %v1618_v12, %v968_v42  ;;  %v969_v48 = vmul.f32 %v1613_v2, %v930_v44 }
 0x148   : > { %v1023_v47 = vadd.f32 %v1618_v12, %v984_v43  ;;  %v985_v49 = vmul.f32 %v1613_v2, %v946_v45 }
 0x149   : > { %v1039_v50 = vmax.f32 %v1007_v46, 0.0  ;;  %v1008_v52 = vadd.f32 %v1618_v12, %v969_v48 }
 0x14a   : > { %v1055_v51 = vmax.f32 %v1023_v47, 0.0  ;;  %v1024_v53 = vadd.f32 %v1618_v12, %v985_v49 }
 0x14b   : > { %1071 = vst.msk [vmem:[%s1635_s29 + $0x70] sm:$0xff] %vm313_vm0, %v1039_v50  ;;  %v1040_v54 = vmax.f32 %v1008_v52, 0.0 }
 0x14c   : > { %1087 = vst.msk [vmem:[%s1635_s29 + $0xf0] sm:$0xff] %vm313_vm0, %v1055_v51  ;;  %v1056_v55 = vmax.f32 %v1024_v53, 0.0 }
 0x14d   : > { %1072 = vst.msk [vmem:[%s1635_s29 + $0x78] sm:$0xff] %vm313_vm0, %v1040_v54 }
 0x14e   : > { %1088 = vst.msk [vmem:[%s1635_s29 + $0xf8] sm:$0xff] %vm313_vm0, %v1056_v55 }
 0x14f PF: > { %s14_s17 = sadd.s32 1, %s1418_s17   ;;  %s1797_s15 = smov %s1414_s16 }
 0x150   : > { %p11_p5 = scmp.ge.s32.totalorder %s14_s17, 4   ;;  %s1798_s16 = smov %s1800_s18 }
 0x152   :  { %13 = sbr.rel (!%p11_p5) target bundleno = 2 (0x2), region = 83 }

// kernel: fish_classifier_forward.25
= control target key start
LH: loop header
LB: loop body
LE: loop exit
PB: predicated region body
PF: predicated region fallthrough
CT: control target
= control target key end

     0   :  { %vm22_vm0 = vcmask 523264   ;;  %s1827_s1 = inlined_call_operand.vmem [shape: bf16[576,64], index: 1, kind: input, shape index: {}]   ;;  %s1828_s0 = inlined_call_operand.vmem [shape: bf16[128,576], index: 0, kind: input, shape index: {}]   ;;  %s1829_s2 = inlined_call_operand.vmem [shape: f32[1,64], index: 2, kind: input, shape index: {}]   ;;  %s1830_s3 = inlined_call_operand.vmem [shape: f32[1,64], index: 3, kind: input, shape index: {}]   ;;  %s1831_s4 = inlined_call_operand.vmem [shape: f32[128,64], index: 4, kind: output, shape index: {}]  }
   0x1   :  { %v1299_v0 = vld [vmem:[%s1827_s1 + $0x40] sm:$0xff]   ;;  %v1303_v4 = vld [vmem:[%s1827_s1 + $0x48] sm:$0xff]   ;;  %v1307_v8 = vld [vmem:[%s1827_s1 + $0x50] sm:$0xff]  }
   0x2   :  { %v1300_v1 = vld [vmem:[%s1827_s1 + $0xc0] sm:$0xff]   ;;  %1126 = vmatprep.subr.bf16.mxu0 %v1299_v0  ;;  %v1304_v5 = vld [vmem:[%s1827_s1 + $0xc8] sm:$0xff]   ;;  %v1308_v9 = vld [vmem:[%s1827_s1 + $0xd0] sm:$0xff]  }
   0x3   :  { %v1301_v2 = vld [vmem:[%s1827_s1] sm:$0xff]   ;;  %1190 = vmatprep.subr.bf16.mxu1 %v1300_v1  ;;  %v1305_v6 = vld [vmem:[%s1827_s1 + $0x8] sm:$0xff]   ;;  %v1309_v10 = vld [vmem:[%s1827_s1 + $0x10] sm:$0xff]  }
   0x4   :  { %v1302_v3 = vld [vmem:[%s1827_s1 + $0x80] sm:$0xff]   ;;  %1127 = vmatpush3.bf16.msra.mxu0 %v1301_v2  ;;  %v1306_v7 = vld [vmem:[%s1827_s1 + $0x88] sm:$0xff]   ;;  %v1310_v11 = vld [vmem:[%s1827_s1 + $0x90] sm:$0xff]  }
   0x5   :  { %1191 = vmatpush3.bf16.msra.mxu1 %v1302_v3  ;;  %1128 = vmatprep.subr.bf16.mxu0 %v1303_v4  ;;  %v1311_v12 = vld [vmem:[%s1827_s1 + $0x58] sm:$0xff]   ;;  %v1315_v16 = vld [vmem:[%s1827_s1 + $0x60] sm:$0xff]   ;;  %v1319_v20 = vld [vmem:[%s1827_s1 + $0x68] sm:$0xff]  }
   0x6   :  { %1192 = vmatprep.subr.bf16.mxu1 %v1304_v5  ;;  %v1312_v13 = vld [vmem:[%s1827_s1 + $0xd8] sm:$0xff]   ;;  %v1316_v17 = vld [vmem:[%s1827_s1 + $0xe0] sm:$0xff]   ;;  %v1320_v21 = vld [vmem:[%s1827_s1 + $0xe8] sm:$0xff]  }
   0x7   :  { %v1313_v14 = vld [vmem:[%s1827_s1 + $0x18] sm:$0xff]   ;;  %v1317_v18 = vld [vmem:[%s1827_s1 + $0x20] sm:$0xff]   ;;  %v1321_v22 = vld [vmem:[%s1827_s1 + $0x28] sm:$0xff]  }
   0x8   :  { %1129 = vmatpush3.bf16.msra.mxu0 %v1305_v6  ;;  %v1314_v15 = vld [vmem:[%s1827_s1 + $0x98] sm:$0xff]   ;;  %v1318_v19 = vld [vmem:[%s1827_s1 + $0xa0] sm:$0xff]   ;;  %v1322_v23 = vld [vmem:[%s1827_s1 + $0xa8] sm:$0xff]  }
   0x9   :  { %1193 = vmatpush3.bf16.msra.mxu1 %v1306_v7  ;;  %1130 = vmatprep.subr.bf16.mxu0 %v1307_v8  ;;  %v1323_v24 = vld [vmem:[%s1827_s1 + $0x70] sm:$0xff]   ;;  %v1327_v28 = vld [vmem:[%s1827_s1 + $0x78] sm:$0xff]   ;;  %v1336_v35 = vld [vmem:[%s1828_s0 + $0xc] ss:$20 sps:$4 sm:$0xff]  }
   0xa   :  { %1194 = vmatprep.subr.bf16.mxu1 %v1308_v9  ;;  %v1324_v25 = vld [vmem:[%s1827_s1 + $0xf0] sm:$0xff]   ;;  %v1328_v29 = vld [vmem:[%s1827_s1 + $0xf8] sm:$0xff]   ;;  %v1337_v36 = vld [vmem:[%s1827_s1 + $0x100] sm:$0xff]   ;;  %745 = vmatprep.mubr.bf16.mxu1 %v1336_v35 }
   0xb   :  { %v1325_v26 = vld [vmem:[%s1827_s1 + $0x30] sm:$0xff]   ;;  %v1329_v30 = vld [vmem:[%s1827_s1 + $0x38] sm:$0xff]   ;;  %v1338_v37 = vld [vmem:[%s1828_s0 + $0x2c] ss:$20 sps:$4 sm:$0xff]  }
   0xc   :  { %1131 = vmatpush3.bf16.msra.mxu0 %v1309_v10  ;;  %v1326_v27 = vld [vmem:[%s1827_s1 + $0xb0] sm:$0xff]   ;;  %v1330_v31 = vld [vmem:[%s1827_s1 + $0xb8] sm:$0xff]   ;;  %v1350_v42 = vld [vmem:[%s1827_s1 + $0x108] sm:$0xff]  }
   0xd   :  { %1195 = vmatpush3.bf16.msra.mxu1 %v1310_v11  ;;  %1132 = vmatprep.subr.bf16.mxu0 %v1311_v12  ;;  %v1331_v32 = vld [vmem:[%s1828_s0] ss:$20 sps:$4 sm:$0xff]   ;;  %v1333_v33 = vld [vmem:[%s1828_s0 + $0x4] ss:$20 sps:$4 sm:$0xff]   ;;  %v1334_v34 = vld [vmem:[%s1828_s0 + $0x8] ss:$20 sps:$4 sm:$0xff]  }
   0xe   :  { %1196 = vmatprep.subr.bf16.mxu1 %v1312_v13  ;;  %648 = vmatprep.mubr.bf16.mxu0 %v1333_v33  ;;  %v1340_v38 = vld [vmem:[%s1828_s0 + $0x34] ss:$20 sps:$4 sm:$0xff]   ;;  %v1343_v40 = vld [vmem:[%s1828_s0 + $0x30] ss:$20 sps:$4 sm:$0xff]   ;;  %v1349_v45 = vld [vmem:[%s1828_s0 + $0x58] ss:$20 sps:$4 sm:$0xff]  }
   0xf   :  { %v1342_v39 = vld [vmem:[%s1828_s0 + $0x28] ss:$20 sps:$4 sm:$0xff]   ;;  %v1348_v44 = vld [vmem:[%s1828_s0 + $0x50] ss:$20 sps:$4 sm:$0xff]   ;;  %v1355_v50 = vld [vmem:[%s1828_s0 + $0x78] ss:$20 sps:$4 sm:$0xff]  }
  0x10   :  { %1133 = vmatpush3.bf16.msra.mxu0 %v1313_v14  ;;  %v1344_v41 = vld [vmem:[%s1828_s0 + $0x54] ss:$20 sps:$4 sm:$0xff]   ;;  %v1346_v43 = vld [vmem:[%s1828_s0 + $0x5c] ss:$20 sps:$4 sm:$0xff]   ;;  %v1353_v48 = vld [vmem:[%s1828_s0 + $0x84] ss:$20 sps:$4 sm:$0xff]  }
  0x11   :  { %1197 = vmatpush3.bf16.msra.mxu1 %v1314_v15  ;;  %1134 = vmatprep.subr.bf16.mxu0 %v1315_v16  ;;  %v1363_v46 = vld [vmem:[%s1827_s1 + $0x110] sm:$0xff]   ;;  %v1376_v49 = vld [vmem:[%s1827_s1 + $0x118] sm:$0xff]   ;;  %v1359_v53 = vld [vmem:[%s1828_s0 + $0xac] ss:$20 sps:$4 sm:$0xff]   ;;  %v1391_v12 = vmov 0.0  }
  0x12   :  { %1198 = vmatprep.subr.bf16.mxu1 %v1316_v17  ;;  %v1351_v47 = vld [vmem:[%s1828_s0 + $0x7c] ss:$20 sps:$4 sm:$0xff]   ;;  %v1356_v51 = vld [vmem:[%s1828_s0 + $0x80] ss:$20 sps:$4 sm:$0xff]   ;;  %v1357_v52 = vld [vmem:[%s1828_s0 + $0xa4] ss:$20 sps:$4 sm:$0xff]  }
  0x13   :  { %v1361_v54 = vld [vmem:[%s1828_s0 + $0xa0] ss:$20 sps:$4 sm:$0xff]   ;;  %v1362_v55 = vld [vmem:[%s1828_s0 + $0xa8] ss:$20 sps:$4 sm:$0xff]   ;;  %v1369_v59 = vld [vmem:[%s1828_s0 + $0xd0] ss:$20 sps:$4 sm:$0xff]  }
  0x14   :  { %1135 = vmatpush3.bf16.msra.mxu0 %v1317_v18  ;;  %v1364_v56 = vld [vmem:[%s1828_s0 + $0xcc] ss:$20 sps:$4 sm:$0xff]   ;;  %v1366_v57 = vld [vmem:[%s1828_s0 + $0xd4] ss:$20 sps:$4 sm:$0xff]   ;;  %v1372_v61 = vld [vmem:[%s1828_s0 + $0xfc] ss:$20 sps:$4 sm:$0xff]  }
  0x15   :  { %1199 = vmatpush3.bf16.msra.mxu1 %v1318_v19  ;;  %1136 = vmatprep.subr.bf16.mxu0 %v1319_v20  ;;  %v1368_v58 = vld [vmem:[%s1828_s0 + $0xc8] ss:$20 sps:$4 sm:$0xff]   ;;  %v1374_v62 = vld [vmem:[%s1828_s0 + $0xf0] ss:$20 sps:$4 sm:$0xff]   ;;  %v1375_v63 = vld [vmem:[%s1828_s0 + $0xf8] ss:$20 sps:$4 sm:$0xff]  }
  0x16   :  { %1200 = vmatprep.subr.bf16.mxu1 %v1320_v21  ;;  %v1370_v60 = vld [vmem:[%s1828_s0 + $0xf4] ss:$20 sps:$4 sm:$0xff]   ;;  %v1377_v0 = vld [vmem:[%s1828_s0 + $0x11c] ss:$20 sps:$4 sm:$0xff]   ;;  %v1379_v1 = vld [vmem:[%s1828_s0 + $0x124] ss:$20 sps:$4 sm:$0xff]  }
  0x17   :  { %v1381_v2 = vld [vmem:[%s1828_s0 + $0x118] ss:$20 sps:$4 sm:$0xff]   ;;  %v1382_v3 = vld [vmem:[%s1828_s0 + $0x120] ss:$20 sps:$4 sm:$0xff]   ;;  %v1383_v4 = vld [vmem:[%s1828_s0 + $0x10] ss:$20 sps:$4 sm:$0xff]  }
  0x18   :  { %1137 = vmatpush3.bf16.msra.mxu0 %v1321_v22  ;;  %v1384_v5 = vld [vmem:[%s1828_s0 + $0xb0] ss:$20 sps:$4 sm:$0xff]   ;;  %v1385_v6 = vld [vmem:[%s1828_s0 + $0x38] ss:$20 sps:$4 sm:$0xff]   ;;  %v1387_v8 = vld [vmem:[%s1828_s0 + $0x60] ss:$20 sps:$4 sm:$0xff]  }
  0x19   :  { %1201 = vmatpush3.bf16.msra.mxu1 %v1322_v23  ;;  %1138 = vmatprep.subr.bf16.mxu0 %v1323_v24  ;;  %v1386_v7 = vld [vmem:[%s1828_s0 + $0xd8] ss:$20 sps:$4 sm:$0xff]   ;;  %v1388_v9 = vld [vmem:[%s1828_s0 + $0x100] ss:$20 sps:$4 sm:$0xff]   ;;  %v1389_v10 = vld [vmem:[%s1828_s0 + $0x88] ss:$20 sps:$4 sm:$0xff]  }
  0x1a   :  { %1202 = vmatprep.subr.bf16.mxu1 %v1324_v25  ;;  %v1390_v11 = vld [vmem:[%s1828_s0 + $0x128] ss:$20 sps:$4 sm:$0xff]   ;;  %25 = vst.msk [vmem:[#allocation2 + $0x10] sm:$0xff] %vm22_vm0, %v1391_v12  ;;  %23 = vst.msk [vmem:[#allocation2] sm:$0xff] %vm22_vm0, %v1391_v12 }
  0x1b   :  { %24 = vst.msk [vmem:[#allocation2 + $0x8] sm:$0xff] %vm22_vm0, %v1391_v12  ;;  %26 = vst.msk [vmem:[#allocation2 + $0x18] sm:$0xff] %vm22_vm0, %v1391_v12 }
  0x1c   :  { %1139 = vmatpush3.bf16.msra.mxu0 %v1325_v26  ;;  %27 = vst.msk [vmem:[#allocation2 + $0x20] sm:$0xff] %vm22_vm0, %v1391_v12  ;;  %28 = vst.msk [vmem:[#allocation2 + $0x28] sm:$0xff] %vm22_vm0, %v1391_v12 }
  0x1d   :  { %1203 = vmatpush3.bf16.msra.mxu1 %v1326_v27  ;;  %1140 = vmatprep.subr.bf16.mxu0 %v1327_v28  ;;  %29 = vst.msk [vmem:[#allocation2 + $0x30] sm:$0xff] %vm22_vm0, %v1391_v12  ;;  %30 = vst.msk [vmem:[#allocation2 + $0x38] sm:$0xff] %vm22_vm0, %v1391_v12 }
  0x1e   :  { %1204 = vmatprep.subr.bf16.mxu1 %v1328_v29  ;;  %31 = vst.msk [vmem:[#allocation2 + $0x40] sm:$0xff] %vm22_vm0, %v1391_v12  ;;  %32 = vst.msk [vmem:[#allocation2 + $0x48] sm:$0xff] %vm22_vm0, %v1391_v12 }
  0x1f   :  { %33 = vst.msk [vmem:[#allocation2 + $0x50] sm:$0xff] %vm22_vm0, %v1391_v12  ;;  %34 = vst.msk [vmem:[#allocation2 + $0x58] sm:$0xff] %vm22_vm0, %v1391_v12 }
  0x20   :  { %1141 = vmatpush3.bf16.msra.mxu0 %v1329_v30  ;;  %35 = vst.msk [vmem:[#allocation2 + $0x60] sm:$0xff] %vm22_vm0, %v1391_v12  ;;  %36 = vst.msk [vmem:[#allocation2 + $0x68] sm:$0xff] %vm22_vm0, %v1391_v12 }
  0x21   :  { %1205 = vmatpush3.bf16.msra.mxu1 %v1330_v31  ;;  %1266 = vmatprep.subr.bf16.mxu0 %v1337_v36  ;;  %37 = vst.msk [vmem:[#allocation2 + $0x70] sm:$0xff] %vm22_vm0, %v1391_v12  ;;  %38 = vst.msk [vmem:[#allocation2 + $0x78] sm:$0xff] %vm22_vm0, %v1391_v12 }
  0x22   :  { %1290 = vmatprep.subr.bf16.mxu1 %v1337_v36 }
  0x23   :  { %649 = vmatmul.mubr.bf16.vlgmr.msra.gmra.mrb[0].mxu0 %v1331_v32 }
  0x24   :  { %746 = vmatmul.mubr.bf16.vlgmr.msra.gmra.mrb[0].mxu1 %v1334_v34  ;;  %1267 = vmatpush3.bf16.msra.mxu0 %v1337_v36 }
  0x25   :  { %1294 = vmatpush3.bf16.msra.mxu1 %v1337_v36  ;;  %656 = vmatprep.mubr.bf16.mxu0 %v1338_v37 }
  0x26   :  { %753 = vmatprep.mubr.bf16.mxu1 %v1340_v38  ;;  %1268 = vmatprep.subr.bf16.mxu0 %v1350_v42 }
  0x27   :  { %1291 = vmatprep.subr.bf16.mxu1 %v1350_v42 }
  0x28   :  { %1269 = vmatpush3.bf16.msra.mxu0 %v1350_v42 }
  0x29   :  { %1295 = vmatpush3.bf16.msra.mxu1 %v1350_v42  ;;  %1270 = vmatprep.subr.bf16.mxu0 %v1363_v46 }
  0x2a   :  { %1292 = vmatprep.subr.bf16.mxu1 %v1363_v46 }
  0x2b   :  { %657 = vmatmul.mubr.bf16.gmra.mrb[4].mxu0 %v1342_v39 }
  0x2c   :  { %754 = vmatmul.mubr.bf16.gmra.mrb[4].mxu1 %v1343_v40  ;;  %664 = vmatprep.mubr.bf16.mxu0 %v1344_v41 }
  0x2d   :  { %761 = vmatprep.mubr.bf16.mxu1 %v1346_v43  ;;  %1271 = vmatpush3.bf16.msra.mxu0 %v1363_v46 }
  0x2e   :  { %1296 = vmatpush3.bf16.msra.mxu1 %v1363_v46  ;;  %1272 = vmatprep.subr.bf16.mxu0 %v1376_v49 }
  0x2f   :  { %1293 = vmatprep.subr.bf16.mxu1 %v1376_v49 }
  0x31   :  { %1273 = vmatpush3.bf16.msra.mxu0 %v1376_v49 }
  0x32   :  { %1297 = vmatpush3.bf16.msra.mxu1 %v1376_v49 }
  0x33   :  { %665 = vmatmul.mubr.bf16.gmra.mrb[8].mxu0 %v1348_v44 }
  0x34   :  { %762 = vmatmul.mubr.bf16.gmra.mrb[8].mxu1 %v1349_v45  ;;  %672 = vmatprep.mubr.bf16.mxu0 %v1351_v47 }
  0x35   :  { %769 = vmatprep.mubr.bf16.mxu1 %v1353_v48 }
  0x3b   :  { %673 = vmatmul.mubr.bf16.gmra.mrb[12].mxu0 %v1355_v50 }
  0x3c   :  { %770 = vmatmul.mubr.bf16.gmra.mrb[12].mxu1 %v1356_v51  ;;  %680 = vmatprep.mubr.bf16.mxu0 %v1357_v52 }
  0x3d   :  { %777 = vmatprep.mubr.bf16.mxu1 %v1359_v53 }
  0x43   :  { %681 = vmatmul.mubr.bf16.gmra.mrb[16].mxu0 %v1361_v54 }
  0x44   :  { %778 = vmatmul.mubr.bf16.gmra.mrb[16].mxu1 %v1362_v55  ;;  %688 = vmatprep.mubr.bf16.mxu0 %v1364_v56 }
  0x45   :  { %785 = vmatprep.mubr.bf16.mxu1 %v1366_v57 }
  0x4b   :  { %689 = vmatmul.mubr.bf16.gmra.mrb[20].mxu0 %v1368_v58 }
  0x4c   :  { %786 = vmatmul.mubr.bf16.gmra.mrb[20].mxu1 %v1369_v59  ;;  %696 = vmatprep.mubr.bf16.mxu0 %v1370_v60 }
  0x4d   :  { %793 = vmatprep.mubr.bf16.mxu1 %v1372_v61 }
  0x53   :  { %697 = vmatmul.mubr.bf16.gmra.mrb[24].mxu0 %v1374_v62 }
  0x54   :  { %794 = vmatmul.mubr.bf16.gmra.mrb[24].mxu1 %v1375_v63  ;;  %704 = vmatprep.mubr.bf16.mxu0 %v1377_v0 }
  0x55   :  { %801 = vmatprep.mubr.bf16.mxu1 %v1379_v1 }
  0x5b   :  { %705 = vmatmul.mubr.bf16.gmra.mrb[28].mxu0 %v1381_v2 }
  0x5c   :  { %802 = vmatmul.mubr.bf16.gmra.mrb[28].mxu1 %v1382_v3  ;;  %1274 = vmatprep.mubr.msk.bf16.mxu0 %vm22_vm0, %v1383_v4 }
  0x5d   :  { %1282 = vmatprep.mubr.msk.bf16.mxu1 %vm22_vm0, %v1384_v5 }
  0x63   :  { %1275 = vmatmul.mubr.msk.bf16.vlgmr.msra.gmra.mrb[32].mxu0 %vm22_vm0, %v1385_v6 }
  0x64   :  { %1283 = vmatmul.mubr.msk.bf16.vlgmr.msra.gmra.mrb[32].mxu1 %vm22_vm0, %v1386_v7  ;;  %1278 = vmatprep.mubr.msk.bf16.mxu0 %vm22_vm0, %v1387_v8 }
  0x65   :  { %1286 = vmatprep.mubr.msk.bf16.mxu1 %vm22_vm0, %v1388_v9 }
  0x6b   :  { %1279 = vmatmul.mubr.msk.bf16.gmra.mrb[36].mxu0 %vm22_vm0, %v1389_v10 }
  0x6c   :  { %1287 = vmatmul.mubr.msk.bf16.gmra.mrb[36].mxu1 %vm22_vm0, %v1390_v11 }
  0xf6   :  { %v1142_v13 = vpop.f32.mrb[0].mxu0 }
  0xf7   :  { %v1206_v14 = vpop.f32.mrb[0].mxu1  ;;  %v1143_v15 = vpop.f32.mrb[1].mxu0 }
  0xf8   :  { %v1144_v16 = vadd.f32 %v1143_v15, %v1142_v13  ;;  %v1207_v17 = vpop.f32.mrb[1].mxu1  ;;  %v1145_v18 = vpop.f32.mrb[2].mxu0 }
  0xf9   :  { %v1208_v19 = vadd.f32 %v1207_v17, %v1206_v14  ;;  %v1209_v20 = vpop.f32.mrb[2].mxu1  ;;  %v1146_v21 = vpop.f32.mrb[3].mxu0 }
  0xfa   :  { %v1147_v22 = vadd.f32 %v1146_v21, %v1145_v18  ;;  %v1210_v23 = vpop.f32.mrb[3].mxu1 }
  0xfb   :  { %v1211_v24 = vadd.f32 %v1210_v23, %v1209_v20  ;;  %v1669_v25 = vadd.f32 %v1208_v19, %v1144_v16 }
  0xfd   :  { %v1671_v26 = vadd.f32 %v1211_v24, %v1147_v22 }
  0xfe   :  { %v1148_v27 = vpop.f32.mrb[4].mxu0 }
  0xff   :  { %v1212_v28 = vpop.f32.mrb[4].mxu1  ;;  %v1149_v29 = vpop.f32.mrb[5].mxu0 }
 0x100   :  { %v1150_v30 = vadd.f32 %v1149_v29, %v1148_v27  ;;  %v1213_v31 = vpop.f32.mrb[5].mxu1  ;;  %v1151_v32 = vpop.f32.mrb[6].mxu0 }
 0x101   :  { %v1214_v33 = vadd.f32 %v1213_v31, %v1212_v28  ;;  %v1215_v34 = vpop.f32.mrb[6].mxu1  ;;  %v1152_v35 = vpop.f32.mrb[7].mxu0 }
 0x102   :  { %v1153_v36 = vadd.f32 %v1152_v35, %v1151_v32  ;;  %v1216_v37 = vpop.f32.mrb[7].mxu1 }
 0x103   :  { %v1217_v38 = vadd.f32 %v1216_v37, %v1215_v34  ;;  %v1673_v39 = vadd.f32 %v1214_v33, %v1150_v30 }
 0x105   :  { %v1675_v40 = vadd.f32 %v1217_v38, %v1153_v36 }
 0x106   :  { %v1154_v41 = vpop.f32.mrb[8].mxu0 }
 0x107   :  { %v1218_v42 = vpop.f32.mrb[8].mxu1  ;;  %v1155_v43 = vpop.f32.mrb[9].mxu0 }
 0x108   :  { %v1156_v44 = vadd.f32 %v1155_v43, %v1154_v41  ;;  %v1219_v45 = vpop.f32.mrb[9].mxu1  ;;  %v1157_v46 = vpop.f32.mrb[10].mxu0 }
 0x109   :  { %v1220_v47 = vadd.f32 %v1219_v45, %v1218_v42  ;;  %v1221_v48 = vpop.f32.mrb[10].mxu1  ;;  %v1158_v49 = vpop.f32.mrb[11].mxu0 }
 0x10a   :  { %v1159_v50 = vadd.f32 %v1158_v49, %v1157_v46  ;;  %v1222_v51 = vpop.f32.mrb[11].mxu1 }
 0x10b   :  { %v1223_v52 = vadd.f32 %v1222_v51, %v1221_v48  ;;  %v1677_v53 = vadd.f32 %v1220_v47, %v1156_v44 }
 0x10d   :  { %v1679_v54 = vadd.f32 %v1223_v52, %v1159_v50 }
 0x10e   :  { %v1160_v55 = vpop.f32.mrb[12].mxu0 }
 0x10f   :  { %v1224_v56 = vpop.f32.mrb[12].mxu1  ;;  %v1161_v57 = vpop.f32.mrb[13].mxu0 }
 0x110   :  { %v1162_v58 = vadd.f32 %v1161_v57, %v1160_v55  ;;  %v1225_v59 = vpop.f32.mrb[13].mxu1  ;;  %v1163_v60 = vpop.f32.mrb[14].mxu0 }
 0x111   :  { %v1226_v61 = vadd.f32 %v1225_v59, %v1224_v56  ;;  %v1227_v62 = vpop.f32.mrb[14].mxu1  ;;  %v1164_v63 = vpop.f32.mrb[15].mxu0 }
 0x112   :  { %v1165_v0 = vadd.f32 %v1164_v63, %v1163_v60  ;;  %v1228_v1 = vpop.f32.mrb[15].mxu1 }
 0x113   :  { %v1229_v2 = vadd.f32 %v1228_v1, %v1227_v62  ;;  %v1681_v3 = vadd.f32 %v1226_v61, %v1162_v58 }
 0x115   :  { %v1683_v4 = vadd.f32 %v1229_v2, %v1165_v0 }
 0x116   :  { %v1166_v5 = vpop.f32.mrb[16].mxu0 }
 0x117   :  { %v1230_v6 = vpop.f32.mrb[16].mxu1  ;;  %v1167_v7 = vpop.f32.mrb[17].mxu0 }
 0x118   :  { %v1168_v8 = vadd.f32 %v1167_v7, %v1166_v5  ;;  %v1231_v9 = vpop.f32.mrb[17].mxu1  ;;  %v1169_v10 = vpop.f32.mrb[18].mxu0  ;;  %v41_v5 = vld [vmem:[#allocation2 + $0x10] sm:$0xff] }
 0x119   :  { %v1232_v11 = vadd.f32 %v1231_v9, %v1230_v6  ;;  %v1233_v12 = vpop.f32.mrb[18].mxu1  ;;  %v1170_v13 = vpop.f32.mrb[19].mxu0 }
 0x11a   :  { %v1171_v14 = vadd.f32 %v1170_v13, %v1169_v10  ;;  %v1234_v15 = vpop.f32.mrb[19].mxu1  ;;  %v39_v10 = vld [vmem:[#allocation2] sm:$0xff] }
 0x11b   :  { %v1235_v16 = vadd.f32 %v1234_v15, %v1233_v12  ;;  %v780_v17 = vadd.f32 %v1232_v11, %v1168_v8  ;;  %v49_v8 = vld [vmem:[#allocation2 + $0x50] sm:$0xff] }
 0x11d   :  { %v1685_v18 = vadd.f32 %v1235_v16, %v1171_v14  ;;  %v47_v14 = vld [vmem:[#allocation2 + $0x40] sm:$0xff]  ;;  %v42_v16 = vld [vmem:[#allocation2 + $0x18] sm:$0xff] }
 0x11e   :  { %v1172_v19 = vpop.f32.mrb[20].mxu0 }
 0x11f   :  { %v1236_v20 = vpop.f32.mrb[20].mxu1  ;;  %v1173_v21 = vpop.f32.mrb[21].mxu0 }
 0x120   :  { %v1174_v22 = vadd.f32 %v1173_v21, %v1172_v19  ;;  %v1237_v23 = vpop.f32.mrb[21].mxu1  ;;  %v1175_v24 = vpop.f32.mrb[22].mxu0 }
 0x121   :  { %v1238_v27 = vadd.f32 %v1237_v23, %v1236_v20  ;;  %v1239_v28 = vpop.f32.mrb[22].mxu1  ;;  %v1176_v29 = vpop.f32.mrb[23].mxu0  ;;  %v50_v23 = vld [vmem:[#allocation2 + $0x58] sm:$0xff] }
 0x122   :  { %v1177_v30 = vadd.f32 %v1176_v29, %v1175_v24  ;;  %v1240_v31 = vpop.f32.mrb[23].mxu1 }
 0x123   :  { %v1241_v32 = vadd.f32 %v1240_v31, %v1239_v28  ;;  %v788_v33 = vadd.f32 %v1238_v27, %v1174_v22  ;;  %v40_v27 = vld [vmem:[#allocation2 + $0x8] sm:$0xff] }
 0x125   :  { %v791_v34 = vadd.f32 %v1241_v32, %v1177_v30  ;;  %v48_v32 = vld [vmem:[#allocation2 + $0x48] sm:$0xff] }
 0x126   :  { %v1178_v35 = vpop.f32.mrb[24].mxu0 }
 0x127   :  { %v1242_v36 = vpop.f32.mrb[24].mxu1  ;;  %v1179_v37 = vpop.f32.mrb[25].mxu0 }
 0x128   :  { %v1180_v38 = vadd.f32 %v1179_v37, %v1178_v35  ;;  %v1243_v41 = vpop.f32.mrb[25].mxu1  ;;  %v1181_v42 = vpop.f32.mrb[26].mxu0 }
 0x129   :  { %v1244_v43 = vadd.f32 %v1243_v41, %v1242_v36  ;;  %v1245_v44 = vpop.f32.mrb[26].mxu1  ;;  %v1182_v45 = vpop.f32.mrb[27].mxu0 }
 0x12a   :  { %v1183_v46 = vadd.f32 %v1182_v45, %v1181_v42  ;;  %v1246_v47 = vpop.f32.mrb[27].mxu1  ;;  %v43_v42 = vld [vmem:[#allocation2 + $0x20] sm:$0xff] }
 0x12b   :  { %v1247_v48 = vadd.f32 %v1246_v47, %v1245_v44  ;;  %v1687_v49 = vadd.f32 %v1244_v43, %v1180_v38  ;;  %v53_v38 = vld [vmem:[#allocation2 + $0x70] sm:$0xff]  ;;  %v1710_v44 = vld [vmem:[%s1829_s2] ss:$0 sm:$0xff] }
 0x12c   :  { %v51_v47 = vld [vmem:[#allocation2 + $0x60] sm:$0xff] }
 0x12d   :  { %v1689_v50 = vadd.f32 %v1247_v48, %v1183_v46 }
 0x12e   :  { %v1184_v51 = vpop.f32.mrb[28].mxu0 }
 0x12f   :  { %v1248_v52 = vpop.f32.mrb[28].mxu1  ;;  %v1185_v55 = vpop.f32.mrb[29].mxu0 }
 0x130   :  { %v1186_v56 = vadd.f32 %v1185_v55, %v1184_v51  ;;  %v1249_v57 = vpop.f32.mrb[29].mxu1  ;;  %v1187_v58 = vpop.f32.mrb[30].mxu0  ;;  %v46_v51 = vld [vmem:[#allocation2 + $0x38] sm:$0xff] }
 0x131   :  { %v1250_v59 = vadd.f32 %v1249_v57, %v1248_v52  ;;  %v1251_v60 = vpop.f32.mrb[30].mxu1  ;;  %v1188_v61 = vpop.f32.mrb[31].mxu0  ;;  %v54_v57 = vld [vmem:[#allocation2 + $0x78] sm:$0xff] }
 0x132   :  { %v1189_v62 = vadd.f32 %v1188_v61, %v1187_v58  ;;  %v1252_v63 = vpop.f32.mrb[31].mxu1 }
 0x133   :  { %v1253_v0 = vadd.f32 %v1252_v63, %v1251_v60  ;;  %v804_v1 = vadd.f32 %v1250_v59, %v1186_v56  ;;  %v44_v59 = vld [vmem:[#allocation2 + $0x28] sm:$0xff] }
 0x135   :  { %v1691_v2 = vadd.f32 %v1253_v0, %v1189_v62  ;;  %v1718_v62 = vld [vmem:[%s1830_s3] ss:$0 sm:$0xff] }
 0x136   :  { %v1276_v6 = vpop.f32.mrb[32].mxu0 }
 0x137   :  { %v853_v7 = vadd.f32 %v1276_v6, %v1673_v39  ;;  %v1284_v9 = vpop.f32.mrb[32].mxu1  ;;  %v844_v11 = vpop.f32.mrb[33].mxu0 }
 0x138   :  { %v885_v12 = vadd.f32 %v1284_v9, %v788_v33  ;;  %v845_v13 = vadd.f32 %v844_v11, %v1669_v25  ;;  %v876_v15 = vpop.f32.mrb[33].mxu1  ;;  %v1277_v19 = vpop.f32.mrb[34].mxu0 }
 0x139   :  { %v909_v20 = vadd.f32 %v853_v7, %v41_v5  ;;  %v877_v21 = vadd.f32 %v876_v15, %v780_v17  ;;  %v856_v22 = vadd.f32 %v1277_v19, %v1675_v40  ;;  %v1285_v24 = vpop.f32.mrb[34].mxu1  ;;  %v847_v28 = vpop.f32.mrb[35].mxu0  ;;  %v52_v5 = vld [vmem:[#allocation2 + $0x68] sm:$0xff] }
 0x13a   :  { %v917_v39 = vadd.f32 %v885_v12, %v49_v8  ;;  %v907_v29 = vadd.f32 %v845_v13, %v39_v10  ;;  %v888_v30 = vadd.f32 %v1285_v24, %v791_v34  ;;  %v848_v31 = vadd.f32 %v847_v28, %v1671_v26  ;;  %v879_v33 = vpop.f32.mrb[35].mxu1  ;;  %v45_v26 = vld [vmem:[#allocation2 + $0x30] sm:$0xff] }
 0x13b   :  { %925 = vst.msk [vmem:[#allocation2 + $0x10] sm:$0xff] %vm22_vm0, %v909_v20  ;;  %v915_v25 = vadd.f32 %v877_v21, %v47_v14  ;;  %v910_v35 = vadd.f32 %v856_v22, %v42_v16  ;;  %v880_v36 = vadd.f32 %v879_v33, %v1685_v18 }
 0x13c   :  { %933 = vst.msk [vmem:[#allocation2 + $0x50] sm:$0xff] %vm22_vm0, %v917_v39  ;;  %923 = vst.msk [vmem:[#allocation2] sm:$0xff] %vm22_vm0, %v907_v29  ;;  %v918_v40 = vadd.f32 %v888_v30, %v50_v23  ;;  %v908_v17 = vadd.f32 %v848_v31, %v40_v27 }
 0x13d   :  { %931 = vst.msk [vmem:[#allocation2 + $0x40] sm:$0xff] %vm22_vm0, %v915_v25  ;;  %926 = vst.msk [vmem:[#allocation2 + $0x18] sm:$0xff] %vm22_vm0, %v910_v35  ;;  %v916_v34 = vadd.f32 %v880_v36, %v48_v32 }
 0x13e   :  { %934 = vst.msk [vmem:[#allocation2 + $0x58] sm:$0xff] %vm22_vm0, %v918_v40  ;;  %924 = vst.msk [vmem:[#allocation2 + $0x8] sm:$0xff] %vm22_vm0, %v908_v17  ;;  %v1280_v37 = vpop.f32.mrb[36].mxu0 }
 0x13f   :  { %932 = vst.msk [vmem:[#allocation2 + $0x48] sm:$0xff] %vm22_vm0, %v916_v34  ;;  %v869_v18 = vadd.f32 %v1280_v37, %v1681_v3  ;;  %v1288_v41 = vpop.f32.mrb[36].mxu1  ;;  %v860_v43 = vpop.f32.mrb[37].mxu0 }
 0x140   :  { %v901_v45 = vadd.f32 %v1288_v41, %v804_v1  ;;  %v861_v46 = vadd.f32 %v860_v43, %v1677_v53  ;;  %v892_v48 = vpop.f32.mrb[37].mxu1  ;;  %v1281_v52 = vpop.f32.mrb[38].mxu0 }
 0x141   :  { %v913_v55 = vadd.f32 %v869_v18, %v45_v26  ;;  %v893_v56 = vadd.f32 %v892_v48, %v1687_v49  ;;  %v872_v3 = vadd.f32 %v1281_v52, %v1683_v4  ;;  %v1289_v58 = vpop.f32.mrb[38].mxu1  ;;  %v863_v60 = vpop.f32.mrb[39].mxu0 }
 0x142   :  { %v944_v61 = vld [vmem:[#allocation2 + $0x10] sm:$0xff]  ;;  %v921_v53 = vadd.f32 %v901_v45, %v53_v38  ;;  %v911_v63 = vadd.f32 %v861_v46, %v43_v42  ;;  %v904_v0 = vadd.f32 %v1289_v58, %v1691_v2  ;;  %v864_v1 = vadd.f32 %v863_v60, %v1679_v54  ;;  %v895_v49 = vpop.f32.mrb[39].mxu1 }
 0x143   :  { %v967_v4 = vmul.f32 %v1710_v44, %v944_v61  ;;  %v952_v6 = vld [vmem:[#allocation2 + $0x50] sm:$0xff]  ;;  %v942_v7 = vld [vmem:[#allocation2] sm:$0xff]  ;;  %929 = vst.msk [vmem:[#allocation2 + $0x30] sm:$0xff] %vm22_vm0, %v913_v55  ;;  %v919_v8 = vadd.f32 %v893_v56, %v51_v47  ;;  %v914_v9 = vadd.f32 %v872_v3, %v46_v51  ;;  %v896_v10 = vadd.f32 %v895_v49, %v1689_v50 }
 0x144   :  { %v975_v11 = vmul.f32 %v1710_v44, %v952_v6  ;;  %v965_v12 = vmul.f32 %v1710_v44, %v942_v7  ;;  %v950_v13 = vld [vmem:[#allocation2 + $0x40] sm:$0xff]  ;;  %v945_v2 = vld [vmem:[#allocation2 + $0x18] sm:$0xff]  ;;  %937 = vst.msk [vmem:[#allocation2 + $0x70] sm:$0xff] %vm22_vm0, %v921_v53  ;;  %927 = vst.msk [vmem:[#allocation2 + $0x20] sm:$0xff] %vm22_vm0, %v911_v63  ;;  %v922_v54 = vadd.f32 %v904_v0, %v54_v57 }
 0x145   :  { %v912_v14 = vadd.f32 %v864_v1, %v44_v59  ;;  %v990_v15 = vadd.f32 %v1718_v62, %v967_v4  ;;  %v973_v16 = vmul.f32 %v1710_v44, %v950_v13  ;;  %v968_v19 = vmul.f32 %v1710_v44, %v945_v2  ;;  %v953_v20 = vld [vmem:[#allocation2 + $0x58] sm:$0xff]  ;;  %v943_v50 = vld [vmem:[#allocation2 + $0x8] sm:$0xff]  ;;  %935 = vst.msk [vmem:[#allocation2 + $0x60] sm:$0xff] %vm22_vm0, %v919_v8 }
 0x146   :  { %930 = vst.msk [vmem:[#allocation2 + $0x38] sm:$0xff] %vm22_vm0, %v914_v9  ;;  %v920_v21 = vadd.f32 %v896_v10, %v52_v5  ;;  %v998_v22 = vadd.f32 %v1718_v62, %v975_v11  ;;  %v988_v23 = vadd.f32 %v1718_v62, %v965_v12  ;;  %v976_v24 = vmul.f32 %v1710_v44, %v953_v20  ;;  %v951_v28 = vld [vmem:[#allocation2 + $0x48] sm:$0xff] }
 0x147   :  { %v966_v27 = vmul.f32 %v1710_v44, %v943_v50  ;;  %938 = vst.msk [vmem:[#allocation2 + $0x78] sm:$0xff] %vm22_vm0, %v922_v54  ;;  %928 = vst.msk [vmem:[#allocation2 + $0x28] sm:$0xff] %vm22_vm0, %v912_v14  ;;  %v1006_v39 = vmax.f32 %v990_v15, 0.0  ;;  %v996_v29 = vadd.f32 %v1718_v62, %v973_v16  ;;  %v991_v30 = vadd.f32 %v1718_v62, %v968_v19 }
 0x148   :  { %v974_v31 = vmul.f32 %v1710_v44, %v951_v28  ;;  %936 = vst.msk [vmem:[#allocation2 + $0x68] sm:$0xff] %vm22_vm0, %v920_v21  ;;  %v1014_v32 = vmax.f32 %v998_v22, 0.0  ;;  %v1004_v33 = vmax.f32 %v988_v23, 0.0  ;;  %v999_v25 = vadd.f32 %v1718_v62, %v976_v24 }
 0x149   :  { %v989_v35 = vadd.f32 %v1718_v62, %v966_v27  ;;  %1022 = vst.msk [vmem:[%s1831_s4 + $0x10] sm:$0xff] %vm22_vm0, %v1006_v39  ;;  %v1012_v36 = vmax.f32 %v996_v29, 0.0  ;;  %v1007_v40 = vmax.f32 %v991_v30, 0.0 }
 0x14a   :  { %v997_v17 = vadd.f32 %v1718_v62, %v974_v31  ;;  %1030 = vst.msk [vmem:[%s1831_s4 + $0x50] sm:$0xff] %vm22_vm0, %v1014_v32  ;;  %1020 = vst.msk [vmem:[%s1831_s4] sm:$0xff] %vm22_vm0, %v1004_v33  ;;  %v1015_v34 = vmax.f32 %v999_v25, 0.0  ;;  %v948_v37 = vld [vmem:[#allocation2 + $0x30] sm:$0xff] }
 0x14b   :  { %v1005_v26 = vmax.f32 %v989_v35, 0.0  ;;  %1028 = vst.msk [vmem:[%s1831_s4 + $0x40] sm:$0xff] %vm22_vm0, %v1012_v36  ;;  %1023 = vst.msk [vmem:[%s1831_s4 + $0x18] sm:$0xff] %vm22_vm0, %v1007_v40  ;;  %v971_v38 = vmul.f32 %v1710_v44, %v948_v37  ;;  %v956_v41 = vld [vmem:[#allocation2 + $0x70] sm:$0xff]  ;;  %v946_v42 = vld [vmem:[#allocation2 + $0x20] sm:$0xff] }
 0x14c   :  { %v1013_v18 = vmax.f32 %v997_v17, 0.0  ;;  %1031 = vst.msk [vmem:[%s1831_s4 + $0x58] sm:$0xff] %vm22_vm0, %v1015_v34  ;;  %v979_v43 = vmul.f32 %v1710_v44, %v956_v41  ;;  %v969_v45 = vmul.f32 %v1710_v44, %v946_v42  ;;  %v954_v46 = vld [vmem:[#allocation2 + $0x60] sm:$0xff] }
 0x14d   :  { %1021 = vst.msk [vmem:[%s1831_s4 + $0x8] sm:$0xff] %vm22_vm0, %v1005_v26  ;;  %v949_v47 = vld [vmem:[#allocation2 + $0x38] sm:$0xff]  ;;  %v994_v48 = vadd.f32 %v1718_v62, %v971_v38  ;;  %v977_v51 = vmul.f32 %v1710_v44, %v954_v46 }
 0x14e   :  { %1029 = vst.msk [vmem:[%s1831_s4 + $0x48] sm:$0xff] %vm22_vm0, %v1013_v18  ;;  %v972_v52 = vmul.f32 %v1710_v44, %v949_v47  ;;  %v957_v55 = vld [vmem:[#allocation2 + $0x78] sm:$0xff]  ;;  %v947_v56 = vld [vmem:[#allocation2 + $0x28] sm:$0xff]  ;;  %v1002_v3 = vadd.f32 %v1718_v62, %v979_v43  ;;  %v992_v57 = vadd.f32 %v1718_v62, %v969_v45 }
 0x14f   :  { %v980_v58 = vmul.f32 %v1710_v44, %v957_v55  ;;  %v970_v59 = vmul.f32 %v1710_v44, %v947_v56  ;;  %v955_v60 = vld [vmem:[#allocation2 + $0x68] sm:$0xff]  ;;  %v1010_v61 = vmax.f32 %v994_v48, 0.0  ;;  %v1000_v53 = vadd.f32 %v1718_v62, %v977_v51 }
 0x150   :  { %v995_v63 = vadd.f32 %v1718_v62, %v972_v52  ;;  %v978_v0 = vmul.f32 %v1710_v44, %v955_v60  ;;  %v1018_v1 = vmax.f32 %v1002_v3, 0.0  ;;  %v1008_v5 = vmax.f32 %v992_v57, 0.0 }
 0x151   :  { %v1003_v49 = vadd.f32 %v1718_v62, %v980_v58  ;;  %v993_v4 = vadd.f32 %v1718_v62, %v970_v59  ;;  %1026 = vst.msk [vmem:[%s1831_s4 + $0x30] sm:$0xff] %vm22_vm0, %v1010_v61  ;;  %v1016_v6 = vmax.f32 %v1000_v53, 0.0 }
 0x152   :  { %v1011_v7 = vmax.f32 %v995_v63, 0.0  ;;  %v1001_v8 = vadd.f32 %v1718_v62, %v978_v0  ;;  %1034 = vst.msk [vmem:[%s1831_s4 + $0x70] sm:$0xff] %vm22_vm0, %v1018_v1  ;;  %1024 = vst.msk [vmem:[%s1831_s4 + $0x20] sm:$0xff] %vm22_vm0, %v1008_v5 }
 0x153   :  { %v1019_v44 = vmax.f32 %v1003_v49, 0.0  ;;  %v1009_v9 = vmax.f32 %v993_v4, 0.0  ;;  %1032 = vst.msk [vmem:[%s1831_s4 + $0x60] sm:$0xff] %vm22_vm0, %v1016_v6 }
 0x154   :  { %1027 = vst.msk [vmem:[%s1831_s4 + $0x38] sm:$0xff] %vm22_vm0, %v1011_v7  ;;  %v1017_v62 = vmax.f32 %v1001_v8, 0.0 }
 0x155   :  { %1035 = vst.msk [vmem:[%s1831_s4 + $0x78] sm:$0xff] %vm22_vm0, %v1019_v44  ;;  %1025 = vst.msk [vmem:[%s1831_s4 + $0x28] sm:$0xff] %vm22_vm0, %v1009_v9 }
 0x156   :  { %1033 = vst.msk [vmem:[%s1831_s4 + $0x68] sm:$0xff] %vm22_vm0, %v1017_v62 }

// kernel: fish_classifier_forward.26
= control target key start
LH: loop header
LB: loop body
LE: loop exit
PB: predicated region body
PF: predicated region fallthrough
CT: control target
= control target key end

     0   :  { %vm25_vm0 = vcmask 523264   ;;  %s1915_s1 = inlined_call_operand.vmem [shape: bf16[576,64], index: 1, kind: input, shape index: {}]   ;;  %s1916_s0 = inlined_call_operand.vmem [shape: bf16[128,576], index: 0, kind: input, shape index: {}]   ;;  %s1917_s2 = inlined_call_operand.vmem [shape: f32[1,64], index: 2, kind: input, shape index: {}]   ;;  %s1918_s3 = inlined_call_operand.vmem [shape: f32[1,64], index: 3, kind: input, shape index: {}]   ;;  %s1919_s4 = inlined_call_operand.vmem [shape: f32[128,64], index: 4, kind: input, shape index: {}]   ;;  %s1920_s5 = inlined_call_operand.vmem [shape: f32[128,64], index: 5, kind: output, shape index: {}]  }
   0x1   :  { %v1334_v0 = vld [vmem:[%s1915_s1 + $0x40] sm:$0xff]   ;;  %v1338_v4 = vld [vmem:[%s1915_s1 + $0x48] sm:$0xff]   ;;  %v1342_v8 = vld [vmem:[%s1915_s1 + $0x50] sm:$0xff]  }
   0x2   :  { %v1335_v1 = vld [vmem:[%s1915_s1 + $0xc0] sm:$0xff]   ;;  %1161 = vmatprep.subr.bf16.mxu0 %v1334_v0  ;;  %v1339_v5 = vld [vmem:[%s1915_s1 + $0xc8] sm:$0xff]   ;;  %v1343_v9 = vld [vmem:[%s1915_s1 + $0xd0] sm:$0xff]  }
   0x3   :  { %v1336_v2 = vld [vmem:[%s1915_s1] sm:$0xff]   ;;  %1225 = vmatprep.subr.bf16.mxu1 %v1335_v1  ;;  %v1340_v6 = vld [vmem:[%s1915_s1 + $0x8] sm:$0xff]   ;;  %v1344_v10 = vld [vmem:[%s1915_s1 + $0x10] sm:$0xff]  }
   0x4   :  { %v1337_v3 = vld [vmem:[%s1915_s1 + $0x80] sm:$0xff]   ;;  %1162 = vmatpush3.bf16.msra.mxu0 %v1336_v2  ;;  %v1341_v7 = vld [vmem:[%s1915_s1 + $0x88] sm:$0xff]   ;;  %v1345_v11 = vld [vmem:[%s1915_s1 + $0x90] sm:$0xff]  }
   0x5   :  { %1226 = vmatpush3.bf16.msra.mxu1 %v1337_v3  ;;  %1163 = vmatprep.subr.bf16.mxu0 %v1338_v4  ;;  %v1346_v12 = vld [vmem:[%s1915_s1 + $0x58] sm:$0xff]   ;;  %v1350_v16 = vld [vmem:[%s1915_s1 + $0x60] sm:$0xff]   ;;  %v1354_v20 = vld [vmem:[%s1915_s1 + $0x68] sm:$0xff]  }
   0x6   :  { %1227 = vmatprep.subr.bf16.mxu1 %v1339_v5  ;;  %v1347_v13 = vld [vmem:[%s1915_s1 + $0xd8] sm:$0xff]   ;;  %v1351_v17 = vld [vmem:[%s1915_s1 + $0xe0] sm:$0xff]   ;;  %v1355_v21 = vld [vmem:[%s1915_s1 + $0xe8] sm:$0xff]  }
   0x7   :  { %v1348_v14 = vld [vmem:[%s1915_s1 + $0x18] sm:$0xff]   ;;  %v1352_v18 = vld [vmem:[%s1915_s1 + $0x20] sm:$0xff]   ;;  %v1356_v22 = vld [vmem:[%s1915_s1 + $0x28] sm:$0xff]  }
   0x8   :  { %1164 = vmatpush3.bf16.msra.mxu0 %v1340_v6  ;;  %v1349_v15 = vld [vmem:[%s1915_s1 + $0x98] sm:$0xff]   ;;  %v1353_v19 = vld [vmem:[%s1915_s1 + $0xa0] sm:$0xff]   ;;  %v1357_v23 = vld [vmem:[%s1915_s1 + $0xa8] sm:$0xff]  }
   0x9   :  { %1228 = vmatpush3.bf16.msra.mxu1 %v1341_v7  ;;  %1165 = vmatprep.subr.bf16.mxu0 %v1342_v8  ;;  %v1358_v24 = vld [vmem:[%s1915_s1 + $0x70] sm:$0xff]   ;;  %v1362_v28 = vld [vmem:[%s1915_s1 + $0x78] sm:$0xff]   ;;  %v1371_v35 = vld [vmem:[%s1916_s0 + $0xc] ss:$20 sps:$4 sm:$0xff]  }
   0xa   :  { %1229 = vmatprep.subr.bf16.mxu1 %v1343_v9  ;;  %v1359_v25 = vld [vmem:[%s1915_s1 + $0xf0] sm:$0xff]   ;;  %v1363_v29 = vld [vmem:[%s1915_s1 + $0xf8] sm:$0xff]   ;;  %v1372_v36 = vld [vmem:[%s1915_s1 + $0x100] sm:$0xff]   ;;  %748 = vmatprep.mubr.bf16.mxu1 %v1371_v35 }
   0xb   :  { %v1360_v26 = vld [vmem:[%s1915_s1 + $0x30] sm:$0xff]   ;;  %v1364_v30 = vld [vmem:[%s1915_s1 + $0x38] sm:$0xff]   ;;  %v1373_v37 = vld [vmem:[%s1916_s0 + $0x2c] ss:$20 sps:$4 sm:$0xff]  }
   0xc   :  { %1166 = vmatpush3.bf16.msra.mxu0 %v1344_v10  ;;  %v1361_v27 = vld [vmem:[%s1915_s1 + $0xb0] sm:$0xff]   ;;  %v1365_v31 = vld [vmem:[%s1915_s1 + $0xb8] sm:$0xff]   ;;  %v1385_v42 = vld [vmem:[%s1915_s1 + $0x108] sm:$0xff]  }
   0xd   :  { %1230 = vmatpush3.bf16.msra.mxu1 %v1345_v11  ;;  %1167 = vmatprep.subr.bf16.mxu0 %v1346_v12  ;;  %v1366_v32 = vld [vmem:[%s1916_s0] ss:$20 sps:$4 sm:$0xff]   ;;  %v1368_v33 = vld [vmem:[%s1916_s0 + $0x4] ss:$20 sps:$4 sm:$0xff]   ;;  %v1369_v34 = vld [vmem:[%s1916_s0 + $0x8] ss:$20 sps:$4 sm:$0xff]  }
   0xe   :  { %1231 = vmatprep.subr.bf16.mxu1 %v1347_v13  ;;  %651 = vmatprep.mubr.bf16.mxu0 %v1368_v33  ;;  %v1375_v38 = vld [vmem:[%s1916_s0 + $0x34] ss:$20 sps:$4 sm:$0xff]   ;;  %v1378_v40 = vld [vmem:[%s1916_s0 + $0x30] ss:$20 sps:$4 sm:$0xff]   ;;  %v1384_v45 = vld [vmem:[%s1916_s0 + $0x58] ss:$20 sps:$4 sm:$0xff]  }
   0xf   :  { %v1377_v39 = vld [vmem:[%s1916_s0 + $0x28] ss:$20 sps:$4 sm:$0xff]   ;;  %v1383_v44 = vld [vmem:[%s1916_s0 + $0x50] ss:$20 sps:$4 sm:$0xff]   ;;  %v1390_v50 = vld [vmem:[%s1916_s0 + $0x78] ss:$20 sps:$4 sm:$0xff]  }
  0x10   :  { %1168 = vmatpush3.bf16.msra.mxu0 %v1348_v14  ;;  %v1379_v41 = vld [vmem:[%s1916_s0 + $0x54] ss:$20 sps:$4 sm:$0xff]   ;;  %v1381_v43 = vld [vmem:[%s1916_s0 + $0x5c] ss:$20 sps:$4 sm:$0xff]   ;;  %v1388_v48 = vld [vmem:[%s1916_s0 + $0x84] ss:$20 sps:$4 sm:$0xff]  }
  0x11   :  { %1232 = vmatpush3.bf16.msra.mxu1 %v1349_v15  ;;  %1169 = vmatprep.subr.bf16.mxu0 %v1350_v16  ;;  %v1398_v46 = vld [vmem:[%s1915_s1 + $0x110] sm:$0xff]   ;;  %v1411_v49 = vld [vmem:[%s1915_s1 + $0x118] sm:$0xff]   ;;  %v1394_v53 = vld [vmem:[%s1916_s0 + $0xac] ss:$20 sps:$4 sm:$0xff]   ;;  %v1426_v12 = vmov 0.0  }
  0x12   :  { %1233 = vmatprep.subr.bf16.mxu1 %v1351_v17  ;;  %v1386_v47 = vld [vmem:[%s1916_s0 + $0x7c] ss:$20 sps:$4 sm:$0xff]   ;;  %v1391_v51 = vld [vmem:[%s1916_s0 + $0x80] ss:$20 sps:$4 sm:$0xff]   ;;  %v1392_v52 = vld [vmem:[%s1916_s0 + $0xa4] ss:$20 sps:$4 sm:$0xff]  }
  0x13   :  { %v1396_v54 = vld [vmem:[%s1916_s0 + $0xa0] ss:$20 sps:$4 sm:$0xff]   ;;  %v1397_v55 = vld [vmem:[%s1916_s0 + $0xa8] ss:$20 sps:$4 sm:$0xff]   ;;  %v1404_v59 = vld [vmem:[%s1916_s0 + $0xd0] ss:$20 sps:$4 sm:$0xff]  }
  0x14   :  { %1170 = vmatpush3.bf16.msra.mxu0 %v1352_v18  ;;  %v1399_v56 = vld [vmem:[%s1916_s0 + $0xcc] ss:$20 sps:$4 sm:$0xff]   ;;  %v1401_v57 = vld [vmem:[%s1916_s0 + $0xd4] ss:$20 sps:$4 sm:$0xff]   ;;  %v1407_v61 = vld [vmem:[%s1916_s0 + $0xfc] ss:$20 sps:$4 sm:$0xff]  }
  0x15   :  { %1234 = vmatpush3.bf16.msra.mxu1 %v1353_v19  ;;  %1171 = vmatprep.subr.bf16.mxu0 %v1354_v20  ;;  %v1403_v58 = vld [vmem:[%s1916_s0 + $0xc8] ss:$20 sps:$4 sm:$0xff]   ;;  %v1409_v62 = vld [vmem:[%s1916_s0 + $0xf0] ss:$20 sps:$4 sm:$0xff]   ;;  %v1410_v63 = vld [vmem:[%s1916_s0 + $0xf8] ss:$20 sps:$4 sm:$0xff]  }
  0x16   :  { %1235 = vmatprep.subr.bf16.mxu1 %v1355_v21  ;;  %v1405_v60 = vld [vmem:[%s1916_s0 + $0xf4] ss:$20 sps:$4 sm:$0xff]   ;;  %v1412_v0 = vld [vmem:[%s1916_s0 + $0x11c] ss:$20 sps:$4 sm:$0xff]   ;;  %v1414_v1 = vld [vmem:[%s1916_s0 + $0x124] ss:$20 sps:$4 sm:$0xff]  }
  0x17   :  { %v1416_v2 = vld [vmem:[%s1916_s0 + $0x118] ss:$20 sps:$4 sm:$0xff]   ;;  %v1417_v3 = vld [vmem:[%s1916_s0 + $0x120] ss:$20 sps:$4 sm:$0xff]   ;;  %v1418_v4 = vld [vmem:[%s1916_s0 + $0x10] ss:$20 sps:$4 sm:$0xff]  }
  0x18   :  { %1172 = vmatpush3.bf16.msra.mxu0 %v1356_v22  ;;  %v1419_v5 = vld [vmem:[%s1916_s0 + $0xb0] ss:$20 sps:$4 sm:$0xff]   ;;  %v1420_v6 = vld [vmem:[%s1916_s0 + $0x38] ss:$20 sps:$4 sm:$0xff]   ;;  %v1422_v8 = vld [vmem:[%s1916_s0 + $0x60] ss:$20 sps:$4 sm:$0xff]  }
  0x19   :  { %1236 = vmatpush3.bf16.msra.mxu1 %v1357_v23  ;;  %1173 = vmatprep.subr.bf16.mxu0 %v1358_v24  ;;  %v1421_v7 = vld [vmem:[%s1916_s0 + $0xd8] ss:$20 sps:$4 sm:$0xff]   ;;  %v1423_v9 = vld [vmem:[%s1916_s0 + $0x100] ss:$20 sps:$4 sm:$0xff]   ;;  %v1424_v10 = vld [vmem:[%s1916_s0 + $0x88] ss:$20 sps:$4 sm:$0xff]  }
  0x1a   :  { %1237 = vmatprep.subr.bf16.mxu1 %v1359_v25  ;;  %v1425_v11 = vld [vmem:[%s1916_s0 + $0x128] ss:$20 sps:$4 sm:$0xff]   ;;  %28 = vst.msk [vmem:[#allocation2 + $0x10] sm:$0xff] %vm25_vm0, %v1426_v12  ;;  %26 = vst.msk [vmem:[#allocation2] sm:$0xff] %vm25_vm0, %v1426_v12 }
  0x1b   :  { %27 = vst.msk [vmem:[#allocation2 + $0x8] sm:$0xff] %vm25_vm0, %v1426_v12  ;;  %29 = vst.msk [vmem:[#allocation2 + $0x18] sm:$0xff] %vm25_vm0, %v1426_v12 }
  0x1c   :  { %1174 = vmatpush3.bf16.msra.mxu0 %v1360_v26  ;;  %30 = vst.msk [vmem:[#allocation2 + $0x20] sm:$0xff] %vm25_vm0, %v1426_v12  ;;  %31 = vst.msk [vmem:[#allocation2 + $0x28] sm:$0xff] %vm25_vm0, %v1426_v12 }
  0x1d   :  { %1238 = vmatpush3.bf16.msra.mxu1 %v1361_v27  ;;  %1175 = vmatprep.subr.bf16.mxu0 %v1362_v28  ;;  %32 = vst.msk [vmem:[#allocation2 + $0x30] sm:$0xff] %vm25_vm0, %v1426_v12  ;;  %33 = vst.msk [vmem:[#allocation2 + $0x38] sm:$0xff] %vm25_vm0, %v1426_v12 }
  0x1e   :  { %1239 = vmatprep.subr.bf16.mxu1 %v1363_v29  ;;  %34 = vst.msk [vmem:[#allocation2 + $0x40] sm:$0xff] %vm25_vm0, %v1426_v12  ;;  %35 = vst.msk [vmem:[#allocation2 + $0x48] sm:$0xff] %vm25_vm0, %v1426_v12 }
  0x1f   :  { %36 = vst.msk [vmem:[#allocation2 + $0x50] sm:$0xff] %vm25_vm0, %v1426_v12  ;;  %37 = vst.msk [vmem:[#allocation2 + $0x58] sm:$0xff] %vm25_vm0, %v1426_v12 }
  0x20   :  { %1176 = vmatpush3.bf16.msra.mxu0 %v1364_v30  ;;  %38 = vst.msk [vmem:[#allocation2 + $0x60] sm:$0xff] %vm25_vm0, %v1426_v12  ;;  %39 = vst.msk [vmem:[#allocation2 + $0x68] sm:$0xff] %vm25_vm0, %v1426_v12 }
  0x21   :  { %1240 = vmatpush3.bf16.msra.mxu1 %v1365_v31  ;;  %1301 = vmatprep.subr.bf16.mxu0 %v1372_v36  ;;  %40 = vst.msk [vmem:[#allocation2 + $0x70] sm:$0xff] %vm25_vm0, %v1426_v12  ;;  %41 = vst.msk [vmem:[#allocation2 + $0x78] sm:$0xff] %vm25_vm0, %v1426_v12 }
  0x22   :  { %1325 = vmatprep.subr.bf16.mxu1 %v1372_v36 }
  0x23   :  { %652 = vmatmul.mubr.bf16.vlgmr.msra.gmra.mrb[0].mxu0 %v1366_v32 }
  0x24   :  { %749 = vmatmul.mubr.bf16.vlgmr.msra.gmra.mrb[0].mxu1 %v1369_v34  ;;  %1302 = vmatpush3.bf16.msra.mxu0 %v1372_v36 }
  0x25   :  { %1329 = vmatpush3.bf16.msra.mxu1 %v1372_v36  ;;  %659 = vmatprep.mubr.bf16.mxu0 %v1373_v37 }
  0x26   :  { %756 = vmatprep.mubr.bf16.mxu1 %v1375_v38  ;;  %1303 = vmatprep.subr.bf16.mxu0 %v1385_v42 }
  0x27   :  { %1326 = vmatprep.subr.bf16.mxu1 %v1385_v42 }
  0x28   :  { %1304 = vmatpush3.bf16.msra.mxu0 %v1385_v42 }
  0x29   :  { %1330 = vmatpush3.bf16.msra.mxu1 %v1385_v42  ;;  %1305 = vmatprep.subr.bf16.mxu0 %v1398_v46 }
  0x2a   :  { %1327 = vmatprep.subr.bf16.mxu1 %v1398_v46 }
  0x2b   :  { %660 = vmatmul.mubr.bf16.gmra.mrb[4].mxu0 %v1377_v39 }
  0x2c   :  { %757 = vmatmul.mubr.bf16.gmra.mrb[4].mxu1 %v1378_v40  ;;  %667 = vmatprep.mubr.bf16.mxu0 %v1379_v41 }
  0x2d   :  { %764 = vmatprep.mubr.bf16.mxu1 %v1381_v43  ;;  %1306 = vmatpush3.bf16.msra.mxu0 %v1398_v46 }
  0x2e   :  { %1331 = vmatpush3.bf16.msra.mxu1 %v1398_v46  ;;  %1307 = vmatprep.subr.bf16.mxu0 %v1411_v49 }
  0x2f   :  { %1328 = vmatprep.subr.bf16.mxu1 %v1411_v49 }
  0x31   :  { %1308 = vmatpush3.bf16.msra.mxu0 %v1411_v49 }
  0x32   :  { %1332 = vmatpush3.bf16.msra.mxu1 %v1411_v49 }
  0x33   :  { %668 = vmatmul.mubr.bf16.gmra.mrb[8].mxu0 %v1383_v44 }
  0x34   :  { %765 = vmatmul.mubr.bf16.gmra.mrb[8].mxu1 %v1384_v45  ;;  %675 = vmatprep.mubr.bf16.mxu0 %v1386_v47 }
  0x35   :  { %772 = vmatprep.mubr.bf16.mxu1 %v1388_v48 }
  0x3b   :  { %676 = vmatmul.mubr.bf16.gmra.mrb[12].mxu0 %v1390_v50 }
  0x3c   :  { %773 = vmatmul.mubr.bf16.gmra.mrb[12].mxu1 %v1391_v51  ;;  %683 = vmatprep.mubr.bf16.mxu0 %v1392_v52 }
  0x3d   :  { %780 = vmatprep.mubr.bf16.mxu1 %v1394_v53 }
  0x43   :  { %684 = vmatmul.mubr.bf16.gmra.mrb[16].mxu0 %v1396_v54 }
  0x44   :  { %781 = vmatmul.mubr.bf16.gmra.mrb[16].mxu1 %v1397_v55  ;;  %691 = vmatprep.mubr.bf16.mxu0 %v1399_v56 }
  0x45   :  { %788 = vmatprep.mubr.bf16.mxu1 %v1401_v57 }
  0x4b   :  { %692 = vmatmul.mubr.bf16.gmra.mrb[20].mxu0 %v1403_v58 }
  0x4c   :  { %789 = vmatmul.mubr.bf16.gmra.mrb[20].mxu1 %v1404_v59  ;;  %699 = vmatprep.mubr.bf16.mxu0 %v1405_v60 }
  0x4d   :  { %796 = vmatprep.mubr.bf16.mxu1 %v1407_v61 }
  0x53   :  { %700 = vmatmul.mubr.bf16.gmra.mrb[24].mxu0 %v1409_v62 }
  0x54   :  { %797 = vmatmul.mubr.bf16.gmra.mrb[24].mxu1 %v1410_v63  ;;  %707 = vmatprep.mubr.bf16.mxu0 %v1412_v0 }
  0x55   :  { %804 = vmatprep.mubr.bf16.mxu1 %v1414_v1 }
  0x5b   :  { %708 = vmatmul.mubr.bf16.gmra.mrb[28].mxu0 %v1416_v2 }
  0x5c   :  { %805 = vmatmul.mubr.bf16.gmra.mrb[28].mxu1 %v1417_v3  ;;  %1309 = vmatprep.mubr.msk.bf16.mxu0 %vm25_vm0, %v1418_v4 }
  0x5d   :  { %1317 = vmatprep.mubr.msk.bf16.mxu1 %vm25_vm0, %v1419_v5 }
  0x63   :  { %1310 = vmatmul.mubr.msk.bf16.vlgmr.msra.gmra.mrb[32].mxu0 %vm25_vm0, %v1420_v6 }
  0x64   :  { %1318 = vmatmul.mubr.msk.bf16.vlgmr.msra.gmra.mrb[32].mxu1 %vm25_vm0, %v1421_v7  ;;  %1313 = vmatprep.mubr.msk.bf16.mxu0 %vm25_vm0, %v1422_v8 }
  0x65   :  { %1321 = vmatprep.mubr.msk.bf16.mxu1 %vm25_vm0, %v1423_v9 }
  0x6b   :  { %1314 = vmatmul.mubr.msk.bf16.gmra.mrb[36].mxu0 %vm25_vm0, %v1424_v10 }
  0x6c   :  { %1322 = vmatmul.mubr.msk.bf16.gmra.mrb[36].mxu1 %vm25_vm0, %v1425_v11 }
  0xf6   :  { %v1177_v13 = vpop.f32.mrb[0].mxu0 }
  0xf7   :  { %v1241_v14 = vpop.f32.mrb[0].mxu1  ;;  %v1178_v15 = vpop.f32.mrb[1].mxu0 }
  0xf8   :  { %v1179_v16 = vadd.f32 %v1178_v15, %v1177_v13  ;;  %v1242_v17 = vpop.f32.mrb[1].mxu1  ;;  %v1180_v18 = vpop.f32.mrb[2].mxu0 }
  0xf9   :  { %v1243_v19 = vadd.f32 %v1242_v17, %v1241_v14  ;;  %v1244_v20 = vpop.f32.mrb[2].mxu1  ;;  %v1181_v21 = vpop.f32.mrb[3].mxu0 }
  0xfa   :  { %v1182_v22 = vadd.f32 %v1181_v21, %v1180_v18  ;;  %v1245_v23 = vpop.f32.mrb[3].mxu1 }
  0xfb   :  { %v1246_v24 = vadd.f32 %v1245_v23, %v1244_v20  ;;  %v1709_v25 = vadd.f32 %v1243_v19, %v1179_v16 }
  0xfd   :  { %v1711_v26 = vadd.f32 %v1246_v24, %v1182_v22 }
  0xfe   :  { %v1183_v27 = vpop.f32.mrb[4].mxu0 }
  0xff   :  { %v1247_v28 = vpop.f32.mrb[4].mxu1  ;;  %v1184_v29 = vpop.f32.mrb[5].mxu0 }
 0x100   :  { %v1185_v30 = vadd.f32 %v1184_v29, %v1183_v27  ;;  %v1248_v31 = vpop.f32.mrb[5].mxu1  ;;  %v1186_v32 = vpop.f32.mrb[6].mxu0 }
 0x101   :  { %v1249_v33 = vadd.f32 %v1248_v31, %v1247_v28  ;;  %v1250_v34 = vpop.f32.mrb[6].mxu1  ;;  %v1187_v35 = vpop.f32.mrb[7].mxu0 }
 0x102   :  { %v1188_v36 = vadd.f32 %v1187_v35, %v1186_v32  ;;  %v1251_v37 = vpop.f32.mrb[7].mxu1 }
 0x103   :  { %v1252_v38 = vadd.f32 %v1251_v37, %v1250_v34  ;;  %v1713_v39 = vadd.f32 %v1249_v33, %v1185_v30 }
 0x105   :  { %v1715_v40 = vadd.f32 %v1252_v38, %v1188_v36 }
 0x106   :  { %v1189_v41 = vpop.f32.mrb[8].mxu0 }
 0x107   :  { %v1253_v42 = vpop.f32.mrb[8].mxu1  ;;  %v1190_v43 = vpop.f32.mrb[9].mxu0 }
 0x108   :  { %v1191_v44 = vadd.f32 %v1190_v43, %v1189_v41  ;;  %v1254_v45 = vpop.f32.mrb[9].mxu1  ;;  %v1192_v46 = vpop.f32.mrb[10].mxu0 }
 0x109   :  { %v1255_v47 = vadd.f32 %v1254_v45, %v1253_v42  ;;  %v1256_v48 = vpop.f32.mrb[10].mxu1  ;;  %v1193_v49 = vpop.f32.mrb[11].mxu0 }
 0x10a   :  { %v1194_v50 = vadd.f32 %v1193_v49, %v1192_v46  ;;  %v1257_v51 = vpop.f32.mrb[11].mxu1 }
 0x10b   :  { %v1258_v52 = vadd.f32 %v1257_v51, %v1256_v48  ;;  %v1717_v53 = vadd.f32 %v1255_v47, %v1191_v44 }
 0x10d   :  { %v1719_v54 = vadd.f32 %v1258_v52, %v1194_v50 }
 0x10e   :  { %v1195_v55 = vpop.f32.mrb[12].mxu0 }
 0x10f   :  { %v1259_v56 = vpop.f32.mrb[12].mxu1  ;;  %v1196_v57 = vpop.f32.mrb[13].mxu0 }
 0x110   :  { %v1197_v58 = vadd.f32 %v1196_v57, %v1195_v55  ;;  %v1260_v59 = vpop.f32.mrb[13].mxu1  ;;  %v1198_v60 = vpop.f32.mrb[14].mxu0 }
 0x111   :  { %v1261_v61 = vadd.f32 %v1260_v59, %v1259_v56  ;;  %v1262_v62 = vpop.f32.mrb[14].mxu1  ;;  %v1199_v63 = vpop.f32.mrb[15].mxu0 }
 0x112   :  { %v1200_v0 = vadd.f32 %v1199_v63, %v1198_v60  ;;  %v1263_v1 = vpop.f32.mrb[15].mxu1 }
 0x113   :  { %v1264_v2 = vadd.f32 %v1263_v1, %v1262_v62  ;;  %v1721_v3 = vadd.f32 %v1261_v61, %v1197_v58 }
 0x115   :  { %v1723_v4 = vadd.f32 %v1264_v2, %v1200_v0 }
 0x116   :  { %v1201_v5 = vpop.f32.mrb[16].mxu0 }
 0x117   :  { %v1265_v6 = vpop.f32.mrb[16].mxu1  ;;  %v1202_v7 = vpop.f32.mrb[17].mxu0 }
 0x118   :  { %v1203_v8 = vadd.f32 %v1202_v7, %v1201_v5  ;;  %v1266_v9 = vpop.f32.mrb[17].mxu1  ;;  %v1204_v10 = vpop.f32.mrb[18].mxu0  ;;  %v44_v5 = vld [vmem:[#allocation2 + $0x10] sm:$0xff] }
 0x119   :  { %v1267_v11 = vadd.f32 %v1266_v9, %v1265_v6  ;;  %v1268_v12 = vpop.f32.mrb[18].mxu1  ;;  %v1205_v13 = vpop.f32.mrb[19].mxu0 }
 0x11a   :  { %v1206_v14 = vadd.f32 %v1205_v13, %v1204_v10  ;;  %v1269_v15 = vpop.f32.mrb[19].mxu1  ;;  %v42_v10 = vld [vmem:[#allocation2] sm:$0xff] }
 0x11b   :  { %v1270_v16 = vadd.f32 %v1269_v15, %v1268_v12  ;;  %v783_v17 = vadd.f32 %v1267_v11, %v1203_v8  ;;  %v52_v8 = vld [vmem:[#allocation2 + $0x50] sm:$0xff] }
 0x11d   :  { %v1725_v18 = vadd.f32 %v1270_v16, %v1206_v14  ;;  %v50_v14 = vld [vmem:[#allocation2 + $0x40] sm:$0xff]  ;;  %v45_v16 = vld [vmem:[#allocation2 + $0x18] sm:$0xff] }
 0x11e   :  { %v1207_v19 = vpop.f32.mrb[20].mxu0 }
 0x11f   :  { %v1271_v20 = vpop.f32.mrb[20].mxu1  ;;  %v1208_v21 = vpop.f32.mrb[21].mxu0 }
 0x120   :  { %v1209_v22 = vadd.f32 %v1208_v21, %v1207_v19  ;;  %v1272_v23 = vpop.f32.mrb[21].mxu1  ;;  %v1210_v24 = vpop.f32.mrb[22].mxu0 }
 0x121   :  { %v1273_v27 = vadd.f32 %v1272_v23, %v1271_v20  ;;  %v1274_v28 = vpop.f32.mrb[22].mxu1  ;;  %v1211_v29 = vpop.f32.mrb[23].mxu0  ;;  %v53_v23 = vld [vmem:[#allocation2 + $0x58] sm:$0xff] }
 0x122   :  { %v1212_v30 = vadd.f32 %v1211_v29, %v1210_v24  ;;  %v1275_v31 = vpop.f32.mrb[23].mxu1 }
 0x123   :  { %v1276_v32 = vadd.f32 %v1275_v31, %v1274_v28  ;;  %v791_v33 = vadd.f32 %v1273_v27, %v1209_v22  ;;  %v43_v27 = vld [vmem:[#allocation2 + $0x8] sm:$0xff] }
 0x125   :  { %v794_v34 = vadd.f32 %v1276_v32, %v1212_v30  ;;  %v51_v32 = vld [vmem:[#allocation2 + $0x48] sm:$0xff] }
 0x126   :  { %v1213_v35 = vpop.f32.mrb[24].mxu0 }
 0x127   :  { %v1277_v36 = vpop.f32.mrb[24].mxu1  ;;  %v1214_v37 = vpop.f32.mrb[25].mxu0 }
 0x128   :  { %v1215_v38 = vadd.f32 %v1214_v37, %v1213_v35  ;;  %v1278_v41 = vpop.f32.mrb[25].mxu1  ;;  %v1216_v42 = vpop.f32.mrb[26].mxu0 }
 0x129   :  { %v1279_v43 = vadd.f32 %v1278_v41, %v1277_v36  ;;  %v1280_v44 = vpop.f32.mrb[26].mxu1  ;;  %v1217_v45 = vpop.f32.mrb[27].mxu0 }
 0x12a   :  { %v1218_v46 = vadd.f32 %v1217_v45, %v1216_v42  ;;  %v1281_v47 = vpop.f32.mrb[27].mxu1  ;;  %v46_v42 = vld [vmem:[#allocation2 + $0x20] sm:$0xff] }
 0x12b   :  { %v1282_v48 = vadd.f32 %v1281_v47, %v1280_v44  ;;  %v1727_v49 = vadd.f32 %v1279_v43, %v1215_v38  ;;  %v56_v38 = vld [vmem:[#allocation2 + $0x70] sm:$0xff]  ;;  %v1750_v44 = vld [vmem:[%s1917_s2] ss:$0 sm:$0xff] }
 0x12c   :  { %v54_v47 = vld [vmem:[#allocation2 + $0x60] sm:$0xff] }
 0x12d   :  { %v1729_v50 = vadd.f32 %v1282_v48, %v1218_v46 }
 0x12e   :  { %v1219_v51 = vpop.f32.mrb[28].mxu0 }
 0x12f   :  { %v1283_v52 = vpop.f32.mrb[28].mxu1  ;;  %v1220_v55 = vpop.f32.mrb[29].mxu0 }
 0x130   :  { %v1221_v56 = vadd.f32 %v1220_v55, %v1219_v51  ;;  %v1284_v57 = vpop.f32.mrb[29].mxu1  ;;  %v1222_v58 = vpop.f32.mrb[30].mxu0  ;;  %v49_v51 = vld [vmem:[#allocation2 + $0x38] sm:$0xff] }
 0x131   :  { %v1285_v59 = vadd.f32 %v1284_v57, %v1283_v52  ;;  %v1286_v60 = vpop.f32.mrb[30].mxu1  ;;  %v1223_v61 = vpop.f32.mrb[31].mxu0  ;;  %v57_v57 = vld [vmem:[#allocation2 + $0x78] sm:$0xff] }
 0x132   :  { %v1224_v62 = vadd.f32 %v1223_v61, %v1222_v58  ;;  %v1287_v63 = vpop.f32.mrb[31].mxu1 }
 0x133   :  { %v1288_v0 = vadd.f32 %v1287_v63, %v1286_v60  ;;  %v807_v1 = vadd.f32 %v1285_v59, %v1221_v56  ;;  %v47_v59 = vld [vmem:[#allocation2 + $0x28] sm:$0xff] }
 0x135   :  { %v1731_v2 = vadd.f32 %v1288_v0, %v1224_v62  ;;  %v1758_v62 = vld [vmem:[%s1918_s3] ss:$0 sm:$0xff] }
 0x136   :  { %v1311_v6 = vpop.f32.mrb[32].mxu0 }
 0x137   :  { %v856_v7 = vadd.f32 %v1311_v6, %v1713_v39  ;;  %v1319_v9 = vpop.f32.mrb[32].mxu1  ;;  %v847_v11 = vpop.f32.mrb[33].mxu0  ;;  %v1009_v6 = vld [vmem:[%s1919_s4 + $0x10] sm:$0xff] }
 0x138   :  { %v888_v12 = vadd.f32 %v1319_v9, %v791_v33  ;;  %v848_v13 = vadd.f32 %v847_v11, %v1709_v25  ;;  %v879_v15 = vpop.f32.mrb[33].mxu1  ;;  %v1312_v19 = vpop.f32.mrb[34].mxu0 }
 0x139   :  { %v912_v20 = vadd.f32 %v856_v7, %v44_v5  ;;  %v880_v21 = vadd.f32 %v879_v15, %v783_v17  ;;  %v859_v22 = vadd.f32 %v1312_v19, %v1715_v40  ;;  %v1320_v24 = vpop.f32.mrb[34].mxu1  ;;  %v850_v28 = vpop.f32.mrb[35].mxu0  ;;  %v55_v5 = vld [vmem:[#allocation2 + $0x68] sm:$0xff] }
 0x13a   :  { %v920_v39 = vadd.f32 %v888_v12, %v52_v8  ;;  %v910_v29 = vadd.f32 %v848_v13, %v42_v10  ;;  %v891_v30 = vadd.f32 %v1320_v24, %v794_v34  ;;  %v851_v31 = vadd.f32 %v850_v28, %v1711_v26  ;;  %v882_v33 = vpop.f32.mrb[35].mxu1  ;;  %v48_v26 = vld [vmem:[#allocation2 + $0x30] sm:$0xff] }
 0x13b   :  { %928 = vst.msk [vmem:[#allocation2 + $0x10] sm:$0xff] %vm25_vm0, %v912_v20  ;;  %v918_v25 = vadd.f32 %v880_v21, %v50_v14  ;;  %v913_v35 = vadd.f32 %v859_v22, %v45_v16  ;;  %v883_v36 = vadd.f32 %v882_v33, %v1725_v18 }
 0x13c   :  { %936 = vst.msk [vmem:[#allocation2 + $0x50] sm:$0xff] %vm25_vm0, %v920_v39  ;;  %926 = vst.msk [vmem:[#allocation2] sm:$0xff] %vm25_vm0, %v910_v29  ;;  %v921_v40 = vadd.f32 %v891_v30, %v53_v23  ;;  %v911_v17 = vadd.f32 %v851_v31, %v43_v27  ;;  %v1015_v39 = vld [vmem:[%s1919_s4 + $0x40] sm:$0xff]  ;;  %v1010_v29 = vld [vmem:[%s1919_s4 + $0x18] sm:$0xff] }
 0x13d   :  { %934 = vst.msk [vmem:[#allocation2 + $0x40] sm:$0xff] %vm25_vm0, %v918_v25  ;;  %929 = vst.msk [vmem:[#allocation2 + $0x18] sm:$0xff] %vm25_vm0, %v913_v35  ;;  %v919_v34 = vadd.f32 %v883_v36, %v51_v32  ;;  %v1018_v36 = vld [vmem:[%s1919_s4 + $0x58] sm:$0xff] }
 0x13e   :  { %937 = vst.msk [vmem:[#allocation2 + $0x58] sm:$0xff] %vm25_vm0, %v921_v40  ;;  %927 = vst.msk [vmem:[#allocation2 + $0x8] sm:$0xff] %vm25_vm0, %v911_v17  ;;  %v1315_v37 = vpop.f32.mrb[36].mxu0  ;;  %v1008_v40 = vld [vmem:[%s1919_s4 + $0x8] sm:$0xff] }
 0x13f   :  { %935 = vst.msk [vmem:[#allocation2 + $0x48] sm:$0xff] %vm25_vm0, %v919_v34  ;;  %v872_v18 = vadd.f32 %v1315_v37, %v1721_v3  ;;  %v1323_v41 = vpop.f32.mrb[36].mxu1  ;;  %v863_v43 = vpop.f32.mrb[37].mxu0 }
 0x140   :  { %v904_v45 = vadd.f32 %v1323_v41, %v807_v1  ;;  %v864_v46 = vadd.f32 %v863_v43, %v1717_v53  ;;  %v895_v48 = vpop.f32.mrb[37].mxu1  ;;  %v1316_v52 = vpop.f32.mrb[38].mxu0 }
 0x141   :  { %v916_v55 = vadd.f32 %v872_v18, %v48_v26  ;;  %v896_v56 = vadd.f32 %v895_v48, %v1727_v49  ;;  %v875_v3 = vadd.f32 %v1316_v52, %v1723_v4  ;;  %v1324_v58 = vpop.f32.mrb[38].mxu1  ;;  %v866_v60 = vpop.f32.mrb[39].mxu0 }
 0x142   :  { %v947_v61 = vld [vmem:[#allocation2 + $0x10] sm:$0xff]  ;;  %v924_v53 = vadd.f32 %v904_v45, %v56_v38  ;;  %v914_v63 = vadd.f32 %v864_v46, %v46_v42  ;;  %v907_v0 = vadd.f32 %v1324_v58, %v1731_v2  ;;  %v867_v1 = vadd.f32 %v866_v60, %v1719_v54  ;;  %v898_v49 = vpop.f32.mrb[39].mxu1  ;;  %v1016_v38 = vld [vmem:[%s1919_s4 + $0x48] sm:$0xff] }
 0x143   :  { %v970_v4 = vmul.f32 %v1750_v44, %v947_v61  ;;  %v955_v7 = vld [vmem:[#allocation2 + $0x50] sm:$0xff]  ;;  %v945_v8 = vld [vmem:[#allocation2] sm:$0xff]  ;;  %932 = vst.msk [vmem:[#allocation2 + $0x30] sm:$0xff] %vm25_vm0, %v916_v55  ;;  %v922_v9 = vadd.f32 %v896_v56, %v54_v47  ;;  %v917_v10 = vadd.f32 %v875_v3, %v49_v51  ;;  %v899_v11 = vadd.f32 %v898_v49, %v1729_v50 }
 0x144   :  { %v978_v2 = vmul.f32 %v1750_v44, %v955_v7  ;;  %v1017_v54 = vld [vmem:[%s1919_s4 + $0x50] sm:$0xff]  ;;  %v968_v12 = vmul.f32 %v1750_v44, %v945_v8  ;;  %v953_v13 = vld [vmem:[#allocation2 + $0x40] sm:$0xff]  ;;  %v948_v14 = vld [vmem:[#allocation2 + $0x18] sm:$0xff]  ;;  %940 = vst.msk [vmem:[#allocation2 + $0x70] sm:$0xff] %vm25_vm0, %v924_v53  ;;  %v925_v15 = vadd.f32 %v907_v0, %v57_v57  ;;  %v915_v16 = vadd.f32 %v867_v1, %v47_v59 }
 0x145   :  { %930 = vst.msk [vmem:[#allocation2 + $0x20] sm:$0xff] %vm25_vm0, %v914_v63  ;;  %v993_v19 = vadd.f32 %v1758_v62, %v970_v4  ;;  %v1007_v50 = vld [vmem:[%s1919_s4] sm:$0xff]  ;;  %v976_v20 = vmul.f32 %v1750_v44, %v953_v13  ;;  %v971_v21 = vmul.f32 %v1750_v44, %v948_v14  ;;  %v956_v22 = vld [vmem:[#allocation2 + $0x58] sm:$0xff]  ;;  %v946_v23 = vld [vmem:[#allocation2 + $0x8] sm:$0xff]  ;;  %v923_v24 = vadd.f32 %v899_v11, %v55_v5 }
 0x146   :  { %938 = vst.msk [vmem:[#allocation2 + $0x60] sm:$0xff] %vm25_vm0, %v922_v9  ;;  %933 = vst.msk [vmem:[#allocation2 + $0x38] sm:$0xff] %vm25_vm0, %v917_v10  ;;  %v1001_v27 = vadd.f32 %v1758_v62, %v978_v2  ;;  %v991_v28 = vadd.f32 %v1758_v62, %v968_v12  ;;  %v979_v30 = vmul.f32 %v1750_v44, %v956_v22  ;;  %v954_v32 = vld [vmem:[#allocation2 + $0x48] sm:$0xff]  ;;  %v1013_v58 = vld [vmem:[%s1919_s4 + $0x30] sm:$0xff] }
 0x147   :  { %v969_v31 = vmul.f32 %v1750_v44, %v946_v23  ;;  %941 = vst.msk [vmem:[#allocation2 + $0x78] sm:$0xff] %vm25_vm0, %v925_v15  ;;  %931 = vst.msk [vmem:[#allocation2 + $0x28] sm:$0xff] %vm25_vm0, %v915_v16  ;;  %v1025_v33 = vadd.f32 %v1009_v6, %v993_v19  ;;  %v999_v25 = vadd.f32 %v1758_v62, %v976_v20  ;;  %v1021_v0 = vld [vmem:[%s1919_s4 + $0x70] sm:$0xff]  ;;  %v1011_v7 = vld [vmem:[%s1919_s4 + $0x20] sm:$0xff] }
 0x148   :  { %v994_v35 = vadd.f32 %v1758_v62, %v971_v21  ;;  %v977_v17 = vmul.f32 %v1750_v44, %v954_v32  ;;  %939 = vst.msk [vmem:[#allocation2 + $0x68] sm:$0xff] %vm25_vm0, %v923_v24  ;;  %v1033_v34 = vadd.f32 %v1017_v54, %v1001_v27  ;;  %v1023_v26 = vadd.f32 %v1007_v50, %v991_v28  ;;  %v1019_v12 = vld [vmem:[%s1919_s4 + $0x60] sm:$0xff]  ;;  %v1014_v13 = vld [vmem:[%s1919_s4 + $0x38] sm:$0xff]  ;;  %v1012_v22 = vld [vmem:[%s1919_s4 + $0x28] sm:$0xff] }
 0x149   :  { %v1002_v37 = vadd.f32 %v1758_v62, %v979_v30  ;;  %v992_v18 = vadd.f32 %v1758_v62, %v969_v31  ;;  %v1041_v41 = vmax.f32 %v1025_v33, 0.0  ;;  %v1031_v42 = vadd.f32 %v1015_v39, %v999_v25  ;;  %v1022_v21 = vld [vmem:[%s1919_s4 + $0x78] sm:$0xff] }
 0x14a   :  { %v1026_v43 = vadd.f32 %v1010_v29, %v994_v35  ;;  %v1000_v45 = vadd.f32 %v1758_v62, %v977_v17  ;;  %v1049_v46 = vmax.f32 %v1033_v34, 0.0  ;;  %v1039_v47 = vmax.f32 %v1023_v26, 0.0  ;;  %v951_v52 = vld [vmem:[#allocation2 + $0x30] sm:$0xff]  ;;  %v1020_v29 = vld [vmem:[%s1919_s4 + $0x68] sm:$0xff] }
 0x14b   :  { %v1034_v48 = vadd.f32 %v1018_v36, %v1002_v37  ;;  %v1024_v51 = vadd.f32 %v1008_v40, %v992_v18  ;;  %1057 = vst.msk [vmem:[%s1920_s5 + $0x10] sm:$0xff] %vm25_vm0, %v1041_v41  ;;  %v1047_v55 = vmax.f32 %v1031_v42, 0.0  ;;  %v974_v57 = vmul.f32 %v1750_v44, %v951_v52  ;;  %v959_v59 = vld [vmem:[#allocation2 + $0x70] sm:$0xff] }
 0x14c   :  { %v1042_v56 = vmax.f32 %v1026_v43, 0.0  ;;  %v1032_v3 = vadd.f32 %v1016_v38, %v1000_v45  ;;  %v949_v60 = vld [vmem:[#allocation2 + $0x20] sm:$0xff]  ;;  %1065 = vst.msk [vmem:[%s1920_s5 + $0x50] sm:$0xff] %vm25_vm0, %v1049_v46  ;;  %1055 = vst.msk [vmem:[%s1920_s5] sm:$0xff] %vm25_vm0, %v1039_v47  ;;  %v982_v63 = vmul.f32 %v1750_v44, %v959_v59 }
 0x14d   :  { %v1050_v61 = vmax.f32 %v1034_v48, 0.0  ;;  %v1040_v53 = vmax.f32 %v1024_v51, 0.0  ;;  %v972_v1 = vmul.f32 %v1750_v44, %v949_v60  ;;  %v957_v5 = vld [vmem:[#allocation2 + $0x60] sm:$0xff]  ;;  %v952_v49 = vld [vmem:[#allocation2 + $0x38] sm:$0xff]  ;;  %1063 = vst.msk [vmem:[%s1920_s5 + $0x40] sm:$0xff] %vm25_vm0, %v1047_v55  ;;  %v997_v6 = vadd.f32 %v1758_v62, %v974_v57 }
 0x14e   :  { %1058 = vst.msk [vmem:[%s1920_s5 + $0x18] sm:$0xff] %vm25_vm0, %v1042_v56  ;;  %v1048_v4 = vmax.f32 %v1032_v3, 0.0  ;;  %v980_v8 = vmul.f32 %v1750_v44, %v957_v5  ;;  %v975_v9 = vmul.f32 %v1750_v44, %v952_v49  ;;  %v960_v10 = vld [vmem:[#allocation2 + $0x78] sm:$0xff]  ;;  %v950_v11 = vld [vmem:[#allocation2 + $0x28] sm:$0xff]  ;;  %v1005_v2 = vadd.f32 %v1758_v62, %v982_v63 }
 0x14f   :  { %1066 = vst.msk [vmem:[%s1920_s5 + $0x58] sm:$0xff] %vm25_vm0, %v1050_v61  ;;  %1056 = vst.msk [vmem:[%s1920_s5 + $0x8] sm:$0xff] %vm25_vm0, %v1040_v53  ;;  %v995_v54 = vadd.f32 %v1758_v62, %v972_v1  ;;  %v983_v14 = vmul.f32 %v1750_v44, %v960_v10  ;;  %v973_v15 = vmul.f32 %v1750_v44, %v950_v11  ;;  %v958_v16 = vld [vmem:[#allocation2 + $0x68] sm:$0xff] }
 0x150   :  { %1064 = vst.msk [vmem:[%s1920_s5 + $0x48] sm:$0xff] %vm25_vm0, %v1048_v4  ;;  %v1029_v19 = vadd.f32 %v1013_v58, %v997_v6  ;;  %v1003_v50 = vadd.f32 %v1758_v62, %v980_v8  ;;  %v998_v20 = vadd.f32 %v1758_v62, %v975_v9  ;;  %v981_v23 = vmul.f32 %v1750_v44, %v958_v16 }
 0x151   :  { %v1037_v24 = vadd.f32 %v1021_v0, %v1005_v2  ;;  %v1027_v27 = vadd.f32 %v1011_v7, %v995_v54  ;;  %v1006_v28 = vadd.f32 %v1758_v62, %v983_v14  ;;  %v996_v39 = vadd.f32 %v1758_v62, %v973_v15 }
 0x152   :  { %v1045_v30 = vmax.f32 %v1029_v19, 0.0  ;;  %v1035_v31 = vadd.f32 %v1019_v12, %v1003_v50  ;;  %v1030_v32 = vadd.f32 %v1014_v13, %v998_v20  ;;  %v1004_v33 = vadd.f32 %v1758_v62, %v981_v23 }
 0x153   :  { %v1053_v25 = vmax.f32 %v1037_v24, 0.0  ;;  %v1043_v35 = vmax.f32 %v1027_v27, 0.0  ;;  %v1038_v36 = vadd.f32 %v1022_v21, %v1006_v28  ;;  %v1028_v40 = vadd.f32 %v1012_v22, %v996_v39 }
 0x154   :  { %1061 = vst.msk [vmem:[%s1920_s5 + $0x30] sm:$0xff] %vm25_vm0, %v1045_v30  ;;  %v1051_v44 = vmax.f32 %v1035_v31, 0.0  ;;  %v1046_v17 = vmax.f32 %v1030_v32, 0.0  ;;  %v1036_v34 = vadd.f32 %v1020_v29, %v1004_v33 }
 0x155   :  { %1069 = vst.msk [vmem:[%s1920_s5 + $0x70] sm:$0xff] %vm25_vm0, %v1053_v25  ;;  %1059 = vst.msk [vmem:[%s1920_s5 + $0x20] sm:$0xff] %vm25_vm0, %v1043_v35  ;;  %v1054_v62 = vmax.f32 %v1038_v36, 0.0  ;;  %v1044_v26 = vmax.f32 %v1028_v40, 0.0 }
 0x156   :  { %1067 = vst.msk [vmem:[%s1920_s5 + $0x60] sm:$0xff] %vm25_vm0, %v1051_v44  ;;  %1062 = vst.msk [vmem:[%s1920_s5 + $0x38] sm:$0xff] %vm25_vm0, %v1046_v17  ;;  %v1052_v37 = vmax.f32 %v1036_v34, 0.0 }
 0x157   :  { %1070 = vst.msk [vmem:[%s1920_s5 + $0x78] sm:$0xff] %vm25_vm0, %v1054_v62  ;;  %1060 = vst.msk [vmem:[%s1920_s5 + $0x28] sm:$0xff] %vm25_vm0, %v1044_v26 }
 0x158   :  { %1068 = vst.msk [vmem:[%s1920_s5 + $0x68] sm:$0xff] %vm25_vm0, %v1052_v37 }

// kernel: fish_classifier_forward.29
= control target key start
LH: loop header
LB: loop body
LE: loop exit
PB: predicated region body
PF: predicated region fallthrough
CT: control target
= control target key end

     0   :  { %vm380_vm0 = vcmask 523264   ;;  %s938_s1 = inlined_call_operand.vmem [shape: bf16[576,128], index: 1, kind: input, shape index: {}]   ;;  %s939_s0 = inlined_call_operand.vmem [shape: bf16[32,576], index: 0, kind: input, shape index: {}]   ;;  %s940_s2 = inlined_call_operand.vmem [shape: f32[1,128], index: 2, kind: input, shape index: {}]   ;;  %s941_s3 = inlined_call_operand.vmem [shape: f32[1,128], index: 3, kind: input, shape index: {}]   ;;  %s942_s4 = inlined_call_operand.vmem [shape: f32[32,128], index: 4, kind: output, shape index: {}]  }
   0x1   :  { %v707_v0 = vld [vmem:[%s938_s1 + $0x40] sm:$0xff]   ;;  %v711_v4 = vld [vmem:[%s938_s1 + $0x48] sm:$0xff]   ;;  %v715_v8 = vld [vmem:[%s938_s1 + $0x50] sm:$0xff]  }
   0x2   :  { %v708_v1 = vld [vmem:[%s938_s1 + $0xc0] sm:$0xff]   ;;  %633 = vmatprep.subr.bf16.mxu0 %v707_v0  ;;  %v712_v5 = vld [vmem:[%s938_s1 + $0xc8] sm:$0xff]   ;;  %v716_v9 = vld [vmem:[%s938_s1 + $0xd0] sm:$0xff]  }
   0x3   :  { %v709_v2 = vld [vmem:[%s938_s1] sm:$0xff]   ;;  %661 = vmatprep.subr.bf16.mxu1 %v708_v1  ;;  %v713_v6 = vld [vmem:[%s938_s1 + $0x8] sm:$0xff]   ;;  %v717_v10 = vld [vmem:[%s938_s1 + $0x10] sm:$0xff]  }
   0x4   :  { %v710_v3 = vld [vmem:[%s938_s1 + $0x80] sm:$0xff]   ;;  %634 = vmatpush3.bf16.msra.mxu0 %v709_v2  ;;  %v714_v7 = vld [vmem:[%s938_s1 + $0x88] sm:$0xff]   ;;  %v718_v11 = vld [vmem:[%s938_s1 + $0x90] sm:$0xff]  }
   0x5   :  { %662 = vmatpush3.bf16.msra.mxu1 %v710_v3  ;;  %635 = vmatprep.subr.bf16.mxu0 %v711_v4  ;;  %v719_v12 = vld [vmem:[%s938_s1 + $0x58] sm:$0xff]   ;;  %v723_v16 = vld [vmem:[%s938_s1 + $0x60] sm:$0xff]   ;;  %v727_v20 = vld [vmem:[%s938_s1 + $0x68] sm:$0xff]  }
   0x6   :  { %663 = vmatprep.subr.bf16.mxu1 %v712_v5  ;;  %v720_v13 = vld [vmem:[%s938_s1 + $0xd8] sm:$0xff]   ;;  %v724_v17 = vld [vmem:[%s938_s1 + $0xe0] sm:$0xff]   ;;  %v728_v21 = vld [vmem:[%s938_s1 + $0xe8] sm:$0xff]  }
   0x7   :  { %v721_v14 = vld [vmem:[%s938_s1 + $0x18] sm:$0xff]   ;;  %v725_v18 = vld [vmem:[%s938_s1 + $0x20] sm:$0xff]   ;;  %v729_v22 = vld [vmem:[%s938_s1 + $0x28] sm:$0xff]  }
   0x8   :  { %636 = vmatpush3.bf16.msra.mxu0 %v713_v6  ;;  %v722_v15 = vld [vmem:[%s938_s1 + $0x98] sm:$0xff]   ;;  %v726_v19 = vld [vmem:[%s938_s1 + $0xa0] sm:$0xff]   ;;  %v730_v23 = vld [vmem:[%s938_s1 + $0xa8] sm:$0xff]  }
   0x9   :  { %664 = vmatpush3.bf16.msra.mxu1 %v714_v7  ;;  %637 = vmatprep.subr.bf16.mxu0 %v715_v8  ;;  %v731_v24 = vld [vmem:[%s938_s1 + $0x70] sm:$0xff]   ;;  %v735_v28 = vld [vmem:[%s938_s1 + $0x78] sm:$0xff]   ;;  %v744_v35 = vld [vmem:[%s939_s0 + $0xc] ss:$20 sps:$4 sm:$0xff]  }
   0xa   :  { %665 = vmatprep.subr.bf16.mxu1 %v716_v9  ;;  %v732_v25 = vld [vmem:[%s938_s1 + $0xf0] sm:$0xff]   ;;  %v736_v29 = vld [vmem:[%s938_s1 + $0xf8] sm:$0xff]   ;;  %v745_v36 = vld [vmem:[%s938_s1 + $0x100] sm:$0xff]   ;;  %468 = vmatprep.mubr.bf16.mxu1 %v744_v35 }
   0xb   :  { %v733_v26 = vld [vmem:[%s938_s1 + $0x30] sm:$0xff]   ;;  %v737_v30 = vld [vmem:[%s938_s1 + $0x38] sm:$0xff]   ;;  %v746_v37 = vld [vmem:[%s938_s1 + $0x108] sm:$0xff]  }
   0xc   :  { %638 = vmatpush3.bf16.msra.mxu0 %v717_v10  ;;  %v734_v27 = vld [vmem:[%s938_s1 + $0xb0] sm:$0xff]   ;;  %v738_v31 = vld [vmem:[%s938_s1 + $0xb8] sm:$0xff]   ;;  %v747_v38 = vld [vmem:[%s939_s0 + $0x2c] ss:$20 sps:$4 sm:$0xff]  }
   0xd   :  { %666 = vmatpush3.bf16.msra.mxu1 %v718_v11  ;;  %639 = vmatprep.subr.bf16.mxu0 %v719_v12  ;;  %v739_v32 = vld [vmem:[%s939_s0] ss:$20 sps:$4 sm:$0xff]   ;;  %v741_v33 = vld [vmem:[%s939_s0 + $0x4] ss:$20 sps:$4 sm:$0xff]   ;;  %v742_v34 = vld [vmem:[%s939_s0 + $0x8] ss:$20 sps:$4 sm:$0xff]  }
   0xe   :  { %667 = vmatprep.subr.bf16.mxu1 %v720_v13  ;;  %419 = vmatprep.mubr.bf16.mxu0 %v741_v33  ;;  %v749_v39 = vld [vmem:[%s939_s0 + $0x34] ss:$20 sps:$4 sm:$0xff]   ;;  %v752_v42 = vld [vmem:[%s939_s0 + $0x30] ss:$20 sps:$4 sm:$0xff]   ;;  %v754_v44 = vld [vmem:[%s938_s1 + $0x118] sm:$0xff]  }
   0xf   :  { %v751_v40 = vld [vmem:[%s939_s0 + $0x28] ss:$20 sps:$4 sm:$0xff]   ;;  %v753_v41 = vld [vmem:[%s938_s1 + $0x110] sm:$0xff]   ;;  %v756_v45 = vld [vmem:[%s939_s0 + $0x38] ss:$20 sps:$4 sm:$0xff]  }
  0x10   :  { %640 = vmatpush3.bf16.msra.mxu0 %v721_v14  ;;  %v755_v43 = vld [vmem:[%s939_s0 + $0x10] ss:$20 sps:$4 sm:$0xff]   ;;  %v631_v11 = vld [vmem:[%s940_s2] ss:$0 sm:$0xff] }
  0x11   :  { %668 = vmatpush3.bf16.msra.mxu1 %v722_v15  ;;  %641 = vmatprep.subr.bf16.mxu0 %v723_v16  ;;  %v632_v14 = vld [vmem:[%s941_s3] ss:$0 sm:$0xff] }
  0x12   :  { %669 = vmatprep.subr.bf16.mxu1 %v724_v17 }
  0x14   :  { %642 = vmatpush3.bf16.msra.mxu0 %v725_v18 }
  0x15   :  { %670 = vmatpush3.bf16.msra.mxu1 %v726_v19  ;;  %643 = vmatprep.subr.bf16.mxu0 %v727_v20 }
  0x16   :  { %671 = vmatprep.subr.bf16.mxu1 %v728_v21 }
  0x18   :  { %644 = vmatpush3.bf16.msra.mxu0 %v729_v22 }
  0x19   :  { %672 = vmatpush3.bf16.msra.mxu1 %v730_v23  ;;  %645 = vmatprep.subr.bf16.mxu0 %v731_v24 }
  0x1a   :  { %673 = vmatprep.subr.bf16.mxu1 %v732_v25 }
  0x1c   :  { %646 = vmatpush3.bf16.msra.mxu0 %v733_v26 }
  0x1d   :  { %674 = vmatpush3.bf16.msra.mxu1 %v734_v27  ;;  %647 = vmatprep.subr.bf16.mxu0 %v735_v28 }
  0x1e   :  { %675 = vmatprep.subr.bf16.mxu1 %v736_v29 }
  0x20   :  { %648 = vmatpush3.bf16.msra.mxu0 %v737_v30 }
  0x21   :  { %676 = vmatpush3.bf16.msra.mxu1 %v738_v31  ;;  %695 = vmatprep.subr.bf16.mxu0 %v745_v36 }
  0x23   :  { %420 = vmatmul.mubr.bf16.vlgmr.msra.gmra.mrb[0].mxu0 %v739_v32 }
  0x24   :  { %469 = vmatmul.mubr.bf16.vlgmr.msra.gmra.mrb[0].mxu1 %v742_v34  ;;  %696 = vmatpush3.bf16.msra.mxu0 %v745_v36 }
  0x25   :  { %697 = vmatprep.subr.bf16.mxu0 %v746_v37  ;;  %427 = vmatprep.mubr.bf16.mxu0 %v747_v38 }
  0x26   :  { %476 = vmatprep.mubr.bf16.mxu1 %v749_v39 }
  0x28   :  { %698 = vmatpush3.bf16.msra.mxu0 %v746_v37 }
  0x29   :  { %699 = vmatprep.subr.bf16.mxu0 %v753_v41 }
  0x2b   :  { %428 = vmatmul.mubr.bf16.gmra.mrb[4].mxu0 %v751_v40 }
  0x2c   :  { %477 = vmatmul.mubr.bf16.gmra.mrb[4].mxu1 %v752_v42  ;;  %703 = vmatprep.mubr.msk.bf16.mxu0 %vm380_vm0, %v755_v43 }
  0x2d   :  { %700 = vmatpush3.bf16.msra.mxu0 %v753_v41 }
  0x2e   :  { %701 = vmatprep.subr.bf16.mxu0 %v754_v44 }
  0x31   :  { %702 = vmatpush3.bf16.msra.mxu0 %v754_v44 }
  0x34   :  { %704 = vmatmul.mubr.msk.bf16.vlgmr.msra.gmra.mrb[8].mxu0 %vm380_vm0, %v756_v45 }
  0xf6   :  { %v649_v46 = vpop.f32.mrb[0].mxu0 }
  0xf7   :  { %v677_v47 = vpop.f32.mrb[0].mxu1  ;;  %v650_v48 = vpop.f32.mrb[1].mxu0 }
  0xf8   :  { %v651_v49 = vadd.f32 %v650_v48, %v649_v46  ;;  %v678_v50 = vpop.f32.mrb[1].mxu1  ;;  %v652_v51 = vpop.f32.mrb[2].mxu0 }
  0xf9   :  { %v679_v52 = vadd.f32 %v678_v50, %v677_v47  ;;  %v680_v53 = vpop.f32.mrb[2].mxu1  ;;  %v653_v54 = vpop.f32.mrb[3].mxu0 }
  0xfa   :  { %v654_v55 = vadd.f32 %v653_v54, %v652_v51  ;;  %v681_v56 = vpop.f32.mrb[3].mxu1 }
  0xfb   :  { %v682_v57 = vadd.f32 %v681_v56, %v680_v53  ;;  %v471_v58 = vadd.f32 %v679_v52, %v651_v49 }
  0xfd   :  { %v474_v59 = vadd.f32 %v682_v57, %v654_v55 }
  0xfe   :  { %v655_v60 = vpop.f32.mrb[4].mxu0 }
  0xff   :  { %v683_v61 = vpop.f32.mrb[4].mxu1  ;;  %v656_v62 = vpop.f32.mrb[5].mxu0 }
 0x100   :  { %v657_v63 = vadd.f32 %v656_v62, %v655_v60  ;;  %v684_v0 = vpop.f32.mrb[5].mxu1  ;;  %v658_v1 = vpop.f32.mrb[6].mxu0 }
 0x101   :  { %v685_v2 = vadd.f32 %v684_v0, %v683_v61  ;;  %v686_v3 = vpop.f32.mrb[6].mxu1  ;;  %v659_v4 = vpop.f32.mrb[7].mxu0 }
 0x102   :  { %v660_v5 = vadd.f32 %v659_v4, %v658_v1  ;;  %v687_v6 = vpop.f32.mrb[7].mxu1 }
 0x103   :  { %v688_v7 = vadd.f32 %v687_v6, %v686_v3  ;;  %v479_v8 = vadd.f32 %v685_v2, %v657_v63 }
 0x105   :  { %v482_v9 = vadd.f32 %v688_v7, %v660_v5 }
 0x107   :  { %v705_v10 = vpop.f32.mrb[8].mxu0 }
 0x108   :  { %v528_v12 = vadd.f32 %v705_v10, %v479_v8  ;;  %v519_v13 = vpop.f32.mrb[9].mxu0 }
 0x109   :  { %v520_v15 = vadd.f32 %v519_v13, %v471_v58  ;;  %v706_v16 = vpop.f32.mrb[10].mxu0 }
 0x10a   :  { %v558_v17 = vmul.f32 %v631_v11, %v528_v12  ;;  %v531_v18 = vadd.f32 %v706_v16, %v482_v9  ;;  %v522_v19 = vpop.f32.mrb[11].mxu0 }
 0x10b   :  { %v556_v20 = vmul.f32 %v631_v11, %v520_v15  ;;  %v523_v21 = vadd.f32 %v522_v19, %v474_v59 }
 0x10c   :  { %v569_v22 = vadd.f32 %v632_v14, %v558_v17  ;;  %v559_v23 = vmul.f32 %v631_v11, %v531_v18 }
 0x10d   :  { %v567_v24 = vadd.f32 %v632_v14, %v556_v20  ;;  %v557_v25 = vmul.f32 %v631_v11, %v523_v21 }
 0x10e   :  { %v573_v26 = vmax.f32 %v569_v22, 0.0  ;;  %v570_v27 = vadd.f32 %v632_v14, %v559_v23 }
 0x10f   :  { %v571_v28 = vmax.f32 %v567_v24, 0.0  ;;  %v568_v29 = vadd.f32 %v632_v14, %v557_v25 }
 0x110   :  { %577 = vst [vmem:[%s942_s4 + $0x10] sm:$0xff] %v573_v26  ;;  %v574_v30 = vmax.f32 %v570_v27, 0.0 }
 0x111   :  { %575 = vst [vmem:[%s942_s4] sm:$0xff] %v571_v28  ;;  %v572_v31 = vmax.f32 %v568_v29, 0.0 }
 0x112   :  { %578 = vst [vmem:[%s942_s4 + $0x18] sm:$0xff] %v574_v30 }
 0x113   :  { %576 = vst [vmem:[%s942_s4 + $0x8] sm:$0xff] %v572_v31 }

// kernel: fish_classifier_forward.30
= control target key start
LH: loop header
LB: loop body
LE: loop exit
PB: predicated region body
PF: predicated region fallthrough
CT: control target
= control target key end

     0   :  { %vm76_vm0 = vcmask 523264   ;;  %s272_s1 = inlined_call_operand.vmem [shape: bf16[64,128], index: 1, kind: input, shape index: {}]   ;;  %s273_s0 = inlined_call_operand.vmem [shape: bf16[32,64], index: 0, kind: input, shape index: {}]   ;;  %s274_s2 = inlined_call_operand.vmem [shape: f32[1,128], index: 2, kind: input, shape index: {}]   ;;  %s275_s3 = inlined_call_operand.vmem [shape: f32[1,128], index: 3, kind: input, shape index: {}]   ;;  %s276_s4 = inlined_call_operand.vmem [shape: f32[32,128], index: 4, kind: output, shape index: {}]  }
   0x1   :  { %v205_v0 = vld [vmem:[%s272_s1] sm:$0xff]   ;;  %v206_v1 = vld [vmem:[%s272_s1 + $0x8] sm:$0xff]   ;;  %v207_v2 = vld [vmem:[%s272_s1 + $0x10] sm:$0xff]  }
   0x2   :  { %193 = vmatprep.subr.bf16.mxu0 %v205_v0  ;;  %v209_v3 = vld [vmem:[%s273_s0] sm:$0xff]   ;;  %v208_v4 = vld [vmem:[%s272_s1 + $0x18] sm:$0xff]   ;;  %v210_v5 = vld [vmem:[%s273_s0 + $0x8] sm:$0xff]  }
   0x3   :  { %194 = vmatpush3.bf16.msra.mxu0 %v205_v0  ;;  %201 = vmatprep.mubr.msk.bf16.mxu0 %vm76_vm0, %v209_v3  ;;  %v185_v6 = vld [vmem:[%s274_s2] ss:$0 sm:$0xff] }
   0x4   :  { %195 = vmatprep.subr.bf16.mxu0 %v206_v1  ;;  %v186_v8 = vld [vmem:[%s275_s3] ss:$0 sm:$0xff] }
   0x7   :  { %196 = vmatpush3.bf16.msra.mxu0 %v206_v1 }
   0x8   :  { %197 = vmatprep.subr.bf16.mxu0 %v207_v2 }
   0xb   :  { %198 = vmatpush3.bf16.msra.mxu0 %v207_v2 }
   0xc   :  { %199 = vmatprep.subr.bf16.mxu0 %v208_v4 }
   0xf   :  { %200 = vmatpush3.bf16.msra.mxu0 %v208_v4 }
  0x12   :  { %202 = vmatmul.mubr.msk.bf16.vlgmr.msra.gmra.mrb[0].mxu0 %vm76_vm0, %v210_v5 }
  0xe5   :  { %v203_v7 = vpop.f32.mrb[0].mxu0 }
  0xe6   :  { %v156_v9 = vmul.f32 %v203_v7, %v185_v6  ;;  %v117_v10 = vpop.f32.mrb[1].mxu0 }
  0xe7   :  { %v154_v11 = vmul.f32 %v185_v6, %v117_v10  ;;  %v204_v12 = vpop.f32.mrb[2].mxu0 }
  0xe8   :  { %v167_v13 = vadd.f32 %v186_v8, %v156_v9  ;;  %v157_v14 = vmul.f32 %v204_v12, %v185_v6  ;;  %v120_v15 = vpop.f32.mrb[3].mxu0 }
  0xe9   :  { %v165_v16 = vadd.f32 %v186_v8, %v154_v11  ;;  %v155_v17 = vmul.f32 %v185_v6, %v120_v15 }
  0xea   :  { %171 = vst [vmem:[%s276_s4 + $0x10] sm:$0xff] %v167_v13  ;;  %v168_v18 = vadd.f32 %v186_v8, %v157_v14 }
  0xeb   :  { %169 = vst [vmem:[%s276_s4] sm:$0xff] %v165_v16  ;;  %v166_v19 = vadd.f32 %v186_v8, %v155_v17 }
  0xec   :  { %172 = vst [vmem:[%s276_s4 + $0x18] sm:$0xff] %v168_v18 }
  0xed   :  { %170 = vst [vmem:[%s276_s4 + $0x8] sm:$0xff] %v166_v19 }

// kernel: fish_classifier_forward.31
= control target key start
LH: loop header
LB: loop body
LE: loop exit
PB: predicated region body
PF: predicated region fallthrough
CT: control target
= control target key end

     0   :  { %s924_s18 = smov 0   ;;  %s926_s19 = smov 0   ;;  %s1038_s0 = inlined_call_operand.vmem [shape: bf16[32,1152], index: 0, kind: input, shape index: {}]   ;;  %s1039_s1 = inlined_call_operand.vmem [shape: bf16[1152,128], index: 1, kind: input, shape index: {}]   ;;  %s1040_s2 = inlined_call_operand.vmem [shape: f32[1,128], index: 2, kind: input, shape index: {}]   ;;  %s1041_s3 = inlined_call_operand.vmem [shape: f32[1,128], index: 3, kind: input, shape index: {}]   ;;  %s1042_s4 = inlined_call_operand.vmem [shape: f32[32,128], index: 4, kind: input, shape index: {}]   ;;  %s1043_s5 = inlined_call_operand.vmem [shape: f32[32,128], index: 5, kind: output, shape index: {}]  }
   0x1   :  { %s928_s20 = smov 0   ;;  %s930_s21 = smov 0  }
   0x2   :  { %s932_s22 = smov 0  }
   0x3 LB: > { %s27_s23 = sadd.s32 1, %s887_s21  ;;  %p50_p1 = scmp.ne.s32.totalorder %s879_s19, %s875_s18  ;;  %s891_s22 = sphi %s932_s22, %s15_s22   ;;  %s887_s21 = sphi %s930_s21, %s1047_s21   ;;  %s883_s20 = sphi %s928_s20, %s1046_s20   ;;  %s879_s19 = sphi %s926_s19, %s1045_s19   ;;  %s875_s18 = sphi %s924_s18, %s1044_s18  }
   0x4   : > { %p28_p0 = scmp.ge.s32.totalorder %s27_s23, 9  ;;  %p51_p2 = scmp.eq.s32.totalorder %s891_s22, 0 }
   0x5   : > { %s43_s25 = sadd.s32 1, %s879_s19  ;;  %p747_p5 = scmp.ge.s32.totalorder %s891_s22, 9 }
   0x6   : > { %s1049_s23 = smov (%p28_p0, %s27_s23), 0  ;;  %p52_p3 = por %p51_p2, %p50_p1 }
   0x7   : > { %s39_s24 = ssub.s32 %s887_s21, %s1049_s23  ;;  %236 = sbr.rel (%p747_p5) target bundleno = 21 (0x15), region = 28 }
   0x8   : > { %p41_p4 = scmp.eq.s32.totalorder %s39_s24, 0 }
   0xa   : > { %s959_s26 = scalar_select %p41_p4, %s879_s19, %s43_s25  }
   0xe   : > { %239 = sbr.rel (!%p52_p3) target bundleno = 21 (0x15), region = 32  ;;  %s241_s27 = sand.u32 (%p52_p3), 1, %s879_s19  }
   0xf   : > { %s749_s28 = sshll.u32 (%p52_p3), %s887_s21, 2  ;;  %s748_s29 = sshll.u32 (%p52_p3), %s241_s27, 4 }
  0x10   : > { %s248_s7 = scalar_lea.vmem (%p52_p3), %s1038_s0, %s749_s28  ;;  %s243_s8 = scalar_lea.vmem (%p52_p3), [#allocation3], %s748_s29 }
  0x11   : > { %v264_v0 = vld [vmem:[%s248_s7] sm:$0xf] (%p52_p3)  ;;  %v266_v1 = vld [vmem:[%s248_s7 + $0x24] sm:$0xf] (%p52_p3)  ;;  %v268_v2 = vld [vmem:[%s248_s7 + $0x48] sm:$0xf] (%p52_p3) }
  0x12   : > { %265 = vst [vmem:[%s243_s8] sm:$0xf] (%p52_p3), %v264_v0  ;;  %267 = vst [vmem:[%s243_s8 + $0x4] sm:$0xf] (%p52_p3), %v266_v1  ;;  %v270_v3 = vld [vmem:[%s248_s7 + $0x6c] sm:$0xf] (%p52_p3) }
  0x13   : > { %269 = vst [vmem:[%s243_s8 + $0x8] sm:$0xf] (%p52_p3), %v268_v2  ;;  %271 = vst [vmem:[%s243_s8 + $0xc] sm:$0xf] (%p52_p3), %v270_v3 }
  0x15 PF: > { %p750_p6 = scmp.ge.s32.totalorder %s891_s22, 1  ;;  %p313_p7 = scmp.lt.s32.totalorder %s891_s22, 10 }
  0x17   : > { %p314_p8 = pnand %p750_p6, %p313_p7 }
  0x18   : > { %s320_s9 = sand.u32 (!%p314_p8), 1, %s875_s18   ;;  %s752_s10 = sshll.u32 (!%p314_p8), %s883_s20, 4 }
  0x19   : > { %317 = sbr.rel (%p314_p8) target bundleno = 306 (0x132), region = 77  ;;  %s971_s11 = sshll.u32 (!%p314_p8), %s320_s9, 4 }
  0x1a   : > { %p374_p9 = scmp.lt.s32.totalorder (!%p314_p8), %s752_s10, 143  ;;  %s322_s16 = scalar_lea.vmem (!%p314_p8), [#allocation3], %s971_s11 }
  0x1b   : > { %p754_p10 = scmp.ne.s32.totalorder (!%p314_p8), %s883_s20, 0 }
  0x20   : > { %s1051_s10 = smov (!%p374_p9, %s752_s10), 143  ;;  %410 = sbr.rel (%p754_p10) target bundleno = 39 (0x27), region = 85 }
  0x21   : > { %s753_s12 = sshll.u32 %s1051_s10, 2  ;;  %v893_v4 = vmov (!%p754_p10), 0.0  }
  0x22   : > { %s976_s15 = scalar_lea.vmem %s1039_s1, %s753_s12  ;;  %411 = vst [vmem:[#allocation2] sm:$0xff] (!%p754_p10), %v893_v4  ;;  %412 = vst [vmem:[#allocation2 + $0x8] sm:$0xff] (!%p754_p10), %v893_v4 }
  0x23   : > { %413 = vst [vmem:[#allocation2 + $0x10] sm:$0xff] (!%p754_p10), %v893_v4  ;;  %414 = vst [vmem:[#allocation2 + $0x18] sm:$0xff] (!%p754_p10), %v893_v4 }
  0x27 PF: > { %v843_v5 = vld [vmem:[%s976_s15] sm:$0xff]   ;;  %v844_v6 = vld [vmem:[%s976_s15 + $0x8] sm:$0xff]   ;;  %v845_v7 = vld [vmem:[%s976_s15 + $0x10] sm:$0xff]   ;;  %p765_p11 = scmp.ne.s32.totalorder %s883_s20, 8 }
  0x28   : > { %782 = vmatprep.subr.bf16.mxu0 %v843_v5  ;;  %v846_v8 = vld [vmem:[%s976_s15 + $0x18] sm:$0xff]   ;;  %v851_v9 = vld [vmem:[%s322_s16] sm:$0xff]   ;;  %v848_v11 = vld [vmem:[%s976_s15 + $0x28] sm:$0xff]  }
  0x29   : > { %783 = vmatpush3.bf16.msra.mxu0 %v843_v5  ;;  %798 = vmatprep.mubr.bf16.mxu0 %v851_v9  ;;  %v847_v10 = vld [vmem:[%s976_s15 + $0x20] sm:$0xff]   ;;  %v849_v12 = vld [vmem:[%s976_s15 + $0x30] sm:$0xff]   ;;  %v850_v13 = vld [vmem:[%s976_s15 + $0x38] sm:$0xff]  }
  0x2a   : > { %784 = vmatprep.subr.bf16.mxu0 %v844_v6  ;;  %v852_v14 = vld [vmem:[%s322_s16 + $0x8] sm:$0xff]   ;;  %v417_v15 = vld [vmem:[#allocation2 + $0x10] sm:$0xff]  ;;  %v415_v16 = vld [vmem:[#allocation2] sm:$0xff] }
  0x2b   : > { %v418_v18 = vld [vmem:[#allocation2 + $0x18] sm:$0xff]  ;;  %v416_v21 = vld [vmem:[#allocation2 + $0x8] sm:$0xff]  ;;  %v766_v28 = vld [vmem:[%s1040_s2] ss:$0 sm:$0xff] (!%p765_p11) }
  0x2c   : > { %v767_v29 = vld [vmem:[%s1041_s3] ss:$0 sm:$0xff] (!%p765_p11)  ;;  %v587_v37 = vld [vmem:[%s1042_s4 + $0x8] sm:$0xff] (!%p765_p11)  ;;  %v588_v41 = vld [vmem:[%s1042_s4 + $0x10] sm:$0xff] (!%p765_p11) }
  0x2d   : > { %785 = vmatpush3.bf16.msra.mxu0 %v844_v6  ;;  %v586_v32 = vld [vmem:[%s1042_s4] sm:$0xff] (!%p765_p11)  ;;  %v589_v42 = vld [vmem:[%s1042_s4 + $0x18] sm:$0xff] (!%p765_p11) }
  0x2e   : > { %786 = vmatprep.subr.bf16.mxu0 %v845_v7 }
  0x31   : > { %787 = vmatpush3.bf16.msra.mxu0 %v845_v7 }
  0x32   : > { %788 = vmatprep.subr.bf16.mxu0 %v846_v8 }
  0x35   : > { %789 = vmatpush3.bf16.msra.mxu0 %v846_v8 }
  0x36   : > { %790 = vmatprep.subr.bf16.mxu0 %v847_v10 }
  0x39   : > { %791 = vmatpush3.bf16.msra.mxu0 %v847_v10 }
  0x3a   : > { %792 = vmatprep.subr.bf16.mxu0 %v848_v11 }
  0x3d   : > { %793 = vmatpush3.bf16.msra.mxu0 %v848_v11 }
  0x3e   : > { %794 = vmatprep.subr.bf16.mxu0 %v849_v12 }
  0x41   : > { %795 = vmatpush3.bf16.msra.mxu0 %v849_v12 }
  0x42   : > { %796 = vmatprep.subr.bf16.mxu0 %v850_v13 }
  0x45   : > { %797 = vmatpush3.bf16.msra.mxu0 %v850_v13 }
  0x48   : > { %799 = vmatmul.mubr.bf16.vlgmr.msra.gmra.mrb[0].mxu0 %v852_v14 }
 0x11b   : > { %v800_v17 = vpop.f32.mrb[0].mxu0  ;;  %559 = sbr.rel (%p765_p11) target bundleno = 306 (0x132), region = 89 }
 0x11c   : > { %v550_v19 = vadd.f32 %v800_v17, %v417_v15  ;;  %v533_v20 = vpop.f32.mrb[1].mxu0 }
 0x11d   : > { %v548_v22 = vadd.f32 %v533_v20, %v415_v16  ;;  %v801_v23 = vpop.f32.mrb[2].mxu0 }
 0x11e   : > { %554 = vst [vmem:[#allocation2 + $0x10] sm:$0xff] %v550_v19  ;;  %v551_v24 = vadd.f32 %v801_v23, %v418_v18  ;;  %v536_v25 = vpop.f32.mrb[3].mxu0 }
 0x11f   : > { %552 = vst [vmem:[#allocation2] sm:$0xff] %v548_v22  ;;  %v549_v26 = vadd.f32 %v536_v25, %v416_v21 }
 0x120   : > { %555 = vst [vmem:[#allocation2 + $0x18] sm:$0xff] %v551_v24 }
 0x121   : > { %553 = vst [vmem:[#allocation2 + $0x8] sm:$0xff] %v549_v26 }
 0x125   : > { %v562_v34 = vld [vmem:[#allocation2 + $0x10] sm:$0xff] }
 0x126   : > { %v560_v27 = vld [vmem:[#allocation2] sm:$0xff]  ;;  %v573_v38 = vmul.f32 %v766_v28, %v562_v34 }
 0x127   : > { %v571_v30 = vmul.f32 %v766_v28, %v560_v27  ;;  %v563_v35 = vld [vmem:[#allocation2 + $0x18] sm:$0xff] }
 0x128   : > { %v561_v31 = vld [vmem:[#allocation2 + $0x8] sm:$0xff]  ;;  %v574_v39 = vmul.f32 %v766_v28, %v563_v35  ;;  %v584_v44 = vadd.f32 %v767_v29, %v573_v38 }
 0x129   : > { %v572_v33 = vmul.f32 %v766_v28, %v561_v31  ;;  %v582_v36 = vadd.f32 %v767_v29, %v571_v30 }
 0x12a   : > { %v585_v45 = vadd.f32 %v767_v29, %v574_v39  ;;  %v592_v48 = vadd.f32 %v588_v41, %v584_v44 }
 0x12b   : > { %v583_v40 = vadd.f32 %v767_v29, %v572_v33  ;;  %v590_v43 = vadd.f32 %v586_v32, %v582_v36 }
 0x12c   : > { %v593_v49 = vadd.f32 %v589_v42, %v585_v45  ;;  %v596_v51 = vmax.f32 %v592_v48, 0.0 }
 0x12d   : > { %v591_v46 = vadd.f32 %v587_v37, %v583_v40  ;;  %v594_v47 = vmax.f32 %v590_v43, 0.0 }
 0x12e   : > { %v597_v52 = vmax.f32 %v593_v49, 0.0  ;;  %600 = vst [vmem:[%s1043_s5 + $0x10] sm:$0xff] %v596_v51 }
 0x12f   : > { %v595_v50 = vmax.f32 %v591_v46, 0.0  ;;  %598 = vst [vmem:[%s1043_s5] sm:$0xff] %v594_v47 }
 0x130   : > { %601 = vst [vmem:[%s1043_s5 + $0x18] sm:$0xff] %v597_v52 }
 0x131   : > { %599 = vst [vmem:[%s1043_s5 + $0x8] sm:$0xff] %v595_v50 }
 0x132 PF: > { %s15_s22 = sadd.s32 1, %s891_s22   ;;  %s1044_s18 = smov %s879_s19 }
 0x133   : > { %p12_p12 = scmp.ge.s32.totalorder %s15_s22, 11   ;;  %s1045_s19 = smov %s959_s26 }
 0x134   : > { %s1046_s20 = smov %s887_s21  ;;  %s1047_s21 = smov %s1049_s23 }
 0x135   :  { %14 = sbr.rel (!%p12_p12) target bundleno = 3 (0x3), region = 136 }

// kernel: fish_classifier_forward.32
= control target key start
LH: loop header
LB: loop body
LE: loop exit
PB: predicated region body
PF: predicated region fallthrough
CT: control target
= control target key end

     0   :  { %s832_s15 = smov 0   ;;  %s834_s16 = smov 0   ;;  %s934_s0 = inlined_call_operand.vmem [shape: bf16[32,1152], index: 0, kind: input, shape index: {}]   ;;  %s935_s1 = inlined_call_operand.vmem [shape: bf16[1152,128], index: 1, kind: input, shape index: {}]   ;;  %s936_s2 = inlined_call_operand.vmem [shape: f32[1,128], index: 2, kind: input, shape index: {}]   ;;  %s937_s3 = inlined_call_operand.vmem [shape: f32[1,128], index: 3, kind: input, shape index: {}]   ;;  %s938_s4 = inlined_call_operand.vmem [shape: f32[32,128], index: 4, kind: output, shape index: {}]  }
   0x1   :  { %s836_s17 = smov 0   ;;  %s838_s18 = smov 0  }
   0x2   :  { %s840_s19 = smov 0  }
   0x3 LB: > { %s26_s20 = sadd.s32 1, %s800_s18  ;;  %p49_p1 = scmp.ne.s32.totalorder %s792_s16, %s788_s15  ;;  %s804_s19 = sphi %s840_s19, %s14_s19   ;;  %s800_s18 = sphi %s838_s18, %s942_s18   ;;  %s796_s17 = sphi %s836_s17, %s941_s17   ;;  %s792_s16 = sphi %s834_s16, %s940_s16   ;;  %s788_s15 = sphi %s832_s15, %s939_s15  }
   0x4   : > { %p27_p0 = scmp.ge.s32.totalorder %s26_s20, 9  ;;  %p50_p2 = scmp.eq.s32.totalorder %s804_s19, 0 }
   0x5   : > { %s42_s22 = sadd.s32 1, %s792_s16  ;;  %p660_p5 = scmp.ge.s32.totalorder %s804_s19, 9 }
   0x6   : > { %s944_s20 = smov (%p27_p0, %s26_s20), 0  ;;  %p51_p3 = por %p50_p2, %p49_p1 }
   0x7   : > { %s38_s21 = ssub.s32 %s800_s18, %s944_s20  ;;  %195 = sbr.rel (%p660_p5) target bundleno = 21 (0x15), region = 24 }
   0x8   : > { %p40_p4 = scmp.eq.s32.totalorder %s38_s21, 0 }
   0xa   : > { %s867_s23 = scalar_select %p40_p4, %s792_s16, %s42_s22  }
   0xe   : > { %198 = sbr.rel (!%p51_p3) target bundleno = 21 (0x15), region = 28  ;;  %s200_s24 = sand.u32 (%p51_p3), 1, %s792_s16  }
   0xf   : > { %s662_s25 = sshll.u32 (%p51_p3), %s800_s18, 2  ;;  %s661_s26 = sshll.u32 (%p51_p3), %s200_s24, 4 }
  0x10   : > { %s207_s29 = scalar_lea.vmem (%p51_p3), %s934_s0, %s662_s25  ;;  %s202_s30 = scalar_lea.vmem (%p51_p3), [#allocation3], %s661_s26 }
  0x11   : > { %v223_v0 = vld [vmem:[%s207_s29] sm:$0xf] (%p51_p3)  ;;  %v225_v1 = vld [vmem:[%s207_s29 + $0x24] sm:$0xf] (%p51_p3)  ;;  %v227_v2 = vld [vmem:[%s207_s29 + $0x48] sm:$0xf] (%p51_p3) }
  0x12   : > { %224 = vst [vmem:[%s202_s30] sm:$0xf] (%p51_p3), %v223_v0  ;;  %226 = vst [vmem:[%s202_s30 + $0x4] sm:$0xf] (%p51_p3), %v225_v1  ;;  %v229_v3 = vld [vmem:[%s207_s29 + $0x6c] sm:$0xf] (%p51_p3) }
  0x13   : > { %228 = vst [vmem:[%s202_s30 + $0x8] sm:$0xf] (%p51_p3), %v227_v2  ;;  %230 = vst [vmem:[%s202_s30 + $0xc] sm:$0xf] (%p51_p3), %v229_v3 }
  0x15 PF: > { %p663_p6 = scmp.ge.s32.totalorder %s804_s19, 1  ;;  %p272_p7 = scmp.lt.s32.totalorder %s804_s19, 10 }
  0x17   : > { %p273_p8 = pnand %p663_p6, %p272_p7 }
  0x18   : > { %s279_s5 = sand.u32 (!%p273_p8), 1, %s788_s15   ;;  %s665_s6 = sshll.u32 (!%p273_p8), %s796_s17, 4 }
  0x19   : > { %276 = sbr.rel (%p273_p8) target bundleno = 304 (0x130), region = 73  ;;  %s879_s7 = sshll.u32 (!%p273_p8), %s279_s5, 4 }
  0x1a   : > { %p323_p9 = scmp.lt.s32.totalorder (!%p273_p8), %s665_s6, 143  ;;  %s281_s12 = scalar_lea.vmem (!%p273_p8), [#allocation3], %s879_s7 }
  0x1b   : > { %p667_p10 = scmp.ne.s32.totalorder (!%p273_p8), %s796_s17, 0 }
  0x20   : > { %s946_s6 = smov (!%p323_p9, %s665_s6), 143  ;;  %350 = sbr.rel (%p667_p10) target bundleno = 39 (0x27), region = 81 }
  0x21   : > { %s666_s8 = sshll.u32 %s946_s6, 2  ;;  %v806_v4 = vmov (!%p667_p10), 0.0  }
  0x22   : > { %s884_s11 = scalar_lea.vmem %s935_s1, %s666_s8  ;;  %351 = vst [vmem:[#allocation2] sm:$0xff] (!%p667_p10), %v806_v4  ;;  %352 = vst [vmem:[#allocation2 + $0x8] sm:$0xff] (!%p667_p10), %v806_v4 }
  0x23   : > { %353 = vst [vmem:[#allocation2 + $0x10] sm:$0xff] (!%p667_p10), %v806_v4  ;;  %354 = vst [vmem:[#allocation2 + $0x18] sm:$0xff] (!%p667_p10), %v806_v4 }
  0x27 PF: > { %v756_v5 = vld [vmem:[%s884_s11] sm:$0xff]   ;;  %v757_v6 = vld [vmem:[%s884_s11 + $0x8] sm:$0xff]   ;;  %v758_v7 = vld [vmem:[%s884_s11 + $0x10] sm:$0xff]   ;;  %p678_p11 = scmp.ne.s32.totalorder %s796_s17, 8 }
  0x28   : > { %695 = vmatprep.subr.bf16.mxu0 %v756_v5  ;;  %v759_v8 = vld [vmem:[%s884_s11 + $0x18] sm:$0xff]   ;;  %v764_v9 = vld [vmem:[%s281_s12] sm:$0xff]   ;;  %v761_v11 = vld [vmem:[%s884_s11 + $0x28] sm:$0xff]  }
  0x29   : > { %696 = vmatpush3.bf16.msra.mxu0 %v756_v5  ;;  %711 = vmatprep.mubr.bf16.mxu0 %v764_v9  ;;  %v760_v10 = vld [vmem:[%s884_s11 + $0x20] sm:$0xff]   ;;  %v762_v12 = vld [vmem:[%s884_s11 + $0x30] sm:$0xff]   ;;  %v763_v13 = vld [vmem:[%s884_s11 + $0x38] sm:$0xff]  }
  0x2a   : > { %697 = vmatprep.subr.bf16.mxu0 %v757_v6  ;;  %v765_v14 = vld [vmem:[%s281_s12 + $0x8] sm:$0xff]   ;;  %v357_v15 = vld [vmem:[#allocation2 + $0x10] sm:$0xff]  ;;  %v355_v16 = vld [vmem:[#allocation2] sm:$0xff] }
  0x2b   : > { %v358_v18 = vld [vmem:[#allocation2 + $0x18] sm:$0xff]  ;;  %v356_v21 = vld [vmem:[#allocation2 + $0x8] sm:$0xff]  ;;  %v679_v28 = vld [vmem:[%s936_s2] ss:$0 sm:$0xff] (!%p678_p11) }
  0x2c   : > { %v680_v29 = vld [vmem:[%s937_s3] ss:$0 sm:$0xff] (!%p678_p11) }
  0x2d   : > { %698 = vmatpush3.bf16.msra.mxu0 %v757_v6 }
  0x2e   : > { %699 = vmatprep.subr.bf16.mxu0 %v758_v7 }
  0x31   : > { %700 = vmatpush3.bf16.msra.mxu0 %v758_v7 }
  0x32   : > { %701 = vmatprep.subr.bf16.mxu0 %v759_v8 }
  0x35   : > { %702 = vmatpush3.bf16.msra.mxu0 %v759_v8 }
  0x36   : > { %703 = vmatprep.subr.bf16.mxu0 %v760_v10 }
  0x39   : > { %704 = vmatpush3.bf16.msra.mxu0 %v760_v10 }
  0x3a   : > { %705 = vmatprep.subr.bf16.mxu0 %v761_v11 }
  0x3d   : > { %706 = vmatpush3.bf16.msra.mxu0 %v761_v11 }
  0x3e   : > { %707 = vmatprep.subr.bf16.mxu0 %v762_v12 }
  0x41   : > { %708 = vmatpush3.bf16.msra.mxu0 %v762_v12 }
  0x42   : > { %709 = vmatprep.subr.bf16.mxu0 %v763_v13 }
  0x45   : > { %710 = vmatpush3.bf16.msra.mxu0 %v763_v13 }
  0x48   : > { %712 = vmatmul.mubr.bf16.vlgmr.msra.gmra.mrb[0].mxu0 %v765_v14 }
 0x11b   : > { %v713_v17 = vpop.f32.mrb[0].mxu0  ;;  %499 = sbr.rel (%p678_p11) target bundleno = 304 (0x130), region = 85 }
 0x11c   : > { %v490_v19 = vadd.f32 %v713_v17, %v357_v15  ;;  %v473_v20 = vpop.f32.mrb[1].mxu0 }
 0x11d   : > { %v488_v22 = vadd.f32 %v473_v20, %v355_v16  ;;  %v714_v23 = vpop.f32.mrb[2].mxu0 }
 0x11e   : > { %494 = vst [vmem:[#allocation2 + $0x10] sm:$0xff] %v490_v19  ;;  %v491_v24 = vadd.f32 %v714_v23, %v358_v18  ;;  %v476_v25 = vpop.f32.mrb[3].mxu0 }
 0x11f   : > { %492 = vst [vmem:[#allocation2] sm:$0xff] %v488_v22  ;;  %v489_v26 = vadd.f32 %v476_v25, %v356_v21 }
 0x120   : > { %495 = vst [vmem:[#allocation2 + $0x18] sm:$0xff] %v491_v24 }
 0x121   : > { %493 = vst [vmem:[#allocation2 + $0x8] sm:$0xff] %v489_v26 }
 0x125   : > { %v502_v32 = vld [vmem:[#allocation2 + $0x10] sm:$0xff] }
 0x126   : > { %v500_v27 = vld [vmem:[#allocation2] sm:$0xff]  ;;  %v513_v35 = vmul.f32 %v679_v28, %v502_v32 }
 0x127   : > { %v511_v30 = vmul.f32 %v679_v28, %v500_v27  ;;  %v503_v33 = vld [vmem:[#allocation2 + $0x18] sm:$0xff] }
 0x128   : > { %v501_v31 = vld [vmem:[#allocation2 + $0x8] sm:$0xff]  ;;  %v514_v36 = vmul.f32 %v679_v28, %v503_v33  ;;  %v524_v39 = vadd.f32 %v680_v29, %v513_v35 }
 0x129   : > { %v512_v34 = vmul.f32 %v679_v28, %v501_v31  ;;  %v522_v37 = vadd.f32 %v680_v29, %v511_v30 }
 0x12a   : > { %v525_v40 = vadd.f32 %v680_v29, %v514_v36  ;;  %v528_v43 = vmax.f32 %v524_v39, 0.0 }
 0x12b   : > { %v523_v38 = vadd.f32 %v680_v29, %v512_v34  ;;  %v526_v41 = vmax.f32 %v522_v37, 0.0 }
 0x12c   : > { %v529_v44 = vmax.f32 %v525_v40, 0.0  ;;  %532 = vst [vmem:[%s938_s4 + $0x10] sm:$0xff] %v528_v43 }
 0x12d   : > { %v527_v42 = vmax.f32 %v523_v38, 0.0  ;;  %530 = vst [vmem:[%s938_s4] sm:$0xff] %v526_v41 }
 0x12e   : > { %533 = vst [vmem:[%s938_s4 + $0x18] sm:$0xff] %v529_v44 }
 0x12f   : > { %531 = vst [vmem:[%s938_s4 + $0x8] sm:$0xff] %v527_v42 }
 0x130 PF: > { %s14_s19 = sadd.s32 1, %s804_s19   ;;  %s939_s15 = smov %s792_s16 }
 0x131   : > { %p11_p12 = scmp.ge.s32.totalorder %s14_s19, 11   ;;  %s940_s16 = smov %s867_s23 }
 0x132   : > { %s941_s17 = smov %s800_s18  ;;  %s942_s18 = smov %s944_s20 }
 0x133   :  { %13 = sbr.rel (!%p11_p12) target bundleno = 3 (0x3), region = 129 }

// kernel: fish_classifier_forward.34
= control target key start
LH: loop header
LB: loop body
LE: loop exit
PB: predicated region body
PF: predicated region fallthrough
CT: control target
= control target key end

     0   :  { %s770_s15 = smov 0   ;;  %s772_s16 = smov 0   ;;  %s843_s0 = inlined_call_operand.vmem [shape: bf16[8,1152], index: 0, kind: input, shape index: {}]   ;;  %s844_s1 = inlined_call_operand.vmem [shape: bf16[1152,256], index: 1, kind: input, shape index: {}]   ;;  %s845_s2 = inlined_call_operand.vmem [shape: f32[1,256], index: 2, kind: input, shape index: {}]   ;;  %s846_s3 = inlined_call_operand.vmem [shape: f32[1,256], index: 3, kind: input, shape index: {}]   ;;  %s847_s4 = inlined_call_operand.vmem [shape: f32[8,256], index: 4, kind: output, shape index: {}]  }
   0x1   :  { %s774_s17 = smov 0  }
   0x2 LB: > { %s26_s18 = sadd.s32 1, %s737_s16  ;;  %p641_p0 = scmp.ge.s32.totalorder %s741_s17, 1  ;;  %s741_s17 = sphi %s774_s17, %s14_s17   ;;  %s737_s16 = sphi %s772_s16, %s849_s16   ;;  %s733_s15 = sphi %s770_s15, %s848_s15  }
   0x3   : > { %p27_p1 = scmp.ge.s32.totalorder %s26_s18, 9  ;;  %p227_p2 = scmp.lt.s32.totalorder %s741_s17, 10 }
   0x5   : > { %s851_s18 = smov (%p27_p1, %s26_s18), 0  ;;  %p228_p3 = pnand %p641_p0, %p227_p2 }
   0x6   : > { %p280_p4 = scmp.lt.s32.totalorder (!%p228_p3), %s733_s15, 8  ;;  %s643_s19 = sshll.u32 (!%p228_p3), %s733_s15, 4 }
   0x7   : > { %231 = sbr.rel (%p228_p3) target bundleno = 285 (0x11d), region = 36  ;;  %p288_p5 = scmp.lt.s32.totalorder (!%p228_p3), %s643_s19, 143 }
   0x8   : > { %p646_p6 = scmp.ne.s32.totalorder (!%p228_p3), %s733_s15, 0 }
   0xe   : > { %s281_s20 = scalar_select %p280_p4, %s733_s15, 8 }
   0xf   : > { %s853_s19 = smov (!%p288_p5, %s643_s19), 143  ;;  %322 = sbr.rel (%p646_p6) target bundleno = 22 (0x16), region = 40 }
  0x10   : > { %s642_s21 = sshll.u32 %s281_s20, 2  ;;  %s668_s25 = sshll.u32 %s853_s19, 3  ;;  %v743_v0 = vmov (!%p646_p6), 0.0  }
  0x11   : > { %s796_s24 = scalar_lea.vmem %s843_s0, %s642_s21  ;;  %s801_s28 = scalar_lea.vmem %s844_s1, %s668_s25  ;;  %323 = vst [vmem:[#allocation2] sm:$0xff] (!%p646_p6), %v743_v0  ;;  %324 = vst [vmem:[#allocation2 + $0x8] sm:$0xff] (!%p646_p6), %v743_v0 }
  0x16 PF: > { %v695_v1 = vld [vmem:[%s801_s28 + $0x4] ss:$8 sps:$4 sm:$0xff]   ;;  %v697_v2 = vld [vmem:[%s801_s28] ss:$8 sps:$4 sm:$0xff]   ;;  %v744_v3 = vmov 0   ;;  %p663_p7 = scmp.ne.s32.totalorder %s733_s15, 8 }
  0x17   : > { %456 = vmatprep.mubr.bf16.mxu0 %v744_v3  ;;  %424 = vmatprep.subr.bf16.mxu0 %v695_v1  ;;  %v698_v4 = vld [vmem:[%s801_s28 + $0x14] ss:$8 sps:$4 sm:$0xff]   ;;  %v700_v5 = vld [vmem:[%s801_s28 + $0x10] ss:$8 sps:$4 sm:$0xff]   ;;  %v701_v6 = vld [vmem:[%s801_s28 + $0x24] ss:$8 sps:$4 sm:$0xff]   ;;  %v477_v27 = vlaneseq (!%p663_p7) }
  0x18   : > { %425 = vmatpush1.bf16.msra.mxu0 %v697_v2  ;;  %v703_v7 = vld [vmem:[%s801_s28 + $0x20] ss:$8 sps:$4 sm:$0xff]   ;;  %v704_v8 = vld [vmem:[%s801_s28 + $0x34] ss:$8 sps:$4 sm:$0xff]   ;;  %v706_v9 = vld [vmem:[%s801_s28 + $0x30] ss:$8 sps:$4 sm:$0xff]  }
  0x19   : > { %426 = vmatprep.subr.bf16.mxu0 %v698_v4  ;;  %v707_v10 = vld [vmem:[%s801_s28 + $0x44] ss:$8 sps:$4 sm:$0xff]   ;;  %v709_v11 = vld [vmem:[%s801_s28 + $0x40] ss:$8 sps:$4 sm:$0xff]   ;;  %v710_v12 = vld [vmem:[%s801_s28 + $0x54] ss:$8 sps:$4 sm:$0xff]  }
  0x1a   : > { %v712_v13 = vld [vmem:[%s801_s28 + $0x50] ss:$8 sps:$4 sm:$0xff]   ;;  %v713_v14 = vld [vmem:[%s801_s28 + $0x64] ss:$8 sps:$4 sm:$0xff]   ;;  %v715_v15 = vld [vmem:[%s801_s28 + $0x60] ss:$8 sps:$4 sm:$0xff]  }
  0x1b   : > { %v716_v16 = vld [vmem:[%s801_s28 + $0x74] ss:$8 sps:$4 sm:$0xff]   ;;  %v718_v17 = vld [vmem:[%s801_s28 + $0x70] ss:$8 sps:$4 sm:$0xff]   ;;  %v327_v18 = vld [vmem:[%s796_s24] sm:$0xf] }
  0x1c   : > { %427 = vmatpush1.bf16.msra.mxu0 %v700_v5  ;;  %v325_v19 = vld [vmem:[#allocation2] sm:$0xff]  ;;  %v326_v20 = vld [vmem:[#allocation2 + $0x8] sm:$0xff]  ;;  %v478_v28 = vshrl.u32 (!%p663_p7), %v477_v27, 7 }
  0x1d   : > { %428 = vmatprep.subr.bf16.mxu0 %v701_v6  ;;  %v475_v29 = vld [vmem:[%s845_s2] sm:$0x3] (!%p663_p7) }
  0x1e   : > { %v489_v30 = vld [vmem:[%s846_s3] sm:$0x3] (!%p663_p7)  ;;  %v479_v31 = vsub.s32 (!%p663_p7), 0, %v478_v28  ;;  %v483_v32 = vsub.s32 (!%p663_p7), 1, %v478_v28 }
  0x20   : > { %429 = vmatpush1.bf16.msra.mxu0 %v703_v7  ;;  %v480_v35 = vrot.slane (!%p663_p7), %v475_v29, %v479_v31  ;;  %v494_v36 = vrot.slane (!%p663_p7), %v489_v30, %v479_v31  ;;  %v484_v37 = vrot.slane (!%p663_p7), %v475_v29, %v483_v32  ;;  %v498_v38 = vrot.slane (!%p663_p7), %v489_v30, %v483_v32 }
  0x21   : > { %430 = vmatprep.subr.bf16.mxu0 %v704_v8 }
  0x24   : > { %431 = vmatpush1.bf16.msra.mxu0 %v706_v9 }
  0x25   : > { %432 = vmatprep.subr.bf16.mxu0 %v707_v10 }
  0x28   : > { %433 = vmatpush1.bf16.msra.mxu0 %v709_v11 }
  0x29   : > { %434 = vmatprep.subr.bf16.mxu0 %v710_v12 }
  0x2c   : > { %435 = vmatpush1.bf16.msra.mxu0 %v712_v13 }
  0x2d   : > { %436 = vmatprep.subr.bf16.mxu0 %v713_v14 }
  0x30   : > { %437 = vmatpush1.bf16.msra.mxu0 %v715_v15 }
  0x31   : > { %438 = vmatprep.subr.bf16.mxu0 %v716_v16 }
  0x34   : > { %439 = vmatpush1.bf16.msra.mxu0 %v718_v17 }
  0x37   : > { %457 = vmatmul.mubr.bf16.vlgmr.msra.gmra.mrb[0].mxu0 %v327_v18 }
 0x108   : > { %472 = sbr.rel (%p663_p7) target bundleno = 285 (0x11d), region = 44 }
 0x10a   : > { %v458_v21 = vpop.f32.mrb[0].mxu0 }
 0x10b   : > { %v465_v22 = vadd.f32 %v458_v21, %v325_v19  ;;  %v460_v23 = vpop.f32.mrb[1].mxu0 }
 0x10c   : > { %v466_v24 = vadd.f32 %v460_v23, %v326_v20  ;;  %v462_v25 = vpop.f32.mrb[2].mxu0 }
 0x10d   : > { %467 = vst [vmem:[#allocation2] sm:$0xff] %v465_v22  ;;  %v463_v26 = vpop.f32.mrb[3].mxu0 }
 0x10e   : > { %468 = vst [vmem:[#allocation2 + $0x8] sm:$0xff] %v466_v24 }
 0x114   : > { %v473_v33 = vld [vmem:[#allocation2] sm:$0xff] }
 0x115   : > { %v474_v34 = vld [vmem:[#allocation2 + $0x8] sm:$0xff]  ;;  %v487_v39 = vmul.f32 %v480_v35, %v473_v33 }
 0x116   : > { %v488_v40 = vmul.f32 %v484_v37, %v474_v34 }
 0x117   : > { %v501_v41 = vadd.f32 %v494_v36, %v487_v39 }
 0x118   : > { %v502_v42 = vadd.f32 %v498_v38, %v488_v40 }
 0x119   : > { %v503_v43 = vmax.f32 %v501_v41, 0.0 }
 0x11a   : > { %v504_v44 = vmax.f32 %v502_v42, 0.0 }
 0x11b   : > { %505 = vst [vmem:[%s847_s4] sm:$0xff] %v503_v43 }
 0x11c   : > { %506 = vst [vmem:[%s847_s4 + $0x8] sm:$0xff] %v504_v44 }
 0x11d PF: > { %s14_s17 = sadd.s32 1, %s741_s17   ;;  %s848_s15 = smov %s737_s16 }
 0x11e   : > { %p11_p8 = scmp.ge.s32.totalorder %s14_s17, 11   ;;  %s849_s16 = smov %s851_s18 }
 0x120   :  { %13 = sbr.rel (!%p11_p8) target bundleno = 2 (0x2), region = 83 }

// kernel: fish_classifier_forward.35
= control target key start
LH: loop header
LB: loop body
LE: loop exit
PB: predicated region body
PF: predicated region fallthrough
CT: control target
= control target key end

     0   :  { %v248_v1 = vmov 0   ;;  %v175_v18 = vlaneseq  ;;  %s337_s1 = inlined_call_operand.vmem [shape: bf16[128,256], index: 1, kind: input, shape index: {}]   ;;  %s338_s0 = inlined_call_operand.vmem [shape: bf16[8,128], index: 0, kind: input, shape index: {}]   ;;  %s339_s2 = inlined_call_operand.vmem [shape: f32[1,256], index: 2, kind: input, shape index: {}]   ;;  %s340_s3 = inlined_call_operand.vmem [shape: f32[1,256], index: 3, kind: input, shape index: {}]   ;;  %s341_s4 = inlined_call_operand.vmem [shape: f32[8,256], index: 4, kind: output, shape index: {}]  }
   0x1   :  { %v224_v0 = vld [vmem:[%s337_s1 + $0x4] ss:$8 sps:$4 sm:$0xff]   ;;  %155 = vmatprep.mubr.bf16.mxu0 %v248_v1  ;;  %v226_v2 = vld [vmem:[%s337_s1] ss:$8 sps:$4 sm:$0xff]   ;;  %v227_v3 = vld [vmem:[%s337_s1 + $0x14] ss:$8 sps:$4 sm:$0xff]  }
   0x2   :  { %123 = vmatprep.subr.bf16.mxu0 %v224_v0  ;;  %v229_v4 = vld [vmem:[%s337_s1 + $0x10] ss:$8 sps:$4 sm:$0xff]   ;;  %v230_v5 = vld [vmem:[%s337_s1 + $0x24] ss:$8 sps:$4 sm:$0xff]   ;;  %v232_v6 = vld [vmem:[%s337_s1 + $0x20] ss:$8 sps:$4 sm:$0xff]  }
   0x3   :  { %124 = vmatpush1.bf16.msra.mxu0 %v226_v2  ;;  %v233_v7 = vld [vmem:[%s337_s1 + $0x34] ss:$8 sps:$4 sm:$0xff]   ;;  %v235_v8 = vld [vmem:[%s337_s1 + $0x30] ss:$8 sps:$4 sm:$0xff]   ;;  %v236_v9 = vld [vmem:[%s337_s1 + $0x44] ss:$8 sps:$4 sm:$0xff]  }
   0x4   :  { %125 = vmatprep.subr.bf16.mxu0 %v227_v3  ;;  %v238_v10 = vld [vmem:[%s337_s1 + $0x40] ss:$8 sps:$4 sm:$0xff]   ;;  %v239_v11 = vld [vmem:[%s337_s1 + $0x54] ss:$8 sps:$4 sm:$0xff]   ;;  %v241_v12 = vld [vmem:[%s337_s1 + $0x50] ss:$8 sps:$4 sm:$0xff]  }
   0x5   :  { %v242_v13 = vld [vmem:[%s337_s1 + $0x64] ss:$8 sps:$4 sm:$0xff]   ;;  %v244_v14 = vld [vmem:[%s337_s1 + $0x60] ss:$8 sps:$4 sm:$0xff]   ;;  %v245_v15 = vld [vmem:[%s337_s1 + $0x74] ss:$8 sps:$4 sm:$0xff]  }
   0x6   :  { %v247_v16 = vld [vmem:[%s337_s1 + $0x70] ss:$8 sps:$4 sm:$0xff]   ;;  %v26_v17 = vld [vmem:[%s338_s0] sm:$0xf]  ;;  %v176_v19 = vshrl.u32 %v175_v18, 7 }
   0x7   :  { %126 = vmatpush1.bf16.msra.mxu0 %v229_v4  ;;  %v173_v21 = vld [vmem:[%s339_s2] sm:$0x3] }
   0x8   :  { %127 = vmatprep.subr.bf16.mxu0 %v230_v5  ;;  %v177_v20 = vsub.s32 0, %v176_v19  ;;  %v181_v22 = vsub.s32 1, %v176_v19  ;;  %v187_v23 = vld [vmem:[%s340_s3] sm:$0x3] }
   0xa   :  { %v178_v24 = vrot.slane %v173_v21, %v177_v20  ;;  %v182_v25 = vrot.slane %v173_v21, %v181_v22  ;;  %v192_v26 = vrot.slane %v187_v23, %v177_v20  ;;  %v196_v28 = vrot.slane %v187_v23, %v181_v22 }
   0xb   :  { %128 = vmatpush1.bf16.msra.mxu0 %v232_v6 }
   0xc   :  { %129 = vmatprep.subr.bf16.mxu0 %v233_v7 }
   0xf   :  { %130 = vmatpush1.bf16.msra.mxu0 %v235_v8 }
  0x10   :  { %131 = vmatprep.subr.bf16.mxu0 %v236_v9 }
  0x13   :  { %132 = vmatpush1.bf16.msra.mxu0 %v238_v10 }
  0x14   :  { %133 = vmatprep.subr.bf16.mxu0 %v239_v11 }
  0x17   :  { %134 = vmatpush1.bf16.msra.mxu0 %v241_v12 }
  0x18   :  { %135 = vmatprep.subr.bf16.mxu0 %v242_v13 }
  0x1b   :  { %136 = vmatpush1.bf16.msra.mxu0 %v244_v14 }
  0x1c   :  { %137 = vmatprep.subr.bf16.mxu0 %v245_v15 }
  0x1f   :  { %138 = vmatpush1.bf16.msra.mxu0 %v247_v16 }
  0x22   :  { %156 = vmatmul.mubr.bf16.vlgmr.msra.gmra.mrb[0].mxu0 %v26_v17 }
  0xf5   :  { %v157_v27 = vpop.f32.mrb[0].mxu0 }
  0xf6   :  { %v185_v29 = vmul.f32 %v178_v24, %v157_v27  ;;  %v159_v30 = vpop.f32.mrb[1].mxu0 }
  0xf7   :  { %v186_v31 = vmul.f32 %v182_v25, %v159_v30  ;;  %v161_v32 = vpop.f32.mrb[2].mxu0 }
  0xf8   :  { %v199_v33 = vadd.f32 %v192_v26, %v185_v29  ;;  %v162_v34 = vpop.f32.mrb[3].mxu0 }
  0xf9   :  { %v200_v35 = vadd.f32 %v196_v28, %v186_v31 }
  0xfa   :  { %201 = vst [vmem:[%s341_s4] sm:$0xff] %v199_v33 }
  0xfb   :  { %202 = vst [vmem:[%s341_s4 + $0x8] sm:$0xff] %v200_v35 }

// kernel: fish_classifier_forward.36
= control target key start
LH: loop header
LB: loop body
LE: loop exit
PB: predicated region body
PF: predicated region fallthrough
CT: control target
= control target key end

     0   :  { %s1014_s18 = smov 0   ;;  %s1016_s19 = smov 0   ;;  %s1108_s0 = inlined_call_operand.vmem [shape: bf16[8,2304], index: 0, kind: input, shape index: {}]   ;;  %s1109_s1 = inlined_call_operand.vmem [shape: bf16[2304,256], index: 1, kind: input, shape index: {}]   ;;  %s1110_s2 = inlined_call_operand.vmem [shape: f32[1,256], index: 2, kind: input, shape index: {}]   ;;  %s1111_s3 = inlined_call_operand.vmem [shape: f32[1,256], index: 3, kind: input, shape index: {}]   ;;  %s1112_s4 = inlined_call_operand.vmem [shape: f32[8,256], index: 4, kind: input, shape index: {}]   ;;  %s1113_s5 = inlined_call_operand.vmem [shape: f32[8,256], index: 5, kind: output, shape index: {}]  }
   0x1   :  { %s1018_s20 = smov 0  }
   0x2 LB: > { %s27_s21 = sadd.s32 1, %s977_s19  ;;  %p837_p0 = scmp.ge.s32.totalorder %s981_s20, 1  ;;  %s981_s20 = sphi %s1018_s20, %s15_s20   ;;  %s977_s19 = sphi %s1016_s19, %s1115_s19   ;;  %s973_s18 = sphi %s1014_s18, %s1114_s18  }
   0x3   : > { %p28_p1 = scmp.ge.s32.totalorder %s27_s21, 9  ;;  %p271_p2 = scmp.lt.s32.totalorder %s981_s20, 10 }
   0x5   : > { %s1117_s21 = smov (%p28_p1, %s27_s21), 0  ;;  %p272_p3 = pnand %p837_p0, %p271_p2 }
   0x6   : > { %s838_s22 = sshll.u32 (!%p272_p3), %s973_s18, 1  ;;  %s840_s23 = sshll.u32 (!%p272_p3), %s973_s18, 5 }
   0x7   : > { %275 = sbr.rel (%p272_p3) target bundleno = 321 (0x141), region = 40  ;;  %p337_p4 = scmp.lt.s32.totalorder (!%p272_p3), %s838_s22, 17 }
   0x8   : > { %p346_p5 = scmp.lt.s32.totalorder (!%p272_p3), %s840_s23, 287  ;;  %p843_p6 = scmp.ne.s32.totalorder (!%p272_p3), %s973_s18, 0 }
   0xe   : > { %s1119_s22 = smov (!%p337_p4, %s838_s22), 17  ;;  %s1121_s23 = smov (!%p346_p5, %s840_s23), 287 }
   0xf   : > { %s839_s24 = sshll.u32 %s1119_s22, 2  ;;  %s883_s28 = sshll.u32 %s1121_s23, 3  ;;  %v983_v0 = vmov (!%p843_p6), 0.0  }
  0x10   : > { %s1039_s27 = scalar_lea.vmem %s1108_s0, %s839_s24  ;;  %s1044_s6 = scalar_lea.vmem %s1109_s1, %s883_s28  ;;  %390 = vst [vmem:[#allocation2] sm:$0xff] (!%p843_p6), %v983_v0  ;;  %391 = vst [vmem:[#allocation2 + $0x8] sm:$0xff] (!%p843_p6), %v983_v0 }
  0x11   : > { %389 = sbr.rel (%p843_p6) target bundleno = 24 (0x18), region = 44 }
  0x18 PF: > { %v909_v1 = vld [vmem:[%s1044_s6 + $0x4] ss:$8 sps:$4 sm:$0xff]   ;;  %v911_v2 = vld [vmem:[%s1044_s6] ss:$8 sps:$4 sm:$0xff]   ;;  %v912_v3 = vld [vmem:[%s1044_s6 + $0x14] ss:$8 sps:$4 sm:$0xff]  }
  0x19   : > { %594 = vmatprep.subr.bf16.mxu0 %v909_v1  ;;  %v914_v4 = vld [vmem:[%s1044_s6 + $0x10] ss:$8 sps:$4 sm:$0xff]   ;;  %v915_v5 = vld [vmem:[%s1044_s6 + $0x24] ss:$8 sps:$4 sm:$0xff]   ;;  %v917_v6 = vld [vmem:[%s1044_s6 + $0x20] ss:$8 sps:$4 sm:$0xff]  }
  0x1a   : > { %595 = vmatpush1.bf16.msra.mxu0 %v911_v2  ;;  %v918_v7 = vld [vmem:[%s1044_s6 + $0x34] ss:$8 sps:$4 sm:$0xff]   ;;  %v920_v8 = vld [vmem:[%s1044_s6 + $0x30] ss:$8 sps:$4 sm:$0xff]   ;;  %v921_v9 = vld [vmem:[%s1044_s6 + $0x44] ss:$8 sps:$4 sm:$0xff]  }
  0x1b   : > { %596 = vmatprep.subr.bf16.mxu0 %v912_v3  ;;  %v923_v10 = vld [vmem:[%s1044_s6 + $0x40] ss:$8 sps:$4 sm:$0xff]   ;;  %v924_v11 = vld [vmem:[%s1044_s6 + $0x54] ss:$8 sps:$4 sm:$0xff]   ;;  %v926_v12 = vld [vmem:[%s1044_s6 + $0x50] ss:$8 sps:$4 sm:$0xff]  }
  0x1c   : > { %v927_v13 = vld [vmem:[%s1044_s6 + $0x64] ss:$8 sps:$4 sm:$0xff]   ;;  %v929_v16 = vld [vmem:[%s1044_s6 + $0x60] ss:$8 sps:$4 sm:$0xff]   ;;  %v930_v17 = vld [vmem:[%s1044_s6 + $0x74] ss:$8 sps:$4 sm:$0xff]  }
  0x1d   : > { %v394_v14 = vld [vmem:[%s1039_s27] sm:$0xff]  ;;  %v932_v18 = vld [vmem:[%s1044_s6 + $0x70] ss:$8 sps:$4 sm:$0xff]   ;;  %v936_v21 = vld [vmem:[%s1044_s6 + $0x94] ss:$8 sps:$4 sm:$0xff]   ;;  %p878_p7 = scmp.ne.s32.totalorder %s973_s18, 8 }
  0x1e   : > { %597 = vmatpush1.bf16.msra.mxu0 %v914_v4  ;;  %v845_v15 = vcombine.high %v394_v14, %v394_v14  ;;  %v933_v19 = vld [vmem:[%s1044_s6 + $0x84] ss:$8 sps:$4 sm:$0xff]   ;;  %v935_v20 = vld [vmem:[%s1044_s6 + $0x80] ss:$8 sps:$4 sm:$0xff]   ;;  %v938_v22 = vld [vmem:[%s1044_s6 + $0x90] ss:$8 sps:$4 sm:$0xff]   ;;  %v844_v35 = vcombine.low %v394_v14, %v394_v14  ;;  %v647_v44 = vlaneseq (!%p878_p7) }
  0x1f   : > { %598 = vmatprep.subr.bf16.mxu0 %v915_v5  ;;  %v939_v23 = vld [vmem:[%s1044_s6 + $0xa4] ss:$8 sps:$4 sm:$0xff]   ;;  %v941_v24 = vld [vmem:[%s1044_s6 + $0xa0] ss:$8 sps:$4 sm:$0xff]   ;;  %v942_v25 = vld [vmem:[%s1044_s6 + $0xb4] ss:$8 sps:$4 sm:$0xff]  }
  0x20   : > { %626 = vmatprep.mubr.bf16.mxu0 %v845_v15  ;;  %v944_v26 = vld [vmem:[%s1044_s6 + $0xb0] ss:$8 sps:$4 sm:$0xff]   ;;  %v945_v27 = vld [vmem:[%s1044_s6 + $0xc4] ss:$8 sps:$4 sm:$0xff]   ;;  %v947_v28 = vld [vmem:[%s1044_s6 + $0xc0] ss:$8 sps:$4 sm:$0xff]  }
  0x21   : > { %v948_v29 = vld [vmem:[%s1044_s6 + $0xd4] ss:$8 sps:$4 sm:$0xff]   ;;  %v950_v30 = vld [vmem:[%s1044_s6 + $0xd0] ss:$8 sps:$4 sm:$0xff]   ;;  %v951_v31 = vld [vmem:[%s1044_s6 + $0xe4] ss:$8 sps:$4 sm:$0xff]  }
  0x22   : > { %599 = vmatpush1.bf16.msra.mxu0 %v917_v6  ;;  %v953_v32 = vld [vmem:[%s1044_s6 + $0xe0] ss:$8 sps:$4 sm:$0xff]   ;;  %v954_v33 = vld [vmem:[%s1044_s6 + $0xf4] ss:$8 sps:$4 sm:$0xff]   ;;  %v956_v34 = vld [vmem:[%s1044_s6 + $0xf0] ss:$8 sps:$4 sm:$0xff]  }
  0x23   : > { %600 = vmatprep.subr.bf16.mxu0 %v918_v7  ;;  %v392_v36 = vld [vmem:[#allocation2] sm:$0xff]  ;;  %v393_v37 = vld [vmem:[#allocation2 + $0x8] sm:$0xff]  ;;  %v648_v45 = vshrl.u32 (!%p878_p7), %v647_v44, 7 }
  0x24   : > { %v645_v46 = vld [vmem:[%s1110_s2] sm:$0x3] (!%p878_p7)  ;;  %v674_v59 = vld [vmem:[%s1112_s4 + $0x8] sm:$0xff] (!%p878_p7) }
  0x25   : > { %v659_v47 = vld [vmem:[%s1111_s3] sm:$0x3] (!%p878_p7)  ;;  %v649_v48 = vsub.s32 (!%p878_p7), 0, %v648_v45  ;;  %v653_v49 = vsub.s32 (!%p878_p7), 1, %v648_v45 }
  0x26   : > { %601 = vmatpush1.bf16.msra.mxu0 %v920_v8  ;;  %v673_v58 = vld [vmem:[%s1112_s4] sm:$0xff] (!%p878_p7) }
  0x27   : > { %602 = vmatprep.subr.bf16.mxu0 %v921_v9  ;;  %v650_v52 = vrot.slane (!%p878_p7), %v645_v46, %v649_v48  ;;  %v664_v53 = vrot.slane (!%p878_p7), %v659_v47, %v649_v48  ;;  %v654_v54 = vrot.slane (!%p878_p7), %v645_v46, %v653_v49  ;;  %v668_v55 = vrot.slane (!%p878_p7), %v659_v47, %v653_v49 }
  0x2a   : > { %603 = vmatpush1.bf16.msra.mxu0 %v923_v10 }
  0x2b   : > { %604 = vmatprep.subr.bf16.mxu0 %v924_v11 }
  0x2e   : > { %605 = vmatpush1.bf16.msra.mxu0 %v926_v12 }
  0x2f   : > { %606 = vmatprep.subr.bf16.mxu0 %v927_v13 }
  0x32   : > { %607 = vmatpush1.bf16.msra.mxu0 %v929_v16 }
  0x33   : > { %608 = vmatprep.subr.bf16.mxu0 %v930_v17 }
  0x36   : > { %609 = vmatpush1.bf16.msra.mxu0 %v932_v18 }
  0x37   : > { %610 = vmatprep.subr.bf16.mxu0 %v933_v19 }
  0x3a   : > { %611 = vmatpush1.bf16.msra.mxu0 %v935_v20 }
  0x3b   : > { %612 = vmatprep.subr.bf16.mxu0 %v936_v21 }
  0x3e   : > { %613 = vmatpush1.bf16.msra.mxu0 %v938_v22 }
  0x3f   : > { %614 = vmatprep.subr.bf16.mxu0 %v939_v23 }
  0x42   : > { %615 = vmatpush1.bf16.msra.mxu0 %v941_v24 }
  0x43   : > { %616 = vmatprep.subr.bf16.mxu0 %v942_v25 }
  0x46   : > { %617 = vmatpush1.bf16.msra.mxu0 %v944_v26 }
  0x47   : > { %618 = vmatprep.subr.bf16.mxu0 %v945_v27 }
  0x4a   : > { %619 = vmatpush1.bf16.msra.mxu0 %v947_v28 }
  0x4b   : > { %620 = vmatprep.subr.bf16.mxu0 %v948_v29 }
  0x4e   : > { %621 = vmatpush1.bf16.msra.mxu0 %v950_v30 }
  0x4f   : > { %622 = vmatprep.subr.bf16.mxu0 %v951_v31 }
  0x52   : > { %623 = vmatpush1.bf16.msra.mxu0 %v953_v32 }
  0x53   : > { %624 = vmatprep.subr.bf16.mxu0 %v954_v33 }
  0x56   : > { %625 = vmatpush1.bf16.msra.mxu0 %v956_v34 }
  0x59   : > { %627 = vmatmul.mubr.bf16.vlgmr.msra.gmra.mrb[0].mxu0 %v844_v35 }
 0x12a   : > { %642 = sbr.rel (%p878_p7) target bundleno = 321 (0x141), region = 48 }
 0x12c   : > { %v628_v38 = vpop.f32.mrb[0].mxu0 }
 0x12d   : > { %v635_v39 = vadd.f32 %v628_v38, %v392_v36  ;;  %v630_v40 = vpop.f32.mrb[1].mxu0 }
 0x12e   : > { %v636_v41 = vadd.f32 %v630_v40, %v393_v37  ;;  %v632_v42 = vpop.f32.mrb[2].mxu0 }
 0x12f   : > { %637 = vst [vmem:[#allocation2] sm:$0xff] %v635_v39  ;;  %v633_v43 = vpop.f32.mrb[3].mxu0 }
 0x130   : > { %638 = vst [vmem:[#allocation2 + $0x8] sm:$0xff] %v636_v41 }
 0x136   : > { %v643_v50 = vld [vmem:[#allocation2] sm:$0xff] }
 0x137   : > { %v644_v51 = vld [vmem:[#allocation2 + $0x8] sm:$0xff]  ;;  %v657_v56 = vmul.f32 %v650_v52, %v643_v50 }
 0x138   : > { %v658_v57 = vmul.f32 %v654_v54, %v644_v51 }
 0x139   : > { %v671_v60 = vadd.f32 %v664_v53, %v657_v56 }
 0x13a   : > { %v672_v61 = vadd.f32 %v668_v55, %v658_v57 }
 0x13b   : > { %v675_v62 = vadd.f32 %v673_v58, %v671_v60 }
 0x13c   : > { %v676_v63 = vadd.f32 %v674_v59, %v672_v61 }
 0x13d   : > { %v677_v0 = vmax.f32 %v675_v62, 0.0 }
 0x13e   : > { %v678_v1 = vmax.f32 %v676_v63, 0.0 }
 0x13f   : > { %679 = vst [vmem:[%s1113_s5] sm:$0xff] %v677_v0 }
 0x140   : > { %680 = vst [vmem:[%s1113_s5 + $0x8] sm:$0xff] %v678_v1 }
 0x141 PF: > { %s15_s20 = sadd.s32 1, %s981_s20   ;;  %s1114_s18 = smov %s977_s19 }
 0x142   : > { %p12_p8 = scmp.ge.s32.totalorder %s15_s20, 11   ;;  %s1115_s19 = smov %s1117_s21 }
 0x144   :  { %14 = sbr.rel (!%p12_p8) target bundleno = 2 (0x2), region = 90 }

// kernel: fish_classifier_forward.37
= control target key start
LH: loop header
LB: loop body
LE: loop exit
PB: predicated region body
PF: predicated region fallthrough
CT: control target
= control target key end

     0   :  { %s920_s15 = smov 0   ;;  %s922_s16 = smov 0   ;;  %s1008_s0 = inlined_call_operand.vmem [shape: bf16[8,2304], index: 0, kind: input, shape index: {}]   ;;  %s1009_s1 = inlined_call_operand.vmem [shape: bf16[2304,256], index: 1, kind: input, shape index: {}]   ;;  %s1010_s2 = inlined_call_operand.vmem [shape: f32[1,256], index: 2, kind: input, shape index: {}]   ;;  %s1011_s3 = inlined_call_operand.vmem [shape: f32[1,256], index: 3, kind: input, shape index: {}]   ;;  %s1012_s4 = inlined_call_operand.vmem [shape: f32[8,256], index: 4, kind: output, shape index: {}]  }
   0x1   :  { %s924_s17 = smov 0  }
   0x2 LB: > { %s26_s18 = sadd.s32 1, %s888_s16  ;;  %p748_p0 = scmp.ge.s32.totalorder %s892_s17, 1  ;;  %s892_s17 = sphi %s924_s17, %s14_s17   ;;  %s888_s16 = sphi %s922_s16, %s1014_s16   ;;  %s884_s15 = sphi %s920_s15, %s1013_s15  }
   0x3   : > { %p27_p1 = scmp.ge.s32.totalorder %s26_s18, 9  ;;  %p229_p2 = scmp.lt.s32.totalorder %s892_s17, 10 }
   0x5   : > { %s1016_s18 = smov (%p27_p1, %s26_s18), 0  ;;  %p230_p3 = pnand %p748_p0, %p229_p2 }
   0x6   : > { %s749_s19 = sshll.u32 (!%p230_p3), %s884_s15, 1  ;;  %s751_s20 = sshll.u32 (!%p230_p3), %s884_s15, 5 }
   0x7   : > { %233 = sbr.rel (%p230_p3) target bundleno = 319 (0x13f), region = 36  ;;  %p284_p4 = scmp.lt.s32.totalorder (!%p230_p3), %s749_s19, 17 }
   0x8   : > { %p293_p5 = scmp.lt.s32.totalorder (!%p230_p3), %s751_s20, 287  ;;  %p754_p6 = scmp.ne.s32.totalorder (!%p230_p3), %s884_s15, 0 }
   0xe   : > { %s1018_s19 = smov (!%p284_p4, %s749_s19), 17  ;;  %s1020_s20 = smov (!%p293_p5, %s751_s20), 287 }
   0xf   : > { %s750_s21 = sshll.u32 %s1018_s19, 2  ;;  %s794_s25 = sshll.u32 %s1020_s20, 3  ;;  %v894_v0 = vmov (!%p754_p6), 0.0  }
  0x10   : > { %s945_s24 = scalar_lea.vmem %s1008_s0, %s750_s21  ;;  %s950_s28 = scalar_lea.vmem %s1009_s1, %s794_s25  ;;  %327 = vst [vmem:[#allocation2] sm:$0xff] (!%p754_p6), %v894_v0  ;;  %328 = vst [vmem:[#allocation2 + $0x8] sm:$0xff] (!%p754_p6), %v894_v0 }
  0x11   : > { %326 = sbr.rel (%p754_p6) target bundleno = 24 (0x18), region = 40 }
  0x18 PF: > { %v820_v1 = vld [vmem:[%s950_s28 + $0x4] ss:$8 sps:$4 sm:$0xff]   ;;  %v822_v2 = vld [vmem:[%s950_s28] ss:$8 sps:$4 sm:$0xff]   ;;  %v823_v3 = vld [vmem:[%s950_s28 + $0x14] ss:$8 sps:$4 sm:$0xff]  }
  0x19   : > { %531 = vmatprep.subr.bf16.mxu0 %v820_v1  ;;  %v825_v4 = vld [vmem:[%s950_s28 + $0x10] ss:$8 sps:$4 sm:$0xff]   ;;  %v826_v5 = vld [vmem:[%s950_s28 + $0x24] ss:$8 sps:$4 sm:$0xff]   ;;  %v828_v6 = vld [vmem:[%s950_s28 + $0x20] ss:$8 sps:$4 sm:$0xff]  }
  0x1a   : > { %532 = vmatpush1.bf16.msra.mxu0 %v822_v2  ;;  %v829_v7 = vld [vmem:[%s950_s28 + $0x34] ss:$8 sps:$4 sm:$0xff]   ;;  %v831_v8 = vld [vmem:[%s950_s28 + $0x30] ss:$8 sps:$4 sm:$0xff]   ;;  %v832_v9 = vld [vmem:[%s950_s28 + $0x44] ss:$8 sps:$4 sm:$0xff]  }
  0x1b   : > { %533 = vmatprep.subr.bf16.mxu0 %v823_v3  ;;  %v834_v10 = vld [vmem:[%s950_s28 + $0x40] ss:$8 sps:$4 sm:$0xff]   ;;  %v835_v11 = vld [vmem:[%s950_s28 + $0x54] ss:$8 sps:$4 sm:$0xff]   ;;  %v837_v12 = vld [vmem:[%s950_s28 + $0x50] ss:$8 sps:$4 sm:$0xff]  }
  0x1c   : > { %v838_v13 = vld [vmem:[%s950_s28 + $0x64] ss:$8 sps:$4 sm:$0xff]   ;;  %v840_v16 = vld [vmem:[%s950_s28 + $0x60] ss:$8 sps:$4 sm:$0xff]   ;;  %v841_v17 = vld [vmem:[%s950_s28 + $0x74] ss:$8 sps:$4 sm:$0xff]  }
  0x1d   : > { %v331_v14 = vld [vmem:[%s945_s24] sm:$0xff]  ;;  %v843_v18 = vld [vmem:[%s950_s28 + $0x70] ss:$8 sps:$4 sm:$0xff]   ;;  %v847_v21 = vld [vmem:[%s950_s28 + $0x94] ss:$8 sps:$4 sm:$0xff]   ;;  %p789_p7 = scmp.ne.s32.totalorder %s884_s15, 8 }
  0x1e   : > { %534 = vmatpush1.bf16.msra.mxu0 %v825_v4  ;;  %v756_v15 = vcombine.high %v331_v14, %v331_v14  ;;  %v844_v19 = vld [vmem:[%s950_s28 + $0x84] ss:$8 sps:$4 sm:$0xff]   ;;  %v846_v20 = vld [vmem:[%s950_s28 + $0x80] ss:$8 sps:$4 sm:$0xff]   ;;  %v849_v22 = vld [vmem:[%s950_s28 + $0x90] ss:$8 sps:$4 sm:$0xff]   ;;  %v755_v35 = vcombine.low %v331_v14, %v331_v14  ;;  %v584_v44 = vlaneseq (!%p789_p7) }
  0x1f   : > { %535 = vmatprep.subr.bf16.mxu0 %v826_v5  ;;  %v850_v23 = vld [vmem:[%s950_s28 + $0xa4] ss:$8 sps:$4 sm:$0xff]   ;;  %v852_v24 = vld [vmem:[%s950_s28 + $0xa0] ss:$8 sps:$4 sm:$0xff]   ;;  %v853_v25 = vld [vmem:[%s950_s28 + $0xb4] ss:$8 sps:$4 sm:$0xff]  }
  0x20   : > { %563 = vmatprep.mubr.bf16.mxu0 %v756_v15  ;;  %v855_v26 = vld [vmem:[%s950_s28 + $0xb0] ss:$8 sps:$4 sm:$0xff]   ;;  %v856_v27 = vld [vmem:[%s950_s28 + $0xc4] ss:$8 sps:$4 sm:$0xff]   ;;  %v858_v28 = vld [vmem:[%s950_s28 + $0xc0] ss:$8 sps:$4 sm:$0xff]  }
  0x21   : > { %v859_v29 = vld [vmem:[%s950_s28 + $0xd4] ss:$8 sps:$4 sm:$0xff]   ;;  %v861_v30 = vld [vmem:[%s950_s28 + $0xd0] ss:$8 sps:$4 sm:$0xff]   ;;  %v862_v31 = vld [vmem:[%s950_s28 + $0xe4] ss:$8 sps:$4 sm:$0xff]  }
  0x22   : > { %536 = vmatpush1.bf16.msra.mxu0 %v828_v6  ;;  %v864_v32 = vld [vmem:[%s950_s28 + $0xe0] ss:$8 sps:$4 sm:$0xff]   ;;  %v865_v33 = vld [vmem:[%s950_s28 + $0xf4] ss:$8 sps:$4 sm:$0xff]   ;;  %v867_v34 = vld [vmem:[%s950_s28 + $0xf0] ss:$8 sps:$4 sm:$0xff]  }
  0x23   : > { %537 = vmatprep.subr.bf16.mxu0 %v829_v7  ;;  %v329_v36 = vld [vmem:[#allocation2] sm:$0xff]  ;;  %v330_v37 = vld [vmem:[#allocation2 + $0x8] sm:$0xff]  ;;  %v585_v45 = vshrl.u32 (!%p789_p7), %v584_v44, 7 }
  0x24   : > { %v582_v46 = vld [vmem:[%s1010_s2] sm:$0x3] (!%p789_p7) }
  0x25   : > { %v596_v47 = vld [vmem:[%s1011_s3] sm:$0x3] (!%p789_p7)  ;;  %v586_v48 = vsub.s32 (!%p789_p7), 0, %v585_v45  ;;  %v590_v49 = vsub.s32 (!%p789_p7), 1, %v585_v45 }
  0x26   : > { %538 = vmatpush1.bf16.msra.mxu0 %v831_v8 }
  0x27   : > { %539 = vmatprep.subr.bf16.mxu0 %v832_v9  ;;  %v587_v52 = vrot.slane (!%p789_p7), %v582_v46, %v586_v48  ;;  %v601_v53 = vrot.slane (!%p789_p7), %v596_v47, %v586_v48  ;;  %v591_v54 = vrot.slane (!%p789_p7), %v582_v46, %v590_v49  ;;  %v605_v55 = vrot.slane (!%p789_p7), %v596_v47, %v590_v49 }
  0x2a   : > { %540 = vmatpush1.bf16.msra.mxu0 %v834_v10 }
  0x2b   : > { %541 = vmatprep.subr.bf16.mxu0 %v835_v11 }
  0x2e   : > { %542 = vmatpush1.bf16.msra.mxu0 %v837_v12 }
  0x2f   : > { %543 = vmatprep.subr.bf16.mxu0 %v838_v13 }
  0x32   : > { %544 = vmatpush1.bf16.msra.mxu0 %v840_v16 }
  0x33   : > { %545 = vmatprep.subr.bf16.mxu0 %v841_v17 }
  0x36   : > { %546 = vmatpush1.bf16.msra.mxu0 %v843_v18 }
  0x37   : > { %547 = vmatprep.subr.bf16.mxu0 %v844_v19 }
  0x3a   : > { %548 = vmatpush1.bf16.msra.mxu0 %v846_v20 }
  0x3b   : > { %549 = vmatprep.subr.bf16.mxu0 %v847_v21 }
  0x3e   : > { %550 = vmatpush1.bf16.msra.mxu0 %v849_v22 }
  0x3f   : > { %551 = vmatprep.subr.bf16.mxu0 %v850_v23 }
  0x42   : > { %552 = vmatpush1.bf16.msra.mxu0 %v852_v24 }
  0x43   : > { %553 = vmatprep.subr.bf16.mxu0 %v853_v25 }
  0x46   : > { %554 = vmatpush1.bf16.msra.mxu0 %v855_v26 }
  0x47   : > { %555 = vmatprep.subr.bf16.mxu0 %v856_v27 }
  0x4a   : > { %556 = vmatpush1.bf16.msra.mxu0 %v858_v28 }
  0x4b   : > { %557 = vmatprep.subr.bf16.mxu0 %v859_v29 }
  0x4e   : > { %558 = vmatpush1.bf16.msra.mxu0 %v861_v30 }
  0x4f   : > { %559 = vmatprep.subr.bf16.mxu0 %v862_v31 }
  0x52   : > { %560 = vmatpush1.bf16.msra.mxu0 %v864_v32 }
  0x53   : > { %561 = vmatprep.subr.bf16.mxu0 %v865_v33 }
  0x56   : > { %562 = vmatpush1.bf16.msra.mxu0 %v867_v34 }
  0x59   : > { %564 = vmatmul.mubr.bf16.vlgmr.msra.gmra.mrb[0].mxu0 %v755_v35 }
 0x12a   : > { %579 = sbr.rel (%p789_p7) target bundleno = 319 (0x13f), region = 44 }
 0x12c   : > { %v565_v38 = vpop.f32.mrb[0].mxu0 }
 0x12d   : > { %v572_v39 = vadd.f32 %v565_v38, %v329_v36  ;;  %v567_v40 = vpop.f32.mrb[1].mxu0 }
 0x12e   : > { %v573_v41 = vadd.f32 %v567_v40, %v330_v37  ;;  %v569_v42 = vpop.f32.mrb[2].mxu0 }
 0x12f   : > { %574 = vst [vmem:[#allocation2] sm:$0xff] %v572_v39  ;;  %v570_v43 = vpop.f32.mrb[3].mxu0 }
 0x130   : > { %575 = vst [vmem:[#allocation2 + $0x8] sm:$0xff] %v573_v41 }
 0x136   : > { %v580_v50 = vld [vmem:[#allocation2] sm:$0xff] }
 0x137   : > { %v581_v51 = vld [vmem:[#allocation2 + $0x8] sm:$0xff]  ;;  %v594_v56 = vmul.f32 %v587_v52, %v580_v50 }
 0x138   : > { %v595_v57 = vmul.f32 %v591_v54, %v581_v51 }
 0x139   : > { %v608_v58 = vadd.f32 %v601_v53, %v594_v56 }
 0x13a   : > { %v609_v59 = vadd.f32 %v605_v55, %v595_v57 }
 0x13b   : > { %v610_v60 = vmax.f32 %v608_v58, 0.0 }
 0x13c   : > { %v611_v61 = vmax.f32 %v609_v59, 0.0 }
 0x13d   : > { %612 = vst [vmem:[%s1012_s4] sm:$0xff] %v610_v60 }
 0x13e   : > { %613 = vst [vmem:[%s1012_s4 + $0x8] sm:$0xff] %v611_v61 }
 0x13f PF: > { %s14_s17 = sadd.s32 1, %s892_s17   ;;  %s1013_s15 = smov %s888_s16 }
 0x140   : > { %p11_p8 = scmp.ge.s32.totalorder %s14_s17, 11   ;;  %s1014_s16 = smov %s1016_s18 }
 0x142   :  { %13 = sbr.rel (!%p11_p8) target bundleno = 2 (0x2), region = 83 }

// kernel: fish_classifier_forward.39
= control target key start
LH: loop header
LB: loop body
LE: loop exit
PB: predicated region body
PF: predicated region fallthrough
CT: control target
= control target key end

     0   :  { %s1164_s15 = smov 0   ;;  %s1166_s16 = smov 0   ;;  %s1398_s0 = inlined_call_operand.vmem [shape: bf16[2,2304], index: 0, kind: input, shape index: {}]   ;;  %s1399_s1 = inlined_call_operand.vmem [shape: bf16[2304,512], index: 1, kind: input, shape index: {}]   ;;  %s1400_s2 = inlined_call_operand.vmem [shape: f32[1,512], index: 2, kind: input, shape index: {}]   ;;  %s1401_s3 = inlined_call_operand.vmem [shape: f32[1,512], index: 3, kind: input, shape index: {}]   ;;  %s1402_s4 = inlined_call_operand.vmem [shape: f32[2,512], index: 4, kind: output, shape index: {}]  }
   0x1   :  { %s1168_s17 = smov 0   ;;  %s1170_s18 = smov 0  }
   0x2   :  { %s1172_s19 = smov 0   ;;  %s1174_s20 = smov 0  }
   0x3   :  { %s1176_s21 = smov 0  }
   0x4 LB: > { %s26_s22 = sadd.s32 1, %s1126_s19  ;;  %s29_s23 = sadd.s32 1, %s1130_s20  ;;  %s1134_s21 = sphi %s1176_s21, %s14_s21   ;;  %s1130_s20 = sphi %s1174_s20, %s1408_s20   ;;  %s1126_s19 = sphi %s1172_s19, %s1407_s19   ;;  %s1122_s18 = sphi %s1170_s18, %s1406_s18   ;;  %s1118_s17 = sphi %s1168_s17, %s1405_s17   ;;  %s1114_s16 = sphi %s1166_s16, %s1404_s16   ;;  %s1110_s15 = sphi %s1164_s15, %s1403_s15  }
   0x5   : > { %p27_p0 = scmp.ge.s32.totalorder %s26_s22, 9  ;;  %p77_p1 = scmp.ne.s32.totalorder %s1114_s16, %s1110_s15 }
   0x6   : > { %p78_p2 = scmp.eq.s32.totalorder %s1134_s21, 0  ;;  %s70_s27 = sadd.s32 1, %s1114_s16 }
   0x7   : > { %s1410_s22 = smov (%p27_p0, %s26_s22), 0  ;;  %s1412_s23 = smov (!%p27_p0, %s29_s23), %s1130_s20 }
   0x8   : > { %p79_p3 = por %p78_p2, %p77_p1  ;;  %p31_p4 = scmp.ge.s32.totalorder %s1412_s23, 2 }
   0x9   : > { %s65_s24 = ssub.s32 %s1126_s19, %s1410_s22  ;;  %p922_p6 = scmp.ge.s32.totalorder %s1134_s21, 18 }
   0xa   : > { %s1414_s23 = smov (%p31_p4, %s1412_s23), 0 }
   0xb   : > { %s66_s25 = ssub.s32 %s1130_s20, %s1414_s23  ;;  %183 = sbr.rel (%p922_p6) target bundleno = 41 (0x29), region = 16 }
   0xc   : > { %s67_s26 = sor.u32 %s66_s25, %s65_s24 }
   0xd   : > { %p68_p5 = scmp.eq.s32.totalorder %s67_s26, 0 }
   0xf   : > { %s1215_s28 = scalar_select %p68_p5, %s1114_s16, %s70_s27  }
  0x12   : > { %198 = sbr.rel (!%p79_p3) target bundleno = 41 (0x29), region = 24  ;;  %s200_s29 = sand.u32 (%p79_p3), 1, %s1114_s16  }
  0x13   : > { %s925_s30 = sshll.u32 (%p79_p3), %s1130_s20, 1  ;;  %s923_s5 = sshll.u32 (%p79_p3), %s200_s29, 8 }
  0x14   : > { %s972_s6 = sshll.u32 (%p79_p3), %s1126_s19, 7  ;;  %s1229_s12 = scalar_lea.vmem (%p79_p3), [#allocation3], %s923_s5 }
  0x15   : > { %s206_s7 = sadd.s32 (%p79_p3), %s972_s6, %s925_s30 }
  0x16   : > { %s927_s8 = sshll.u32 (%p79_p3), %s206_s7, 2 }
  0x17   : > { %s1224_s11 = scalar_lea.vmem (%p79_p3), %s1399_s1, %s927_s8 }
  0x18   : > { %v298_v0 = vld [vmem:[%s1224_s11] sm:$0xff] (%p79_p3)  ;;  %v300_v1 = vld [vmem:[%s1224_s11 + $0x10] sm:$0xff] (%p79_p3) }
  0x19   : > { %v302_v2 = vld [vmem:[%s1224_s11 + $0x20] sm:$0xff]  ;;  %299 = vst [vmem:[%s1229_s12] sm:$0xff] %v298_v0  ;;  %301 = vst [vmem:[%s1229_s12 + $0x8] sm:$0xff] %v300_v1  ;;  %v304_v3 = vld [vmem:[%s1224_s11 + $0x30] sm:$0xff] }
  0x1a   : > { %303 = vst [vmem:[%s1229_s12 + $0x10] sm:$0xff] %v302_v2  ;;  %v306_v4 = vld [vmem:[%s1224_s11 + $0x40] sm:$0xff]  ;;  %v308_v5 = vld [vmem:[%s1224_s11 + $0x50] sm:$0xff]  ;;  %305 = vst [vmem:[%s1229_s12 + $0x18] sm:$0xff] %v304_v3 }
  0x1b   : > { %307 = vst [vmem:[%s1229_s12 + $0x20] sm:$0xff] %v306_v4  ;;  %309 = vst [vmem:[%s1229_s12 + $0x28] sm:$0xff] %v308_v5  ;;  %v310_v6 = vld [vmem:[%s1224_s11 + $0x60] sm:$0xff]  ;;  %v312_v7 = vld [vmem:[%s1224_s11 + $0x70] sm:$0xff] }
  0x1c   : > { %v314_v8 = vld [vmem:[%s1224_s11 + $0x80] sm:$0xff]  ;;  %311 = vst [vmem:[%s1229_s12 + $0x30] sm:$0xff] %v310_v6  ;;  %313 = vst [vmem:[%s1229_s12 + $0x38] sm:$0xff] %v312_v7  ;;  %v316_v9 = vld [vmem:[%s1224_s11 + $0x90] sm:$0xff] }
  0x1d   : > { %315 = vst [vmem:[%s1229_s12 + $0x40] sm:$0xff] %v314_v8  ;;  %v318_v10 = vld [vmem:[%s1224_s11 + $0xa0] sm:$0xff]  ;;  %v320_v11 = vld [vmem:[%s1224_s11 + $0xb0] sm:$0xff]  ;;  %317 = vst [vmem:[%s1229_s12 + $0x48] sm:$0xff] %v316_v9 }
  0x1e   : > { %319 = vst [vmem:[%s1229_s12 + $0x50] sm:$0xff] %v318_v10  ;;  %321 = vst [vmem:[%s1229_s12 + $0x58] sm:$0xff] %v320_v11  ;;  %v322_v12 = vld [vmem:[%s1224_s11 + $0xc0] sm:$0xff]  ;;  %v324_v13 = vld [vmem:[%s1224_s11 + $0xd0] sm:$0xff] }
  0x1f   : > { %v326_v14 = vld [vmem:[%s1224_s11 + $0xe0] sm:$0xff]  ;;  %323 = vst [vmem:[%s1229_s12 + $0x60] sm:$0xff] %v322_v12  ;;  %325 = vst [vmem:[%s1229_s12 + $0x68] sm:$0xff] %v324_v13  ;;  %v328_v15 = vld [vmem:[%s1224_s11 + $0xf0] sm:$0xff] }
  0x20   : > { %327 = vst [vmem:[%s1229_s12 + $0x70] sm:$0xff] %v326_v14  ;;  %v330_v16 = vld [vmem:[%s1224_s11 + $0x100] sm:$0xff]  ;;  %v332_v17 = vld [vmem:[%s1224_s11 + $0x110] sm:$0xff]  ;;  %329 = vst [vmem:[%s1229_s12 + $0x78] sm:$0xff] %v328_v15 }
  0x21   : > { %331 = vst [vmem:[%s1229_s12 + $0x80] sm:$0xff] %v330_v16  ;;  %333 = vst [vmem:[%s1229_s12 + $0x88] sm:$0xff] %v332_v17  ;;  %v334_v18 = vld [vmem:[%s1224_s11 + $0x120] sm:$0xff]  ;;  %v336_v19 = vld [vmem:[%s1224_s11 + $0x130] sm:$0xff] }
  0x22   : > { %v338_v20 = vld [vmem:[%s1224_s11 + $0x140] sm:$0xff]  ;;  %335 = vst [vmem:[%s1229_s12 + $0x90] sm:$0xff] %v334_v18  ;;  %337 = vst [vmem:[%s1229_s12 + $0x98] sm:$0xff] %v336_v19  ;;  %v340_v21 = vld [vmem:[%s1224_s11 + $0x150] sm:$0xff] }
  0x23   : > { %339 = vst [vmem:[%s1229_s12 + $0xa0] sm:$0xff] %v338_v20  ;;  %v342_v22 = vld [vmem:[%s1224_s11 + $0x160] sm:$0xff]  ;;  %v344_v23 = vld [vmem:[%s1224_s11 + $0x170] sm:$0xff]  ;;  %341 = vst [vmem:[%s1229_s12 + $0xa8] sm:$0xff] %v340_v21 }
  0x24   : > { %343 = vst [vmem:[%s1229_s12 + $0xb0] sm:$0xff] %v342_v22  ;;  %345 = vst [vmem:[%s1229_s12 + $0xb8] sm:$0xff] %v344_v23  ;;  %v346_v24 = vld [vmem:[%s1224_s11 + $0x180] sm:$0xff]  ;;  %v348_v25 = vld [vmem:[%s1224_s11 + $0x190] sm:$0xff] }
  0x25   : > { %v350_v26 = vld [vmem:[%s1224_s11 + $0x1a0] sm:$0xff]  ;;  %347 = vst [vmem:[%s1229_s12 + $0xc0] sm:$0xff] %v346_v24  ;;  %349 = vst [vmem:[%s1229_s12 + $0xc8] sm:$0xff] %v348_v25  ;;  %v352_v27 = vld [vmem:[%s1224_s11 + $0x1b0] sm:$0xff] }
  0x26   : > { %351 = vst [vmem:[%s1229_s12 + $0xd0] sm:$0xff] %v350_v26  ;;  %v354_v28 = vld [vmem:[%s1224_s11 + $0x1c0] sm:$0xff]  ;;  %v356_v29 = vld [vmem:[%s1224_s11 + $0x1d0] sm:$0xff]  ;;  %353 = vst [vmem:[%s1229_s12 + $0xd8] sm:$0xff] %v352_v27 }
  0x27   : > { %355 = vst [vmem:[%s1229_s12 + $0xe0] sm:$0xff] %v354_v28  ;;  %357 = vst [vmem:[%s1229_s12 + $0xe8] sm:$0xff] %v356_v29  ;;  %v358_v30 = vld [vmem:[%s1224_s11 + $0x1e0] sm:$0xff]  ;;  %v360_v31 = vld [vmem:[%s1224_s11 + $0x1f0] sm:$0xff] }
  0x28   : > { %359 = vst [vmem:[%s1229_s12 + $0xf0] sm:$0xff] %v358_v30  ;;  %361 = vst [vmem:[%s1229_s12 + $0xf8] sm:$0xff] %v360_v31 }
  0x29 PF: > { %p928_p7 = scmp.ge.s32.totalorder %s1134_s21, 1  ;;  %p382_p8 = scmp.lt.s32.totalorder %s1134_s21, 19 }
  0x2b   : > { %p383_p9 = pnand %p928_p7, %p382_p8 }
  0x2c   : > { %s389_s13 = sand.u32 (!%p383_p9), 1, %s1110_s15   ;;  %s930_s14 = sshll.u32 (!%p383_p9), %s1118_s17, 1 }
  0x2d   : > { %386 = sbr.rel (%p383_p9) target bundleno = 361 (0x169), region = 70  ;;  %s929_s24 = sshll.u32 (!%p383_p9), %s389_s13, 8 }
  0x2e   : > { %p437_p10 = scmp.lt.s32.totalorder (!%p383_p9), %s930_s14, 17  ;;  %s931_s25 = sshll.u32 (!%p383_p9), %s1122_s18, 1 }
  0x2f   : > { %p446_p11 = scmp.lt.s32.totalorder (!%p383_p9), %s931_s25, 3  ;;  %s1319_s12 = scalar_lea.vmem (!%p383_p9), [#allocation3], %s929_s24 }
  0x30   : > { %p935_p12 = scmp.ne.s32.totalorder (!%p383_p9), %s1118_s17, 0 }
  0x34   : > { %s1416_s14 = smov (!%p437_p10, %s930_s14), 17  ;;  %s1418_s25 = smov (!%p446_p11, %s931_s25), 3 }
  0x35   : > { %s441_s29 = scalar_lea.vmem %s1398_s0, %s1416_s14  ;;  %s448_s15 = scalar_lea.vmem %s1400_s2, %s1418_s25  ;;  %v1136_v32 = vmov (!%p935_p12), 0.0  }
  0x36   : > { %s453_s18 = scalar_lea.vmem %s1401_s3, %s1418_s25  ;;  %s934_s8 = sshll.u32 %s1418_s25, 1  ;;  %469 = vst [vmem:[#allocation2] sm:$0xf] (!%p935_p12), %v1136_v32 }
  0x37   : > { %s1317_s11 = scalar_lea.vmem %s1402_s4, %s934_s8  ;;  %468 = sbr.rel (%p935_p12) target bundleno = 62 (0x3e), region = 78 }
  0x3e PF: > { %v1032_v33 = vld [vmem:[%s1319_s12 + $0x4] ss:$8 sps:$4 sm:$0xff]   ;;  %v1034_v34 = vld [vmem:[%s1319_s12] ss:$8 sps:$4 sm:$0xff]   ;;  %v1035_v35 = vld [vmem:[%s1319_s12 + $0x14] ss:$8 sps:$4 sm:$0xff]   ;;  %v516_v44 = vlaneseq }
  0x3f   : > { %689 = vmatprep.subr.bf16.mxu0 %v1032_v33  ;;  %v1037_v36 = vld [vmem:[%s1319_s12 + $0x10] ss:$8 sps:$4 sm:$0xff]   ;;  %v1038_v37 = vld [vmem:[%s1319_s12 + $0x24] ss:$8 sps:$4 sm:$0xff]   ;;  %v1040_v38 = vld [vmem:[%s1319_s12 + $0x20] ss:$8 sps:$4 sm:$0xff]  }
  0x40   : > { %690 = vmatpush1.bf16.msra.mxu0 %v1034_v34  ;;  %v1041_v39 = vld [vmem:[%s1319_s12 + $0x34] ss:$8 sps:$4 sm:$0xff]   ;;  %v1043_v40 = vld [vmem:[%s1319_s12 + $0x30] ss:$8 sps:$4 sm:$0xff]   ;;  %v1044_v41 = vld [vmem:[%s1319_s12 + $0x44] ss:$8 sps:$4 sm:$0xff]  }
  0x41   : > { %691 = vmatprep.subr.bf16.mxu0 %v1035_v35  ;;  %v1137_v42 = vmov 1966171168   ;;  %v1046_v45 = vld [vmem:[%s1319_s12 + $0x40] ss:$8 sps:$4 sm:$0xff]   ;;  %v1047_v46 = vld [vmem:[%s1319_s12 + $0x54] ss:$8 sps:$4 sm:$0xff]  }
  0x42   : > { %v514_v43 = vunpack.c.l.s4 %v1137_v42  ;;  %v1333_v48 = vshrl.u32 %v516_v44, 7  ;;  %v1049_v49 = vld [vmem:[%s1319_s12 + $0x50] ss:$8 sps:$4 sm:$0xff]   ;;  %v1050_v50 = vld [vmem:[%s1319_s12 + $0x64] ss:$8 sps:$4 sm:$0xff]   ;;  %p969_p13 = scmp.ne.s32.totalorder %s1118_s17, 8 }
  0x43   : > { %v936_v52 = vld.sshfl [vmem:[%s441_s29] sm:$0x11 pattern:$0x75316420]  ;;  %v1052_v54 = vld [vmem:[%s1319_s12 + $0x60] ss:$8 sps:$4 sm:$0xff]  }
  0x44   : > { %692 = vmatpush1.bf16.msra.mxu0 %v1037_v36  ;;  %v515_v47 = vunpack.c.0.s8 %v514_v43  ;;  %v512_v53 = vcombine.high %v936_v52, %v936_v52  ;;  %v1053_v55 = vld [vmem:[%s1319_s12 + $0x74] ss:$8 sps:$4 sm:$0xff]   ;;  %v1055_v57 = vld [vmem:[%s1319_s12 + $0x70] ss:$8 sps:$4 sm:$0xff]   ;;  %v1056_v58 = vld [vmem:[%s1319_s12 + $0x84] ss:$8 sps:$4 sm:$0xff]  }
  0x45   : > { %693 = vmatprep.subr.bf16.mxu0 %v1038_v37  ;;  %v1058_v59 = vld [vmem:[%s1319_s12 + $0x80] ss:$8 sps:$4 sm:$0xff]   ;;  %v1059_v60 = vld [vmem:[%s1319_s12 + $0x94] ss:$8 sps:$4 sm:$0xff]   ;;  %v1061_v61 = vld [vmem:[%s1319_s12 + $0x90] ss:$8 sps:$4 sm:$0xff]  }
  0x46   : > { %v518_v51 = vsub.s32 %v515_v47, %v1333_v48  ;;  %v1062_v62 = vld [vmem:[%s1319_s12 + $0xa4] ss:$8 sps:$4 sm:$0xff]   ;;  %v1064_v63 = vld [vmem:[%s1319_s12 + $0xa0] ss:$8 sps:$4 sm:$0xff]   ;;  %v1065_v0 = vld [vmem:[%s1319_s12 + $0xb4] ss:$8 sps:$4 sm:$0xff]  }
  0x47   : > { %v1067_v1 = vld [vmem:[%s1319_s12 + $0xb0] ss:$8 sps:$4 sm:$0xff]   ;;  %v1068_v2 = vld [vmem:[%s1319_s12 + $0xc4] ss:$8 sps:$4 sm:$0xff]   ;;  %v1070_v3 = vld [vmem:[%s1319_s12 + $0xc0] ss:$8 sps:$4 sm:$0xff]  }
  0x48   : > { %694 = vmatpush1.bf16.msra.mxu0 %v1040_v38  ;;  %v526_v56 = vrot.slane %v512_v53, %v518_v51  ;;  %v1071_v4 = vld [vmem:[%s1319_s12 + $0xd4] ss:$8 sps:$4 sm:$0xff]   ;;  %v1073_v5 = vld [vmem:[%s1319_s12 + $0xd0] ss:$8 sps:$4 sm:$0xff]   ;;  %v1074_v6 = vld [vmem:[%s1319_s12 + $0xe4] ss:$8 sps:$4 sm:$0xff]   ;;  %v519_v10 = vrot.slane %v936_v52, %v518_v51 }
  0x49   : > { %695 = vmatprep.subr.bf16.mxu0 %v1041_v39  ;;  %v1076_v7 = vld [vmem:[%s1319_s12 + $0xe0] ss:$8 sps:$4 sm:$0xff]   ;;  %v1077_v8 = vld [vmem:[%s1319_s12 + $0xf4] ss:$8 sps:$4 sm:$0xff]   ;;  %v1079_v9 = vld [vmem:[%s1319_s12 + $0xf0] ss:$8 sps:$4 sm:$0xff]  }
  0x4a   : > { %721 = vmatprep.mubr.bf16.mxu0 %v526_v56  ;;  %v1138_v11 = vmov 1983009808   ;;  %v470_v19 = vld [vmem:[#allocation2] sm:$0xf]  ;;  %v752_v24 = vsub.s32 (!%p969_p13), 0, %v1333_v48  ;;  %v756_v25 = vsub.s32 (!%p969_p13), 1, %v1333_v48 }
  0x4b   : > { %v734_v12 = vunpack.c.l.s4 %v1138_v11  ;;  %v748_v23 = vld [vmem:[%s448_s15] sm:$0x3] (!%p969_p13) }
  0x4c   : > { %696 = vmatpush1.bf16.msra.mxu0 %v1043_v40  ;;  %v768_v26 = vld [vmem:[%s453_s18] sm:$0x3] (!%p969_p13)  ;;  %v753_v27 = vrot.slane (!%p969_p13), %v748_v23, %v752_v24  ;;  %v757_v28 = vrot.slane (!%p969_p13), %v748_v23, %v756_v25 }
  0x4d   : > { %697 = vmatprep.subr.bf16.mxu0 %v1044_v41  ;;  %v735_v13 = vunpack.c.0.s8 %v734_v12  ;;  %v773_v29 = vrot.slane (!%p969_p13), %v768_v26, %v752_v24  ;;  %v777_v30 = vrot.slane (!%p969_p13), %v768_v26, %v756_v25 }
  0x4e   : > { %v758_v31 = vcombine.low (!%p969_p13), %v753_v27, %v757_v28 }
  0x4f   : > { %v738_v15 = vsub.s32 %v735_v13, %v1333_v48  ;;  %v778_v32 = vcombine.low (!%p969_p13), %v773_v29, %v777_v30 }
  0x50   : > { %698 = vmatpush1.bf16.msra.mxu0 %v1046_v45 }
  0x51   : > { %699 = vmatprep.subr.bf16.mxu0 %v1047_v46  ;;  %v765_v34 = vrot.slane (!%p969_p13), %v758_v31, %v738_v15  ;;  %v785_v35 = vrot.slane (!%p969_p13), %v778_v32, %v738_v15 }
  0x54   : > { %700 = vmatpush1.bf16.msra.mxu0 %v1049_v49 }
  0x55   : > { %701 = vmatprep.subr.bf16.mxu0 %v1050_v50 }
  0x58   : > { %702 = vmatpush1.bf16.msra.mxu0 %v1052_v54 }
  0x59   : > { %703 = vmatprep.subr.bf16.mxu0 %v1053_v55 }
  0x5c   : > { %704 = vmatpush1.bf16.msra.mxu0 %v1055_v57 }
  0x5d   : > { %705 = vmatprep.subr.bf16.mxu0 %v1056_v58 }
  0x60   : > { %706 = vmatpush1.bf16.msra.mxu0 %v1058_v59 }
  0x61   : > { %707 = vmatprep.subr.bf16.mxu0 %v1059_v60 }
  0x64   : > { %708 = vmatpush1.bf16.msra.mxu0 %v1061_v61 }
  0x65   : > { %709 = vmatprep.subr.bf16.mxu0 %v1062_v62 }
  0x68   : > { %710 = vmatpush1.bf16.msra.mxu0 %v1064_v63 }
  0x69   : > { %711 = vmatprep.subr.bf16.mxu0 %v1065_v0 }
  0x6c   : > { %712 = vmatpush1.bf16.msra.mxu0 %v1067_v1 }
  0x6d   : > { %713 = vmatprep.subr.bf16.mxu0 %v1068_v2 }
  0x70   : > { %714 = vmatpush1.bf16.msra.mxu0 %v1070_v3 }
  0x71   : > { %715 = vmatprep.subr.bf16.mxu0 %v1071_v4 }
  0x74   : > { %716 = vmatpush1.bf16.msra.mxu0 %v1073_v5 }
  0x75   : > { %717 = vmatprep.subr.bf16.mxu0 %v1074_v6 }
  0x78   : > { %718 = vmatpush1.bf16.msra.mxu0 %v1076_v7 }
  0x79   : > { %719 = vmatprep.subr.bf16.mxu0 %v1077_v8 }
  0x7c   : > { %720 = vmatpush1.bf16.msra.mxu0 %v1079_v9 }
  0x7f   : > { %722 = vmatmul.mubr.bf16.vlgmr.msra.gmra.mrb[0].mxu0 %v519_v10 }
 0x152   : > { %v723_v14 = vpop.f32.mrb[0].mxu0 }
 0x153   : > { %v725_v16 = vpop.f32.mrb[1].mxu0 }
 0x154   : > { %v732_v17 = vcombine.low %v723_v14, %v725_v16  ;;  %v727_v18 = vpop.f32.mrb[2].mxu0  ;;  %746 = sbr.rel (%p969_p13) target bundleno = 361 (0x169), region = 82 }
 0x155   : > { %v728_v20 = vpop.f32.mrb[3].mxu0 }
 0x156   : > { %v739_v21 = vrot.slane %v732_v17, %v738_v15 }
 0x158   : > { %v741_v22 = vadd.f32 %v739_v21, %v470_v19 }
 0x15a   : > { %742 = vst [vmem:[#allocation2] sm:$0xf] %v741_v22 }
 0x161   : > { %v747_v33 = vld [vmem:[#allocation2] sm:$0xf] }
 0x162   : > { %v767_v36 = vmul.f32 %v765_v34, %v747_v33 }
 0x164   : > { %v787_v37 = vadd.f32 %v785_v35, %v767_v36 }
 0x166   : > { %v788_v38 = vmax.f32 %v787_v37, 0.0 }
 0x168   : > { %789 = vst [vmem:[%s1317_s11] sm:$0xf] %v788_v38 }
 0x169 PF: > { %s14_s21 = sadd.s32 1, %s1134_s21   ;;  %s1403_s15 = smov %s1114_s16 }
 0x16a   : > { %p11_p0 = scmp.ge.s32.totalorder %s14_s21, 20   ;;  %s1404_s16 = smov %s1215_s28 }
 0x16b   : > { %s1405_s17 = smov %s1126_s19  ;;  %s1406_s18 = smov %s1130_s20 }
 0x16c   : > { %s1407_s19 = smov %s1410_s22  ;;  %s1408_s20 = smov %s1414_s23 }
 0x16d   :  { %13 = sbr.rel (!%p11_p0) target bundleno = 4 (0x4), region = 126 }

// kernel: fish_classifier_forward.40
= control target key start
LH: loop header
LB: loop body
LE: loop exit
PB: predicated region body
PF: predicated region fallthrough
CT: control target
= control target key end

     0   :  { %s1126_s15 = smov 0   ;;  %s1128_s16 = smov 0   ;;  %s1318_s0 = inlined_call_operand.vmem [shape: bf16[2,256], index: 0, kind: input, shape index: {}]   ;;  %s1319_s1 = inlined_call_operand.vmem [shape: bf16[256,512], index: 1, kind: input, shape index: {}]   ;;  %s1320_s2 = inlined_call_operand.vmem [shape: f32[1,512], index: 2, kind: input, shape index: {}]   ;;  %s1321_s3 = inlined_call_operand.vmem [shape: f32[1,512], index: 3, kind: input, shape index: {}]   ;;  %s1322_s4 = inlined_call_operand.vmem [shape: f32[2,512], index: 4, kind: output, shape index: {}]  }
   0x1   :  { %s1130_s17 = smov 0   ;;  %s1132_s18 = smov 0  }
   0x2   :  { %s1134_s19 = smov 0  }
   0x3 LB: > { %s29_s20 = sadd.s32 1, %s1092_s18  ;;  %p77_p1 = scmp.ne.s32.totalorder %s1084_s16, %s1080_s15  ;;  %s1096_s19 = sphi %s1134_s19, %s14_s19   ;;  %s1092_s18 = sphi %s1132_s18, %s1326_s18   ;;  %s1088_s17 = sphi %s1130_s17, %s1325_s17   ;;  %s1084_s16 = sphi %s1128_s16, %s1324_s16   ;;  %s1080_s15 = sphi %s1126_s15, %s1323_s15  }
   0x4   : > { %p31_p0 = scmp.ge.s32.totalorder %s29_s20, 2  ;;  %p78_p2 = scmp.eq.s32.totalorder %s1096_s19, 0 }
   0x5   : > { %s70_s22 = sadd.s32 1, %s1084_s16  ;;  %p921_p5 = scmp.ge.s32.totalorder %s1096_s19, 2 }
   0x6   : > { %s1328_s20 = smov (%p31_p0, %s29_s20), 0  ;;  %p79_p3 = por %p78_p2, %p77_p1 }
   0x7   : > { %s66_s21 = ssub.s32 %s1092_s18, %s1328_s20  ;;  %195 = sbr.rel (%p921_p5) target bundleno = 34 (0x22), region = 20 }
   0x8   : > { %p68_p4 = scmp.eq.s32.totalorder %s66_s21, 0 }
   0xa   : > { %s1161_s23 = scalar_select %p68_p4, %s1084_s16, %s70_s22  }
   0xe   : > { %198 = sbr.rel (!%p79_p3) target bundleno = 34 (0x22), region = 24  ;;  %s200_s24 = sand.u32 (%p79_p3), 1, %s1084_s16  }
   0xf   : > { %s966_s25 = sshll.u32 (%p79_p3), %s1092_s18, 3  ;;  %s922_s26 = sshll.u32 (%p79_p3), %s200_s24, 8 }
  0x10   : > { %s1169_s29 = scalar_lea.vmem (%p79_p3), %s1319_s1, %s966_s25  ;;  %s1174_s30 = scalar_lea.vmem (%p79_p3), [#allocation3], %s922_s26 }
  0x11   : > { %v298_v0 = vld [vmem:[%s1169_s29] sm:$0xff] (%p79_p3)  ;;  %v300_v1 = vld [vmem:[%s1169_s29 + $0x10] sm:$0xff] (%p79_p3) }
  0x12   : > { %v302_v2 = vld [vmem:[%s1169_s29 + $0x20] sm:$0xff] (%p79_p3)  ;;  %299 = vst [vmem:[%s1174_s30] sm:$0xff] (%p79_p3), %v298_v0  ;;  %301 = vst [vmem:[%s1174_s30 + $0x8] sm:$0xff] (%p79_p3), %v300_v1  ;;  %v304_v3 = vld [vmem:[%s1169_s29 + $0x30] sm:$0xff] (%p79_p3) }
  0x13   : > { %303 = vst [vmem:[%s1174_s30 + $0x10] sm:$0xff] (%p79_p3), %v302_v2  ;;  %v306_v4 = vld [vmem:[%s1169_s29 + $0x40] sm:$0xff] (%p79_p3)  ;;  %v308_v5 = vld [vmem:[%s1169_s29 + $0x50] sm:$0xff] (%p79_p3)  ;;  %305 = vst [vmem:[%s1174_s30 + $0x18] sm:$0xff] (%p79_p3), %v304_v3 }
  0x14   : > { %307 = vst [vmem:[%s1174_s30 + $0x20] sm:$0xff] (%p79_p3), %v306_v4  ;;  %309 = vst [vmem:[%s1174_s30 + $0x28] sm:$0xff] (%p79_p3), %v308_v5  ;;  %v310_v6 = vld [vmem:[%s1169_s29 + $0x60] sm:$0xff] (%p79_p3)  ;;  %v312_v7 = vld [vmem:[%s1169_s29 + $0x70] sm:$0xff] (%p79_p3) }
  0x15   : > { %v314_v8 = vld [vmem:[%s1169_s29 + $0x80] sm:$0xff]  ;;  %311 = vst [vmem:[%s1174_s30 + $0x30] sm:$0xff] %v310_v6  ;;  %313 = vst [vmem:[%s1174_s30 + $0x38] sm:$0xff] %v312_v7  ;;  %v316_v9 = vld [vmem:[%s1169_s29 + $0x90] sm:$0xff] }
  0x16   : > { %315 = vst [vmem:[%s1174_s30 + $0x40] sm:$0xff] %v314_v8  ;;  %v318_v10 = vld [vmem:[%s1169_s29 + $0xa0] sm:$0xff]  ;;  %v320_v11 = vld [vmem:[%s1169_s29 + $0xb0] sm:$0xff]  ;;  %317 = vst [vmem:[%s1174_s30 + $0x48] sm:$0xff] %v316_v9 }
  0x17   : > { %319 = vst [vmem:[%s1174_s30 + $0x50] sm:$0xff] %v318_v10  ;;  %321 = vst [vmem:[%s1174_s30 + $0x58] sm:$0xff] %v320_v11  ;;  %v322_v12 = vld [vmem:[%s1169_s29 + $0xc0] sm:$0xff]  ;;  %v324_v13 = vld [vmem:[%s1169_s29 + $0xd0] sm:$0xff] }
  0x18   : > { %v326_v14 = vld [vmem:[%s1169_s29 + $0xe0] sm:$0xff]  ;;  %323 = vst [vmem:[%s1174_s30 + $0x60] sm:$0xff] %v322_v12  ;;  %325 = vst [vmem:[%s1174_s30 + $0x68] sm:$0xff] %v324_v13  ;;  %v328_v15 = vld [vmem:[%s1169_s29 + $0xf0] sm:$0xff] }
  0x19   : > { %327 = vst [vmem:[%s1174_s30 + $0x70] sm:$0xff] %v326_v14  ;;  %v330_v16 = vld [vmem:[%s1169_s29 + $0x100] sm:$0xff]  ;;  %v332_v17 = vld [vmem:[%s1169_s29 + $0x110] sm:$0xff]  ;;  %329 = vst [vmem:[%s1174_s30 + $0x78] sm:$0xff] %v328_v15 }
  0x1a   : > { %331 = vst [vmem:[%s1174_s30 + $0x80] sm:$0xff] %v330_v16  ;;  %333 = vst [vmem:[%s1174_s30 + $0x88] sm:$0xff] %v332_v17  ;;  %v334_v18 = vld [vmem:[%s1169_s29 + $0x120] sm:$0xff]  ;;  %v336_v19 = vld [vmem:[%s1169_s29 + $0x130] sm:$0xff] }
  0x1b   : > { %v338_v20 = vld [vmem:[%s1169_s29 + $0x140] sm:$0xff]  ;;  %335 = vst [vmem:[%s1174_s30 + $0x90] sm:$0xff] %v334_v18  ;;  %337 = vst [vmem:[%s1174_s30 + $0x98] sm:$0xff] %v336_v19  ;;  %v340_v21 = vld [vmem:[%s1169_s29 + $0x150] sm:$0xff] }
  0x1c   : > { %339 = vst [vmem:[%s1174_s30 + $0xa0] sm:$0xff] %v338_v20  ;;  %v342_v22 = vld [vmem:[%s1169_s29 + $0x160] sm:$0xff]  ;;  %v344_v23 = vld [vmem:[%s1169_s29 + $0x170] sm:$0xff]  ;;  %341 = vst [vmem:[%s1174_s30 + $0xa8] sm:$0xff] %v340_v21 }
  0x1d   : > { %343 = vst [vmem:[%s1174_s30 + $0xb0] sm:$0xff] %v342_v22  ;;  %345 = vst [vmem:[%s1174_s30 + $0xb8] sm:$0xff] %v344_v23  ;;  %v346_v24 = vld [vmem:[%s1169_s29 + $0x180] sm:$0xff]  ;;  %v348_v25 = vld [vmem:[%s1169_s29 + $0x190] sm:$0xff] }
  0x1e   : > { %v350_v26 = vld [vmem:[%s1169_s29 + $0x1a0] sm:$0xff]  ;;  %347 = vst [vmem:[%s1174_s30 + $0xc0] sm:$0xff] %v346_v24  ;;  %349 = vst [vmem:[%s1174_s30 + $0xc8] sm:$0xff] %v348_v25  ;;  %v352_v27 = vld [vmem:[%s1169_s29 + $0x1b0] sm:$0xff] }
  0x1f   : > { %351 = vst [vmem:[%s1174_s30 + $0xd0] sm:$0xff] %v350_v26  ;;  %v354_v28 = vld [vmem:[%s1169_s29 + $0x1c0] sm:$0xff]  ;;  %v356_v29 = vld [vmem:[%s1169_s29 + $0x1d0] sm:$0xff]  ;;  %353 = vst [vmem:[%s1174_s30 + $0xd8] sm:$0xff] %v352_v27 }
  0x20   : > { %355 = vst [vmem:[%s1174_s30 + $0xe0] sm:$0xff] %v354_v28  ;;  %357 = vst [vmem:[%s1174_s30 + $0xe8] sm:$0xff] %v356_v29  ;;  %v358_v30 = vld [vmem:[%s1169_s29 + $0x1e0] sm:$0xff]  ;;  %v360_v31 = vld [vmem:[%s1169_s29 + $0x1f0] sm:$0xff] }
  0x21   : > { %359 = vst [vmem:[%s1174_s30 + $0xf0] sm:$0xff] %v358_v30  ;;  %361 = vst [vmem:[%s1174_s30 + $0xf8] sm:$0xff] %v360_v31 }
  0x22 PF: > { %p925_p6 = scmp.ge.s32.totalorder %s1096_s19, 1  ;;  %p382_p7 = scmp.lt.s32.totalorder %s1096_s19, 3 }
  0x24   : > { %p383_p8 = pnand %p925_p6, %p382_p7 }
  0x25   : > { %s389_s5 = sand.u32 (!%p383_p8), 1, %s1080_s15   ;;  %v1243_v32 = vld.sshfl [vmem:[%s1318_s0] sm:$0x11 pattern:$0x75316420] (!%p383_p8)  ;;  %v516_v33 = vlaneseq (!%p383_p8)  ;;  %v1099_v10 = vmov (!%p383_p8), 0.0  }
  0x26   : > { %386 = sbr.rel (%p383_p8) target bundleno = 337 (0x151), region = 70  ;;  %s926_s8 = sshll.u32 (!%p383_p8), %s389_s5, 8  ;;  %v1098_v34 = vmov (!%p383_p8), 1966171168   ;;  %v512_v39 = vcombine.high (!%p383_p8), %v1243_v32, %v1243_v32  ;;  %469 = vst [vmem:[#allocation2] sm:$0xf] (!%p383_p8), %v1099_v10 }
  0x27   : > { %v514_v35 = vunpack.c.l.s4 (!%p383_p8), %v1098_v34  ;;  %v1245_v36 = vshrl.u32 (!%p383_p8), %v516_v33, 7  ;;  %s1247_s9 = scalar_lea.vmem (!%p383_p8), [#allocation3], %s926_s8  ;;  %s927_s10 = sshll.u32 (!%p383_p8), %s1088_s17, 1  ;;  %v1100_v11 = vmov (!%p383_p8), 1983009808  }
  0x28   : > { %v1010_v37 = vld [vmem:[%s1247_s9 + $0x4] ss:$8 sps:$4 sm:$0xff] (!%p383_p8)   ;;  %v1012_v38 = vld [vmem:[%s1247_s9] ss:$8 sps:$4 sm:$0xff] (!%p383_p8)   ;;  %v1013_v41 = vld [vmem:[%s1247_s9 + $0x14] ss:$8 sps:$4 sm:$0xff] (!%p383_p8)   ;;  %v734_v12 = vunpack.c.l.s4 (!%p383_p8), %v1100_v11 }
  0x29   : > { %v515_v40 = vunpack.c.0.s8 (!%p383_p8), %v514_v35  ;;  %689 = vmatprep.subr.bf16.mxu0 (!%p383_p8), %v1010_v37  ;;  %v1015_v42 = vld [vmem:[%s1247_s9 + $0x10] ss:$8 sps:$4 sm:$0xff] (!%p383_p8)   ;;  %v1016_v44 = vld [vmem:[%s1247_s9 + $0x24] ss:$8 sps:$4 sm:$0xff] (!%p383_p8)   ;;  %v1018_v46 = vld [vmem:[%s1247_s9 + $0x20] ss:$8 sps:$4 sm:$0xff] (!%p383_p8)  }
  0x2a   : > { %690 = vmatpush1.bf16.msra.mxu0 (!%p383_p8), %v1012_v38  ;;  %v1019_v47 = vld [vmem:[%s1247_s9 + $0x34] ss:$8 sps:$4 sm:$0xff] (!%p383_p8)   ;;  %v1021_v48 = vld [vmem:[%s1247_s9 + $0x30] ss:$8 sps:$4 sm:$0xff] (!%p383_p8)   ;;  %v1022_v49 = vld [vmem:[%s1247_s9 + $0x44] ss:$8 sps:$4 sm:$0xff] (!%p383_p8)   ;;  %v735_v13 = vunpack.c.0.s8 (!%p383_p8), %v734_v12 }
  0x2b   : > { %v518_v43 = vsub.s32 (!%p383_p8), %v515_v40, %v1245_v36  ;;  %691 = vmatprep.subr.bf16.mxu0 (!%p383_p8), %v1013_v41  ;;  %v1024_v50 = vld [vmem:[%s1247_s9 + $0x40] ss:$8 sps:$4 sm:$0xff] (!%p383_p8)   ;;  %v1025_v51 = vld [vmem:[%s1247_s9 + $0x54] ss:$8 sps:$4 sm:$0xff] (!%p383_p8)   ;;  %v1027_v52 = vld [vmem:[%s1247_s9 + $0x50] ss:$8 sps:$4 sm:$0xff] (!%p383_p8)  }
  0x2c   : > { %v1028_v53 = vld [vmem:[%s1247_s9 + $0x64] ss:$8 sps:$4 sm:$0xff] (!%p383_p8)   ;;  %v1030_v54 = vld [vmem:[%s1247_s9 + $0x60] ss:$8 sps:$4 sm:$0xff] (!%p383_p8)   ;;  %v1031_v55 = vld [vmem:[%s1247_s9 + $0x74] ss:$8 sps:$4 sm:$0xff] (!%p383_p8)   ;;  %v738_v15 = vsub.s32 (!%p383_p8), %v735_v13, %v1245_v36 }
  0x2d   : > { %v526_v45 = vrot.slane %v512_v39, %v518_v43  ;;  %v1033_v56 = vld [vmem:[%s1247_s9 + $0x70] ss:$8 sps:$4 sm:$0xff]   ;;  %v1034_v57 = vld [vmem:[%s1247_s9 + $0x84] ss:$8 sps:$4 sm:$0xff]   ;;  %v1036_v58 = vld [vmem:[%s1247_s9 + $0x80] ss:$8 sps:$4 sm:$0xff]   ;;  %v519_v9 = vrot.slane %v1243_v32, %v518_v43 }
  0x2e   : > { %692 = vmatpush1.bf16.msra.mxu0 %v1015_v42  ;;  %v1037_v59 = vld [vmem:[%s1247_s9 + $0x94] ss:$8 sps:$4 sm:$0xff]   ;;  %v1039_v60 = vld [vmem:[%s1247_s9 + $0x90] ss:$8 sps:$4 sm:$0xff]   ;;  %v1040_v61 = vld [vmem:[%s1247_s9 + $0xa4] ss:$8 sps:$4 sm:$0xff]  }
  0x2f   : > { %721 = vmatprep.mubr.bf16.mxu0 %v526_v45  ;;  %693 = vmatprep.subr.bf16.mxu0 %v1016_v44  ;;  %v1042_v62 = vld [vmem:[%s1247_s9 + $0xa0] ss:$8 sps:$4 sm:$0xff]   ;;  %v1043_v63 = vld [vmem:[%s1247_s9 + $0xb4] ss:$8 sps:$4 sm:$0xff]   ;;  %v1045_v0 = vld [vmem:[%s1247_s9 + $0xb0] ss:$8 sps:$4 sm:$0xff]  }
  0x30   : > { %v1046_v1 = vld [vmem:[%s1247_s9 + $0xc4] ss:$8 sps:$4 sm:$0xff]   ;;  %v1048_v2 = vld [vmem:[%s1247_s9 + $0xc0] ss:$8 sps:$4 sm:$0xff]   ;;  %v1049_v3 = vld [vmem:[%s1247_s9 + $0xd4] ss:$8 sps:$4 sm:$0xff]  }
  0x31   : > { %v1051_v4 = vld [vmem:[%s1247_s9 + $0xd0] ss:$8 sps:$4 sm:$0xff]   ;;  %v1052_v5 = vld [vmem:[%s1247_s9 + $0xe4] ss:$8 sps:$4 sm:$0xff]   ;;  %v1054_v6 = vld [vmem:[%s1247_s9 + $0xe0] ss:$8 sps:$4 sm:$0xff]  }
  0x32   : > { %694 = vmatpush1.bf16.msra.mxu0 %v1018_v46  ;;  %v1055_v7 = vld [vmem:[%s1247_s9 + $0xf4] ss:$8 sps:$4 sm:$0xff]   ;;  %v1057_v8 = vld [vmem:[%s1247_s9 + $0xf0] ss:$8 sps:$4 sm:$0xff]   ;;  %p446_p9 = scmp.lt.s32.totalorder %s927_s10, 3  ;;  %v751_v16 = vsub.s32 0, %v1245_v36 }
  0x33   : > { %695 = vmatprep.subr.bf16.mxu0 %v1019_v47  ;;  %v755_v17 = vsub.s32 1, %v1245_v36  ;;  %v470_v22 = vld [vmem:[#allocation2] sm:$0xf] }
  0x34   : > { %s1330_s10 = smov (!%p446_p9, %s927_s10), 3 }
  0x35   : > { %s448_s13 = scalar_lea.vmem %s1320_s2, %s1330_s10  ;;  %s453_s21 = scalar_lea.vmem %s1321_s3, %s1330_s10 }
  0x36   : > { %696 = vmatpush1.bf16.msra.mxu0 %v1021_v48  ;;  %v747_v19 = vld [vmem:[%s448_s13] sm:$0x3]  ;;  %s930_s17 = sshll.u32 %s1330_s10, 1 }
  0x37   : > { %697 = vmatprep.subr.bf16.mxu0 %v1022_v49  ;;  %v767_v23 = vld [vmem:[%s453_s21] sm:$0x3]  ;;  %v752_v26 = vrot.slane %v747_v19, %v751_v16  ;;  %v756_v27 = vrot.slane %v747_v19, %v755_v17  ;;  %s463_s25 = scalar_lea.vmem %s1322_s4, %s930_s17 }
  0x38   : > { %v772_v29 = vrot.slane %v767_v23, %v751_v16  ;;  %v776_v30 = vrot.slane %v767_v23, %v755_v17 }
  0x39   : > { %v757_v31 = vcombine.low %v752_v26, %v756_v27 }
  0x3a   : > { %698 = vmatpush1.bf16.msra.mxu0 %v1024_v50  ;;  %v777_v32 = vcombine.low %v772_v29, %v776_v30 }
  0x3b   : > { %699 = vmatprep.subr.bf16.mxu0 %v1025_v51  ;;  %v764_v33 = vrot.slane %v757_v31, %v738_v15 }
  0x3c   : > { %v784_v34 = vrot.slane %v777_v32, %v738_v15 }
  0x3e   : > { %700 = vmatpush1.bf16.msra.mxu0 %v1027_v52 }
  0x3f   : > { %701 = vmatprep.subr.bf16.mxu0 %v1028_v53 }
  0x42   : > { %702 = vmatpush1.bf16.msra.mxu0 %v1030_v54 }
  0x43   : > { %703 = vmatprep.subr.bf16.mxu0 %v1031_v55 }
  0x46   : > { %704 = vmatpush1.bf16.msra.mxu0 %v1033_v56 }
  0x47   : > { %705 = vmatprep.subr.bf16.mxu0 %v1034_v57 }
  0x4a   : > { %706 = vmatpush1.bf16.msra.mxu0 %v1036_v58 }
  0x4b   : > { %707 = vmatprep.subr.bf16.mxu0 %v1037_v59 }
  0x4e   : > { %708 = vmatpush1.bf16.msra.mxu0 %v1039_v60 }
  0x4f   : > { %709 = vmatprep.subr.bf16.mxu0 %v1040_v61 }
  0x52   : > { %710 = vmatpush1.bf16.msra.mxu0 %v1042_v62 }
  0x53   : > { %711 = vmatprep.subr.bf16.mxu0 %v1043_v63 }
  0x56   : > { %712 = vmatpush1.bf16.msra.mxu0 %v1045_v0 }
  0x57   : > { %713 = vmatprep.subr.bf16.mxu0 %v1046_v1 }
  0x5a   : > { %714 = vmatpush1.bf16.msra.mxu0 %v1048_v2 }
  0x5b   : > { %715 = vmatprep.subr.bf16.mxu0 %v1049_v3 }
  0x5e   : > { %716 = vmatpush1.bf16.msra.mxu0 %v1051_v4 }
  0x5f   : > { %717 = vmatprep.subr.bf16.mxu0 %v1052_v5 }
  0x62   : > { %718 = vmatpush1.bf16.msra.mxu0 %v1054_v6 }
  0x63   : > { %719 = vmatprep.subr.bf16.mxu0 %v1055_v7 }
  0x66   : > { %720 = vmatpush1.bf16.msra.mxu0 %v1057_v8 }
  0x69   : > { %722 = vmatmul.mubr.bf16.vlgmr.msra.gmra.mrb[0].mxu0 %v519_v9 }
 0x13c   : > { %v723_v14 = vpop.f32.mrb[0].mxu0 }
 0x13d   : > { %v725_v18 = vpop.f32.mrb[1].mxu0 }
 0x13e   : > { %v732_v20 = vcombine.low %v723_v14, %v725_v18  ;;  %v727_v21 = vpop.f32.mrb[2].mxu0 }
 0x13f   : > { %v728_v24 = vpop.f32.mrb[3].mxu0 }
 0x140   : > { %v739_v25 = vrot.slane %v732_v20, %v738_v15 }
 0x142   : > { %v741_v28 = vadd.f32 %v739_v25, %v470_v22 }
 0x144   : > { %742 = vst [vmem:[#allocation2] sm:$0xf] %v741_v28 }
 0x14b   : > { %v746_v35 = vld [vmem:[#allocation2] sm:$0xf] }
 0x14c   : > { %v766_v36 = vmul.f32 %v764_v33, %v746_v35 }
 0x14e   : > { %v786_v37 = vadd.f32 %v784_v34, %v766_v36 }
 0x150   : > { %787 = vst [vmem:[%s463_s25] sm:$0xf] %v786_v37 }
 0x151 PF: > { %s14_s19 = sadd.s32 1, %s1096_s19   ;;  %s1323_s15 = smov %s1084_s16 }
 0x152   : > { %p11_p10 = scmp.ge.s32.totalorder %s14_s19, 4   ;;  %s1324_s16 = smov %s1161_s23 }
 0x153   : > { %s1325_s17 = smov %s1092_s18  ;;  %s1326_s18 = smov %s1328_s20 }
 0x154   :  { %13 = sbr.rel (!%p11_p10) target bundleno = 3 (0x3), region = 126 }

// kernel: fish_classifier_forward.41
= control target key start
LH: loop header
LB: loop body
LE: loop exit
PB: predicated region body
PF: predicated region fallthrough
CT: control target
= control target key end

     0   :  { %s1254_s18 = smov 0   ;;  %s1256_s19 = smov 0   ;;  %s1494_s0 = inlined_call_operand.vmem [shape: bf16[2,4608], index: 0, kind: input, shape index: {}]   ;;  %s1495_s1 = inlined_call_operand.vmem [shape: bf16[4608,512], index: 1, kind: input, shape index: {}]   ;;  %s1496_s2 = inlined_call_operand.vmem [shape: f32[1,512], index: 2, kind: input, shape index: {}]   ;;  %s1497_s3 = inlined_call_operand.vmem [shape: f32[1,512], index: 3, kind: input, shape index: {}]   ;;  %s1498_s4 = inlined_call_operand.vmem [shape: f32[2,512], index: 4, kind: input, shape index: {}]   ;;  %s1499_s5 = inlined_call_operand.vmem [shape: f32[2,512], index: 5, kind: output, shape index: {}]  }
   0x1   :  { %s1258_s20 = smov 0   ;;  %s1260_s21 = smov 0  }
   0x2   :  { %s1262_s22 = smov 0   ;;  %s1264_s23 = smov 0  }
   0x3   :  { %s1266_s24 = smov 0  }
   0x4 LB: > { %s27_s25 = sadd.s32 1, %s1211_s22  ;;  %s30_s26 = sadd.s32 1, %s1215_s23  ;;  %s1219_s24 = sphi %s1266_s24, %s15_s24   ;;  %s1215_s23 = sphi %s1264_s23, %s1506_s23   ;;  %s1211_s22 = sphi %s1262_s22, %s1505_s22   ;;  %s1207_s21 = sphi %s1260_s21, %s1504_s21   ;;  %s1203_s20 = sphi %s1258_s20, %s1503_s20   ;;  %s1199_s19 = sphi %s1256_s19, %s1502_s19   ;;  %s1195_s18 = sphi %s1254_s18, %s1501_s18  }
   0x5   : > { %p28_p0 = scmp.ge.s32.totalorder %s27_s25, 18  ;;  %p78_p1 = scmp.ne.s32.totalorder %s1199_s19, %s1195_s18 }
   0x6   : > { %p79_p2 = scmp.eq.s32.totalorder %s1219_s24, 0  ;;  %s71_s30 = sadd.s32 1, %s1199_s19 }
   0x7   : > { %s1508_s25 = smov (%p28_p0, %s27_s25), 0  ;;  %s1510_s26 = smov (!%p28_p0, %s30_s26), %s1215_s23 }
   0x8   : > { %p80_p3 = por %p79_p2, %p78_p1  ;;  %p32_p4 = scmp.ge.s32.totalorder %s1510_s26, 2 }
   0x9   : > { %s66_s27 = ssub.s32 %s1211_s22, %s1508_s25  ;;  %p1005_p6 = scmp.ge.s32.totalorder %s1219_s24, 36 }
   0xa   : > { %s1512_s26 = smov (%p32_p4, %s1510_s26), 0 }
   0xb   : > { %s67_s28 = ssub.s32 %s1215_s23, %s1512_s26  ;;  %212 = sbr.rel (%p1005_p6) target bundleno = 41 (0x29), region = 16 }
   0xc   : > { %s68_s29 = sor.u32 %s67_s28, %s66_s27 }
   0xd   : > { %p69_p5 = scmp.eq.s32.totalorder %s68_s29, 0 }
   0xf   : > { %s1305_s6 = scalar_select %p69_p5, %s1199_s19, %s71_s30  }
  0x12   : > { %227 = sbr.rel (!%p80_p3) target bundleno = 41 (0x29), region = 24  ;;  %s229_s7 = sand.u32 (%p80_p3), 1, %s1199_s19  }
  0x13   : > { %s1008_s8 = sshll.u32 (%p80_p3), %s1215_s23, 1  ;;  %s1006_s9 = sshll.u32 (%p80_p3), %s229_s7, 8 }
  0x14   : > { %s1057_s10 = sshll.u32 (%p80_p3), %s1211_s22, 7  ;;  %s1319_s16 = scalar_lea.vmem (%p80_p3), [#allocation3], %s1006_s9 }
  0x15   : > { %s235_s11 = sadd.s32 (%p80_p3), %s1057_s10, %s1008_s8 }
  0x16   : > { %s1010_s12 = sshll.u32 (%p80_p3), %s235_s11, 2 }
  0x17   : > { %s1314_s15 = scalar_lea.vmem (%p80_p3), %s1495_s1, %s1010_s12 }
  0x18   : > { %v327_v0 = vld [vmem:[%s1314_s15] sm:$0xff] (%p80_p3)  ;;  %v329_v1 = vld [vmem:[%s1314_s15 + $0x10] sm:$0xff] (%p80_p3) }
  0x19   : > { %v331_v2 = vld [vmem:[%s1314_s15 + $0x20] sm:$0xff]  ;;  %328 = vst [vmem:[%s1319_s16] sm:$0xff] %v327_v0  ;;  %330 = vst [vmem:[%s1319_s16 + $0x8] sm:$0xff] %v329_v1  ;;  %v333_v3 = vld [vmem:[%s1314_s15 + $0x30] sm:$0xff] }
  0x1a   : > { %332 = vst [vmem:[%s1319_s16 + $0x10] sm:$0xff] %v331_v2  ;;  %v335_v4 = vld [vmem:[%s1314_s15 + $0x40] sm:$0xff]  ;;  %v337_v5 = vld [vmem:[%s1314_s15 + $0x50] sm:$0xff]  ;;  %334 = vst [vmem:[%s1319_s16 + $0x18] sm:$0xff] %v333_v3 }
  0x1b   : > { %336 = vst [vmem:[%s1319_s16 + $0x20] sm:$0xff] %v335_v4  ;;  %338 = vst [vmem:[%s1319_s16 + $0x28] sm:$0xff] %v337_v5  ;;  %v339_v6 = vld [vmem:[%s1314_s15 + $0x60] sm:$0xff]  ;;  %v341_v7 = vld [vmem:[%s1314_s15 + $0x70] sm:$0xff] }
  0x1c   : > { %v343_v8 = vld [vmem:[%s1314_s15 + $0x80] sm:$0xff]  ;;  %340 = vst [vmem:[%s1319_s16 + $0x30] sm:$0xff] %v339_v6  ;;  %342 = vst [vmem:[%s1319_s16 + $0x38] sm:$0xff] %v341_v7  ;;  %v345_v9 = vld [vmem:[%s1314_s15 + $0x90] sm:$0xff] }
  0x1d   : > { %344 = vst [vmem:[%s1319_s16 + $0x40] sm:$0xff] %v343_v8  ;;  %v347_v10 = vld [vmem:[%s1314_s15 + $0xa0] sm:$0xff]  ;;  %v349_v11 = vld [vmem:[%s1314_s15 + $0xb0] sm:$0xff]  ;;  %346 = vst [vmem:[%s1319_s16 + $0x48] sm:$0xff] %v345_v9 }
  0x1e   : > { %348 = vst [vmem:[%s1319_s16 + $0x50] sm:$0xff] %v347_v10  ;;  %350 = vst [vmem:[%s1319_s16 + $0x58] sm:$0xff] %v349_v11  ;;  %v351_v12 = vld [vmem:[%s1314_s15 + $0xc0] sm:$0xff]  ;;  %v353_v13 = vld [vmem:[%s1314_s15 + $0xd0] sm:$0xff] }
  0x1f   : > { %v355_v14 = vld [vmem:[%s1314_s15 + $0xe0] sm:$0xff]  ;;  %352 = vst [vmem:[%s1319_s16 + $0x60] sm:$0xff] %v351_v12  ;;  %354 = vst [vmem:[%s1319_s16 + $0x68] sm:$0xff] %v353_v13  ;;  %v357_v15 = vld [vmem:[%s1314_s15 + $0xf0] sm:$0xff] }
  0x20   : > { %356 = vst [vmem:[%s1319_s16 + $0x70] sm:$0xff] %v355_v14  ;;  %v359_v16 = vld [vmem:[%s1314_s15 + $0x100] sm:$0xff]  ;;  %v361_v17 = vld [vmem:[%s1314_s15 + $0x110] sm:$0xff]  ;;  %358 = vst [vmem:[%s1319_s16 + $0x78] sm:$0xff] %v357_v15 }
  0x21   : > { %360 = vst [vmem:[%s1319_s16 + $0x80] sm:$0xff] %v359_v16  ;;  %362 = vst [vmem:[%s1319_s16 + $0x88] sm:$0xff] %v361_v17  ;;  %v363_v18 = vld [vmem:[%s1314_s15 + $0x120] sm:$0xff]  ;;  %v365_v19 = vld [vmem:[%s1314_s15 + $0x130] sm:$0xff] }
  0x22   : > { %v367_v20 = vld [vmem:[%s1314_s15 + $0x140] sm:$0xff]  ;;  %364 = vst [vmem:[%s1319_s16 + $0x90] sm:$0xff] %v363_v18  ;;  %366 = vst [vmem:[%s1319_s16 + $0x98] sm:$0xff] %v365_v19  ;;  %v369_v21 = vld [vmem:[%s1314_s15 + $0x150] sm:$0xff] }
  0x23   : > { %368 = vst [vmem:[%s1319_s16 + $0xa0] sm:$0xff] %v367_v20  ;;  %v371_v22 = vld [vmem:[%s1314_s15 + $0x160] sm:$0xff]  ;;  %v373_v23 = vld [vmem:[%s1314_s15 + $0x170] sm:$0xff]  ;;  %370 = vst [vmem:[%s1319_s16 + $0xa8] sm:$0xff] %v369_v21 }
  0x24   : > { %372 = vst [vmem:[%s1319_s16 + $0xb0] sm:$0xff] %v371_v22  ;;  %374 = vst [vmem:[%s1319_s16 + $0xb8] sm:$0xff] %v373_v23  ;;  %v375_v24 = vld [vmem:[%s1314_s15 + $0x180] sm:$0xff]  ;;  %v377_v25 = vld [vmem:[%s1314_s15 + $0x190] sm:$0xff] }
  0x25   : > { %v379_v26 = vld [vmem:[%s1314_s15 + $0x1a0] sm:$0xff]  ;;  %376 = vst [vmem:[%s1319_s16 + $0xc0] sm:$0xff] %v375_v24  ;;  %378 = vst [vmem:[%s1319_s16 + $0xc8] sm:$0xff] %v377_v25  ;;  %v381_v27 = vld [vmem:[%s1314_s15 + $0x1b0] sm:$0xff] }
  0x26   : > { %380 = vst [vmem:[%s1319_s16 + $0xd0] sm:$0xff] %v379_v26  ;;  %v383_v28 = vld [vmem:[%s1314_s15 + $0x1c0] sm:$0xff]  ;;  %v385_v29 = vld [vmem:[%s1314_s15 + $0x1d0] sm:$0xff]  ;;  %382 = vst [vmem:[%s1319_s16 + $0xd8] sm:$0xff] %v381_v27 }
  0x27   : > { %384 = vst [vmem:[%s1319_s16 + $0xe0] sm:$0xff] %v383_v28  ;;  %386 = vst [vmem:[%s1319_s16 + $0xe8] sm:$0xff] %v385_v29  ;;  %v387_v30 = vld [vmem:[%s1314_s15 + $0x1e0] sm:$0xff]  ;;  %v389_v31 = vld [vmem:[%s1314_s15 + $0x1f0] sm:$0xff] }
  0x28   : > { %388 = vst [vmem:[%s1319_s16 + $0xf0] sm:$0xff] %v387_v30  ;;  %390 = vst [vmem:[%s1319_s16 + $0xf8] sm:$0xff] %v389_v31 }
  0x29 PF: > { %p1011_p7 = scmp.ge.s32.totalorder %s1219_s24, 1  ;;  %p424_p8 = scmp.lt.s32.totalorder %s1219_s24, 37 }
  0x2b   : > { %p425_p9 = pnand %p1011_p7, %p424_p8 }
  0x2c   : > { %s431_s17 = sand.u32 (!%p425_p9), 1, %s1195_s18   ;;  %s1013_s27 = sshll.u32 (!%p425_p9), %s1203_s20, 1 }
  0x2d   : > { %428 = sbr.rel (%p425_p9) target bundleno = 362 (0x16a), region = 74  ;;  %s1012_s28 = sshll.u32 (!%p425_p9), %s431_s17, 8 }
  0x2e   : > { %p490_p10 = scmp.lt.s32.totalorder (!%p425_p9), %s1013_s27, 35  ;;  %s1014_s29 = sshll.u32 (!%p425_p9), %s1207_s21, 1 }
  0x2f   : > { %p499_p11 = scmp.lt.s32.totalorder (!%p425_p9), %s1014_s29, 3  ;;  %s1414_s8 = scalar_lea.vmem (!%p425_p9), [#allocation3], %s1012_s28 }
  0x30   : > { %p1020_p12 = scmp.ne.s32.totalorder (!%p425_p9), %s1203_s20, 0 }
  0x34   : > { %s1514_s27 = smov (!%p490_p10, %s1013_s27), 35  ;;  %s1516_s29 = smov (!%p499_p11, %s1014_s29), 3 }
  0x35   : > { %s501_s18 = scalar_lea.vmem %s1496_s2, %s1516_s29  ;;  %s506_s21 = scalar_lea.vmem %s1497_s3, %s1516_s29  ;;  %v1221_v32 = vmov (!%p1020_p12), 0.0  }
  0x36   : > { %s1017_s13 = sshll.u32 %s1516_s29, 1  ;;  %531 = sbr.rel (%p1020_p12) target bundleno = 61 (0x3d), region = 82  ;;  %532 = vst [vmem:[#allocation2] sm:$0xf] (!%p1020_p12), %v1221_v32 }
  0x37   : > { %s1407_s16 = scalar_lea.vmem %s1498_s4, %s1017_s13  ;;  %s1412_s7 = scalar_lea.vmem %s1499_s5, %s1017_s13 }
  0x3d PF: > { %v1117_v33 = vld [vmem:[%s1414_s8 + $0x4] ss:$8 sps:$4 sm:$0xff]   ;;  %v1119_v34 = vld [vmem:[%s1414_s8] ss:$8 sps:$4 sm:$0xff]   ;;  %v1120_v35 = vld [vmem:[%s1414_s8 + $0x14] ss:$8 sps:$4 sm:$0xff]   ;;  %v579_v44 = vlaneseq  ;;  %s1500_s10 = scalar_lea.vmem %s1494_s0, %s1514_s27 }
  0x3e   : > { %752 = vmatprep.subr.bf16.mxu0 %v1117_v33  ;;  %v1122_v36 = vld [vmem:[%s1414_s8 + $0x10] ss:$8 sps:$4 sm:$0xff]   ;;  %v1123_v37 = vld [vmem:[%s1414_s8 + $0x24] ss:$8 sps:$4 sm:$0xff]   ;;  %v1125_v38 = vld [vmem:[%s1414_s8 + $0x20] ss:$8 sps:$4 sm:$0xff]  }
  0x3f   : > { %753 = vmatpush1.bf16.msra.mxu0 %v1119_v34  ;;  %v1126_v39 = vld [vmem:[%s1414_s8 + $0x34] ss:$8 sps:$4 sm:$0xff]   ;;  %v1128_v40 = vld [vmem:[%s1414_s8 + $0x30] ss:$8 sps:$4 sm:$0xff]   ;;  %v1129_v41 = vld [vmem:[%s1414_s8 + $0x44] ss:$8 sps:$4 sm:$0xff]  }
  0x40   : > { %754 = vmatprep.subr.bf16.mxu0 %v1120_v35  ;;  %v1222_v42 = vmov 1966171168   ;;  %v1131_v45 = vld [vmem:[%s1414_s8 + $0x40] ss:$8 sps:$4 sm:$0xff]   ;;  %v1132_v46 = vld [vmem:[%s1414_s8 + $0x54] ss:$8 sps:$4 sm:$0xff]  }
  0x41   : > { %v577_v43 = vunpack.c.l.s4 %v1222_v42  ;;  %v1428_v48 = vshrl.u32 %v579_v44, 7  ;;  %v1134_v49 = vld [vmem:[%s1414_s8 + $0x50] ss:$8 sps:$4 sm:$0xff]   ;;  %v1135_v50 = vld [vmem:[%s1414_s8 + $0x64] ss:$8 sps:$4 sm:$0xff]   ;;  %p1054_p13 = scmp.ne.s32.totalorder %s1203_s20, 17 }
  0x42   : > { %v1021_v52 = vld.sshfl [vmem:[%s1500_s10] sm:$0x11 pattern:$0x75316420]  ;;  %v1137_v54 = vld [vmem:[%s1414_s8 + $0x60] ss:$8 sps:$4 sm:$0xff]  }
  0x43   : > { %755 = vmatpush1.bf16.msra.mxu0 %v1122_v36  ;;  %v578_v47 = vunpack.c.0.s8 %v577_v43  ;;  %v575_v53 = vcombine.high %v1021_v52, %v1021_v52  ;;  %v1138_v55 = vld [vmem:[%s1414_s8 + $0x74] ss:$8 sps:$4 sm:$0xff]   ;;  %v1140_v57 = vld [vmem:[%s1414_s8 + $0x70] ss:$8 sps:$4 sm:$0xff]   ;;  %v1141_v58 = vld [vmem:[%s1414_s8 + $0x84] ss:$8 sps:$4 sm:$0xff]  }
  0x44   : > { %756 = vmatprep.subr.bf16.mxu0 %v1123_v37  ;;  %v1143_v59 = vld [vmem:[%s1414_s8 + $0x80] ss:$8 sps:$4 sm:$0xff]   ;;  %v1144_v60 = vld [vmem:[%s1414_s8 + $0x94] ss:$8 sps:$4 sm:$0xff]   ;;  %v1146_v61 = vld [vmem:[%s1414_s8 + $0x90] ss:$8 sps:$4 sm:$0xff]  }
  0x45   : > { %v581_v51 = vsub.s32 %v578_v47, %v1428_v48  ;;  %v1147_v62 = vld [vmem:[%s1414_s8 + $0xa4] ss:$8 sps:$4 sm:$0xff]   ;;  %v1149_v63 = vld [vmem:[%s1414_s8 + $0xa0] ss:$8 sps:$4 sm:$0xff]   ;;  %v1150_v0 = vld [vmem:[%s1414_s8 + $0xb4] ss:$8 sps:$4 sm:$0xff]  }
  0x46   : > { %v1152_v1 = vld [vmem:[%s1414_s8 + $0xb0] ss:$8 sps:$4 sm:$0xff]   ;;  %v1153_v2 = vld [vmem:[%s1414_s8 + $0xc4] ss:$8 sps:$4 sm:$0xff]   ;;  %v1155_v3 = vld [vmem:[%s1414_s8 + $0xc0] ss:$8 sps:$4 sm:$0xff]  }
  0x47   : > { %757 = vmatpush1.bf16.msra.mxu0 %v1125_v38  ;;  %v589_v56 = vrot.slane %v575_v53, %v581_v51  ;;  %v1156_v4 = vld [vmem:[%s1414_s8 + $0xd4] ss:$8 sps:$4 sm:$0xff]   ;;  %v1158_v5 = vld [vmem:[%s1414_s8 + $0xd0] ss:$8 sps:$4 sm:$0xff]   ;;  %v1159_v6 = vld [vmem:[%s1414_s8 + $0xe4] ss:$8 sps:$4 sm:$0xff]   ;;  %v582_v10 = vrot.slane %v1021_v52, %v581_v51 }
  0x48   : > { %758 = vmatprep.subr.bf16.mxu0 %v1126_v39  ;;  %v1161_v7 = vld [vmem:[%s1414_s8 + $0xe0] ss:$8 sps:$4 sm:$0xff]   ;;  %v1162_v8 = vld [vmem:[%s1414_s8 + $0xf4] ss:$8 sps:$4 sm:$0xff]   ;;  %v1164_v9 = vld [vmem:[%s1414_s8 + $0xf0] ss:$8 sps:$4 sm:$0xff]  }
  0x49   : > { %784 = vmatprep.mubr.bf16.mxu0 %v589_v56  ;;  %v1223_v11 = vmov 1983009808   ;;  %v533_v19 = vld [vmem:[#allocation2] sm:$0xf]  ;;  %v815_v24 = vsub.s32 (!%p1054_p13), 0, %v1428_v48  ;;  %v819_v25 = vsub.s32 (!%p1054_p13), 1, %v1428_v48 }
  0x4a   : > { %v797_v12 = vunpack.c.l.s4 %v1223_v11  ;;  %v811_v23 = vld [vmem:[%s501_s18] sm:$0x3] (!%p1054_p13) }
  0x4b   : > { %759 = vmatpush1.bf16.msra.mxu0 %v1128_v40  ;;  %v831_v26 = vld [vmem:[%s506_s21] sm:$0x3] (!%p1054_p13)  ;;  %v816_v27 = vrot.slane (!%p1054_p13), %v811_v23, %v815_v24  ;;  %v820_v28 = vrot.slane (!%p1054_p13), %v811_v23, %v819_v25 }
  0x4c   : > { %760 = vmatprep.subr.bf16.mxu0 %v1129_v41  ;;  %v798_v13 = vunpack.c.0.s8 %v797_v12  ;;  %v836_v29 = vrot.slane (!%p1054_p13), %v831_v26, %v815_v24  ;;  %v840_v30 = vrot.slane (!%p1054_p13), %v831_v26, %v819_v25  ;;  %v851_v37 = vld [vmem:[%s1407_s16] sm:$0xf] (!%p1054_p13) }
  0x4d   : > { %v821_v31 = vcombine.low (!%p1054_p13), %v816_v27, %v820_v28 }
  0x4e   : > { %v801_v15 = vsub.s32 %v798_v13, %v1428_v48  ;;  %v841_v32 = vcombine.low (!%p1054_p13), %v836_v29, %v840_v30 }
  0x4f   : > { %761 = vmatpush1.bf16.msra.mxu0 %v1131_v45 }
  0x50   : > { %762 = vmatprep.subr.bf16.mxu0 %v1132_v46  ;;  %v828_v34 = vrot.slane (!%p1054_p13), %v821_v31, %v801_v15  ;;  %v848_v35 = vrot.slane (!%p1054_p13), %v841_v32, %v801_v15 }
  0x53   : > { %763 = vmatpush1.bf16.msra.mxu0 %v1134_v49 }
  0x54   : > { %764 = vmatprep.subr.bf16.mxu0 %v1135_v50 }
  0x57   : > { %765 = vmatpush1.bf16.msra.mxu0 %v1137_v54 }
  0x58   : > { %766 = vmatprep.subr.bf16.mxu0 %v1138_v55 }
  0x5b   : > { %767 = vmatpush1.bf16.msra.mxu0 %v1140_v57 }
  0x5c   : > { %768 = vmatprep.subr.bf16.mxu0 %v1141_v58 }
  0x5f   : > { %769 = vmatpush1.bf16.msra.mxu0 %v1143_v59 }
  0x60   : > { %770 = vmatprep.subr.bf16.mxu0 %v1144_v60 }
  0x63   : > { %771 = vmatpush1.bf16.msra.mxu0 %v1146_v61 }
  0x64   : > { %772 = vmatprep.subr.bf16.mxu0 %v1147_v62 }
  0x67   : > { %773 = vmatpush1.bf16.msra.mxu0 %v1149_v63 }
  0x68   : > { %774 = vmatprep.subr.bf16.mxu0 %v1150_v0 }
  0x6b   : > { %775 = vmatpush1.bf16.msra.mxu0 %v1152_v1 }
  0x6c   : > { %776 = vmatprep.subr.bf16.mxu0 %v1153_v2 }
  0x6f   : > { %777 = vmatpush1.bf16.msra.mxu0 %v1155_v3 }
  0x70   : > { %778 = vmatprep.subr.bf16.mxu0 %v1156_v4 }
  0x73   : > { %779 = vmatpush1.bf16.msra.mxu0 %v1158_v5 }
  0x74   : > { %780 = vmatprep.subr.bf16.mxu0 %v1159_v6 }
  0x77   : > { %781 = vmatpush1.bf16.msra.mxu0 %v1161_v7 }
  0x78   : > { %782 = vmatprep.subr.bf16.mxu0 %v1162_v8 }
  0x7b   : > { %783 = vmatpush1.bf16.msra.mxu0 %v1164_v9 }
  0x7e   : > { %785 = vmatmul.mubr.bf16.vlgmr.msra.gmra.mrb[0].mxu0 %v582_v10 }
 0x151   : > { %v786_v14 = vpop.f32.mrb[0].mxu0 }
 0x152   : > { %v788_v16 = vpop.f32.mrb[1].mxu0 }
 0x153   : > { %v795_v17 = vcombine.low %v786_v14, %v788_v16  ;;  %v790_v18 = vpop.f32.mrb[2].mxu0  ;;  %809 = sbr.rel (%p1054_p13) target bundleno = 362 (0x16a), region = 86 }
 0x154   : > { %v791_v20 = vpop.f32.mrb[3].mxu0 }
 0x155   : > { %v802_v21 = vrot.slane %v795_v17, %v801_v15 }
 0x157   : > { %v804_v22 = vadd.f32 %v802_v21, %v533_v19 }
 0x159   : > { %805 = vst [vmem:[#allocation2] sm:$0xf] %v804_v22 }
 0x160   : > { %v810_v33 = vld [vmem:[#allocation2] sm:$0xf] }
 0x161   : > { %v830_v36 = vmul.f32 %v828_v34, %v810_v33 }
 0x163   : > { %v850_v38 = vadd.f32 %v848_v35, %v830_v36 }
 0x165   : > { %v852_v39 = vadd.f32 %v851_v37, %v850_v38 }
 0x167   : > { %v853_v40 = vmax.f32 %v852_v39, 0.0 }
 0x169   : > { %854 = vst [vmem:[%s1412_s7] sm:$0xf] %v853_v40 }
 0x16a PF: > { %s15_s24 = sadd.s32 1, %s1219_s24   ;;  %s1501_s18 = smov %s1199_s19 }
 0x16b   : > { %p12_p0 = scmp.ge.s32.totalorder %s15_s24, 38   ;;  %s1502_s19 = smov %s1305_s6 }
 0x16c   : > { %s1503_s20 = smov %s1211_s22  ;;  %s1504_s21 = smov %s1215_s23 }
 0x16d   : > { %s1505_s22 = smov %s1508_s25  ;;  %s1506_s23 = smov %s1512_s26 }
 0x16e   :  { %14 = sbr.rel (!%p12_p0) target bundleno = 4 (0x4), region = 133 }

// kernel: fish_classifier_forward.42
= control target key start
LH: loop header
LB: loop body
LE: loop exit
PB: predicated region body
PF: predicated region fallthrough
CT: control target
= control target key end

     0   :  { %s1164_s15 = smov 0   ;;  %s1166_s16 = smov 0   ;;  %s1398_s0 = inlined_call_operand.vmem [shape: bf16[2,4608], index: 0, kind: input, shape index: {}]   ;;  %s1399_s1 = inlined_call_operand.vmem [shape: bf16[4608,512], index: 1, kind: input, shape index: {}]   ;;  %s1400_s2 = inlined_call_operand.vmem [shape: f32[1,512], index: 2, kind: input, shape index: {}]   ;;  %s1401_s3 = inlined_call_operand.vmem [shape: f32[1,512], index: 3, kind: input, shape index: {}]   ;;  %s1402_s4 = inlined_call_operand.vmem [shape: f32[2,512], index: 4, kind: output, shape index: {}]  }
   0x1   :  { %s1168_s17 = smov 0   ;;  %s1170_s18 = smov 0  }
   0x2   :  { %s1172_s19 = smov 0   ;;  %s1174_s20 = smov 0  }
   0x3   :  { %s1176_s21 = smov 0  }
   0x4 LB: > { %s26_s22 = sadd.s32 1, %s1126_s19  ;;  %s29_s23 = sadd.s32 1, %s1130_s20  ;;  %s1134_s21 = sphi %s1176_s21, %s14_s21   ;;  %s1130_s20 = sphi %s1174_s20, %s1408_s20   ;;  %s1126_s19 = sphi %s1172_s19, %s1407_s19   ;;  %s1122_s18 = sphi %s1170_s18, %s1406_s18   ;;  %s1118_s17 = sphi %s1168_s17, %s1405_s17   ;;  %s1114_s16 = sphi %s1166_s16, %s1404_s16   ;;  %s1110_s15 = sphi %s1164_s15, %s1403_s15  }
   0x5   : > { %p27_p0 = scmp.ge.s32.totalorder %s26_s22, 18  ;;  %p77_p1 = scmp.ne.s32.totalorder %s1114_s16, %s1110_s15 }
   0x6   : > { %p78_p2 = scmp.eq.s32.totalorder %s1134_s21, 0  ;;  %s70_s27 = sadd.s32 1, %s1114_s16 }
   0x7   : > { %s1410_s22 = smov (%p27_p0, %s26_s22), 0  ;;  %s1412_s23 = smov (!%p27_p0, %s29_s23), %s1130_s20 }
   0x8   : > { %p79_p3 = por %p78_p2, %p77_p1  ;;  %p31_p4 = scmp.ge.s32.totalorder %s1412_s23, 2 }
   0x9   : > { %s65_s24 = ssub.s32 %s1126_s19, %s1410_s22  ;;  %p922_p6 = scmp.ge.s32.totalorder %s1134_s21, 36 }
   0xa   : > { %s1414_s23 = smov (%p31_p4, %s1412_s23), 0 }
   0xb   : > { %s66_s25 = ssub.s32 %s1130_s20, %s1414_s23  ;;  %183 = sbr.rel (%p922_p6) target bundleno = 41 (0x29), region = 16 }
   0xc   : > { %s67_s26 = sor.u32 %s66_s25, %s65_s24 }
   0xd   : > { %p68_p5 = scmp.eq.s32.totalorder %s67_s26, 0 }
   0xf   : > { %s1215_s28 = scalar_select %p68_p5, %s1114_s16, %s70_s27  }
  0x12   : > { %198 = sbr.rel (!%p79_p3) target bundleno = 41 (0x29), region = 24  ;;  %s200_s29 = sand.u32 (%p79_p3), 1, %s1114_s16  }
  0x13   : > { %s925_s30 = sshll.u32 (%p79_p3), %s1130_s20, 1  ;;  %s923_s5 = sshll.u32 (%p79_p3), %s200_s29, 8 }
  0x14   : > { %s972_s6 = sshll.u32 (%p79_p3), %s1126_s19, 7  ;;  %s1229_s12 = scalar_lea.vmem (%p79_p3), [#allocation3], %s923_s5 }
  0x15   : > { %s206_s7 = sadd.s32 (%p79_p3), %s972_s6, %s925_s30 }
  0x16   : > { %s927_s8 = sshll.u32 (%p79_p3), %s206_s7, 2 }
  0x17   : > { %s1224_s11 = scalar_lea.vmem (%p79_p3), %s1399_s1, %s927_s8 }
  0x18   : > { %v298_v0 = vld [vmem:[%s1224_s11] sm:$0xff] (%p79_p3)  ;;  %v300_v1 = vld [vmem:[%s1224_s11 + $0x10] sm:$0xff] (%p79_p3) }
  0x19   : > { %v302_v2 = vld [vmem:[%s1224_s11 + $0x20] sm:$0xff]  ;;  %299 = vst [vmem:[%s1229_s12] sm:$0xff] %v298_v0  ;;  %301 = vst [vmem:[%s1229_s12 + $0x8] sm:$0xff] %v300_v1  ;;  %v304_v3 = vld [vmem:[%s1224_s11 + $0x30] sm:$0xff] }
  0x1a   : > { %303 = vst [vmem:[%s1229_s12 + $0x10] sm:$0xff] %v302_v2  ;;  %v306_v4 = vld [vmem:[%s1224_s11 + $0x40] sm:$0xff]  ;;  %v308_v5 = vld [vmem:[%s1224_s11 + $0x50] sm:$0xff]  ;;  %305 = vst [vmem:[%s1229_s12 + $0x18] sm:$0xff] %v304_v3 }
  0x1b   : > { %307 = vst [vmem:[%s1229_s12 + $0x20] sm:$0xff] %v306_v4  ;;  %309 = vst [vmem:[%s1229_s12 + $0x28] sm:$0xff] %v308_v5  ;;  %v310_v6 = vld [vmem:[%s1224_s11 + $0x60] sm:$0xff]  ;;  %v312_v7 = vld [vmem:[%s1224_s11 + $0x70] sm:$0xff] }
  0x1c   : > { %v314_v8 = vld [vmem:[%s1224_s11 + $0x80] sm:$0xff]  ;;  %311 = vst [vmem:[%s1229_s12 + $0x30] sm:$0xff] %v310_v6  ;;  %313 = vst [vmem:[%s1229_s12 + $0x38] sm:$0xff] %v312_v7  ;;  %v316_v9 = vld [vmem:[%s1224_s11 + $0x90] sm:$0xff] }
  0x1d   : > { %315 = vst [vmem:[%s1229_s12 + $0x40] sm:$0xff] %v314_v8  ;;  %v318_v10 = vld [vmem:[%s1224_s11 + $0xa0] sm:$0xff]  ;;  %v320_v11 = vld [vmem:[%s1224_s11 + $0xb0] sm:$0xff]  ;;  %317 = vst [vmem:[%s1229_s12 + $0x48] sm:$0xff] %v316_v9 }
  0x1e   : > { %319 = vst [vmem:[%s1229_s12 + $0x50] sm:$0xff] %v318_v10  ;;  %321 = vst [vmem:[%s1229_s12 + $0x58] sm:$0xff] %v320_v11  ;;  %v322_v12 = vld [vmem:[%s1224_s11 + $0xc0] sm:$0xff]  ;;  %v324_v13 = vld [vmem:[%s1224_s11 + $0xd0] sm:$0xff] }
  0x1f   : > { %v326_v14 = vld [vmem:[%s1224_s11 + $0xe0] sm:$0xff]  ;;  %323 = vst [vmem:[%s1229_s12 + $0x60] sm:$0xff] %v322_v12  ;;  %325 = vst [vmem:[%s1229_s12 + $0x68] sm:$0xff] %v324_v13  ;;  %v328_v15 = vld [vmem:[%s1224_s11 + $0xf0] sm:$0xff] }
  0x20   : > { %327 = vst [vmem:[%s1229_s12 + $0x70] sm:$0xff] %v326_v14  ;;  %v330_v16 = vld [vmem:[%s1224_s11 + $0x100] sm:$0xff]  ;;  %v332_v17 = vld [vmem:[%s1224_s11 + $0x110] sm:$0xff]  ;;  %329 = vst [vmem:[%s1229_s12 + $0x78] sm:$0xff] %v328_v15 }
  0x21   : > { %331 = vst [vmem:[%s1229_s12 + $0x80] sm:$0xff] %v330_v16  ;;  %333 = vst [vmem:[%s1229_s12 + $0x88] sm:$0xff] %v332_v17  ;;  %v334_v18 = vld [vmem:[%s1224_s11 + $0x120] sm:$0xff]  ;;  %v336_v19 = vld [vmem:[%s1224_s11 + $0x130] sm:$0xff] }
  0x22   : > { %v338_v20 = vld [vmem:[%s1224_s11 + $0x140] sm:$0xff]  ;;  %335 = vst [vmem:[%s1229_s12 + $0x90] sm:$0xff] %v334_v18  ;;  %337 = vst [vmem:[%s1229_s12 + $0x98] sm:$0xff] %v336_v19  ;;  %v340_v21 = vld [vmem:[%s1224_s11 + $0x150] sm:$0xff] }
  0x23   : > { %339 = vst [vmem:[%s1229_s12 + $0xa0] sm:$0xff] %v338_v20  ;;  %v342_v22 = vld [vmem:[%s1224_s11 + $0x160] sm:$0xff]  ;;  %v344_v23 = vld [vmem:[%s1224_s11 + $0x170] sm:$0xff]  ;;  %341 = vst [vmem:[%s1229_s12 + $0xa8] sm:$0xff] %v340_v21 }
  0x24   : > { %343 = vst [vmem:[%s1229_s12 + $0xb0] sm:$0xff] %v342_v22  ;;  %345 = vst [vmem:[%s1229_s12 + $0xb8] sm:$0xff] %v344_v23  ;;  %v346_v24 = vld [vmem:[%s1224_s11 + $0x180] sm:$0xff]  ;;  %v348_v25 = vld [vmem:[%s1224_s11 + $0x190] sm:$0xff] }
  0x25   : > { %v350_v26 = vld [vmem:[%s1224_s11 + $0x1a0] sm:$0xff]  ;;  %347 = vst [vmem:[%s1229_s12 + $0xc0] sm:$0xff] %v346_v24  ;;  %349 = vst [vmem:[%s1229_s12 + $0xc8] sm:$0xff] %v348_v25  ;;  %v352_v27 = vld [vmem:[%s1224_s11 + $0x1b0] sm:$0xff] }
  0x26   : > { %351 = vst [vmem:[%s1229_s12 + $0xd0] sm:$0xff] %v350_v26  ;;  %v354_v28 = vld [vmem:[%s1224_s11 + $0x1c0] sm:$0xff]  ;;  %v356_v29 = vld [vmem:[%s1224_s11 + $0x1d0] sm:$0xff]  ;;  %353 = vst [vmem:[%s1229_s12 + $0xd8] sm:$0xff] %v352_v27 }
  0x27   : > { %355 = vst [vmem:[%s1229_s12 + $0xe0] sm:$0xff] %v354_v28  ;;  %357 = vst [vmem:[%s1229_s12 + $0xe8] sm:$0xff] %v356_v29  ;;  %v358_v30 = vld [vmem:[%s1224_s11 + $0x1e0] sm:$0xff]  ;;  %v360_v31 = vld [vmem:[%s1224_s11 + $0x1f0] sm:$0xff] }
  0x28   : > { %359 = vst [vmem:[%s1229_s12 + $0xf0] sm:$0xff] %v358_v30  ;;  %361 = vst [vmem:[%s1229_s12 + $0xf8] sm:$0xff] %v360_v31 }
  0x29 PF: > { %p928_p7 = scmp.ge.s32.totalorder %s1134_s21, 1  ;;  %p382_p8 = scmp.lt.s32.totalorder %s1134_s21, 37 }
  0x2b   : > { %p383_p9 = pnand %p928_p7, %p382_p8 }
  0x2c   : > { %s389_s13 = sand.u32 (!%p383_p9), 1, %s1110_s15   ;;  %s930_s14 = sshll.u32 (!%p383_p9), %s1118_s17, 1 }
  0x2d   : > { %386 = sbr.rel (%p383_p9) target bundleno = 361 (0x169), region = 70  ;;  %s929_s24 = sshll.u32 (!%p383_p9), %s389_s13, 8 }
  0x2e   : > { %p437_p10 = scmp.lt.s32.totalorder (!%p383_p9), %s930_s14, 35  ;;  %s931_s25 = sshll.u32 (!%p383_p9), %s1122_s18, 1 }
  0x2f   : > { %p446_p11 = scmp.lt.s32.totalorder (!%p383_p9), %s931_s25, 3  ;;  %s1319_s12 = scalar_lea.vmem (!%p383_p9), [#allocation3], %s929_s24 }
  0x30   : > { %p935_p12 = scmp.ne.s32.totalorder (!%p383_p9), %s1118_s17, 0 }
  0x34   : > { %s1416_s14 = smov (!%p437_p10, %s930_s14), 35  ;;  %s1418_s25 = smov (!%p446_p11, %s931_s25), 3 }
  0x35   : > { %s441_s29 = scalar_lea.vmem %s1398_s0, %s1416_s14  ;;  %s448_s15 = scalar_lea.vmem %s1400_s2, %s1418_s25  ;;  %v1136_v32 = vmov (!%p935_p12), 0.0  }
  0x36   : > { %s453_s18 = scalar_lea.vmem %s1401_s3, %s1418_s25  ;;  %s934_s8 = sshll.u32 %s1418_s25, 1  ;;  %469 = vst [vmem:[#allocation2] sm:$0xf] (!%p935_p12), %v1136_v32 }
  0x37   : > { %s1317_s11 = scalar_lea.vmem %s1402_s4, %s934_s8  ;;  %468 = sbr.rel (%p935_p12) target bundleno = 62 (0x3e), region = 78 }
  0x3e PF: > { %v1032_v33 = vld [vmem:[%s1319_s12 + $0x4] ss:$8 sps:$4 sm:$0xff]   ;;  %v1034_v34 = vld [vmem:[%s1319_s12] ss:$8 sps:$4 sm:$0xff]   ;;  %v1035_v35 = vld [vmem:[%s1319_s12 + $0x14] ss:$8 sps:$4 sm:$0xff]   ;;  %v516_v44 = vlaneseq }
  0x3f   : > { %689 = vmatprep.subr.bf16.mxu0 %v1032_v33  ;;  %v1037_v36 = vld [vmem:[%s1319_s12 + $0x10] ss:$8 sps:$4 sm:$0xff]   ;;  %v1038_v37 = vld [vmem:[%s1319_s12 + $0x24] ss:$8 sps:$4 sm:$0xff]   ;;  %v1040_v38 = vld [vmem:[%s1319_s12 + $0x20] ss:$8 sps:$4 sm:$0xff]  }
  0x40   : > { %690 = vmatpush1.bf16.msra.mxu0 %v1034_v34  ;;  %v1041_v39 = vld [vmem:[%s1319_s12 + $0x34] ss:$8 sps:$4 sm:$0xff]   ;;  %v1043_v40 = vld [vmem:[%s1319_s12 + $0x30] ss:$8 sps:$4 sm:$0xff]   ;;  %v1044_v41 = vld [vmem:[%s1319_s12 + $0x44] ss:$8 sps:$4 sm:$0xff]  }
  0x41   : > { %691 = vmatprep.subr.bf16.mxu0 %v1035_v35  ;;  %v1137_v42 = vmov 1966171168   ;;  %v1046_v45 = vld [vmem:[%s1319_s12 + $0x40] ss:$8 sps:$4 sm:$0xff]   ;;  %v1047_v46 = vld [vmem:[%s1319_s12 + $0x54] ss:$8 sps:$4 sm:$0xff]  }
  0x42   : > { %v514_v43 = vunpack.c.l.s4 %v1137_v42  ;;  %v1333_v48 = vshrl.u32 %v516_v44, 7  ;;  %v1049_v49 = vld [vmem:[%s1319_s12 + $0x50] ss:$8 sps:$4 sm:$0xff]   ;;  %v1050_v50 = vld [vmem:[%s1319_s12 + $0x64] ss:$8 sps:$4 sm:$0xff]   ;;  %p969_p13 = scmp.ne.s32.totalorder %s1118_s17, 17 }
  0x43   : > { %v936_v52 = vld.sshfl [vmem:[%s441_s29] sm:$0x11 pattern:$0x75316420]  ;;  %v1052_v54 = vld [vmem:[%s1319_s12 + $0x60] ss:$8 sps:$4 sm:$0xff]  }
  0x44   : > { %692 = vmatpush1.bf16.msra.mxu0 %v1037_v36  ;;  %v515_v47 = vunpack.c.0.s8 %v514_v43  ;;  %v512_v53 = vcombine.high %v936_v52, %v936_v52  ;;  %v1053_v55 = vld [vmem:[%s1319_s12 + $0x74] ss:$8 sps:$4 sm:$0xff]   ;;  %v1055_v57 = vld [vmem:[%s1319_s12 + $0x70] ss:$8 sps:$4 sm:$0xff]   ;;  %v1056_v58 = vld [vmem:[%s1319_s12 + $0x84] ss:$8 sps:$4 sm:$0xff]  }
  0x45   : > { %693 = vmatprep.subr.bf16.mxu0 %v1038_v37  ;;  %v1058_v59 = vld [vmem:[%s1319_s12 + $0x80] ss:$8 sps:$4 sm:$0xff]   ;;  %v1059_v60 = vld [vmem:[%s1319_s12 + $0x94] ss:$8 sps:$4 sm:$0xff]   ;;  %v1061_v61 = vld [vmem:[%s1319_s12 + $0x90] ss:$8 sps:$4 sm:$0xff]  }
  0x46   : > { %v518_v51 = vsub.s32 %v515_v47, %v1333_v48  ;;  %v1062_v62 = vld [vmem:[%s1319_s12 + $0xa4] ss:$8 sps:$4 sm:$0xff]   ;;  %v1064_v63 = vld [vmem:[%s1319_s12 + $0xa0] ss:$8 sps:$4 sm:$0xff]   ;;  %v1065_v0 = vld [vmem:[%s1319_s12 + $0xb4] ss:$8 sps:$4 sm:$0xff]  }
  0x47   : > { %v1067_v1 = vld [vmem:[%s1319_s12 + $0xb0] ss:$8 sps:$4 sm:$0xff]   ;;  %v1068_v2 = vld [vmem:[%s1319_s12 + $0xc4] ss:$8 sps:$4 sm:$0xff]   ;;  %v1070_v3 = vld [vmem:[%s1319_s12 + $0xc0] ss:$8 sps:$4 sm:$0xff]  }
  0x48   : > { %694 = vmatpush1.bf16.msra.mxu0 %v1040_v38  ;;  %v526_v56 = vrot.slane %v512_v53, %v518_v51  ;;  %v1071_v4 = vld [vmem:[%s1319_s12 + $0xd4] ss:$8 sps:$4 sm:$0xff]   ;;  %v1073_v5 = vld [vmem:[%s1319_s12 + $0xd0] ss:$8 sps:$4 sm:$0xff]   ;;  %v1074_v6 = vld [vmem:[%s1319_s12 + $0xe4] ss:$8 sps:$4 sm:$0xff]   ;;  %v519_v10 = vrot.slane %v936_v52, %v518_v51 }
  0x49   : > { %695 = vmatprep.subr.bf16.mxu0 %v1041_v39  ;;  %v1076_v7 = vld [vmem:[%s1319_s12 + $0xe0] ss:$8 sps:$4 sm:$0xff]   ;;  %v1077_v8 = vld [vmem:[%s1319_s12 + $0xf4] ss:$8 sps:$4 sm:$0xff]   ;;  %v1079_v9 = vld [vmem:[%s1319_s12 + $0xf0] ss:$8 sps:$4 sm:$0xff]  }
  0x4a   : > { %721 = vmatprep.mubr.bf16.mxu0 %v526_v56  ;;  %v1138_v11 = vmov 1983009808   ;;  %v470_v19 = vld [vmem:[#allocation2] sm:$0xf]  ;;  %v752_v24 = vsub.s32 (!%p969_p13), 0, %v1333_v48  ;;  %v756_v25 = vsub.s32 (!%p969_p13), 1, %v1333_v48 }
  0x4b   : > { %v734_v12 = vunpack.c.l.s4 %v1138_v11  ;;  %v748_v23 = vld [vmem:[%s448_s15] sm:$0x3] (!%p969_p13) }
  0x4c   : > { %696 = vmatpush1.bf16.msra.mxu0 %v1043_v40  ;;  %v768_v26 = vld [vmem:[%s453_s18] sm:$0x3] (!%p969_p13)  ;;  %v753_v27 = vrot.slane (!%p969_p13), %v748_v23, %v752_v24  ;;  %v757_v28 = vrot.slane (!%p969_p13), %v748_v23, %v756_v25 }
  0x4d   : > { %697 = vmatprep.subr.bf16.mxu0 %v1044_v41  ;;  %v735_v13 = vunpack.c.0.s8 %v734_v12  ;;  %v773_v29 = vrot.slane (!%p969_p13), %v768_v26, %v752_v24  ;;  %v777_v30 = vrot.slane (!%p969_p13), %v768_v26, %v756_v25 }
  0x4e   : > { %v758_v31 = vcombine.low (!%p969_p13), %v753_v27, %v757_v28 }
  0x4f   : > { %v738_v15 = vsub.s32 %v735_v13, %v1333_v48  ;;  %v778_v32 = vcombine.low (!%p969_p13), %v773_v29, %v777_v30 }
  0x50   : > { %698 = vmatpush1.bf16.msra.mxu0 %v1046_v45 }
  0x51   : > { %699 = vmatprep.subr.bf16.mxu0 %v1047_v46  ;;  %v765_v34 = vrot.slane (!%p969_p13), %v758_v31, %v738_v15  ;;  %v785_v35 = vrot.slane (!%p969_p13), %v778_v32, %v738_v15 }
  0x54   : > { %700 = vmatpush1.bf16.msra.mxu0 %v1049_v49 }
  0x55   : > { %701 = vmatprep.subr.bf16.mxu0 %v1050_v50 }
  0x58   : > { %702 = vmatpush1.bf16.msra.mxu0 %v1052_v54 }
  0x59   : > { %703 = vmatprep.subr.bf16.mxu0 %v1053_v55 }
  0x5c   : > { %704 = vmatpush1.bf16.msra.mxu0 %v1055_v57 }
  0x5d   : > { %705 = vmatprep.subr.bf16.mxu0 %v1056_v58 }
  0x60   : > { %706 = vmatpush1.bf16.msra.mxu0 %v1058_v59 }
  0x61   : > { %707 = vmatprep.subr.bf16.mxu0 %v1059_v60 }
  0x64   : > { %708 = vmatpush1.bf16.msra.mxu0 %v1061_v61 }
  0x65   : > { %709 = vmatprep.subr.bf16.mxu0 %v1062_v62 }
  0x68   : > { %710 = vmatpush1.bf16.msra.mxu0 %v1064_v63 }
  0x69   : > { %711 = vmatprep.subr.bf16.mxu0 %v1065_v0 }
  0x6c   : > { %712 = vmatpush1.bf16.msra.mxu0 %v1067_v1 }
  0x6d   : > { %713 = vmatprep.subr.bf16.mxu0 %v1068_v2 }
  0x70   : > { %714 = vmatpush1.bf16.msra.mxu0 %v1070_v3 }
  0x71   : > { %715 = vmatprep.subr.bf16.mxu0 %v1071_v4 }
  0x74   : > { %716 = vmatpush1.bf16.msra.mxu0 %v1073_v5 }
  0x75   : > { %717 = vmatprep.subr.bf16.mxu0 %v1074_v6 }
  0x78   : > { %718 = vmatpush1.bf16.msra.mxu0 %v1076_v7 }
  0x79   : > { %719 = vmatprep.subr.bf16.mxu0 %v1077_v8 }
  0x7c   : > { %720 = vmatpush1.bf16.msra.mxu0 %v1079_v9 }
  0x7f   : > { %722 = vmatmul.mubr.bf16.vlgmr.msra.gmra.mrb[0].mxu0 %v519_v10 }
 0x152   : > { %v723_v14 = vpop.f32.mrb[0].mxu0 }
 0x153   : > { %v725_v16 = vpop.f32.mrb[1].mxu0 }
 0x154   : > { %v732_v17 = vcombine.low %v723_v14, %v725_v16  ;;  %v727_v18 = vpop.f32.mrb[2].mxu0  ;;  %746 = sbr.rel (%p969_p13) target bundleno = 361 (0x169), region = 82 }
 0x155   : > { %v728_v20 = vpop.f32.mrb[3].mxu0 }
 0x156   : > { %v739_v21 = vrot.slane %v732_v17, %v738_v15 }
 0x158   : > { %v741_v22 = vadd.f32 %v739_v21, %v470_v19 }
 0x15a   : > { %742 = vst [vmem:[#allocation2] sm:$0xf] %v741_v22 }
 0x161   : > { %v747_v33 = vld [vmem:[#allocation2] sm:$0xf] }
 0x162   : > { %v767_v36 = vmul.f32 %v765_v34, %v747_v33 }
 0x164   : > { %v787_v37 = vadd.f32 %v785_v35, %v767_v36 }
 0x166   : > { %v788_v38 = vmax.f32 %v787_v37, 0.0 }
 0x168   : > { %789 = vst [vmem:[%s1317_s11] sm:$0xf] %v788_v38 }
 0x169 PF: > { %s14_s21 = sadd.s32 1, %s1134_s21   ;;  %s1403_s15 = smov %s1114_s16 }
 0x16a   : > { %p11_p0 = scmp.ge.s32.totalorder %s14_s21, 38   ;;  %s1404_s16 = smov %s1215_s28 }
 0x16b   : > { %s1405_s17 = smov %s1126_s19  ;;  %s1406_s18 = smov %s1130_s20 }
 0x16c   : > { %s1407_s19 = smov %s1410_s22  ;;  %s1408_s20 = smov %s1414_s23 }
 0x16d   :  { %13 = sbr.rel (!%p11_p0) target bundleno = 4 (0x4), region = 126 }

// kernel: fish_classifier_forward.44
= control target key start
LH: loop header
LB: loop body
LE: loop exit
PB: predicated region body
PF: predicated region fallthrough
CT: control target
= control target key end

     0   :  { %s46_s0 = inlined_call_operand.vmem [shape: f32[2,1,512], index: 0, kind: input, shape index: {}]   ;;  %s47_s1 = inlined_call_operand.vmem [shape: f32[2,512], index: 1, kind: output, shape index: {}]  }
   0x1   :  { %v29_v0 = vld [vmem:[%s46_s0] sm:$0xff]  }
   0x2   :  { %28 = vst.sshfl [vmem:[%s47_s1] sm:$0xff pattern:$0x75316420] %v29_v0 }

// kernel: fish_classifier_forward.45
= control target key start
LH: loop header
LB: loop body
LE: loop exit
PB: predicated region body
PF: predicated region fallthrough
CT: control target
= control target key end

     0   :  { %9 = vsyncpa [#allocation4], 0  ;;  %s804_s15 = smov 0   ;;  %s806_s16 = smov 0   ;;  %s899_s0 = inlined_call_operand.vmem [shape: bf16[2,512], index: 0, kind: input, shape index: {}]   ;;  %s900_s1 = inlined_call_operand.vmem [shape: bf16[512,5], index: 1, kind: input, shape index: {}]   ;;  %s901_s2 = inlined_call_operand.vmem [shape: f32[1,5], index: 2, kind: input, shape index: {}]   ;;  %s902_s3 = inlined_call_operand.vmem [shape: f32[1,5], index: 3, kind: input, shape index: {}]   ;;  %s903_s4 = inlined_call_operand.hbm [shape: f32[2,5], index: 4, kind: output, shape index: {}]  }
   0x1   :  { %s808_s17 = smov 0  }
   0x2 LB: > { %s617_s18 = sadd.s32 4294967295, %s774_s17   ;;  %s27_s19 = sadd.s32 1, %s770_s16  ;;  %s774_s17 = sphi %s808_s17, %s15_s17   ;;  %s770_s16 = sphi %s806_s16, %s906_s16   ;;  %s766_s15 = sphi %s804_s15, %s905_s15  }
   0x3   : > { %p28_p0 = scmp.ge.s32.totalorder %s27_s19, 2  ;;  %p622_p1 = scmp.ge.s32.totalorder %s774_s17, 1 }
   0x4   : > { %p222_p2 = scmp.lt.s32.totalorder %s774_s17, 3 }
   0x5   : > { %s908_s19 = smov (%p28_p0, %s27_s19), 0 }
   0x6   : > { %p223_p3 = pnand %p622_p1, %p222_p2 }
   0x7   : > { %s623_s20 = sshll.u32 (!%p223_p3), %s766_s15, 1  ;;  %s624_s21 = sshll.u32 (!%p223_p3), %s766_s15, 5 }
   0x8   : > { %226 = sbr.rel (%p223_p3) target bundleno = 312 (0x138), region = 36  ;;  %p263_p4 = scmp.lt.s32.totalorder (!%p223_p3), %s623_s20, 3 }
   0x9   : > { %p270_p5 = scmp.lt.s32.totalorder (!%p223_p3), %s624_s21, 63  ;;  %p626_p6 = scmp.ne.s32.totalorder (!%p223_p3), %s766_s15, 0 }
   0xf   : > { %s910_s20 = smov (!%p263_p4, %s623_s20), 3  ;;  %s912_s21 = smov (!%p270_p5, %s624_s21), 63 }
  0x10   : > { %s267_s24 = scalar_lea.vmem %s899_s0, %s910_s20  ;;  %s625_s25 = sshll.u32 %s912_s21, 2  ;;  %vm289_vm0 = vcmask (!%p626_p6), 33792   ;;  %v776_v0 = vmov (!%p626_p6), 0.0  }
  0x11   : > { %s836_s28 = scalar_lea.vmem %s900_s1, %s625_s25  ;;  %288 = sbr.rel (%p626_p6) target bundleno = 24 (0x18), region = 40  ;;  %290 = vst.msk [vmem:[#allocation2] sm:$0x3] (!%p626_p6), %vm289_vm0, %v776_v0 }
  0x18 PF: > { %v706_v1 = vld [vmem:[%s836_s28 + $0x40] sm:$0xff]   ;;  %v708_v3 = vld [vmem:[%s836_s28 + $0x48] sm:$0xff]   ;;  %v710_v5 = vld [vmem:[%s836_s28 + $0x50] sm:$0xff]   ;;  %v337_v10 = vlaneseq  ;;  %v777_v14 = vmov 1966171168   ;;  %vm487_vm1 = vcmask 33792  }
  0x19   : > { %v707_v2 = vld [vmem:[%s836_s28] sm:$0xff]   ;;  %651 = vmatprep.subr.bf16.mxu0 %v706_v1  ;;  %v709_v4 = vld [vmem:[%s836_s28 + $0x8] sm:$0xff]   ;;  %v711_v6 = vld [vmem:[%s836_s28 + $0x10] sm:$0xff]   ;;  %v335_v15 = vunpack.c.l.s4 %v777_v14  ;;  %p644_p7 = scmp.ne.s32.totalorder %s766_s15, 1 }
  0x1a   : > { %652 = vmatpush3.bf16.msra.mxu0 %v707_v2  ;;  %v712_v7 = vld [vmem:[%s836_s28 + $0x58] sm:$0xff]   ;;  %v714_v9 = vld [vmem:[%s836_s28 + $0x60] sm:$0xff]   ;;  %v716_v12 = vld [vmem:[%s836_s28 + $0x68] sm:$0xff]   ;;  %v338_v16 = vshrl.u32 %v337_v10, 7 }
  0x1b   : > { %653 = vmatprep.subr.bf16.mxu0 %v708_v3  ;;  %v713_v8 = vld [vmem:[%s836_s28 + $0x18] sm:$0xff]   ;;  %v715_v11 = vld [vmem:[%s836_s28 + $0x20] sm:$0xff]   ;;  %v717_v17 = vld [vmem:[%s836_s28 + $0x28] sm:$0xff]   ;;  %v336_v19 = vunpack.c.0.s8 %v335_v15 }
  0x1c   : > { %v627_v13 = vld.sshfl [vmem:[%s267_s24] sm:$0x11 pattern:$0x75316420]  ;;  %v718_v20 = vld [vmem:[%s836_s28 + $0x70] sm:$0xff]   ;;  %v720_v24 = vld [vmem:[%s836_s28 + $0x78] sm:$0xff]  }
  0x1d   : > { %v333_v18 = vcombine.high %v627_v13, %v627_v13  ;;  %v339_v21 = vsub.s32 %v336_v19, %v338_v16  ;;  %v719_v22 = vld [vmem:[%s836_s28 + $0x30] sm:$0xff]   ;;  %v721_v25 = vld [vmem:[%s836_s28 + $0x38] sm:$0xff]   ;;  %v291_v28 = vld [vmem:[#allocation2] sm:$0x3] }
  0x1e   : > { %654 = vmatpush3.bf16.msra.mxu0 %v709_v4  ;;  %v645_v35 = vld [vmem:[%s901_s2] ss:$0 sm:$0xff] (!%p644_p7) }
  0x1f   : > { %655 = vmatprep.subr.bf16.mxu0 %v710_v5  ;;  %v347_v23 = vrot.slane %v333_v18, %v339_v21  ;;  %v340_v26 = vrot.slane %v627_v13, %v339_v21  ;;  %v646_v36 = vld [vmem:[%s902_s3] ss:$0 sm:$0xff] (!%p644_p7) }
  0x21   : > { %478 = vmatprep.mubr.bf16.mxu0 %v347_v23 }
  0x22   : > { %656 = vmatpush3.bf16.msra.mxu0 %v711_v6 }
  0x23   : > { %657 = vmatprep.subr.bf16.mxu0 %v712_v7 }
  0x26   : > { %658 = vmatpush3.bf16.msra.mxu0 %v713_v8 }
  0x27   : > { %659 = vmatprep.subr.bf16.mxu0 %v714_v9 }
  0x2a   : > { %660 = vmatpush3.bf16.msra.mxu0 %v715_v11 }
  0x2b   : > { %661 = vmatprep.subr.bf16.mxu0 %v716_v12 }
  0x2e   : > { %662 = vmatpush3.bf16.msra.mxu0 %v717_v17 }
  0x2f   : > { %663 = vmatprep.subr.bf16.mxu0 %v718_v20 }
  0x32   : > { %664 = vmatpush3.bf16.msra.mxu0 %v719_v22 }
  0x33   : > { %665 = vmatprep.subr.bf16.mxu0 %v720_v24 }
  0x36   : > { %666 = vmatpush3.bf16.msra.mxu0 %v721_v25 }
  0x39   : > { %479 = vmatmul.mubr.bf16.vlgmr.msra.gmra.mrb[0].mxu0 %v340_v26 }
 0x10c   : > { %v667_v27 = vpop.f32.mrb[0].mxu0  ;;  %492 = sbr.rel (%p644_p7) target bundleno = 287 (0x11f), region = 44 }
 0x10d   : > { %v668_v29 = vpop.f32.mrb[1].mxu0 }
 0x10e   : > { %v669_v30 = vadd.f32 %v668_v29, %v667_v27  ;;  %v670_v31 = vpop.f32.mrb[2].mxu0 }
 0x10f   : > { %v671_v32 = vpop.f32.mrb[3].mxu0 }
 0x110   : > { %v486_v33 = vadd.f32 %v669_v30, %v291_v28 }
 0x112   : > { %488 = vst.msk [vmem:[#allocation2] sm:$0x3] %vm487_vm1, %v486_v33 }
 0x119   : > { %v493_v34 = vld [vmem:[#allocation2] sm:$0x3] }
 0x11a   : > { %v501_v37 = vmul.f32 %v645_v35, %v493_v34 }
 0x11c   : > { %v509_v38 = vadd.f32 %v646_v36, %v501_v37 }
 0x11e   : > { %510 = vst.msk [vmem:[#allocation3] sm:$0x3] %vm487_vm1, %v509_v38 }
 0x11f PF: > { %p864_p8 = scmp.eq.s32.totalorder %s617_s18, 1  ;;  %s778_s8 = smov [#allocation3]  }
 0x120   : > { %s521_s9 = sshll.u32 %s778_s8, 4  ;;  %s522_s9 = int_to_ptr.vmem [resolvable:$true] %s521_s9 }
 0x121   : > { %s722_s10 = scalar_lea.vmem %s522_s9, 32  ;;  %p729_p12 = scmp.lt.s32.totalorder %s522_s9, %s522_s9 }
 0x122   : > { %p723_p9 = scmp.ne.s32.totalorder %s522_s9, %s722_s10  ;;  %p730_p13 = scmp.lt.s32.totalorder %s722_s10, %s722_s10 }
 0x124   : > { %p724_p10 = pnand %p723_p9, %p864_p8  ;;  %p731_p0 = por %p730_p13, %p729_p12 }
 0x126   : > { %p725_p11 = pneg %p724_p10 }
 0x128   : > { %p732_p1 = pnand %p731_p0, %p725_p11 }
 0x12a   : > { %735 = shalt.err (!%p732_p1)
}
 0x12b   : > { %s736_s13 = scalar_lea.hbm %s903_s4, 32 }
 0x12c   : > { %p737_p2 = scmp.ne.s32.totalorder %s903_s4, %s736_s13  ;;  %p742_p5 = scmp.lt.u32.totalorder %s736_s13, %s903_s4 }
 0x12e   : > { %p738_p3 = pnand %p737_p2, %p864_p8 }
 0x130   : > { %p739_p4 = pneg %p738_p3 }
 0x132   : > { %p744_p6 = pnand %p742_p5, %p739_p4 }
 0x134   : > { %747 = shalt.err (!%p744_p6)
}
 0x135   : > { %674 = dma.vmem_to_hbm [thread:$0]  (%p864_p8), %s522_s9, 32, %s903_s4, [#allocation4]  }
 0x136   : > { %761 = dma.done.wait (%p864_p8), [#allocation4], 32  }
 0x137   : > { %763 = vsyncadd (%p864_p8), [#allocation4], 4294967264 }
 0x138 PF: > { %s15_s17 = sadd.s32 1, %s774_s17   ;;  %s905_s15 = smov %s770_s16 }
 0x139   : > { %p12_p7 = scmp.ge.s32.totalorder %s15_s17, 4   ;;  %s906_s16 = smov %s908_s19 }
 0x13b   :  { %14 = sbr.rel (!%p12_p7) target bundleno = 2 (0x2), region = 81 }
 0x142   :  { %534 = vsyncpa [#allocation4], 1 }
 0x143   :  { %536 = vsyncpa [#allocation4 + $0x1], 1 }

</bundles_post_ra>
